<compile_context>
chip_gen: v5e
topology: v5e:2x2
jax: 0.10.0
libtpu: 0.0.40
codegen_flags: <defaults>
</compile_context>

<pallas_src>
from math import prod

import jax
import jax.numpy as jnp
from jax.experimental import pallas as pl
from jax.experimental.pallas import tpu as pltpu

EPS = 1e-5          # nn.BatchNorm2d default eps
LANE = 128          # TPU lane width
ROW_TARGET = 128    # target output pixels per in-kernel (vreg) accumulator chunk


def _round_up(x, m):
    return ((x + m - 1) // m) * m


def _row_chunk(Ho, Wo):
    rc = max(1, ROW_TARGET // max(Wo, 1))
    return min(rc, Ho)


def _nbytes(shape, dtype):
    return prod(shape) * jnp.dtype(dtype).itemsize


def _compiler_params(tile_bytes):
    # Double-buffered tiles + headroom; clamp so it stays compile-safe on v7x
    # (64 MiB physical) while allowing bigger tiles on v5e/v6e (128 MiB).
    limit = int(min(max(2 * tile_bytes + (8 << 20), 32 << 20), 100 << 20))
    return pltpu.CompilerParams(
        dimension_semantics=("parallel",),
        vmem_limit_bytes=limit,
    )


# ---------------------------------------------------------------------------
# Kernel 1: 3x3 conv (9 shifted matmuls) + per-image BN stats
#           (+ optional fused 1x1 stride-2 shortcut)
# ---------------------------------------------------------------------------
def _make_conv1_kernel(tap_map, n_phases, Ho, Wo, Cin_p, Cout_p, row_chunk,
                       fuse_shortcut):
    def kernel(*refs):
        i = 0
        phase_refs = refs[i:i + n_phases]; i += n_phases
        w_ref = refs[i]; i += 1
        if fuse_shortcut:
            w3_ref = refs[i]; i += 1
            b3_ref = refs[i]; i += 1
        y_ref = refs[i]; i += 1
        st_ref = refs[i]; i += 1
        res_ref = refs[i] if fuse_shortcut else None

        s_acc = jnp.zeros((1, Cout_p), jnp.float32)
        ss_acc = jnp.zeros((1, Cout_p), jnp.float32)

        # Row-chunked accumulation: the chunk accumulator stays in vregs, the
        # 9-tap loop is the inner loop, y is written once per chunk, and BN
        # partial sums are folded from the same vreg accumulator.
        for r0 in range(0, Ho, row_chunk):
            rc = min(row_chunk, Ho - r0)
            acc = jnp.zeros((rc * Wo, Cout_p), jnp.float32)
            for k, (ph, oy, ox) in enumerate(tap_map):
                slab = phase_refs[ph][r0 + oy:r0 + oy + rc, ox:ox + Wo, :]
                slab = slab.reshape(rc * Wo, Cin_p)
                acc = acc + jnp.dot(slab, w_ref[k],
                                    preferred_element_type=jnp.float32)
            s_acc = s_acc + jnp.sum(acc, axis=0, keepdims=True)
            ss_acc = ss_acc + jnp.sum(acc * acc, axis=0, keepdims=True)
            y_ref[r0:r0 + rc, :, :] = (
                acc.reshape(rc, Wo, Cout_p).astype(y_ref.dtype))

            if fuse_shortcut:
                # 1x1 stride-2 shortcut: phase 3 (xpad[1::2, 1::2]) == x[::2, ::2]
                # is already resident in VMEM, so emit it as a second output.
                xs = phase_refs[3][r0:r0 + rc, 0:Wo, :].reshape(rc * Wo, Cin_p)
                res = jnp.dot(xs, w3_ref[...],
                              preferred_element_type=jnp.float32) + b3_ref[...]
                res_ref[r0:r0 + rc, :, :] = (
                    res.reshape(rc, Wo, Cout_p).astype(res_ref.dtype))

        st_ref[...] = jnp.concatenate([s_acc, ss_acc], axis=0)
    return kernel


def conv1_bn_stats(phases, w, Ho, Wo, tap_map, w3=None, b3=None):
    N = phases[0].shape[0]
    Cin_p = phases[0].shape[-1]
    Cout_p = w.shape[-1]
    fuse = w3 is not None
    kernel = _make_conv1_kernel(tap_map, len(phases), Ho, Wo, Cin_p, Cout_p,
                                _row_chunk(Ho, Wo), fuse)

    in_specs = [pl.BlockSpec((None,) + p.shape[1:], lambda n: (n, 0, 0, 0))
                for p in phases]
    in_specs.append(pl.BlockSpec(w.shape, lambda n: (0, 0, 0)))   # resident weights
    inputs = list(phases) + [w]
    if fuse:
        in_specs.append(pl.BlockSpec(w3.shape, lambda n: (0, 0)))
        in_specs.append(pl.BlockSpec(b3.shape, lambda n: (0, 0)))
        inputs += [w3, b3]

    out_specs = [
        pl.BlockSpec((None, Ho, Wo, Cout_p), lambda n: (n, 0, 0, 0)),
        pl.BlockSpec((None, 2, Cout_p), lambda n: (n, 0, 0)),
    ]
    out_shape = [
        jax.ShapeDtypeStruct((N, Ho, Wo, Cout_p), jnp.bfloat16),   # bf16 intermediate
        jax.ShapeDtypeStruct((N, 2, Cout_p), jnp.float32),
    ]
    if fuse:
        out_specs.append(pl.BlockSpec((None, Ho, Wo, Cout_p),
                                      lambda n: (n, 0, 0, 0)))
        out_shape.append(jax.ShapeDtypeStruct((N, Ho, Wo, Cout_p), jnp.bfloat16))

    tile_bytes = sum(_nbytes(p.shape[1:], p.dtype) for p in phases)
    tile_bytes += _nbytes(w.shape, w.dtype)
    if fuse:
        tile_bytes += _nbytes(w3.shape, w3.dtype) + _nbytes(b3.shape, b3.dtype)
    tile_bytes += sum(_nbytes(s.shape[1:], s.dtype) for s in out_shape)

    res = pl.pallas_call(
        kernel,
        grid=(N,),
        in_specs=in_specs,
        out_specs=out_specs,
        out_shape=out_shape,
        compiler_params=_compiler_params(tile_bytes),
    )(*inputs)
    return tuple(res)


# ---------------------------------------------------------------------------
# Kernel 2: bn1 + relu fused into 3x3 conv2 (+ per-image BN stats of conv2)
# ---------------------------------------------------------------------------
def _make_bnrelu_conv2_kernel(Ho, Wo, C, row_chunk):
    def kernel(y1_ref, s_ref, b_ref, w_ref, y2_ref, st_ref, hbuf):
        # bn1 (folded scale/bias) + relu in f32; store bf16 straight into the
        # interior of the spatially padded scratch (no concatenate copies).
        h = jnp.maximum(
            y1_ref[...].astype(jnp.float32) * s_ref[...] + b_ref[...], 0.0)
        # Re-zero only the 1-pixel border each step (cheap, and safe under
        # megacore grid sharding where program_id(0)==0 may not run per-core).
        hbuf[0:1, :, :] = jnp.zeros((1, Wo + 2, C), hbuf.dtype)
        hbuf[Ho + 1:Ho + 2, :, :] = jnp.zeros((1, Wo + 2, C), hbuf.dtype)
        hbuf[:, 0:1, :] = jnp.zeros((Ho + 2, 1, C), hbuf.dtype)
        hbuf[:, Wo + 1:Wo + 2, :] = jnp.zeros((Ho + 2, 1, C), hbuf.dtype)
        hbuf[1:Ho + 1, 1:Wo + 1, :] = h.astype(hbuf.dtype)

        s_acc = jnp.zeros((1, C), jnp.float32)
        ss_acc = jnp.zeros((1, C), jnp.float32)
        for r0 in range(0, Ho, row_chunk):
            rc = min(row_chunk, Ho - r0)
            acc = jnp.zeros((rc * Wo, C), jnp.float32)
            k = 0
            for dy in range(3):
                for dx in range(3):
                    slab = hbuf[r0 + dy:r0 + dy + rc, dx:dx + Wo, :]
                    acc = acc + jnp.dot(slab.reshape(rc * Wo, C), w_ref[k],
                                        preferred_element_type=jnp.float32)
                    k += 1
            s_acc = s_acc + jnp.sum(acc, axis=0, keepdims=True)
            ss_acc = ss_acc + jnp.sum(acc * acc, axis=0, keepdims=True)
            y2_ref[r0:r0 + rc, :, :] = acc.reshape(rc, Wo, C).astype(y2_ref.dtype)
        st_ref[...] = jnp.concatenate([s_acc, ss_acc], axis=0)
    return kernel


def bnrelu_conv2_stats(y1, scale, bias, w):
    N, Ho, Wo, C = y1.shape
    kernel = _make_bnrelu_conv2_kernel(Ho, Wo, C, _row_chunk(Ho, Wo))

    tile_bytes = (_nbytes((Ho, Wo, C), y1.dtype)
                  + _nbytes(w.shape, w.dtype)
                  + 2 * _nbytes((1, 1, C), jnp.float32)
                  + _nbytes((Ho, Wo, C), jnp.bfloat16)
                  + _nbytes((2, C), jnp.float32)
                  + _nbytes((Ho + 2, Wo + 2, C), jnp.bfloat16))

    y2, stats = pl.pallas_call(
        kernel,
        grid=(N,),
        in_specs=[
            pl.BlockSpec((None, Ho, Wo, C), lambda n: (n, 0, 0, 0)),
            pl.BlockSpec((1, 1, C), lambda n: (0, 0, 0)),
            pl.BlockSpec((1, 1, C), lambda n: (0, 0, 0)),
            pl.BlockSpec((9, C, C), lambda n: (0, 0, 0)),          # resident weights
        ],
        out_specs=[
            pl.BlockSpec((None, Ho, Wo, C), lambda n: (n, 0, 0, 0)),
            pl.BlockSpec((None, 2, C), lambda n: (n, 0, 0)),
        ],
        out_shape=[
            jax.ShapeDtypeStruct((N, Ho, Wo, C), jnp.bfloat16),    # bf16 intermediate
            jax.ShapeDtypeStruct((N, 2, C), jnp.float32),
        ],
        scratch_shapes=[pltpu.VMEM((Ho + 2, Wo + 2, C), jnp.bfloat16)],
        compiler_params=_compiler_params(tile_bytes),
    )(y1, scale, bias, w)
    return y2, stats


# ---------------------------------------------------------------------------
# Kernel 3: bn2 + relu + residual add + relu (purely elementwise)
# ---------------------------------------------------------------------------
def _epilogue_kernel(y2_ref, s_ref, b_ref, xres_ref, out_ref):
    bn = jnp.maximum(
        y2_ref[...].astype(jnp.float32) * s_ref[...] + b_ref[...], 0.0)
    out_ref[...] = jnp.maximum(bn + xres_ref[...].astype(jnp.float32), 0.0)


def epilogue(y2, scale, bias, xres):
    N, Ho, Wo, C = y2.shape
    tile_bytes = (_nbytes((Ho, Wo, C), y2.dtype)
                  + _nbytes((Ho, Wo, C), xres.dtype)
                  + 2 * _nbytes((1, 1, C), jnp.float32)
                  + _nbytes((Ho, Wo, C), jnp.float32))
    return pl.pallas_call(
        _epilogue_kernel,
        grid=(N,),
        in_specs=[
            pl.BlockSpec((None, Ho, Wo, C), lambda n: (n, 0, 0, 0)),
            pl.BlockSpec((1, 1, C), lambda n: (0, 0, 0)),
            pl.BlockSpec((1, 1, C), lambda n: (0, 0, 0)),
            pl.BlockSpec((None, Ho, Wo, C), lambda n: (n, 0, 0, 0)),
        ],
        out_specs=pl.BlockSpec((None, Ho, Wo, C), lambda n: (n, 0, 0, 0)),
        out_shape=jax.ShapeDtypeStruct((N, Ho, Wo, C), jnp.float32),
        compiler_params=_compiler_params(tile_bytes),
    )(y2, scale, bias, xres)


# ---------------------------------------------------------------------------
# JAX glue: BN folding, padding / phase extraction, parameter setup, forward
# ---------------------------------------------------------------------------
def _fold_bn(stats, count, gamma, beta):
    """Per-image (sum, sum_sq) -> folded (scale, bias) for y*scale + bias."""
    # TODO(synk): single-pass E[y^2]-mu^2 can cancel in f32 for very large
    #             batches / |mean| >> std; switch to mean-shifted partial sums.
    s = jnp.sum(stats[:, 0, :], axis=0)
    ss = jnp.sum(stats[:, 1, :], axis=0)
    mu = s / count
    var = jnp.maximum(ss / count - mu * mu, 0.0)     # biased (training-mode) var
    scale = gamma * jax.lax.rsqrt(var + EPS)
    bias = beta - mu * scale
    C = scale.shape[0]
    return scale.reshape(1, 1, C), bias.reshape(1, 1, C)


def residual_block_forward(x_nchw, params, same_shape=True):
    x = jnp.transpose(x_nchw.astype(jnp.float32), (0, 2, 3, 1))   # NCHW -> NHWC
    N, H, W, Cin = x.shape
    Cout = params["w1"].shape[-1]
    stride = 1 if same_shape else 2
    C1p = _round_up(Cin, LANE)
    C2p = _round_up(Cout, LANE)

    if same_shape and Cin != Cout:
        raise ValueError("identity shortcut requires in_channel == out_channel")

    # channel-pad the input (lane-dense); spatial pad=1 for conv1
    xp_c = jnp.pad(x, ((0, 0), (0, 0), (0, 0), (0, C1p - Cin)))
    xpad = jnp.pad(xp_c, ((0, 0), (1, 1), (1, 1), (0, 0)))

    if stride == 1:
        Ho, Wo = H, W
        phases = [xpad.astype(jnp.bfloat16)]
        tap_map = [(0, dy, dx) for dy in range(3) for dx in range(3)]
    else:
        Ho = (H - 1) // 2 + 1
        Wo = (W - 1) // 2 + 1
        phases = []
        for p in range(2):
            for q in range(2):
                ph = xpad[:, p::2, q::2, :][:, :Ho + 1, :Wo + 1, :]
                ph = jnp.pad(ph, ((0, 0), (0, Ho + 1 - ph.shape[1]),
                                  (0, Wo + 1 - ph.shape[2]), (0, 0)))
                phases.append(ph.astype(jnp.bfloat16))
        tap_map = [(2 * (dy % 2) + (dx % 2), dy // 2, dx // 2)
                   for dy in range(3) for dx in range(3)]
    # NOTE: Wo that is a multiple of 8 keeps the in-kernel reshapes
    # layout-preserving; other widths stay correct but cost relayout copies.

    # weights (HWIO), channel-padded, flattened to (9, Cin_p, Cout_p), bf16
    w1 = jnp.pad(params["w1"], ((0, 0), (0, 0), (0, C1p - Cin), (0, C2p - Cout)))
    w1 = w1.reshape(9, C1p, C2p).astype(jnp.bfloat16)
    w2 = jnp.pad(params["w2"], ((0, 0), (0, 0), (0, C2p - Cout), (0, C2p - Cout)))
    w2 = w2.reshape(9, C2p, C2p).astype(jnp.bfloat16)

    gamma1 = jnp.pad(params["gamma1"].reshape(-1), (0, C2p - Cout),
                     constant_values=1.0)
    beta1 = jnp.pad(params["beta1"].reshape(-1), (0, C2p - Cout))
    gamma2 = jnp.pad(params["gamma2"].reshape(-1), (0, C2p - Cout),
                     constant_values=1.0)
    beta2 = jnp.pad(params["beta2"].reshape(-1), (0, C2p - Cout))

    count = N * Ho * Wo

    # conv1 (+ per-image batch stats); strided path also fuses the 1x1 shortcut.
    if same_shape:
        y1, stats1 = conv1_bn_stats(phases, w1, Ho, Wo, tap_map)
        xres = xp_c.astype(jnp.bfloat16)
    else:
        w3 = jnp.pad(params["w3"],
                     ((0, C1p - Cin), (0, C2p - Cout))).astype(jnp.bfloat16)
        b3 = jnp.pad(params["b3"].reshape(-1), (0, C2p - Cout)).reshape(1, C2p)
        y1, stats1, xres = conv1_bn_stats(phases, w1, Ho, Wo, tap_map,
                                          w3=w3, b3=b3)
    scale1, bias1 = _fold_bn(stats1, count, gamma1, beta1)

    # bn1 + relu + conv2 (+ per-image batch stats), fold BN2.
    y2, stats2 = bnrelu_conv2_stats(y1, scale1, bias1, w2)
    scale2, bias2 = _fold_bn(stats2, count, gamma2, beta2)

    # epilogue: bn2 + relu + residual add + relu
    out = epilogue(y2, scale2, bias2, xres)
    out = out[:, :, :, :Cout]
    return jnp.transpose(out, (0, 3, 1, 2))                        # NHWC -> NCHW


def init_params(key, in_ch, out_ch, same_shape=True):
    k1, k2, k3, k4 = jax.random.split(key, 4)
    p = {
        "w1": jax.random.normal(k1, (3, 3, in_ch, out_ch), jnp.float32) * 0.1,   # HWIO
        "gamma1": jnp.ones((out_ch,), jnp.float32),
        "beta1": jnp.zeros((out_ch,), jnp.float32),
        "w2": jax.random.normal(k2, (3, 3, out_ch, out_ch), jnp.float32) * 0.1,  # HWIO
        "gamma2": jnp.ones((out_ch,), jnp.float32),
        "beta2": jnp.zeros((out_ch,), jnp.float32),
    }
    if not same_shape:
        p["w3"] = jax.random.normal(k3, (in_ch, out_ch), jnp.float32) * 0.1      # 1x1
        p["b3"] = jax.random.normal(k4, (out_ch,), jnp.float32) * 0.1
    return p


# ---------------------------------------------------------------------------
# Pure-JAX reference (numerical sanity check)
# ---------------------------------------------------------------------------
def ref_forward(x_nchw, params, same_shape=True):
    x = jnp.transpose(x_nchw.astype(jnp.float32), (0, 2, 3, 1))
    stride = 1 if same_shape else 2
    dn = ("NHWC", "HWIO", "NHWC")

    def bn_relu(y, gamma, beta):
        mu = jnp.mean(y, axis=(0, 1, 2), keepdims=True)
        var = jnp.mean((y - mu) ** 2, axis=(0, 1, 2), keepdims=True)
        y = (y - mu) / jnp.sqrt(var + EPS)
        y = y * gamma.reshape(1, 1, 1, -1) + beta.reshape(1, 1, 1, -1)
        return jnp.maximum(y, 0.0)

    out = jax.lax.conv_general_dilated(x, params["w1"], (stride, stride),
                                       ((1, 1), (1, 1)), dimension_numbers=dn)
    out = bn_relu(out, params["gamma1"], params["beta1"])
    out = jax.lax.conv_general_dilated(out, params["w2"], (1, 1),
                                       ((1, 1), (1, 1)), dimension_numbers=dn)
    out = bn_relu(out, params["gamma2"], params["beta2"])
    if not same_shape:
        w3 = params["w3"].reshape(1, 1, *params["w3"].shape)
        x = jax.lax.conv_general_dilated(x, w3, (2, 2), "VALID",
                                         dimension_numbers=dn)
        x = x + params["b3"].reshape(1, 1, 1, -1)
    out = jnp.maximum(x + out, 0.0)
    return jnp.transpose(out, (0, 3, 1, 2))


if __name__ == "__main__":
    key = jax.random.PRNGKey(0)
    kx, kp1, kp2 = jax.random.split(key, 3)
    x = jax.random.normal(kx, (2, 4, 16, 16), jnp.float32)   # NCHW, small

    fwd = jax.jit(residual_block_forward, static_argnames=("same_shape",))

    # Case 1: same_shape=True (stride 1, identity shortcut), in=4, out=4
    p1 = init_params(kp1, 4, 4, same_shape=True)
    y1 = jax.block_until_ready(fwd(x, p1, same_shape=True))
    r1 = ref_forward(x, p1, same_shape=True)
    assert y1.shape == (2, 4, 16, 16)
    assert jnp.allclose(y1, r1, atol=5e-2, rtol=5e-2), \
        float(jnp.max(jnp.abs(y1 - r1)))

    # Case 2: same_shape=False (stride 2, 1x1 conv shortcut), in=4, out=8
    p2 = init_params(kp2, 4, 8, same_shape=False)
    y2 = jax.block_until_ready(fwd(x, p2, same_shape=False))
    r2 = ref_forward(x, p2, same_shape=False)
    assert y2.shape == (2, 8, 8, 8)
    assert jnp.allclose(y2, r2, atol=5e-2, rtol=5e-2), \
        float(jnp.max(jnp.abs(y2 - r2)))

    print("KERNEL_OK")
</pallas_src>

<mosaic_0001>
module attributes {stable_mosaic.version = 11 : i64} {
  func.func @_epilogue_kernel(%arg0: i32, %arg1: memref<1x16x16x128xbf16, #tpu.memory_space<vmem>>, %arg2: memref<1x1x128xf32, #tpu.memory_space<vmem>>, %arg3: memref<1x1x128xf32, #tpu.memory_space<vmem>>, %arg4: memref<1x16x16x128xbf16, #tpu.memory_space<vmem>>, %arg5: memref<1x16x16x128xf32, #tpu.memory_space<vmem>>) attributes {dimension_semantics = [#tpu.dimension_semantics<parallel>], iteration_bounds = array<i64: 2>, scalar_prefetch = 0 : i64, scratch_operands = 0 : i64, tpu.core_type = #tpu.core_type<tc>, window_params = [{transform_indices = @transform_0, window_bounds = array<i64: 1, 16, 16, 128>}, {pipeline_mode = #tpu.pipeline_mode<synchronous>, transform_indices = @transform_1, window_bounds = array<i64: 1, 1, 128>}, {pipeline_mode = #tpu.pipeline_mode<synchronous>, transform_indices = @transform_2, window_bounds = array<i64: 1, 1, 128>}, {transform_indices = @transform_3, window_bounds = array<i64: 1, 16, 16, 128>}, {transform_indices = @transform_4, window_bounds = array<i64: 1, 16, 16, 128>}]} {
    %c0 = arith.constant 0 : index
    %c0_0 = arith.constant 0 : index
    %c0_1 = arith.constant 0 : index
    %c0_2 = arith.constant 0 : index
    %0 = vector.load %arg1[%c0, %c0_0, %c0_1, %c0_2] : memref<1x16x16x128xbf16, #tpu.memory_space<vmem>>, vector<1x16x16x128xbf16>
    %1 = vector.shape_cast %0 : vector<1x16x16x128xbf16> to vector<16x16x128xbf16>
    %2 = arith.extf %1 : vector<16x16x128xbf16> to vector<16x16x128xf32>
    %c0_3 = arith.constant 0 : index
    %c0_4 = arith.constant 0 : index
    %c0_5 = arith.constant 0 : index
    %3 = vector.load %arg2[%c0_3, %c0_4, %c0_5] : memref<1x1x128xf32, #tpu.memory_space<vmem>>, vector<1x1x128xf32>
    %4 = vector.broadcast %3 : vector<1x1x128xf32> to vector<16x16x128xf32>
    %5 = arith.mulf %2, %4 : vector<16x16x128xf32>
    %c0_6 = arith.constant 0 : index
    %c0_7 = arith.constant 0 : index
    %c0_8 = arith.constant 0 : index
    %6 = vector.load %arg3[%c0_6, %c0_7, %c0_8] : memref<1x1x128xf32, #tpu.memory_space<vmem>>, vector<1x1x128xf32>
    %7 = vector.broadcast %6 : vector<1x1x128xf32> to vector<16x16x128xf32>
    %8 = arith.addf %5, %7 : vector<16x16x128xf32>
    %cst = arith.constant 0.000000e+00 : f32
    %9 = vector.broadcast %cst : f32 to vector<16x16x128xf32>
    %10 = arith.maximumf %8, %9 : vector<16x16x128xf32>
    %c0_9 = arith.constant 0 : index
    %c0_10 = arith.constant 0 : index
    %c0_11 = arith.constant 0 : index
    %c0_12 = arith.constant 0 : index
    %11 = vector.load %arg4[%c0_9, %c0_10, %c0_11, %c0_12] : memref<1x16x16x128xbf16, #tpu.memory_space<vmem>>, vector<1x16x16x128xbf16>
    %12 = vector.shape_cast %11 : vector<1x16x16x128xbf16> to vector<16x16x128xbf16>
    %13 = arith.extf %12 : vector<16x16x128xbf16> to vector<16x16x128xf32>
    %14 = arith.addf %10, %13 : vector<16x16x128xf32>
    %cst_13 = arith.constant 0.000000e+00 : f32
    %15 = vector.broadcast %cst_13 : f32 to vector<16x16x128xf32>
    %16 = arith.maximumf %14, %15 : vector<16x16x128xf32>
    %c0_14 = arith.constant 0 : index
    %c0_15 = arith.constant 0 : index
    %c0_16 = arith.constant 0 : index
    %c0_17 = arith.constant 0 : index
    %17 = vector.load %arg5[%c0_14, %c0_15, %c0_16, %c0_17] : memref<1x16x16x128xf32, #tpu.memory_space<vmem>>, vector<1x16x16x128xf32>
    %18 = vector.shape_cast %17 : vector<1x16x16x128xf32> to vector<16x16x128xf32>
    %19 = vector.shape_cast %16 : vector<16x16x128xf32> to vector<1x16x16x128xf32>
    tpu.vector_store %arg5[%c0_14, %c0_15, %c0_16, %c0_17], %19 {strides = array<i32>} : memref<1x16x16x128xf32, #tpu.memory_space<vmem>>, vector<1x16x16x128xf32>,
    return
  }
  func.func @transform_0(%arg0: i32) -> (i32, i32, i32, i32) {
    %c0_i32 = arith.constant 0 : i32
    %c0_i32_0 = arith.constant 0 : i32
    %c0_i32_1 = arith.constant 0 : i32
    %c0_i32_2 = arith.constant 0 : i32
    return %arg0, %c0_i32, %c0_i32_0, %c0_i32_1 : i32, i32, i32, i32
  }
  func.func @transform_1(%arg0: i32) -> (i32, i32, i32) {
    %c0_i32 = arith.constant 0 : i32
    %c0_i32_0 = arith.constant 0 : i32
    %c0_i32_1 = arith.constant 0 : i32
    %c0_i32_2 = arith.constant 0 : i32
    return %c0_i32, %c0_i32_0, %c0_i32_1 : i32, i32, i32
  }
  func.func @transform_2(%arg0: i32) -> (i32, i32, i32) {
    %c0_i32 = arith.constant 0 : i32
    %c0_i32_0 = arith.constant 0 : i32
    %c0_i32_1 = arith.constant 0 : i32
    %c0_i32_2 = arith.constant 0 : i32
    return %c0_i32, %c0_i32_0, %c0_i32_1 : i32, i32, i32
  }
  func.func @transform_3(%arg0: i32) -> (i32, i32, i32, i32) {
    %c0_i32 = arith.constant 0 : i32
    %c0_i32_0 = arith.constant 0 : i32
    %c0_i32_1 = arith.constant 0 : i32
    %c0_i32_2 = arith.constant 0 : i32
    return %arg0, %c0_i32, %c0_i32_0, %c0_i32_1 : i32, i32, i32, i32
  }
  func.func @transform_4(%arg0: i32) -> (i32, i32, i32, i32) {
    %c0_i32 = arith.constant 0 : i32
    %c0_i32_0 = arith.constant 0 : i32
    %c0_i32_1 = arith.constant 0 : i32
    %c0_i32_2 = arith.constant 0 : i32
    return %arg0, %c0_i32, %c0_i32_0, %c0_i32_1 : i32, i32, i32, i32
  }
}

module attributes {stable_mosaic.version = 11 : i64} {
  func.func @kernel(%arg0: i32, %arg1: memref<1x18x18x128xbf16, #tpu.memory_space<vmem>>, %arg2: memref<9x128x128xbf16, #tpu.memory_space<vmem>>, %arg3: memref<1x16x16x128xbf16, #tpu.memory_space<vmem>>, %arg4: memref<1x2x128xf32, #tpu.memory_space<vmem>>) attributes {dimension_semantics = [#tpu.dimension_semantics<parallel>], iteration_bounds = array<i64: 2>, scalar_prefetch = 0 : i64, scratch_operands = 0 : i64, tpu.core_type = #tpu.core_type<tc>, window_params = [{transform_indices = @transform_0, window_bounds = array<i64: 1, 18, 18, 128>}, {pipeline_mode = #tpu.pipeline_mode<synchronous>, transform_indices = @transform_1, window_bounds = array<i64: 9, 128, 128>}, {transform_indices = @transform_2, window_bounds = array<i64: 1, 16, 16, 128>}, {transform_indices = @transform_3, window_bounds = array<i64: 1, 2, 128>}]} {
    %cst = arith.constant 0.000000e+00 : f32
    %0 = vector.broadcast %cst : f32 to vector<1x128xf32>
    %cst_0 = arith.constant 0.000000e+00 : f32
    %1 = vector.broadcast %cst_0 : f32 to vector<1x128xf32>
    %cst_1 = arith.constant 0.000000e+00 : f32
    %2 = vector.broadcast %cst_1 : f32 to vector<128x128xf32>
    %c0 = arith.constant 0 : index
    %c0_2 = arith.constant 0 : index
    %c0_3 = arith.constant 0 : index
    %c0_4 = arith.constant 0 : index
    %3 = vector.load %arg1[%c0, %c0_2, %c0_3, %c0_4] : memref<1x18x18x128xbf16, #tpu.memory_space<vmem>>, vector<1x8x16x128xbf16>
    %4 = vector.shape_cast %3 : vector<1x8x16x128xbf16> to vector<8x16x128xbf16>
    %5 = vector.shape_cast %4 : vector<8x16x128xbf16> to vector<128x128xbf16>
    %c0_5 = arith.constant 0 : index
    %c0_6 = arith.constant 0 : index
    %c0_7 = arith.constant 0 : index
    %6 = vector.load %arg2[%c0_5, %c0_6, %c0_7] : memref<9x128x128xbf16, #tpu.memory_space<vmem>>, vector<1x128x128xbf16>
    %7 = vector.shape_cast %6 : vector<1x128x128xbf16> to vector<128x128xbf16>
    %cst_8 = arith.constant dense<0.000000e+00> : vector<128x128xf32>
    %8 = tpu.matmul %5, %7, %cst_8 {dimension_numbers = #tpu.dot_dimension_numbers<[1], [0], [0], [1], [0, 0, 1, 1], [], []>} : vector<128x128xbf16>, vector<128x128xbf16>, vector<128x128xf32> -> vector<128x128xf32>
    %9 = arith.addf %2, %8 : vector<128x128xf32>
    %c0_9 = arith.constant 0 : index
    %c0_10 = arith.constant 0 : index
    %c1 = arith.constant 1 : index
    %c0_11 = arith.constant 0 : index
    %10 = vector.load %arg1[%c0_9, %c0_10, %c1, %c0_11] : memref<1x18x18x128xbf16, #tpu.memory_space<vmem>>, vector<1x8x16x128xbf16>
    %11 = vector.shape_cast %10 : vector<1x8x16x128xbf16> to vector<8x16x128xbf16>
    %12 = vector.shape_cast %11 : vector<8x16x128xbf16> to vector<128x128xbf16>
    %c1_12 = arith.constant 1 : index
    %c0_13 = arith.constant 0 : index
    %c0_14 = arith.constant 0 : index
    %13 = vector.load %arg2[%c1_12, %c0_13, %c0_14] : memref<9x128x128xbf16, #tpu.memory_space<vmem>>, vector<1x128x128xbf16>
    %14 = vector.shape_cast %13 : vector<1x128x128xbf16> to vector<128x128xbf16>
    %cst_15 = arith.constant dense<0.000000e+00> : vector<128x128xf32>
    %15 = tpu.matmul %12, %14, %cst_15 {dimension_numbers = #tpu.dot_dimension_numbers<[1], [0], [0], [1], [0, 0, 1, 1], [], []>} : vector<128x128xbf16>, vector<128x128xbf16>, vector<128x128xf32> -> vector<128x128xf32>
    %16 = arith.addf %9, %15 : vector<128x128xf32>
    %c0_16 = arith.constant 0 : index
    %c0_17 = arith.constant 0 : index
    %c2 = arith.constant 2 : index
    %c0_18 = arith.constant 0 : index
    %17 = vector.load %arg1[%c0_16, %c0_17, %c2, %c0_18] : memref<1x18x18x128xbf16, #tpu.memory_space<vmem>>, vector<1x8x16x128xbf16>
    %18 = vector.shape_cast %17 : vector<1x8x16x128xbf16> to vector<8x16x128xbf16>
    %19 = vector.shape_cast %18 : vector<8x16x128xbf16> to vector<128x128xbf16>
    %c2_19 = arith.constant 2 : index
    %c0_20 = arith.constant 0 : index
    %c0_21 = arith.constant 0 : index
    %20 = vector.load %arg2[%c2_19, %c0_20, %c0_21] : memref<9x128x128xbf16, #tpu.memory_space<vmem>>, vector<1x128x128xbf16>
    %21 = vector.shape_cast %20 : vector<1x128x128xbf16> to vector<128x128xbf16>
    %cst_22 = arith.constant dense<0.000000e+00> : vector<128x128xf32>
    %22 = tpu.matmul %19, %21, %cst_22 {dimension_numbers = #tpu.dot_dimension_numbers<[1], [0], [0], [1], [0, 0, 1, 1], [], []>} : vector<128x128xbf16>, vector<128x128xbf16>, vector<128x128xf32> -> vector<128x128xf32>
    %23 = arith.addf %16, %22 : vector<128x128xf32>
    %c0_23 = arith.constant 0 : index
    %c1_24 = arith.constant 1 : index
    %c0_25 = arith.constant 0 : index
    %c0_26 = arith.constant 0 : index
    %24 = vector.load %arg1[%c0_23, %c1_24, %c0_25, %c0_26] : memref<1x18x18x128xbf16, #tpu.memory_space<vmem>>, vector<1x8x16x128xbf16>
    %25 = vector.shape_cast %24 : vector<1x8x16x128xbf16> to vector<8x16x128xbf16>
    %26 = vector.shape_cast %25 : vector<8x16x128xbf16> to vector<128x128xbf16>
    %c3 = arith.constant 3 : index
    %c0_27 = arith.constant 0 : index
    %c0_28 = arith.constant 0 : index
    %27 = vector.load %arg2[%c3, %c0_27, %c0_28] : memref<9x128x128xbf16, #tpu.memory_space<vmem>>, vector<1x128x128xbf16>
    %28 = vector.shape_cast %27 : vector<1x128x128xbf16> to vector<128x128xbf16>
    %cst_29 = arith.constant dense<0.000000e+00> : vector<128x128xf32>
    %29 = tpu.matmul %26, %28, %cst_29 {dimension_numbers = #tpu.dot_dimension_numbers<[1], [0], [0], [1], [0, 0, 1, 1], [], []>} : vector<128x128xbf16>, vector<128x128xbf16>, vector<128x128xf32> -> vector<128x128xf32>
    %30 = arith.addf %23, %29 : vector<128x128xf32>
    %c0_30 = arith.constant 0 : index
    %c1_31 = arith.constant 1 : index
    %c1_32 = arith.constant 1 : index
    %c0_33 = arith.constant 0 : index
    %31 = vector.load %arg1[%c0_30, %c1_31, %c1_32, %c0_33] : memref<1x18x18x128xbf16, #tpu.memory_space<vmem>>, vector<1x8x16x128xbf16>
    %32 = vector.shape_cast %31 : vector<1x8x16x128xbf16> to vector<8x16x128xbf16>
    %33 = vector.shape_cast %32 : vector<8x16x128xbf16> to vector<128x128xbf16>
    %c4 = arith.constant 4 : index
    %c0_34 = arith.constant 0 : index
    %c0_35 = arith.constant 0 : index
    %34 = vector.load %arg2[%c4, %c0_34, %c0_35] : memref<9x128x128xbf16, #tpu.memory_space<vmem>>, vector<1x128x128xbf16>
    %35 = vector.shape_cast %34 : vector<1x128x128xbf16> to vector<128x128xbf16>
    %cst_36 = arith.constant dense<0.000000e+00> : vector<128x128xf32>
    %36 = tpu.matmul %33, %35, %cst_36 {dimension_numbers = #tpu.dot_dimension_numbers<[1], [0], [0], [1], [0, 0, 1, 1], [], []>} : vector<128x128xbf16>, vector<128x128xbf16>, vector<128x128xf32> -> vector<128x128xf32>
    %37 = arith.addf %30, %36 : vector<128x128xf32>
    %c0_37 = arith.constant 0 : index
    %c1_38 = arith.constant 1 : index
    %c2_39 = arith.constant 2 : index
    %c0_40 = arith.constant 0 : index
    %38 = vector.load %arg1[%c0_37, %c1_38, %c2_39, %c0_40] : memref<1x18x18x128xbf16, #tpu.memory_space<vmem>>, vector<1x8x16x128xbf16>
    %39 = vector.shape_cast %38 : vector<1x8x16x128xbf16> to vector<8x16x128xbf16>
    %40 = vector.shape_cast %39 : vector<8x16x128xbf16> to vector<128x128xbf16>
    %c5 = arith.constant 5 : index
    %c0_41 = arith.constant 0 : index
    %c0_42 = arith.constant 0 : index
    %41 = vector.load %arg2[%c5, %c0_41, %c0_42] : memref<9x128x128xbf16, #tpu.memory_space<vmem>>, vector<1x128x128xbf16>
    %42 = vector.shape_cast %41 : vector<1x128x128xbf16> to vector<128x128xbf16>
    %cst_43 = arith.constant dense<0.000000e+00> : vector<128x128xf32>
    %43 = tpu.matmul %40, %42, %cst_43 {dimension_numbers = #tpu.dot_dimension_numbers<[1], [0], [0], [1], [0, 0, 1, 1], [], []>} : vector<128x128xbf16>, vector<128x128xbf16>, vector<128x128xf32> -> vector<128x128xf32>
    %44 = arith.addf %37, %43 : vector<128x128xf32>
    %c0_44 = arith.constant 0 : index
    %c2_45 = arith.constant 2 : index
    %c0_46 = arith.constant 0 : index
    %c0_47 = arith.constant 0 : index
    %45 = vector.load %arg1[%c0_44, %c2_45, %c0_46, %c0_47] : memref<1x18x18x128xbf16, #tpu.memory_space<vmem>>, vector<1x8x16x128xbf16>
    %46 = vector.shape_cast %45 : vector<1x8x16x128xbf16> to vector<8x16x128xbf16>
    %47 = vector.shape_cast %46 : vector<8x16x128xbf16> to vector<128x128xbf16>
    %c6 = arith.constant 6 : index
    %c0_48 = arith.constant 0 : index
    %c0_49 = arith.constant 0 : index
    %48 = vector.load %arg2[%c6, %c0_48, %c0_49] : memref<9x128x128xbf16, #tpu.memory_space<vmem>>, vector<1x128x128xbf16>
    %49 = vector.shape_cast %48 : vector<1x128x128xbf16> to vector<128x128xbf16>
    %cst_50 = arith.constant dense<0.000000e+00> : vector<128x128xf32>
    %50 = tpu.matmul %47, %49, %cst_50 {dimension_numbers = #tpu.dot_dimension_numbers<[1], [0], [0], [1], [0, 0, 1, 1], [], []>} : vector<128x128xbf16>, vector<128x128xbf16>, vector<128x128xf32> -> vector<128x128xf32>
    %51 = arith.addf %44, %50 : vector<128x128xf32>
    %c0_51 = arith.constant 0 : index
    %c2_52 = arith.constant 2 : index
    %c1_53 = arith.constant 1 : index
    %c0_54 = arith.constant 0 : index
    %52 = vector.load %arg1[%c0_51, %c2_52, %c1_53, %c0_54] : memref<1x18x18x128xbf16, #tpu.memory_space<vmem>>, vector<1x8x16x128xbf16>
    %53 = vector.shape_cast %52 : vector<1x8x16x128xbf16> to vector<8x16x128xbf16>
    %54 = vector.shape_cast %53 : vector<8x16x128xbf16> to vector<128x128xbf16>
    %c7 = arith.constant 7 : index
    %c0_55 = arith.constant 0 : index
    %c0_56 = arith.constant 0 : index
    %55 = vector.load %arg2[%c7, %c0_55, %c0_56] : memref<9x128x128xbf16, #tpu.memory_space<vmem>>, vector<1x128x128xbf16>
    %56 = vector.shape_cast %55 : vector<1x128x128xbf16> to vector<128x128xbf16>
    %cst_57 = arith.constant dense<0.000000e+00> : vector<128x128xf32>
    %57 = tpu.matmul %54, %56, %cst_57 {dimension_numbers = #tpu.dot_dimension_numbers<[1], [0], [0], [1], [0, 0, 1, 1], [], []>} : vector<128x128xbf16>, vector<128x128xbf16>, vector<128x128xf32> -> vector<128x128xf32>
    %58 = arith.addf %51, %57 : vector<128x128xf32>
    %c0_58 = arith.constant 0 : index
    %c2_59 = arith.constant 2 : index
    %c2_60 = arith.constant 2 : index
    %c0_61 = arith.constant 0 : index
    %59 = vector.load %arg1[%c0_58, %c2_59, %c2_60, %c0_61] : memref<1x18x18x128xbf16, #tpu.memory_space<vmem>>, vector<1x8x16x128xbf16>
    %60 = vector.shape_cast %59 : vector<1x8x16x128xbf16> to vector<8x16x128xbf16>
    %61 = vector.shape_cast %60 : vector<8x16x128xbf16> to vector<128x128xbf16>
    %c8 = arith.constant 8 : index
    %c0_62 = arith.constant 0 : index
    %c0_63 = arith.constant 0 : index
    %62 = vector.load %arg2[%c8, %c0_62, %c0_63] : memref<9x128x128xbf16, #tpu.memory_space<vmem>>, vector<1x128x128xbf16>
    %63 = vector.shape_cast %62 : vector<1x128x128xbf16> to vector<128x128xbf16>
    %cst_64 = arith.constant dense<0.000000e+00> : vector<128x128xf32>
    %64 = tpu.matmul %61, %63, %cst_64 {dimension_numbers = #tpu.dot_dimension_numbers<[1], [0], [0], [1], [0, 0, 1, 1], [], []>} : vector<128x128xbf16>, vector<128x128xbf16>, vector<128x128xf32> -> vector<128x128xf32>
    %65 = arith.addf %58, %64 : vector<128x128xf32>
    %cst_65 = arith.constant dense<0.000000e+00> : vector<128xf32>
    %66 = vector.multi_reduction <add>, %65, %cst_65 [0] : vector<128x128xf32> to vector<128xf32>
    %67 = vector.shape_cast %66 : vector<128xf32> to vector<1x128xf32>
    %68 = arith.addf %0, %67 : vector<1x128xf32>
    %69 = arith.mulf %65, %65 : vector<128x128xf32>
    %cst_66 = arith.constant dense<0.000000e+00> : vector<128xf32>
    %70 = vector.multi_reduction <add>, %69, %cst_66 [0] : vector<128x128xf32> to vector<128xf32>
    %71 = vector.shape_cast %70 : vector<128xf32> to vector<1x128xf32>
    %72 = arith.addf %1, %71 : vector<1x128xf32>
    %73 = vector.shape_cast %65 : vector<128x128xf32> to vector<8x16x128xf32>
    %74 = arith.truncf %73 : vector<8x16x128xf32> to vector<8x16x128xbf16>
    %c0_67 = arith.constant 0 : index
    %c0_68 = arith.constant 0 : index
    %c0_69 = arith.constant 0 : index
    %c0_70 = arith.constant 0 : index
    %75 = vector.load %arg3[%c0_67, %c0_68, %c0_69, %c0_70] : memref<1x16x16x128xbf16, #tpu.memory_space<vmem>>, vector<1x8x16x128xbf16>
    %76 = vector.shape_cast %75 : vector<1x8x16x128xbf16> to vector<8x16x128xbf16>
    %77 = vector.shape_cast %74 : vector<8x16x128xbf16> to vector<1x8x16x128xbf16>
    tpu.vector_store %arg3[%c0_67, %c0_68, %c0_69, %c0_70], %77 {strides = array<i32>} : memref<1x16x16x128xbf16, #tpu.memory_space<vmem>>, vector<1x8x16x128xbf16>,
    %cst_71 = arith.constant 0.000000e+00 : f32
    %78 = vector.broadcast %cst_71 : f32 to vector<128x128xf32>
    %c0_72 = arith.constant 0 : index
    %c8_73 = arith.constant 8 : index
    %c0_74 = arith.constant 0 : index
    %c0_75 = arith.constant 0 : index
    %79 = vector.load %arg1[%c0_72, %c8_73, %c0_74, %c0_75] : memref<1x18x18x128xbf16, #tpu.memory_space<vmem>>, vector<1x8x16x128xbf16>
    %80 = vector.shape_cast %79 : vector<1x8x16x128xbf16> to vector<8x16x128xbf16>
    %81 = vector.shape_cast %80 : vector<8x16x128xbf16> to vector<128x128xbf16>
    %c0_76 = arith.constant 0 : index
    %c0_77 = arith.constant 0 : index
    %c0_78 = arith.constant 0 : index
    %82 = vector.load %arg2[%c0_76, %c0_77, %c0_78] : memref<9x128x128xbf16, #tpu.memory_space<vmem>>, vector<1x128x128xbf16>
    %83 = vector.shape_cast %82 : vector<1x128x128xbf16> to vector<128x128xbf16>
    %cst_79 = arith.constant dense<0.000000e+00> : vector<128x128xf32>
    %84 = tpu.matmul %81, %83, %cst_79 {dimension_numbers = #tpu.dot_dimension_numbers<[1], [0], [0], [1], [0, 0, 1, 1], [], []>} : vector<128x128xbf16>, vector<128x128xbf16>, vector<128x128xf32> -> vector<128x128xf32>
    %85 = arith.addf %78, %84 : vector<128x128xf32>
    %c0_80 = arith.constant 0 : index
    %c8_81 = arith.constant 8 : index
    %c1_82 = arith.constant 1 : index
    %c0_83 = arith.constant 0 : index
    %86 = vector.load %arg1[%c0_80, %c8_81, %c1_82, %c0_83] : memref<1x18x18x128xbf16, #tpu.memory_space<vmem>>, vector<1x8x16x128xbf16>
    %87 = vector.shape_cast %86 : vector<1x8x16x128xbf16> to vector<8x16x128xbf16>
    %88 = vector.shape_cast %87 : vector<8x16x128xbf16> to vector<128x128xbf16>
    %c1_84 = arith.constant 1 : index
    %c0_85 = arith.constant 0 : index
    %c0_86 = arith.constant 0 : index
    %89 = vector.load %arg2[%c1_84, %c0_85, %c0_86] : memref<9x128x128xbf16, #tpu.memory_space<vmem>>, vector<1x128x128xbf16>
    %90 = vector.shape_cast %89 : vector<1x128x128xbf16> to vector<128x128xbf16>
    %cst_87 = arith.constant dense<0.000000e+00> : vector<128x128xf32>
    %91 = tpu.matmul %88, %90, %cst_87 {dimension_numbers = #tpu.dot_dimension_numbers<[1], [0], [0], [1], [0, 0, 1, 1], [], []>} : vector<128x128xbf16>, vector<128x128xbf16>, vector<128x128xf32> -> vector<128x128xf32>
    %92 = arith.addf %85, %91 : vector<128x128xf32>
    %c0_88 = arith.constant 0 : index
    %c8_89 = arith.constant 8 : index
    %c2_90 = arith.constant 2 : index
    %c0_91 = arith.constant 0 : index
    %93 = vector.load %arg1[%c0_88, %c8_89, %c2_90, %c0_91] : memref<1x18x18x128xbf16, #tpu.memory_space<vmem>>, vector<1x8x16x128xbf16>
    %94 = vector.shape_cast %93 : vector<1x8x16x128xbf16> to vector<8x16x128xbf16>
    %95 = vector.shape_cast %94 : vector<8x16x128xbf16> to vector<128x128xbf16>
    %c2_92 = arith.constant 2 : index
    %c0_93 = arith.constant 0 : index
    %c0_94 = arith.constant 0 : index
    %96 = vector.load %arg2[%c2_92, %c0_93, %c0_94] : memref<9x128x128xbf16, #tpu.memory_space<vmem>>, vector<1x128x128xbf16>
    %97 = vector.shape_cast %96 : vector<1x128x128xbf16> to vector<128x128xbf16>
    %cst_95 = arith.constant dense<0.000000e+00> : vector<128x128xf32>
    %98 = tpu.matmul %95, %97, %cst_95 {dimension_numbers = #tpu.dot_dimension_numbers<[1], [0], [0], [1], [0, 0, 1, 1], [], []>} : vector<128x128xbf16>, vector<128x128xbf16>, vector<128x128xf32> -> vector<128x128xf32>
    %99 = arith.addf %92, %98 : vector<128x128xf32>
    %c0_96 = arith.constant 0 : index
    %c9 = arith.constant 9 : index
    %c0_97 = arith.constant 0 : index
    %c0_98 = arith.constant 0 : index
    %100 = vector.load %arg1[%c0_96, %c9, %c0_97, %c0_98] : memref<1x18x18x128xbf16, #tpu.memory_space<vmem>>, vector<1x8x16x128xbf16>
    %101 = vector.shape_cast %100 : vector<1x8x16x128xbf16> to vector<8x16x128xbf16>
    %102 = vector.shape_cast %101 : vector<8x16x128xbf16> to vector<128x128xbf16>
    %c3_99 = arith.constant 3 : index
    %c0_100 = arith.constant 0 : index
    %c0_101 = arith.constant 0 : index
    %103 = vector.load %arg2[%c3_99, %c0_100, %c0_101] : memref<9x128x128xbf16, #tpu.memory_space<vmem>>, vector<1x128x128xbf16>
    %104 = vector.shape_cast %103 : vector<1x128x128xbf16> to vector<128x128xbf16>
    %cst_102 = arith.constant dense<0.000000e+00> : vector<128x128xf32>
    %105 = tpu.matmul %102, %104, %cst_102 {dimension_numbers = #tpu.dot_dimension_numbers<[1], [0], [0], [1], [0, 0, 1, 1], [], []>} : vector<128x128xbf16>, vector<128x128xbf16>, vector<128x128xf32> -> vector<128x128xf32>
    %106 = arith.addf %99, %105 : vector<128x128xf32>
    %c0_103 = arith.constant 0 : index
    %c9_104 = arith.constant 9 : index
    %c1_105 = arith.constant 1 : index
    %c0_106 = arith.constant 0 : index
    %107 = vector.load %arg1[%c0_103, %c9_104, %c1_105, %c0_106] : memref<1x18x18x128xbf16, #tpu.memory_space<vmem>>, vector<1x8x16x128xbf16>
    %108 = vector.shape_cast %107 : vector<1x8x16x128xbf16> to vector<8x16x128xbf16>
    %109 = vector.shape_cast %108 : vector<8x16x128xbf16> to vector<128x128xbf16>
    %c4_107 = arith.constant 4 : index
    %c0_108 = arith.constant 0 : index
    %c0_109 = arith.constant 0 : index
    %110 = vector.load %arg2[%c4_107, %c0_108, %c0_109] : memref<9x128x128xbf16, #tpu.memory_space<vmem>>, vector<1x128x128xbf16>
    %111 = vector.shape_cast %110 : vector<1x128x128xbf16> to vector<128x128xbf16>
    %cst_110 = arith.constant dense<0.000000e+00> : vector<128x128xf32>
    %112 = tpu.matmul %109, %111, %cst_110 {dimension_numbers = #tpu.dot_dimension_numbers<[1], [0], [0], [1], [0, 0, 1, 1], [], []>} : vector<128x128xbf16>, vector<128x128xbf16>, vector<128x128xf32> -> vector<128x128xf32>
    %113 = arith.addf %106, %112 : vector<128x128xf32>
    %c0_111 = arith.constant 0 : index
    %c9_112 = arith.constant 9 : index
    %c2_113 = arith.constant 2 : index
    %c0_114 = arith.constant 0 : index
    %114 = vector.load %arg1[%c0_111, %c9_112, %c2_113, %c0_114] : memref<1x18x18x128xbf16, #tpu.memory_space<vmem>>, vector<1x8x16x128xbf16>
    %115 = vector.shape_cast %114 : vector<1x8x16x128xbf16> to vector<8x16x128xbf16>
    %116 = vector.shape_cast %115 : vector<8x16x128xbf16> to vector<128x128xbf16>
    %c5_115 = arith.constant 5 : index
    %c0_116 = arith.constant 0 : index
    %c0_117 = arith.constant 0 : index
    %117 = vector.load %arg2[%c5_115, %c0_116, %c0_117] : memref<9x128x128xbf16, #tpu.memory_space<vmem>>, vector<1x128x128xbf16>
    %118 = vector.shape_cast %117 : vector<1x128x128xbf16> to vector<128x128xbf16>
    %cst_118 = arith.constant dense<0.000000e+00> : vector<128x128xf32>
    %119 = tpu.matmul %116, %118, %cst_118 {dimension_numbers = #tpu.dot_dimension_numbers<[1], [0], [0], [1], [0, 0, 1, 1], [], []>} : vector<128x128xbf16>, vector<128x128xbf16>, vector<128x128xf32> -> vector<128x128xf32>
    %120 = arith.addf %113, %119 : vector<128x128xf32>
    %c0_119 = arith.constant 0 : index
    %c10 = arith.constant 10 : index
    %c0_120 = arith.constant 0 : index
    %c0_121 = arith.constant 0 : index
    %121 = vector.load %arg1[%c0_119, %c10, %c0_120, %c0_121] : memref<1x18x18x128xbf16, #tpu.memory_space<vmem>>, vector<1x8x16x128xbf16>
    %122 = vector.shape_cast %121 : vector<1x8x16x128xbf16> to vector<8x16x128xbf16>
    %123 = vector.shape_cast %122 : vector<8x16x128xbf16> to vector<128x128xbf16>
    %c6_122 = arith.constant 6 : index
    %c0_123 = arith.constant 0 : index
    %c0_124 = arith.constant 0 : index
    %124 = vector.load %arg2[%c6_122, %c0_123, %c0_124] : memref<9x128x128xbf16, #tpu.memory_space<vmem>>, vector<1x128x128xbf16>
    %125 = vector.shape_cast %124 : vector<1x128x128xbf16> to vector<128x128xbf16>
    %cst_125 = arith.constant dense<0.000000e+00> : vector<128x128xf32>
    %126 = tpu.matmul %123, %125, %cst_125 {dimension_numbers = #tpu.dot_dimension_numbers<[1], [0], [0], [1], [0, 0, 1, 1], [], []>} : vector<128x128xbf16>, vector<128x128xbf16>, vector<128x128xf32> -> vector<128x128xf32>
    %127 = arith.addf %120, %126 : vector<128x128xf32>
    %c0_126 = arith.constant 0 : index
    %c10_127 = arith.constant 10 : index
    %c1_128 = arith.constant 1 : index
    %c0_129 = arith.constant 0 : index
    %128 = vector.load %arg1[%c0_126, %c10_127, %c1_128, %c0_129] : memref<1x18x18x128xbf16, #tpu.memory_space<vmem>>, vector<1x8x16x128xbf16>
    %129 = vector.shape_cast %128 : vector<1x8x16x128xbf16> to vector<8x16x128xbf16>
    %130 = vector.shape_cast %129 : vector<8x16x128xbf16> to vector<128x128xbf16>
    %c7_130 = arith.constant 7 : index
    %c0_131 = arith.constant 0 : index
    %c0_132 = arith.constant 0 : index
    %131 = vector.load %arg2[%c7_130, %c0_131, %c0_132] : memref<9x128x128xbf16, #tpu.memory_space<vmem>>, vector<1x128x128xbf16>
    %132 = vector.shape_cast %131 : vector<1x128x128xbf16> to vector<128x128xbf16>
    %cst_133 = arith.constant dense<0.000000e+00> : vector<128x128xf32>
    %133 = tpu.matmul %130, %132, %cst_133 {dimension_numbers = #tpu.dot_dimension_numbers<[1], [0], [0], [1], [0, 0, 1, 1], [], []>} : vector<128x128xbf16>, vector<128x128xbf16>, vector<128x128xf32> -> vector<128x128xf32>
    %134 = arith.addf %127, %133 : vector<128x128xf32>
    %c0_134 = arith.constant 0 : index
    %c10_135 = arith.constant 10 : index
    %c2_136 = arith.constant 2 : index
    %c0_137 = arith.constant 0 : index
    %135 = vector.load %arg1[%c0_134, %c10_135, %c2_136, %c0_137] : memref<1x18x18x128xbf16, #tpu.memory_space<vmem>>, vector<1x8x16x128xbf16>
    %136 = vector.shape_cast %135 : vector<1x8x16x128xbf16> to vector<8x16x128xbf16>
    %137 = vector.shape_cast %136 : vector<8x16x128xbf16> to vector<128x128xbf16>
    %c8_138 = arith.constant 8 : index
    %c0_139 = arith.constant 0 : index
    %c0_140 = arith.constant 0 : index
    %138 = vector.load %arg2[%c8_138, %c0_139, %c0_140] : memref<9x128x128xbf16, #tpu.memory_space<vmem>>, vector<1x128x128xbf16>
    %139 = vector.shape_cast %138 : vector<1x128x128xbf16> to vector<128x128xbf16>
    %cst_141 = arith.constant dense<0.000000e+00> : vector<128x128xf32>
    %140 = tpu.matmul %137, %139, %cst_141 {dimension_numbers = #tpu.dot_dimension_numbers<[1], [0], [0], [1], [0, 0, 1, 1], [], []>} : vector<128x128xbf16>, vector<128x128xbf16>, vector<128x128xf32> -> vector<128x128xf32>
    %141 = arith.addf %134, %140 : vector<128x128xf32>
    %cst_142 = arith.constant dense<0.000000e+00> : vector<128xf32>
    %142 = vector.multi_reduction <add>, %141, %cst_142 [0] : vector<128x128xf32> to vector<128xf32>
    %143 = vector.shape_cast %142 : vector<128xf32> to vector<1x128xf32>
    %144 = arith.addf %68, %143 : vector<1x128xf32>
    %145 = arith.mulf %141, %141 : vector<128x128xf32>
    %cst_143 = arith.constant dense<0.000000e+00> : vector<128xf32>
    %146 = vector.multi_reduction <add>, %145, %cst_143 [0] : vector<128x128xf32> to vector<128xf32>
    %147 = vector.shape_cast %146 : vector<128xf32> to vector<1x128xf32>
    %148 = arith.addf %72, %147 : vector<1x128xf32>
    %149 = vector.shape_cast %141 : vector<128x128xf32> to vector<8x16x128xf32>
    %150 = arith.truncf %149 : vector<8x16x128xf32> to vector<8x16x128xbf16>
    %c0_144 = arith.constant 0 : index
    %c8_145 = arith.constant 8 : index
    %c0_146 = arith.constant 0 : index
    %c0_147 = arith.constant 0 : index
    %151 = vector.load %arg3[%c0_144, %c8_145, %c0_146, %c0_147] : memref<1x16x16x128xbf16, #tpu.memory_space<vmem>>, vector<1x8x16x128xbf16>
    %152 = vector.shape_cast %151 : vector<1x8x16x128xbf16> to vector<8x16x128xbf16>
    %153 = vector.shape_cast %150 : vector<8x16x128xbf16> to vector<1x8x16x128xbf16>
    tpu.vector_store %arg3[%c0_144, %c8_145, %c0_146, %c0_147], %153 {strides = array<i32>} : memref<1x16x16x128xbf16, #tpu.memory_space<vmem>>, vector<1x8x16x128xbf16>,
    %154 = tpu.concatenate %144, %148 in 0 : vector<1x128xf32>, vector<1x128xf32> -> vector<2x128xf32>
    %c0_148 = arith.constant 0 : index
    %c0_149 = arith.constant 0 : index
    %c0_150 = arith.constant 0 : index
    %155 = vector.load %arg4[%c0_148, %c0_149, %c0_150] : memref<1x2x128xf32, #tpu.memory_space<vmem>>, vector<1x2x128xf32>
    %156 = vector.shape_cast %155 : vector<1x2x128xf32> to vector<2x128xf32>
    %157 = vector.shape_cast %154 : vector<2x128xf32> to vector<1x2x128xf32>
    tpu.vector_store %arg4[%c0_148, %c0_149, %c0_150], %157 {strides = array<i32>} : memref<1x2x128xf32, #tpu.memory_space<vmem>>, vector<1x2x128xf32>,
    return
  }
  func.func @transform_0(%arg0: i32) -> (i32, i32, i32, i32) {
    %c0_i32 = arith.constant 0 : i32
    %c0_i32_0 = arith.constant 0 : i32
    %c0_i32_1 = arith.constant 0 : i32
    %c0_i32_2 = arith.constant 0 : i32
    return %arg0, %c0_i32, %c0_i32_0, %c0_i32_1 : i32, i32, i32, i32
  }
  func.func @transform_1(%arg0: i32) -> (i32, i32, i32) {
    %c0_i32 = arith.constant 0 : i32
    %c0_i32_0 = arith.constant 0 : i32
    %c0_i32_1 = arith.constant 0 : i32
    %c0_i32_2 = arith.constant 0 : i32
    return %c0_i32, %c0_i32_0, %c0_i32_1 : i32, i32, i32
  }
  func.func @transform_2(%arg0: i32) -> (i32, i32, i32, i32) {
    %c0_i32 = arith.constant 0 : i32
    %c0_i32_0 = arith.constant 0 : i32
    %c0_i32_1 = arith.constant 0 : i32
    %c0_i32_2 = arith.constant 0 : i32
    return %arg0, %c0_i32, %c0_i32_0, %c0_i32_1 : i32, i32, i32, i32
  }
  func.func @transform_3(%arg0: i32) -> (i32, i32, i32) {
    %c0_i32 = arith.constant 0 : i32
    %c0_i32_0 = arith.constant 0 : i32
    %c0_i32_1 = arith.constant 0 : i32
    return %arg0, %c0_i32, %c0_i32_0 : i32, i32, i32
  }
}

module attributes {stable_mosaic.version = 11 : i64} {
  func.func @kernel(%arg0: i32, %arg1: memref<1x16x16x128xbf16, #tpu.memory_space<vmem>>, %arg2: memref<1x1x128xf32, #tpu.memory_space<vmem>>, %arg3: memref<1x1x128xf32, #tpu.memory_space<vmem>>, %arg4: memref<9x128x128xbf16, #tpu.memory_space<vmem>>, %arg5: memref<1x16x16x128xbf16, #tpu.memory_space<vmem>>, %arg6: memref<1x2x128xf32, #tpu.memory_space<vmem>>, %arg7: memref<18x18x128xbf16, #tpu.memory_space<vmem>>) attributes {dimension_semantics = [#tpu.dimension_semantics<parallel>], iteration_bounds = array<i64: 2>, scalar_prefetch = 0 : i64, scratch_operands = 1 : i64, tpu.core_type = #tpu.core_type<tc>, window_params = [{transform_indices = @transform_0, window_bounds = array<i64: 1, 16, 16, 128>}, {pipeline_mode = #tpu.pipeline_mode<synchronous>, transform_indices = @transform_1, window_bounds = array<i64: 1, 1, 128>}, {pipeline_mode = #tpu.pipeline_mode<synchronous>, transform_indices = @transform_2, window_bounds = array<i64: 1, 1, 128>}, {pipeline_mode = #tpu.pipeline_mode<synchronous>, transform_indices = @transform_3, window_bounds = array<i64: 9, 128, 128>}, {transform_indices = @transform_4, window_bounds = array<i64: 1, 16, 16, 128>}, {transform_indices = @transform_5, window_bounds = array<i64: 1, 2, 128>}]} {
    %c0 = arith.constant 0 : index
    %c0_0 = arith.constant 0 : index
    %c0_1 = arith.constant 0 : index
    %c0_2 = arith.constant 0 : index
    %0 = vector.load %arg1[%c0, %c0_0, %c0_1, %c0_2] : memref<1x16x16x128xbf16, #tpu.memory_space<vmem>>, vector<1x16x16x128xbf16>
    %1 = vector.shape_cast %0 : vector<1x16x16x128xbf16> to vector<16x16x128xbf16>
    %2 = arith.extf %1 : vector<16x16x128xbf16> to vector<16x16x128xf32>
    %c0_3 = arith.constant 0 : index
    %c0_4 = arith.constant 0 : index
    %c0_5 = arith.constant 0 : index
    %3 = vector.load %arg2[%c0_3, %c0_4, %c0_5] : memref<1x1x128xf32, #tpu.memory_space<vmem>>, vector<1x1x128xf32>
    %4 = vector.broadcast %3 : vector<1x1x128xf32> to vector<16x16x128xf32>
    %5 = arith.mulf %2, %4 : vector<16x16x128xf32>
    %c0_6 = arith.constant 0 : index
    %c0_7 = arith.constant 0 : index
    %c0_8 = arith.constant 0 : index
    %6 = vector.load %arg3[%c0_6, %c0_7, %c0_8] : memref<1x1x128xf32, #tpu.memory_space<vmem>>, vector<1x1x128xf32>
    %7 = vector.broadcast %6 : vector<1x1x128xf32> to vector<16x16x128xf32>
    %8 = arith.addf %5, %7 : vector<16x16x128xf32>
    %cst = arith.constant 0.000000e+00 : f32
    %9 = vector.broadcast %cst : f32 to vector<16x16x128xf32>
    %10 = arith.maximumf %8, %9 : vector<16x16x128xf32>
    %cst_9 = arith.constant 0.000000e+00 : bf16
    %11 = vector.broadcast %cst_9 : bf16 to vector<1x18x128xbf16>
    %c0_10 = arith.constant 0 : index
    %c0_11 = arith.constant 0 : index
    %c0_12 = arith.constant 0 : index
    %12 = vector.load %arg7[%c0_10, %c0_11, %c0_12] : memref<18x18x128xbf16, #tpu.memory_space<vmem>>, vector<1x18x128xbf16>
    tpu.vector_store %arg7[%c0_10, %c0_11, %c0_12], %11 {strides = array<i32>} : memref<18x18x128xbf16, #tpu.memory_space<vmem>>, vector<1x18x128xbf16>,
    %cst_13 = arith.constant 0.000000e+00 : bf16
    %13 = vector.broadcast %cst_13 : bf16 to vector<1x18x128xbf16>
    %c17 = arith.constant 17 : index
    %c0_14 = arith.constant 0 : index
    %c0_15 = arith.constant 0 : index
    %14 = vector.load %arg7[%c17, %c0_14, %c0_15] : memref<18x18x128xbf16, #tpu.memory_space<vmem>>, vector<1x18x128xbf16>
    tpu.vector_store %arg7[%c17, %c0_14, %c0_15], %13 {strides = array<i32>} : memref<18x18x128xbf16, #tpu.memory_space<vmem>>, vector<1x18x128xbf16>,
    %cst_16 = arith.constant 0.000000e+00 : bf16
    %15 = vector.broadcast %cst_16 : bf16 to vector<18x1x128xbf16>
    %c0_17 = arith.constant 0 : index
    %c0_18 = arith.constant 0 : index
    %c0_19 = arith.constant 0 : index
    %16 = vector.load %arg7[%c0_17, %c0_18, %c0_19] : memref<18x18x128xbf16, #tpu.memory_space<vmem>>, vector<18x1x128xbf16>
    tpu.vector_store %arg7[%c0_17, %c0_18, %c0_19], %15 {strides = array<i32>} : memref<18x18x128xbf16, #tpu.memory_space<vmem>>, vector<18x1x128xbf16>,
    %cst_20 = arith.constant 0.000000e+00 : bf16
    %17 = vector.broadcast %cst_20 : bf16 to vector<18x1x128xbf16>
    %c0_21 = arith.constant 0 : index
    %c17_22 = arith.constant 17 : index
    %c0_23 = arith.constant 0 : index
    %18 = vector.load %arg7[%c0_21, %c17_22, %c0_23] : memref<18x18x128xbf16, #tpu.memory_space<vmem>>, vector<18x1x128xbf16>
    tpu.vector_store %arg7[%c0_21, %c17_22, %c0_23], %17 {strides = array<i32>} : memref<18x18x128xbf16, #tpu.memory_space<vmem>>, vector<18x1x128xbf16>,
    %19 = arith.truncf %10 : vector<16x16x128xf32> to vector<16x16x128xbf16>
    %c1 = arith.constant 1 : index
    %c1_24 = arith.constant 1 : index
    %c0_25 = arith.constant 0 : index
    %20 = vector.load %arg7[%c1, %c1_24, %c0_25] : memref<18x18x128xbf16, #tpu.memory_space<vmem>>, vector<16x16x128xbf16>
    tpu.vector_store %arg7[%c1, %c1_24, %c0_25], %19 {strides = array<i32>} : memref<18x18x128xbf16, #tpu.memory_space<vmem>>, vector<16x16x128xbf16>,
    %cst_26 = arith.constant 0.000000e+00 : f32
    %21 = vector.broadcast %cst_26 : f32 to vector<1x128xf32>
    %cst_27 = arith.constant 0.000000e+00 : f32
    %22 = vector.broadcast %cst_27 : f32 to vector<1x128xf32>
    %cst_28 = arith.constant 0.000000e+00 : f32
    %23 = vector.broadcast %cst_28 : f32 to vector<128x128xf32>
    %c0_29 = arith.constant 0 : index
    %c0_30 = arith.constant 0 : index
    %c0_31 = arith.constant 0 : index
    %24 = vector.load %arg7[%c0_29, %c0_30, %c0_31] : memref<18x18x128xbf16, #tpu.memory_space<vmem>>, vector<8x16x128xbf16>
    %25 = vector.shape_cast %24 : vector<8x16x128xbf16> to vector<128x128xbf16>
    %c0_32 = arith.constant 0 : index
    %c0_33 = arith.constant 0 : index
    %c0_34 = arith.constant 0 : index
    %26 = vector.load %arg4[%c0_32, %c0_33, %c0_34] : memref<9x128x128xbf16, #tpu.memory_space<vmem>>, vector<1x128x128xbf16>
    %27 = vector.shape_cast %26 : vector<1x128x128xbf16> to vector<128x128xbf16>
    %cst_35 = arith.constant dense<0.000000e+00> : vector<128x128xf32>
    %28 = tpu.matmul %25, %27, %cst_35 {dimension_numbers = #tpu.dot_dimension_numbers<[1], [0], [0], [1], [0, 0, 1, 1], [], []>} : vector<128x128xbf16>, vector<128x128xbf16>, vector<128x128xf32> -> vector<128x128xf32>
    %29 = arith.addf %23, %28 : vector<128x128xf32>
    %c0_36 = arith.constant 0 : index
    %c1_37 = arith.constant 1 : index
    %c0_38 = arith.constant 0 : index
    %30 = vector.load %arg7[%c0_36, %c1_37, %c0_38] : memref<18x18x128xbf16, #tpu.memory_space<vmem>>, vector<8x16x128xbf16>
    %31 = vector.shape_cast %30 : vector<8x16x128xbf16> to vector<128x128xbf16>
    %c1_39 = arith.constant 1 : index
    %c0_40 = arith.constant 0 : index
    %c0_41 = arith.constant 0 : index
    %32 = vector.load %arg4[%c1_39, %c0_40, %c0_41] : memref<9x128x128xbf16, #tpu.memory_space<vmem>>, vector<1x128x128xbf16>
    %33 = vector.shape_cast %32 : vector<1x128x128xbf16> to vector<128x128xbf16>
    %cst_42 = arith.constant dense<0.000000e+00> : vector<128x128xf32>
    %34 = tpu.matmul %31, %33, %cst_42 {dimension_numbers = #tpu.dot_dimension_numbers<[1], [0], [0], [1], [0, 0, 1, 1], [], []>} : vector<128x128xbf16>, vector<128x128xbf16>, vector<128x128xf32> -> vector<128x128xf32>
    %35 = arith.addf %29, %34 : vector<128x128xf32>
    %c0_43 = arith.constant 0 : index
    %c2 = arith.constant 2 : index
    %c0_44 = arith.constant 0 : index
    %36 = vector.load %arg7[%c0_43, %c2, %c0_44] : memref<18x18x128xbf16, #tpu.memory_space<vmem>>, vector<8x16x128xbf16>
    %37 = vector.shape_cast %36 : vector<8x16x128xbf16> to vector<128x128xbf16>
    %c2_45 = arith.constant 2 : index
    %c0_46 = arith.constant 0 : index
    %c0_47 = arith.constant 0 : index
    %38 = vector.load %arg4[%c2_45, %c0_46, %c0_47] : memref<9x128x128xbf16, #tpu.memory_space<vmem>>, vector<1x128x128xbf16>
    %39 = vector.shape_cast %38 : vector<1x128x128xbf16> to vector<128x128xbf16>
    %cst_48 = arith.constant dense<0.000000e+00> : vector<128x128xf32>
    %40 = tpu.matmul %37, %39, %cst_48 {dimension_numbers = #tpu.dot_dimension_numbers<[1], [0], [0], [1], [0, 0, 1, 1], [], []>} : vector<128x128xbf16>, vector<128x128xbf16>, vector<128x128xf32> -> vector<128x128xf32>
    %41 = arith.addf %35, %40 : vector<128x128xf32>
    %c1_49 = arith.constant 1 : index
    %c0_50 = arith.constant 0 : index
    %c0_51 = arith.constant 0 : index
    %42 = vector.load %arg7[%c1_49, %c0_50, %c0_51] : memref<18x18x128xbf16, #tpu.memory_space<vmem>>, vector<8x16x128xbf16>
    %43 = vector.shape_cast %42 : vector<8x16x128xbf16> to vector<128x128xbf16>
    %c3 = arith.constant 3 : index
    %c0_52 = arith.constant 0 : index
    %c0_53 = arith.constant 0 : index
    %44 = vector.load %arg4[%c3, %c0_52, %c0_53] : memref<9x128x128xbf16, #tpu.memory_space<vmem>>, vector<1x128x128xbf16>
    %45 = vector.shape_cast %44 : vector<1x128x128xbf16> to vector<128x128xbf16>
    %cst_54 = arith.constant dense<0.000000e+00> : vector<128x128xf32>
    %46 = tpu.matmul %43, %45, %cst_54 {dimension_numbers = #tpu.dot_dimension_numbers<[1], [0], [0], [1], [0, 0, 1, 1], [], []>} : vector<128x128xbf16>, vector<128x128xbf16>, vector<128x128xf32> -> vector<128x128xf32>
    %47 = arith.addf %41, %46 : vector<128x128xf32>
    %c1_55 = arith.constant 1 : index
    %c1_56 = arith.constant 1 : index
    %c0_57 = arith.constant 0 : index
    %48 = vector.load %arg7[%c1_55, %c1_56, %c0_57] : memref<18x18x128xbf16, #tpu.memory_space<vmem>>, vector<8x16x128xbf16>
    %49 = vector.shape_cast %48 : vector<8x16x128xbf16> to vector<128x128xbf16>
    %c4 = arith.constant 4 : index
    %c0_58 = arith.constant 0 : index
    %c0_59 = arith.constant 0 : index
    %50 = vector.load %arg4[%c4, %c0_58, %c0_59] : memref<9x128x128xbf16, #tpu.memory_space<vmem>>, vector<1x128x128xbf16>
    %51 = vector.shape_cast %50 : vector<1x128x128xbf16> to vector<128x128xbf16>
    %cst_60 = arith.constant dense<0.000000e+00> : vector<128x128xf32>
    %52 = tpu.matmul %49, %51, %cst_60 {dimension_numbers = #tpu.dot_dimension_numbers<[1], [0], [0], [1], [0, 0, 1, 1], [], []>} : vector<128x128xbf16>, vector<128x128xbf16>, vector<128x128xf32> -> vector<128x128xf32>
    %53 = arith.addf %47, %52 : vector<128x128xf32>
    %c1_61 = arith.constant 1 : index
    %c2_62 = arith.constant 2 : index
    %c0_63 = arith.constant 0 : index
    %54 = vector.load %arg7[%c1_61, %c2_62, %c0_63] : memref<18x18x128xbf16, #tpu.memory_space<vmem>>, vector<8x16x128xbf16>
    %55 = vector.shape_cast %54 : vector<8x16x128xbf16> to vector<128x128xbf16>
    %c5 = arith.constant 5 : index
    %c0_64 = arith.constant 0 : index
    %c0_65 = arith.constant 0 : index
    %56 = vector.load %arg4[%c5, %c0_64, %c0_65] : memref<9x128x128xbf16, #tpu.memory_space<vmem>>, vector<1x128x128xbf16>
    %57 = vector.shape_cast %56 : vector<1x128x128xbf16> to vector<128x128xbf16>
    %cst_66 = arith.constant dense<0.000000e+00> : vector<128x128xf32>
    %58 = tpu.matmul %55, %57, %cst_66 {dimension_numbers = #tpu.dot_dimension_numbers<[1], [0], [0], [1], [0, 0, 1, 1], [], []>} : vector<128x128xbf16>, vector<128x128xbf16>, vector<128x128xf32> -> vector<128x128xf32>
    %59 = arith.addf %53, %58 : vector<128x128xf32>
    %c2_67 = arith.constant 2 : index
    %c0_68 = arith.constant 0 : index
    %c0_69 = arith.constant 0 : index
    %60 = vector.load %arg7[%c2_67, %c0_68, %c0_69] : memref<18x18x128xbf16, #tpu.memory_space<vmem>>, vector<8x16x128xbf16>
    %61 = vector.shape_cast %60 : vector<8x16x128xbf16> to vector<128x128xbf16>
    %c6 = arith.constant 6 : index
    %c0_70 = arith.constant 0 : index
    %c0_71 = arith.constant 0 : index
    %62 = vector.load %arg4[%c6, %c0_70, %c0_71] : memref<9x128x128xbf16, #tpu.memory_space<vmem>>, vector<1x128x128xbf16>
    %63 = vector.shape_cast %62 : vector<1x128x128xbf16> to vector<128x128xbf16>
    %cst_72 = arith.constant dense<0.000000e+00> : vector<128x128xf32>
    %64 = tpu.matmul %61, %63, %cst_72 {dimension_numbers = #tpu.dot_dimension_numbers<[1], [0], [0], [1], [0, 0, 1, 1], [], []>} : vector<128x128xbf16>, vector<128x128xbf16>, vector<128x128xf32> -> vector<128x128xf32>
    %65 = arith.addf %59, %64 : vector<128x128xf32>
    %c2_73 = arith.constant 2 : index
    %c1_74 = arith.constant 1 : index
    %c0_75 = arith.constant 0 : index
    %66 = vector.load %arg7[%c2_73, %c1_74, %c0_75] : memref<18x18x128xbf16, #tpu.memory_space<vmem>>, vector<8x16x128xbf16>
    %67 = vector.shape_cast %66 : vector<8x16x128xbf16> to vector<128x128xbf16>
    %c7 = arith.constant 7 : index
    %c0_76 = arith.constant 0 : index
    %c0_77 = arith.constant 0 : index
    %68 = vector.load %arg4[%c7, %c0_76, %c0_77] : memref<9x128x128xbf16, #tpu.memory_space<vmem>>, vector<1x128x128xbf16>
    %69 = vector.shape_cast %68 : vector<1x128x128xbf16> to vector<128x128xbf16>
    %cst_78 = arith.constant dense<0.000000e+00> : vector<128x128xf32>
    %70 = tpu.matmul %67, %69, %cst_78 {dimension_numbers = #tpu.dot_dimension_numbers<[1], [0], [0], [1], [0, 0, 1, 1], [], []>} : vector<128x128xbf16>, vector<128x128xbf16>, vector<128x128xf32> -> vector<128x128xf32>
    %71 = arith.addf %65, %70 : vector<128x128xf32>
    %c2_79 = arith.constant 2 : index
    %c2_80 = arith.constant 2 : index
    %c0_81 = arith.constant 0 : index
    %72 = vector.load %arg7[%c2_79, %c2_80, %c0_81] : memref<18x18x128xbf16, #tpu.memory_space<vmem>>, vector<8x16x128xbf16>
    %73 = vector.shape_cast %72 : vector<8x16x128xbf16> to vector<128x128xbf16>
    %c8 = arith.constant 8 : index
    %c0_82 = arith.constant 0 : index
    %c0_83 = arith.constant 0 : index
    %74 = vector.load %arg4[%c8, %c0_82, %c0_83] : memref<9x128x128xbf16, #tpu.memory_space<vmem>>, vector<1x128x128xbf16>
    %75 = vector.shape_cast %74 : vector<1x128x128xbf16> to vector<128x128xbf16>
    %cst_84 = arith.constant dense<0.000000e+00> : vector<128x128xf32>
    %76 = tpu.matmul %73, %75, %cst_84 {dimension_numbers = #tpu.dot_dimension_numbers<[1], [0], [0], [1], [0, 0, 1, 1], [], []>} : vector<128x128xbf16>, vector<128x128xbf16>, vector<128x128xf32> -> vector<128x128xf32>
    %77 = arith.addf %71, %76 : vector<128x128xf32>
    %cst_85 = arith.constant dense<0.000000e+00> : vector<128xf32>
    %78 = vector.multi_reduction <add>, %77, %cst_85 [0] : vector<128x128xf32> to vector<128xf32>
    %79 = vector.shape_cast %78 : vector<128xf32> to vector<1x128xf32>
    %80 = arith.addf %21, %79 : vector<1x128xf32>
    %81 = arith.mulf %77, %77 : vector<128x128xf32>
    %cst_86 = arith.constant dense<0.000000e+00> : vector<128xf32>
    %82 = vector.multi_reduction <add>, %81, %cst_86 [0] : vector<128x128xf32> to vector<128xf32>
    %83 = vector.shape_cast %82 : vector<128xf32> to vector<1x128xf32>
    %84 = arith.addf %22, %83 : vector<1x128xf32>
    %85 = vector.shape_cast %77 : vector<128x128xf32> to vector<8x16x128xf32>
    %86 = arith.truncf %85 : vector<8x16x128xf32> to vector<8x16x128xbf16>
    %c0_87 = arith.constant 0 : index
    %c0_88 = arith.constant 0 : index
    %c0_89 = arith.constant 0 : index
    %c0_90 = arith.constant 0 : index
    %87 = vector.load %arg5[%c0_87, %c0_88, %c0_89, %c0_90] : memref<1x16x16x128xbf16, #tpu.memory_space<vmem>>, vector<1x8x16x128xbf16>
    %88 = vector.shape_cast %87 : vector<1x8x16x128xbf16> to vector<8x16x128xbf16>
    %89 = vector.shape_cast %86 : vector<8x16x128xbf16> to vector<1x8x16x128xbf16>
    tpu.vector_store %arg5[%c0_87, %c0_88, %c0_89, %c0_90], %89 {strides = array<i32>} : memref<1x16x16x128xbf16, #tpu.memory_space<vmem>>, vector<1x8x16x128xbf16>,
    %cst_91 = arith.constant 0.000000e+00 : f32
    %90 = vector.broadcast %cst_91 : f32 to vector<128x128xf32>
    %c8_92 = arith.constant 8 : index
    %c0_93 = arith.constant 0 : index
    %c0_94 = arith.constant 0 : index
    %91 = vector.load %arg7[%c8_92, %c0_93, %c0_94] : memref<18x18x128xbf16, #tpu.memory_space<vmem>>, vector<8x16x128xbf16>
    %92 = vector.shape_cast %91 : vector<8x16x128xbf16> to vector<128x128xbf16>
    %c0_95 = arith.constant 0 : index
    %c0_96 = arith.constant 0 : index
    %c0_97 = arith.constant 0 : index
    %93 = vector.load %arg4[%c0_95, %c0_96, %c0_97] : memref<9x128x128xbf16, #tpu.memory_space<vmem>>, vector<1x128x128xbf16>
    %94 = vector.shape_cast %93 : vector<1x128x128xbf16> to vector<128x128xbf16>
    %cst_98 = arith.constant dense<0.000000e+00> : vector<128x128xf32>
    %95 = tpu.matmul %92, %94, %cst_98 {dimension_numbers = #tpu.dot_dimension_numbers<[1], [0], [0], [1], [0, 0, 1, 1], [], []>} : vector<128x128xbf16>, vector<128x128xbf16>, vector<128x128xf32> -> vector<128x128xf32>
    %96 = arith.addf %90, %95 : vector<128x128xf32>
    %c8_99 = arith.constant 8 : index
    %c1_100 = arith.constant 1 : index
    %c0_101 = arith.constant 0 : index
    %97 = vector.load %arg7[%c8_99, %c1_100, %c0_101] : memref<18x18x128xbf16, #tpu.memory_space<vmem>>, vector<8x16x128xbf16>
    %98 = vector.shape_cast %97 : vector<8x16x128xbf16> to vector<128x128xbf16>
    %c1_102 = arith.constant 1 : index
    %c0_103 = arith.constant 0 : index
    %c0_104 = arith.constant 0 : index
    %99 = vector.load %arg4[%c1_102, %c0_103, %c0_104] : memref<9x128x128xbf16, #tpu.memory_space<vmem>>, vector<1x128x128xbf16>
    %100 = vector.shape_cast %99 : vector<1x128x128xbf16> to vector<128x128xbf16>
    %cst_105 = arith.constant dense<0.000000e+00> : vector<128x128xf32>
    %101 = tpu.matmul %98, %100, %cst_105 {dimension_numbers = #tpu.dot_dimension_numbers<[1], [0], [0], [1], [0, 0, 1, 1], [], []>} : vector<128x128xbf16>, vector<128x128xbf16>, vector<128x128xf32> -> vector<128x128xf32>
    %102 = arith.addf %96, %101 : vector<128x128xf32>
    %c8_106 = arith.constant 8 : index
    %c2_107 = arith.constant 2 : index
    %c0_108 = arith.constant 0 : index
    %103 = vector.load %arg7[%c8_106, %c2_107, %c0_108] : memref<18x18x128xbf16, #tpu.memory_space<vmem>>, vector<8x16x128xbf16>
    %104 = vector.shape_cast %103 : vector<8x16x128xbf16> to vector<128x128xbf16>
    %c2_109 = arith.constant 2 : index
    %c0_110 = arith.constant 0 : index
    %c0_111 = arith.constant 0 : index
    %105 = vector.load %arg4[%c2_109, %c0_110, %c0_111] : memref<9x128x128xbf16, #tpu.memory_space<vmem>>, vector<1x128x128xbf16>
    %106 = vector.shape_cast %105 : vector<1x128x128xbf16> to vector<128x128xbf16>
    %cst_112 = arith.constant dense<0.000000e+00> : vector<128x128xf32>
    %107 = tpu.matmul %104, %106, %cst_112 {dimension_numbers = #tpu.dot_dimension_numbers<[1], [0], [0], [1], [0, 0, 1, 1], [], []>} : vector<128x128xbf16>, vector<128x128xbf16>, vector<128x128xf32> -> vector<128x128xf32>
    %108 = arith.addf %102, %107 : vector<128x128xf32>
    %c9 = arith.constant 9 : index
    %c0_113 = arith.constant 0 : index
    %c0_114 = arith.constant 0 : index
    %109 = vector.load %arg7[%c9, %c0_113, %c0_114] : memref<18x18x128xbf16, #tpu.memory_space<vmem>>, vector<8x16x128xbf16>
    %110 = vector.shape_cast %109 : vector<8x16x128xbf16> to vector<128x128xbf16>
    %c3_115 = arith.constant 3 : index
    %c0_116 = arith.constant 0 : index
    %c0_117 = arith.constant 0 : index
    %111 = vector.load %arg4[%c3_115, %c0_116, %c0_117] : memref<9x128x128xbf16, #tpu.memory_space<vmem>>, vector<1x128x128xbf16>
    %112 = vector.shape_cast %111 : vector<1x128x128xbf16> to vector<128x128xbf16>
    %cst_118 = arith.constant dense<0.000000e+00> : vector<128x128xf32>
    %113 = tpu.matmul %110, %112, %cst_118 {dimension_numbers = #tpu.dot_dimension_numbers<[1], [0], [0], [1], [0, 0, 1, 1], [], []>} : vector<128x128xbf16>, vector<128x128xbf16>, vector<128x128xf32> -> vector<128x128xf32>
    %114 = arith.addf %108, %113 : vector<128x128xf32>
    %c9_119 = arith.constant 9 : index
    %c1_120 = arith.constant 1 : index
    %c0_121 = arith.constant 0 : index
    %115 = vector.load %arg7[%c9_119, %c1_120, %c0_121] : memref<18x18x128xbf16, #tpu.memory_space<vmem>>, vector<8x16x128xbf16>
    %116 = vector.shape_cast %115 : vector<8x16x128xbf16> to vector<128x128xbf16>
    %c4_122 = arith.constant 4 : index
    %c0_123 = arith.constant 0 : index
    %c0_124 = arith.constant 0 : index
    %117 = vector.load %arg4[%c4_122, %c0_123, %c0_124] : memref<9x128x128xbf16, #tpu.memory_space<vmem>>, vector<1x128x128xbf16>
    %118 = vector.shape_cast %117 : vector<1x128x128xbf16> to vector<128x128xbf16>
    %cst_125 = arith.constant dense<0.000000e+00> : vector<128x128xf32>
    %119 = tpu.matmul %116, %118, %cst_125 {dimension_numbers = #tpu.dot_dimension_numbers<[1], [0], [0], [1], [0, 0, 1, 1], [], []>} : vector<128x128xbf16>, vector<128x128xbf16>, vector<128x128xf32> -> vector<128x128xf32>
    %120 = arith.addf %114, %119 : vector<128x128xf32>
    %c9_126 = arith.constant 9 : index
    %c2_127 = arith.constant 2 : index
    %c0_128 = arith.constant 0 : index
    %121 = vector.load %arg7[%c9_126, %c2_127, %c0_128] : memref<18x18x128xbf16, #tpu.memory_space<vmem>>, vector<8x16x128xbf16>
    %122 = vector.shape_cast %121 : vector<8x16x128xbf16> to vector<128x128xbf16>
    %c5_129 = arith.constant 5 : index
    %c0_130 = arith.constant 0 : index
    %c0_131 = arith.constant 0 : index
    %123 = vector.load %arg4[%c5_129, %c0_130, %c0_131] : memref<9x128x128xbf16, #tpu.memory_space<vmem>>, vector<1x128x128xbf16>
    %124 = vector.shape_cast %123 : vector<1x128x128xbf16> to vector<128x128xbf16>
    %cst_132 = arith.constant dense<0.000000e+00> : vector<128x128xf32>
    %125 = tpu.matmul %122, %124, %cst_132 {dimension_numbers = #tpu.dot_dimension_numbers<[1], [0], [0], [1], [0, 0, 1, 1], [], []>} : vector<128x128xbf16>, vector<128x128xbf16>, vector<128x128xf32> -> vector<128x128xf32>
    %126 = arith.addf %120, %125 : vector<128x128xf32>
    %c10 = arith.constant 10 : index
    %c0_133 = arith.constant 0 : index
    %c0_134 = arith.constant 0 : index
    %127 = vector.load %arg7[%c10, %c0_133, %c0_134] : memref<18x18x128xbf16, #tpu.memory_space<vmem>>, vector<8x16x128xbf16>
    %128 = vector.shape_cast %127 : vector<8x16x128xbf16> to vector<128x128xbf16>
    %c6_135 = arith.constant 6 : index
    %c0_136 = arith.constant 0 : index
    %c0_137 = arith.constant 0 : index
    %129 = vector.load %arg4[%c6_135, %c0_136, %c0_137] : memref<9x128x128xbf16, #tpu.memory_space<vmem>>, vector<1x128x128xbf16>
    %130 = vector.shape_cast %129 : vector<1x128x128xbf16> to vector<128x128xbf16>
    %cst_138 = arith.constant dense<0.000000e+00> : vector<128x128xf32>
    %131 = tpu.matmul %128, %130, %cst_138 {dimension_numbers = #tpu.dot_dimension_numbers<[1], [0], [0], [1], [0, 0, 1, 1], [], []>} : vector<128x128xbf16>, vector<128x128xbf16>, vector<128x128xf32> -> vector<128x128xf32>
    %132 = arith.addf %126, %131 : vector<128x128xf32>
    %c10_139 = arith.constant 10 : index
    %c1_140 = arith.constant 1 : index
    %c0_141 = arith.constant 0 : index
    %133 = vector.load %arg7[%c10_139, %c1_140, %c0_141] : memref<18x18x128xbf16, #tpu.memory_space<vmem>>, vector<8x16x128xbf16>
    %134 = vector.shape_cast %133 : vector<8x16x128xbf16> to vector<128x128xbf16>
    %c7_142 = arith.constant 7 : index
    %c0_143 = arith.constant 0 : index
    %c0_144 = arith.constant 0 : index
    %135 = vector.load %arg4[%c7_142, %c0_143, %c0_144] : memref<9x128x128xbf16, #tpu.memory_space<vmem>>, vector<1x128x128xbf16>
    %136 = vector.shape_cast %135 : vector<1x128x128xbf16> to vector<128x128xbf16>
    %cst_145 = arith.constant dense<0.000000e+00> : vector<128x128xf32>
    %137 = tpu.matmul %134, %136, %cst_145 {dimension_numbers = #tpu.dot_dimension_numbers<[1], [0], [0], [1], [0, 0, 1, 1], [], []>} : vector<128x128xbf16>, vector<128x128xbf16>, vector<128x128xf32> -> vector<128x128xf32>
    %138 = arith.addf %132, %137 : vector<128x128xf32>
    %c10_146 = arith.constant 10 : index
    %c2_147 = arith.constant 2 : index
    %c0_148 = arith.constant 0 : index
    %139 = vector.load %arg7[%c10_146, %c2_147, %c0_148] : memref<18x18x128xbf16, #tpu.memory_space<vmem>>, vector<8x16x128xbf16>
    %140 = vector.shape_cast %139 : vector<8x16x128xbf16> to vector<128x128xbf16>
    %c8_149 = arith.constant 8 : index
    %c0_150 = arith.constant 0 : index
    %c0_151 = arith.constant 0 : index
    %141 = vector.load %arg4[%c8_149, %c0_150, %c0_151] : memref<9x128x128xbf16, #tpu.memory_space<vmem>>, vector<1x128x128xbf16>
    %142 = vector.shape_cast %141 : vector<1x128x128xbf16> to vector<128x128xbf16>
    %cst_152 = arith.constant dense<0.000000e+00> : vector<128x128xf32>
    %143 = tpu.matmul %140, %142, %cst_152 {dimension_numbers = #tpu.dot_dimension_numbers<[1], [0], [0], [1], [0, 0, 1, 1], [], []>} : vector<128x128xbf16>, vector<128x128xbf16>, vector<128x128xf32> -> vector<128x128xf32>
    %144 = arith.addf %138, %143 : vector<128x128xf32>
    %cst_153 = arith.constant dense<0.000000e+00> : vector<128xf32>
    %145 = vector.multi_reduction <add>, %144, %cst_153 [0] : vector<128x128xf32> to vector<128xf32>
    %146 = vector.shape_cast %145 : vector<128xf32> to vector<1x128xf32>
    %147 = arith.addf %80, %146 : vector<1x128xf32>
    %148 = arith.mulf %144, %144 : vector<128x128xf32>
    %cst_154 = arith.constant dense<0.000000e+00> : vector<128xf32>
    %149 = vector.multi_reduction <add>, %148, %cst_154 [0] : vector<128x128xf32> to vector<128xf32>
    %150 = vector.shape_cast %149 : vector<128xf32> to vector<1x128xf32>
    %151 = arith.addf %84, %150 : vector<1x128xf32>
    %152 = vector.shape_cast %144 : vector<128x128xf32> to vector<8x16x128xf32>
    %153 = arith.truncf %152 : vector<8x16x128xf32> to vector<8x16x128xbf16>
    %c0_155 = arith.constant 0 : index
    %c8_156 = arith.constant 8 : index
    %c0_157 = arith.constant 0 : index
    %c0_158 = arith.constant 0 : index
    %154 = vector.load %arg5[%c0_155, %c8_156, %c0_157, %c0_158] : memref<1x16x16x128xbf16, #tpu.memory_space<vmem>>, vector<1x8x16x128xbf16>
    %155 = vector.shape_cast %154 : vector<1x8x16x128xbf16> to vector<8x16x128xbf16>
    %156 = vector.shape_cast %153 : vector<8x16x128xbf16> to vector<1x8x16x128xbf16>
    tpu.vector_store %arg5[%c0_155, %c8_156, %c0_157, %c0_158], %156 {strides = array<i32>} : memref<1x16x16x128xbf16, #tpu.memory_space<vmem>>, vector<1x8x16x128xbf16>,
    %157 = tpu.concatenate %147, %151 in 0 : vector<1x128xf32>, vector<1x128xf32> -> vector<2x128xf32>
    %c0_159 = arith.constant 0 : index
    %c0_160 = arith.constant 0 : index
    %c0_161 = arith.constant 0 : index
    %158 = vector.load %arg6[%c0_159, %c0_160, %c0_161] : memref<1x2x128xf32, #tpu.memory_space<vmem>>, vector<1x2x128xf32>
    %159 = vector.shape_cast %158 : vector<1x2x128xf32> to vector<2x128xf32>
    %160 = vector.shape_cast %157 : vector<2x128xf32> to vector<1x2x128xf32>
    tpu.vector_store %arg6[%c0_159, %c0_160, %c0_161], %160 {strides = array<i32>} : memref<1x2x128xf32, #tpu.memory_space<vmem>>, vector<1x2x128xf32>,
    return
  }
  func.func @transform_0(%arg0: i32) -> (i32, i32, i32, i32) {
    %c0_i32 = arith.constant 0 : i32
    %c0_i32_0 = arith.constant 0 : i32
    %c0_i32_1 = arith.constant 0 : i32
    %c0_i32_2 = arith.constant 0 : i32
    return %arg0, %c0_i32, %c0_i32_0, %c0_i32_1 : i32, i32, i32, i32
  }
  func.func @transform_1(%arg0: i32) -> (i32, i32, i32) {
    %c0_i32 = arith.constant 0 : i32
    %c0_i32_0 = arith.constant 0 : i32
    %c0_i32_1 = arith.constant 0 : i32
    %c0_i32_2 = arith.constant 0 : i32
    return %c0_i32, %c0_i32_0, %c0_i32_1 : i32, i32, i32
  }
  func.func @transform_2(%arg0: i32) -> (i32, i32, i32) {
    %c0_i32 = arith.constant 0 : i32
    %c0_i32_0 = arith.constant 0 : i32
    %c0_i32_1 = arith.constant 0 : i32
    %c0_i32_2 = arith.constant 0 : i32
    return %c0_i32, %c0_i32_0, %c0_i32_1 : i32, i32, i32
  }
  func.func @transform_3(%arg0: i32) -> (i32, i32, i32) {
    %c0_i32 = arith.constant 0 : i32
    %c0_i32_0 = arith.constant 0 : i32
    %c0_i32_1 = arith.constant 0 : i32
    %c0_i32_2 = arith.constant 0 : i32
    return %c0_i32, %c0_i32_0, %c0_i32_1 : i32, i32, i32
  }
  func.func @transform_4(%arg0: i32) -> (i32, i32, i32, i32) {
    %c0_i32 = arith.constant 0 : i32
    %c0_i32_0 = arith.constant 0 : i32
    %c0_i32_1 = arith.constant 0 : i32
    %c0_i32_2 = arith.constant 0 : i32
    return %arg0, %c0_i32, %c0_i32_0, %c0_i32_1 : i32, i32, i32, i32
  }
  func.func @transform_5(%arg0: i32) -> (i32, i32, i32) {
    %c0_i32 = arith.constant 0 : i32
    %c0_i32_0 = arith.constant 0 : i32
    %c0_i32_1 = arith.constant 0 : i32
    return %arg0, %c0_i32, %c0_i32_0 : i32, i32, i32
  }
}

</mosaic_0001>

<bundles_post_ra>
// kernel: residual_block_forward.5
= control target key start
LH: loop header
LB: loop body
LE: loop exit
PB: predicated region body
PF: predicated region fallthrough
CT: control target
= control target key end

     0   :  { %s830_s15 = smov 0   ;;  %s1002_s0 = inlined_call_operand.vmem [shape: bf16[2,16,16,128], index: 0, kind: input, shape index: {}]   ;;  %s1003_s1 = inlined_call_operand.vmem [shape: f32[1,1,128], index: 1, kind: input, shape index: {}]   ;;  %s1004_s2 = inlined_call_operand.vmem [shape: f32[1,1,128], index: 2, kind: input, shape index: {}]   ;;  %s1005_s3 = inlined_call_operand.vmem [shape: bf16[2,16,16,128], index: 3, kind: input, shape index: {}]   ;;  %s1006_s4 = inlined_call_operand.vmem [shape: f32[2,16,16,128], index: 4, kind: output, shape index: {}]  }
   0x1 LB: > { %s613_s16 = sadd.s32 4294967295, %s803_s15   ;;  %p617_p0 = scmp.ge.s32.totalorder %s803_s15, 1  ;;  %s803_s15 = sphi %s830_s15, %s14_s15  }
   0x2   : > { %p172_p1 = scmp.lt.s32.totalorder %s803_s15, 3 }
   0x4   : > { %p173_p2 = pnand %p617_p0, %p172_p1 }
   0x5   : > { %p203_p3 = scmp.lt.s32.totalorder (!%p173_p2), %s613_s16, 1 }
   0x6   : > { %176 = sbr.rel (%p173_p2) target bundleno = 78 (0x4e), region = 36 }
   0xb   : > { %s1008_s16 = smov (!%p203_p3, %s613_s16), 1  ;;  %v854_v0 = vld [vmem:[%s1003_s1] ss:$0 sm:$0xff] }
   0xc   : > { %s626_s17 = sshll.u32 %s1008_s16, 7  ;;  %v859_v1 = vld [vmem:[%s1004_s2] ss:$0 sm:$0xff]  ;;  %s628_s28 = sshll.u32 %s1008_s16, 8 }
   0xd   : > { %s844_s20 = scalar_lea.vmem %s1002_s0, %s626_s17  ;;  %s849_s23 = scalar_lea.vmem %s1005_s3, %s626_s17 }
   0xe   : > { %v630_v2 = vld [vmem:[%s844_s20] sm:$0xff]   ;;  %v757_v4 = vld [vmem:[%s844_s20 + $0x8] sm:$0xff]   ;;  %v758_v10 = vld [vmem:[%s844_s20 + $0x10] sm:$0xff]   ;;  %s887_s5 = scalar_lea.vmem %s1006_s4, %s628_s28 }
   0xf   : > { %v694_v3 = vld [vmem:[%s849_s23] sm:$0xff]   ;;  %v631_v5 = vunpack.c.l.bf16 %v630_v2  ;;  %v632_v7 = vunpack.c.h.bf16 %v630_v2  ;;  %v772_v9 = vld [vmem:[%s849_s23 + $0x8] sm:$0xff]   ;;  %v773_v11 = vld [vmem:[%s849_s23 + $0x10] sm:$0xff]   ;;  %v635_v12 = vunpack.c.l.bf16 %v757_v4  ;;  %v636_v14 = vunpack.c.h.bf16 %v757_v4 }
  0x10   : > { %v695_v6 = vunpack.c.l.bf16 %v694_v3  ;;  %v696_v8 = vunpack.c.h.bf16 %v694_v3  ;;  %v699_v13 = vunpack.c.l.bf16 %v772_v9  ;;  %v700_v15 = vunpack.c.h.bf16 %v772_v9  ;;  %v759_v16 = vld [vmem:[%s844_s20 + $0x18] sm:$0xff]   ;;  %v760_v50 = vld [vmem:[%s844_s20 + $0x20] sm:$0xff]   ;;  %v761_v60 = vld [vmem:[%s844_s20 + $0x28] sm:$0xff]  }
  0x11   : > { %v286_v17 = vmul.f32 %v854_v0, %v631_v5  ;;  %v287_v18 = vmul.f32 %v854_v0, %v632_v7  ;;  %v639_v19 = vunpack.c.l.bf16 %v758_v10  ;;  %v703_v20 = vunpack.c.l.bf16 %v773_v11  ;;  %v774_v21 = vld [vmem:[%s849_s23 + $0x18] sm:$0xff]   ;;  %v775_v55 = vld [vmem:[%s849_s23 + $0x20] sm:$0xff]   ;;  %v776_v3 = vld [vmem:[%s849_s23 + $0x28] sm:$0xff]  }
  0x12   : > { %v288_v22 = vmul.f32 %v854_v0, %v635_v12  ;;  %v289_v23 = vmul.f32 %v854_v0, %v636_v14  ;;  %v640_v24 = vunpack.c.h.bf16 %v758_v10  ;;  %v704_v25 = vunpack.c.h.bf16 %v773_v11 }
  0x13   : > { %v322_v26 = vadd.f32 %v859_v1, %v286_v17  ;;  %v323_v27 = vadd.f32 %v859_v1, %v287_v18  ;;  %v290_v28 = vmul.f32 %v854_v0, %v639_v19  ;;  %v643_v29 = vunpack.c.l.bf16 %v759_v16 }
  0x14   : > { %v324_v30 = vadd.f32 %v859_v1, %v288_v22  ;;  %v325_v31 = vadd.f32 %v859_v1, %v289_v23  ;;  %v291_v32 = vmul.f32 %v854_v0, %v640_v24  ;;  %v707_v33 = vunpack.c.l.bf16 %v774_v21  ;;  %v763_v22 = vld [vmem:[%s844_s20 + $0x38] sm:$0xff]  }
  0x15   : > { %v354_v34 = vmax.f32 %v322_v26, 0.0  ;;  %v355_v35 = vmax.f32 %v323_v27, 0.0  ;;  %v326_v36 = vadd.f32 %v859_v1, %v290_v28  ;;  %v292_v37 = vmul.f32 %v854_v0, %v643_v29 }
  0x16   : > { %v356_v38 = vmax.f32 %v324_v30, 0.0  ;;  %v357_v39 = vmax.f32 %v325_v31, 0.0  ;;  %v327_v40 = vadd.f32 %v859_v1, %v291_v32  ;;  %v644_v41 = vunpack.c.h.bf16 %v759_v16  ;;  %v914_v31 = vld [vmem:[%s849_s23 + $0x38] sm:$0xff]  }
  0x17   : > { %v450_v42 = vadd.f32 %v695_v6, %v354_v34  ;;  %v451_v43 = vadd.f32 %v696_v8, %v355_v35  ;;  %v358_v44 = vmax.f32 %v326_v36, 0.0  ;;  %v328_v45 = vadd.f32 %v859_v1, %v292_v37  ;;  %v762_v8 = vld [vmem:[%s844_s20 + $0x30] sm:$0xff]  }
  0x18   : > { %v452_v46 = vadd.f32 %v699_v13, %v356_v38  ;;  %v453_v47 = vadd.f32 %v700_v15, %v357_v39  ;;  %v359_v48 = vmax.f32 %v327_v40, 0.0  ;;  %v293_v49 = vmul.f32 %v854_v0, %v644_v41  ;;  %v777_v13 = vld [vmem:[%s849_s23 + $0x30] sm:$0xff]  }
  0x19   : > { %v482_v51 = vmax.f32 %v450_v42, 0.0  ;;  %v483_v52 = vmax.f32 %v451_v43, 0.0  ;;  %v454_v53 = vadd.f32 %v703_v20, %v358_v44  ;;  %v360_v54 = vmax.f32 %v328_v45, 0.0 }
  0x1a   : > { %v484_v56 = vmax.f32 %v452_v46, 0.0  ;;  %v485_v57 = vmax.f32 %v453_v47, 0.0  ;;  %v455_v58 = vadd.f32 %v704_v25, %v359_v48  ;;  %v329_v59 = vadd.f32 %v859_v1, %v293_v49  ;;  %v764_v48 = vld [vmem:[%s844_s20 + $0x40] sm:$0xff]  }
  0x1b   : > { %514 = vst [vmem:[%s887_s5] sm:$0xff] %v482_v51  ;;  %v486_v61 = vmax.f32 %v454_v53, 0.0  ;;  %v456_v62 = vadd.f32 %v707_v33, %v360_v54  ;;  %v708_v63 = vunpack.c.h.bf16 %v774_v21  ;;  %v647_v2 = vunpack.c.l.bf16 %v760_v50 }
  0x1c   : > { %515 = vst [vmem:[%s887_s5 + $0x8] sm:$0xff] %v483_v52  ;;  %v487_v4 = vmax.f32 %v455_v58, 0.0  ;;  %v361_v5 = vmax.f32 %v329_v59, 0.0  ;;  %v711_v6 = vunpack.c.l.bf16 %v775_v55  ;;  %v648_v7 = vunpack.c.h.bf16 %v760_v50 }
  0x1d   : > { %516 = vst [vmem:[%s887_s5 + $0x10] sm:$0xff] %v484_v56  ;;  %v488_v9 = vmax.f32 %v456_v62, 0.0  ;;  %v294_v10 = vmul.f32 %v854_v0, %v647_v2  ;;  %v712_v11 = vunpack.c.h.bf16 %v775_v55  ;;  %v651_v12 = vunpack.c.l.bf16 %v761_v60  ;;  %v779_v56 = vld [vmem:[%s849_s23 + $0x40] sm:$0xff]  }
  0x1e   : > { %517 = vst [vmem:[%s887_s5 + $0x18] sm:$0xff] %v485_v57  ;;  %v457_v14 = vadd.f32 %v708_v63, %v361_v5  ;;  %v295_v15 = vmul.f32 %v854_v0, %v648_v7  ;;  %v715_v16 = vunpack.c.l.bf16 %v776_v3  ;;  %v652_v17 = vunpack.c.h.bf16 %v761_v60 }
  0x1f   : > { %518 = vst [vmem:[%s887_s5 + $0x20] sm:$0xff] %v486_v61  ;;  %v330_v18 = vadd.f32 %v859_v1, %v294_v10  ;;  %v296_v19 = vmul.f32 %v854_v0, %v651_v12  ;;  %v716_v20 = vunpack.c.h.bf16 %v776_v3  ;;  %v655_v21 = vunpack.c.l.bf16 %v762_v8  ;;  %v765_v61 = vld [vmem:[%s844_s20 + $0x48] sm:$0xff]  }
  0x20   : > { %519 = vst [vmem:[%s887_s5 + $0x28] sm:$0xff] %v487_v4  ;;  %v489_v23 = vmax.f32 %v457_v14, 0.0  ;;  %v331_v24 = vadd.f32 %v859_v1, %v295_v15  ;;  %v297_v25 = vmul.f32 %v854_v0, %v652_v17  ;;  %v719_v26 = vunpack.c.l.bf16 %v777_v13 }
  0x21   : > { %520 = vst [vmem:[%s887_s5 + $0x30] sm:$0xff] %v488_v9  ;;  %v362_v27 = vmax.f32 %v330_v18, 0.0  ;;  %v332_v28 = vadd.f32 %v859_v1, %v296_v19  ;;  %v298_v29 = vmul.f32 %v854_v0, %v655_v21  ;;  %v656_v30 = vunpack.c.h.bf16 %v762_v8  ;;  %v780_v8 = vld [vmem:[%s849_s23 + $0x48] sm:$0xff]   ;;  %v766_v9 = vld [vmem:[%s844_s20 + $0x50] sm:$0xff]  }
  0x22   : > { %521 = vst [vmem:[%s887_s5 + $0x38] sm:$0xff] %v489_v23  ;;  %v363_v32 = vmax.f32 %v331_v24, 0.0  ;;  %v333_v33 = vadd.f32 %v859_v1, %v297_v25  ;;  %v720_v34 = vunpack.c.h.bf16 %v777_v13  ;;  %v659_v35 = vunpack.c.l.bf16 %v763_v22 }
  0x23   : > { %v458_v36 = vadd.f32 %v711_v6, %v362_v27  ;;  %v364_v37 = vmax.f32 %v332_v28, 0.0  ;;  %v334_v38 = vadd.f32 %v859_v1, %v298_v29  ;;  %v299_v39 = vmul.f32 %v854_v0, %v656_v30 }
  0x24   : > { %v459_v40 = vadd.f32 %v712_v11, %v363_v32  ;;  %v365_v41 = vmax.f32 %v333_v33, 0.0  ;;  %v300_v42 = vmul.f32 %v854_v0, %v659_v35  ;;  %v723_v43 = vunpack.c.l.bf16 %v914_v31 }
  0x25   : > { %v490_v44 = vmax.f32 %v458_v36, 0.0  ;;  %v460_v45 = vadd.f32 %v715_v16, %v364_v37  ;;  %v366_v46 = vmax.f32 %v334_v38, 0.0  ;;  %v335_v47 = vadd.f32 %v859_v1, %v299_v39 }
  0x26   : > { %v491_v49 = vmax.f32 %v459_v40, 0.0  ;;  %v461_v50 = vadd.f32 %v716_v20, %v365_v41  ;;  %v336_v51 = vadd.f32 %v859_v1, %v300_v42  ;;  %v660_v52 = vunpack.c.h.bf16 %v763_v22  ;;  %v781_v22 = vld [vmem:[%s849_s23 + $0x50] sm:$0xff]   ;;  %v782_v40 = vld [vmem:[%s849_s23 + $0x58] sm:$0xff]  }
  0x27   : > { %522 = vst [vmem:[%s887_s5 + $0x40] sm:$0xff] %v490_v44  ;;  %v492_v53 = vmax.f32 %v460_v45, 0.0  ;;  %v462_v54 = vadd.f32 %v719_v26, %v366_v46  ;;  %v367_v55 = vmax.f32 %v335_v47, 0.0  ;;  %v663_v60 = vunpack.c.l.bf16 %v764_v48  ;;  %v768_v45 = vld [vmem:[%s844_s20 + $0x60] sm:$0xff]  }
  0x28   : > { %523 = vst [vmem:[%s887_s5 + $0x48] sm:$0xff] %v491_v49  ;;  %v493_v57 = vmax.f32 %v461_v50, 0.0  ;;  %v368_v58 = vmax.f32 %v336_v51, 0.0  ;;  %v301_v59 = vmul.f32 %v854_v0, %v660_v52  ;;  %v724_v2 = vunpack.c.h.bf16 %v914_v31  ;;  %v767_v31 = vld [vmem:[%s844_s20 + $0x58] sm:$0xff]  }
  0x29   : > { %524 = vst [vmem:[%s887_s5 + $0x50] sm:$0xff] %v492_v53  ;;  %v494_v62 = vmax.f32 %v462_v54, 0.0  ;;  %v463_v63 = vadd.f32 %v720_v34, %v367_v55  ;;  %v664_v3 = vunpack.c.h.bf16 %v764_v48  ;;  %v302_v6 = vmul.f32 %v854_v0, %v663_v60 }
  0x2a   : > { %525 = vst [vmem:[%s887_s5 + $0x58] sm:$0xff] %v493_v57  ;;  %v464_v4 = vadd.f32 %v723_v43, %v368_v58  ;;  %v337_v5 = vadd.f32 %v859_v1, %v301_v59  ;;  %v727_v7 = vunpack.c.l.bf16 %v779_v56  ;;  %v728_v12 = vunpack.c.h.bf16 %v779_v56  ;;  %v783_v58 = vld [vmem:[%s849_s23 + $0x60] sm:$0xff]   ;;  %v769_v59 = vld [vmem:[%s844_s20 + $0x68] sm:$0xff]  }
  0x2b   : > { %526 = vst [vmem:[%s887_s5 + $0x60] sm:$0xff] %v494_v62  ;;  %v495_v10 = vmax.f32 %v463_v63, 0.0  ;;  %v303_v11 = vmul.f32 %v854_v0, %v664_v3  ;;  %v667_v13 = vunpack.c.l.bf16 %v765_v61  ;;  %v338_v16 = vadd.f32 %v859_v1, %v302_v6 }
  0x2c   : > { %v496_v14 = vmax.f32 %v464_v4, 0.0  ;;  %v369_v15 = vmax.f32 %v337_v5, 0.0  ;;  %v668_v17 = vunpack.c.h.bf16 %v765_v61  ;;  %v731_v20 = vunpack.c.l.bf16 %v780_v8 }
  0x2d   : > { %527 = vst [vmem:[%s887_s5 + $0x68] sm:$0xff] %v495_v10  ;;  %v339_v18 = vadd.f32 %v859_v1, %v303_v11  ;;  %v304_v19 = vmul.f32 %v854_v0, %v667_v13  ;;  %v671_v21 = vunpack.c.l.bf16 %v766_v9  ;;  %v370_v24 = vmax.f32 %v338_v16, 0.0  ;;  %v784_v10 = vld [vmem:[%s849_s23 + $0x68] sm:$0xff]   ;;  %v770_v11 = vld [vmem:[%s844_s20 + $0x70] sm:$0xff]  }
  0x2e   : > { %528 = vst [vmem:[%s887_s5 + $0x70] sm:$0xff] %v496_v14  ;;  %v465_v23 = vadd.f32 %v724_v2, %v369_v15  ;;  %v305_v25 = vmul.f32 %v854_v0, %v668_v17  ;;  %v732_v26 = vunpack.c.h.bf16 %v780_v8  ;;  %v672_v30 = vunpack.c.h.bf16 %v766_v9 }
  0x2f   : > { %v371_v27 = vmax.f32 %v339_v18, 0.0  ;;  %v340_v28 = vadd.f32 %v859_v1, %v304_v19  ;;  %v306_v29 = vmul.f32 %v854_v0, %v671_v21  ;;  %v466_v33 = vadd.f32 %v727_v7, %v370_v24 }
  0x30   : > { %v497_v32 = vmax.f32 %v465_v23, 0.0  ;;  %v341_v34 = vadd.f32 %v859_v1, %v305_v25  ;;  %v735_v35 = vunpack.c.l.bf16 %v781_v22  ;;  %v307_v39 = vmul.f32 %v854_v0, %v672_v30 }
  0x31   : > { %v467_v36 = vadd.f32 %v728_v12, %v371_v27  ;;  %v372_v37 = vmax.f32 %v340_v28, 0.0  ;;  %v342_v38 = vadd.f32 %v859_v1, %v306_v29  ;;  %v498_v41 = vmax.f32 %v466_v33, 0.0  ;;  %v785_v28 = vld [vmem:[%s849_s23 + $0x70] sm:$0xff]   ;;  %v771_v33 = vld [vmem:[%s844_s20 + $0x78] sm:$0xff]  }
  0x32   : > { %529 = vst [vmem:[%s887_s5 + $0x78] sm:$0xff] %v497_v32  ;;  %v373_v42 = vmax.f32 %v341_v34, 0.0  ;;  %v736_v43 = vunpack.c.h.bf16 %v781_v22  ;;  %v675_v44 = vunpack.c.l.bf16 %v767_v31  ;;  %v343_v49 = vadd.f32 %v859_v1, %v307_v39 }
  0x33   : > { %v499_v46 = vmax.f32 %v467_v36, 0.0  ;;  %v468_v47 = vadd.f32 %v731_v20, %v372_v37  ;;  %v374_v48 = vmax.f32 %v342_v38, 0.0  ;;  %530 = vst [vmem:[%s887_s5 + $0x80] sm:$0xff] %v498_v41  ;;  %v739_v52 = vunpack.c.l.bf16 %v782_v40 }
  0x34   : > { %v469_v50 = vadd.f32 %v732_v26, %v373_v42  ;;  %v308_v51 = vmul.f32 %v854_v0, %v675_v44  ;;  %v676_v53 = vunpack.c.h.bf16 %v767_v31  ;;  %v375_v56 = vmax.f32 %v343_v49, 0.0  ;;  %v786_v49 = vld [vmem:[%s849_s23 + $0x78] sm:$0xff]  }
  0x35   : > { %531 = vst [vmem:[%s887_s5 + $0x88] sm:$0xff] %v499_v46  ;;  %v500_v54 = vmax.f32 %v468_v47, 0.0  ;;  %v470_v55 = vadd.f32 %v735_v35, %v374_v48  ;;  %v679_v57 = vunpack.c.l.bf16 %v768_v45  ;;  %v740_v63 = vunpack.c.h.bf16 %v782_v40 }
  0x36   : > { %v501_v60 = vmax.f32 %v469_v50, 0.0  ;;  %v344_v61 = vadd.f32 %v859_v1, %v308_v51  ;;  %v309_v62 = vmul.f32 %v854_v0, %v676_v53  ;;  %v471_v3 = vadd.f32 %v736_v43, %v375_v56 }
  0x37   : > { %532 = vst [vmem:[%s887_s5 + $0x90] sm:$0xff] %v500_v54  ;;  %v502_v2 = vmax.f32 %v470_v55, 0.0  ;;  %v310_v4 = vmul.f32 %v854_v0, %v679_v57  ;;  %v680_v5 = vunpack.c.h.bf16 %v768_v45  ;;  %v743_v8 = vunpack.c.l.bf16 %v783_v58 }
  0x38   : > { %533 = vst [vmem:[%s887_s5 + $0x98] sm:$0xff] %v501_v60  ;;  %v376_v6 = vmax.f32 %v344_v61, 0.0  ;;  %v345_v7 = vadd.f32 %v859_v1, %v309_v62  ;;  %v683_v9 = vunpack.c.l.bf16 %v769_v59  ;;  %v503_v12 = vmax.f32 %v471_v3, 0.0 }
  0x39   : > { %534 = vst [vmem:[%s887_s5 + $0xa0] sm:$0xff] %v502_v2  ;;  %v346_v13 = vadd.f32 %v859_v1, %v310_v4  ;;  %v311_v14 = vmul.f32 %v854_v0, %v680_v5  ;;  %v744_v15 = vunpack.c.h.bf16 %v783_v58  ;;  %v684_v19 = vunpack.c.h.bf16 %v769_v59 }
  0x3a   : > { %v472_v16 = vadd.f32 %v739_v52, %v376_v6  ;;  %v377_v17 = vmax.f32 %v345_v7, 0.0  ;;  %v312_v18 = vmul.f32 %v854_v0, %v683_v9  ;;  %535 = vst [vmem:[%s887_s5 + $0xa8] sm:$0xff] %v503_v12  ;;  %v747_v22 = vunpack.c.l.bf16 %v784_v10 }
  0x3b   : > { %v378_v20 = vmax.f32 %v346_v13, 0.0  ;;  %v347_v21 = vadd.f32 %v859_v1, %v311_v14  ;;  %v687_v23 = vunpack.c.l.bf16 %v770_v11  ;;  %v313_v27 = vmul.f32 %v854_v0, %v684_v19 }
  0x3c   : > { %v504_v24 = vmax.f32 %v472_v16, 0.0  ;;  %v473_v25 = vadd.f32 %v740_v63, %v377_v17  ;;  %v348_v26 = vadd.f32 %v859_v1, %v312_v18  ;;  %v748_v31 = vunpack.c.h.bf16 %v784_v10 }
  0x3d   : > { %v474_v29 = vadd.f32 %v743_v8, %v378_v20  ;;  %v379_v30 = vmax.f32 %v347_v21, 0.0  ;;  %v314_v32 = vmul.f32 %v854_v0, %v687_v23  ;;  %v349_v36 = vadd.f32 %v859_v1, %v313_v27 }
  0x3e   : > { %536 = vst [vmem:[%s887_s5 + $0xb0] sm:$0xff] %v504_v24  ;;  %v505_v34 = vmax.f32 %v473_v25, 0.0  ;;  %v380_v35 = vmax.f32 %v348_v26, 0.0  ;;  %v688_v37 = vunpack.c.h.bf16 %v770_v11  ;;  %v751_v41 = vunpack.c.l.bf16 %v785_v28 }
  0x3f   : > { %v506_v38 = vmax.f32 %v474_v29, 0.0  ;;  %v475_v39 = vadd.f32 %v744_v15, %v379_v30  ;;  %v350_v40 = vadd.f32 %v859_v1, %v314_v32  ;;  %v381_v43 = vmax.f32 %v349_v36, 0.0 }
  0x40   : > { %537 = vst [vmem:[%s887_s5 + $0xb8] sm:$0xff] %v505_v34  ;;  %v476_v42 = vadd.f32 %v747_v22, %v380_v35  ;;  %v315_v44 = vmul.f32 %v854_v0, %v688_v37  ;;  %v691_v45 = vunpack.c.l.bf16 %v771_v33  ;;  %v752_v48 = vunpack.c.h.bf16 %v785_v28 }
  0x41   : > { %538 = vst [vmem:[%s887_s5 + $0xc0] sm:$0xff] %v506_v38  ;;  %v507_v46 = vmax.f32 %v475_v39, 0.0  ;;  %v382_v47 = vmax.f32 %v350_v40, 0.0  ;;  %v692_v50 = vunpack.c.h.bf16 %v771_v33  ;;  %v477_v52 = vadd.f32 %v748_v31, %v381_v43 }
  0x42   : > { %v508_v51 = vmax.f32 %v476_v42, 0.0  ;;  %v351_v53 = vadd.f32 %v859_v1, %v315_v44  ;;  %v316_v54 = vmul.f32 %v854_v0, %v691_v45  ;;  %v755_v60 = vunpack.c.l.bf16 %v786_v49 }
  0x43   : > { %539 = vst [vmem:[%s887_s5 + $0xc8] sm:$0xff] %v507_v46  ;;  %v478_v55 = vadd.f32 %v751_v41, %v382_v47  ;;  %v317_v56 = vmul.f32 %v854_v0, %v692_v50  ;;  %v509_v57 = vmax.f32 %v477_v52, 0.0  ;;  %v756_v63 = vunpack.c.h.bf16 %v786_v49 }
  0x44   : > { %540 = vst [vmem:[%s887_s5 + $0xd0] sm:$0xff] %v508_v51  ;;  %v383_v58 = vmax.f32 %v351_v53, 0.0  ;;  %v352_v59 = vadd.f32 %v859_v1, %v316_v54 }
  0x45   : > { %v510_v61 = vmax.f32 %v478_v55, 0.0  ;;  %v353_v62 = vadd.f32 %v859_v1, %v317_v56  ;;  %541 = vst [vmem:[%s887_s5 + $0xd8] sm:$0xff] %v509_v57 }
  0x46   : > { %v479_v2 = vadd.f32 %v752_v48, %v383_v58  ;;  %v384_v3 = vmax.f32 %v352_v59, 0.0 }
  0x47   : > { %542 = vst [vmem:[%s887_s5 + $0xe0] sm:$0xff] %v510_v61  ;;  %v385_v4 = vmax.f32 %v353_v62, 0.0 }
  0x48   : > { %v511_v5 = vmax.f32 %v479_v2, 0.0  ;;  %v480_v0 = vadd.f32 %v755_v60, %v384_v3 }
  0x49   : > { %v481_v6 = vadd.f32 %v756_v63, %v385_v4 }
  0x4a   : > { %543 = vst [vmem:[%s887_s5 + $0xe8] sm:$0xff] %v511_v5  ;;  %v512_v7 = vmax.f32 %v480_v0, 0.0 }
  0x4b   : > { %v513_v8 = vmax.f32 %v481_v6, 0.0 }
  0x4c   : > { %544 = vst [vmem:[%s887_s5 + $0xf0] sm:$0xff] %v512_v7 }
  0x4d   : > { %545 = vst [vmem:[%s887_s5 + $0xf8] sm:$0xff] %v513_v8 }
  0x4e PF: > { %s14_s15 = sadd.s32 1, %s803_s15  }
  0x4f   : > { %p11_p4 = scmp.ge.s32.totalorder %s14_s15, 4  }
  0x51   :  { %13 = sbr.rel (!%p11_p4) target bundleno = 1 (0x1), region = 69 }

// kernel: residual_block_forward.3
= control target key start
LH: loop header
LB: loop body
LE: loop exit
PB: predicated region body
PF: predicated region fallthrough
CT: control target
= control target key end

     0   :  { %s6979_s12 = smov 0   ;;  %s8719_s0 = inlined_call_operand.vmem [shape: bf16[2,18,18,128], index: 0, kind: input, shape index: {}]   ;;  %s8720_s1 = inlined_call_operand.vmem [shape: bf16[9,128,128], index: 1, kind: input, shape index: {}]   ;;  %s8721_s2 = inlined_call_operand.vmem [shape: bf16[2,16,16,128], index: 2, kind: output, shape index: {0}]   ;;  %s8722_s3 = inlined_call_operand.vmem [shape: f32[2,2,128], index: 3, kind: output, shape index: {1}]  }
   0x1 LB: > { %s5277_s13 = sadd.s32 4294967295, %s6957_s12   ;;  %p5281_p0 = scmp.ge.s32.totalorder %s6957_s12, 1  ;;  %s6957_s12 = sphi %s6979_s12, %s14_s12  }
   0x2   : > { %p140_p1 = scmp.lt.s32.totalorder %s6957_s12, 3 }
   0x4   : > { %p141_p2 = pnand %p5281_p0, %p140_p1 }
   0x5   : > { %p168_p3 = scmp.lt.s32.totalorder (!%p141_p2), %s5277_s13, 1 }
   0x6   : > { %144 = sbr.rel (%p141_p2) target bundleno = 771 (0x303), region = 28 }
   0xb   : > { %v6624_v0 = vld [vmem:[%s8720_s1 + $0x78] sm:$0xff]  ;;  %v6623_v2 = vld [vmem:[%s8720_s1 + $0x70] sm:$0xff]  ;;  %s8728_s13 = smov (!%p168_p3, %s5277_s13), 1  ;;  %v6622_v4 = vld [vmem:[%s8720_s1 + $0x68] sm:$0xff]  ;;  %vm222_vm0 = vsmask.f32 3328 }
   0xc   : > { %v6616_v1 = vld [vmem:[%s8720_s1 + $0x38] sm:$0xff]  ;;  %6888 = vmatpush.bf16.msra.mxu2 %v6624_v0  ;;  %v6615_v3 = vld [vmem:[%s8720_s1 + $0x30] sm:$0xff]  ;;  %514 = vmatpush.bf16.msra.mxu0 %v6624_v0  ;;  %s6904_s22 = smul.u32 216, %s8728_s13  ;;  %v6614_v5 = vld [vmem:[%s8720_s1 + $0x28] sm:$0xff]  ;;  %vm223_vm1 = vsmask.f32 7440 }
   0xd   : > { %6896 = vmatpush.bf16.msra.mxu3 %v6616_v1  ;;  %659 = vmatpush.bf16.msra.mxu1 %v6616_v1  ;;  %v6621_v14 = vld [vmem:[%s8720_s1 + $0x60] sm:$0xff]  ;;  %v6620_v30 = vld [vmem:[%s8720_s1 + $0x58] sm:$0xff]  ;;  %v6619_v38 = vld [vmem:[%s8720_s1 + $0x50] sm:$0xff]  ;;  %vm732_vm3 = vcmask 1042432   ;;  %vm733_vm4 = vcmask 1046532   ;;  %s6600_s23 = sshll.u32 %s8728_s13, 7 }
   0xe   : > { %s7011_s29 = scalar_lea.vmem %s8719_s0, %s6904_s22  ;;  %v6613_v15 = vld [vmem:[%s8720_s1 + $0x20] sm:$0xff]  ;;  %v6612_v31 = vld [vmem:[%s8720_s1 + $0x18] sm:$0xff]  ;;  %v6611_v41 = vld [vmem:[%s8720_s1 + $0x10] sm:$0xff]  ;;  %s8180_s26 = scalar_lea.vmem %s8721_s2, %s6600_s23  ;;  %vm5188_vm6 = vcmask 1040384  }
   0xf   : > { %v190_v6 = vld [vmem:[%s7011_s29 + $0x30] sm:$0xf]  ;;  %v191_v7 = vld [vmem:[%s7011_s29 + $0x34] sm:$0xf]  ;;  %v182_v12 = vld [vmem:[%s7011_s29] sm:$0xf] }
  0x10   : > { %6889 = vmatpush.bf16.msra.mxu2 %v6623_v2  ;;  %515 = vmatpush.bf16.msra.mxu0 %v6623_v2  ;;  %v322_v8 = vshrl.u32 %v190_v6, 16  ;;  %v325_v9 = vshll.u32 %v190_v6, 16  ;;  %v331_v10 = vshll.u32 %v191_v7, 16  ;;  %v335_v11 = vshrl.u32 %v191_v7, 16  ;;  %v7017_v13 = vld [vmem:[%s7011_s29 + $0x4] sm:$0xf]  ;;  %vm7048_vm2 = vmor %vm222_vm0, %vm223_vm1 }
  0x11   : > { %6897 = vmatpush.bf16.msra.mxu3 %v6615_v3  ;;  %660 = vmatpush.bf16.msra.mxu1 %v6615_v3  ;;  %v218_v20 = vld [vmem:[%s7011_s29 + $0x38] sm:$0x1]  ;;  %v226_v21 = vshrl.u32 %v182_v12, 16  ;;  %v229_v22 = vshll.u32 %v182_v12, 16  ;;  %v235_v23 = vshll.u32 %v7017_v13, 16  ;;  %v239_v25 = vshrl.u32 %v7017_v13, 16  ;;  %vm7221_vm5 = vmor %vm732_vm3, %vm733_vm4 }
  0x12   : > { %v324_v16 = vrot.slane %v322_v8, 4  ;;  %v327_v17 = vrot.slane %v325_v9, 5  ;;  %v7025_v18 = vrot.slane %v331_v10, 5  ;;  %v337_v19 = vrot.slane %v335_v11, 4  ;;  %v7030_v24 = vld [vmem:[%s7011_s29 + $0x8] sm:$0x1] }
  0x13   : > { %v228_v27 = vrot.slane %v226_v21, 4  ;;  %v231_v28 = vrot.slane %v229_v22, 5  ;;  %v237_v29 = vrot.slane %v235_v23, 5  ;;  %v341_v33 = vshll.u32 %v218_v20, 16  ;;  %v192_v40 = vld [vmem:[%s7011_s29 + $0x3c] sm:$0xf] }
  0x14   : > { %6890 = vmatpush.bf16.msra.mxu2 %v6622_v4  ;;  %516 = vmatpush.bf16.msra.mxu0 %v6622_v4  ;;  %v328_v26 = vor.u32 %v327_v17, %v324_v16  ;;  %v338_v32 = vor.u32 %v337_v19, %v7025_v18  ;;  %v241_v34 = vrot.slane %v239_v25, 4  ;;  %v245_v36 = vshll.u32 %v7030_v24, 16  ;;  %v193_v45 = vld [vmem:[%s7011_s29 + $0x40] sm:$0xf]  ;;  %v184_v49 = vld [vmem:[%s7011_s29 + $0xc] sm:$0xf] }
  0x15   : > { %6898 = vmatpush.bf16.msra.mxu3 %v6614_v5  ;;  %661 = vmatpush.bf16.msra.mxu1 %v6614_v5  ;;  %v232_v35 = vor.u32 %v231_v28, %v228_v27  ;;  %v343_v44 = vrot.slane %v341_v33, 5  ;;  %v346_v50 = vshrl.u32 %v192_v40, 16  ;;  %v7055_v51 = vld [vmem:[%s7011_s29 + $0x10] sm:$0xf]  ;;  %v349_v53 = vshll.u32 %v192_v40, 16  ;;  %v6618_v56 = vld [vmem:[%s8720_s1 + $0x48] sm:$0xff] }
  0x16   : > { %v242_v37 = vor.u32 %v241_v34, %v237_v29  ;;  %v329_v39 = vrot.slane %v328_v26, 4  ;;  %v339_v43 = vrot.slane %v338_v32, 4  ;;  %v247_v48 = vrot.slane %v245_v36, 5  ;;  %v6610_v57 = vld [vmem:[%s8720_s1 + $0x8] sm:$0xff]  ;;  %v219_v4 = vld [vmem:[%s7011_s29 + $0x44] sm:$0x1] }
  0x17   : > { %v233_v46 = vrot.slane %v232_v35, 4  ;;  %v355_v54 = vshll.u32 %v193_v45, 16  ;;  %v359_v55 = vshrl.u32 %v193_v45, 16  ;;  %v250_v59 = vshrl.u32 %v184_v49, 16  ;;  %v6617_v8 = vld [vmem:[%s8720_s1 + $0x40] sm:$0xff]  ;;  %v6632_v17 = vld [vmem:[%s8720_s1 + $0xb8] sm:$0xff] }
  0x18   : > { %6891 = vmatpush.bf16.msra.mxu2 %v6621_v14  ;;  %517 = vmatpush.bf16.msra.mxu0 %v6621_v14  ;;  %v243_v47 = vrot.slane %v242_v37, 4  ;;  %v334_v52 = vsel %vm7048_vm2, %v329_v39, %v7025_v18  ;;  %v344_v58 = vsel %vm7048_vm2, %v339_v43, %v343_v44  ;;  %v253_v60 = vshll.u32 %v184_v49, 16  ;;  %v6609_v9 = vld [vmem:[%s8720_s1] sm:$0xff]  ;;  %v6648_v18 = vld [vmem:[%s8720_s1 + $0xf8] sm:$0xff]  ;;  %v7092_v20 = vld [vmem:[%s7011_s29 + $0x14] sm:$0x1] }
  0x19   : > { %6899 = vmatpush.bf16.msra.mxu3 %v6613_v15  ;;  %662 = vmatpush.bf16.msra.mxu1 %v6613_v15  ;;  %v238_v61 = vsel %vm7048_vm2, %v233_v46, %v237_v29  ;;  %v259_v63 = vshll.u32 %v7055_v51, 16  ;;  %v263_v0 = vshrl.u32 %v7055_v51, 16  ;;  %v442_v1 = vunpack.c.l.b16 %v334_v52  ;;  %v6605_v22 = vld [vmem:[%s7011_s29 + $0x30] sm:$0xff]  ;;  %v6601_v27 = vld [vmem:[%s7011_s29] sm:$0xff]  ;;  %v6656_v29 = vld [vmem:[%s8720_s1 + $0x138] sm:$0xff] }
  0x1a   : > { %v248_v62 = vsel %vm7048_vm2, %v243_v47, %v247_v48  ;;  %v348_v2 = vrot.slane %v346_v50, 4  ;;  %v443_v3 = vunpack.c.l.b16 %v344_v58  ;;  %v351_v5 = vrot.slane %v349_v53, 5  ;;  %v6631_v33 = vld [vmem:[%s8720_s1 + $0xb0] sm:$0xff]  ;;  %v195_v39 = vld [vmem:[%s7011_s29 + $0x4c] sm:$0xf] }
  0x1b   : > { %v7075_v6 = vrot.slane %v355_v54, 5  ;;  %v361_v7 = vrot.slane %v359_v55, 4  ;;  %v434_v10 = vunpack.c.l.b16 %v238_v61  ;;  %v435_v11 = vunpack.c.l.b16 %v248_v62  ;;  %v6647_v34 = vld [vmem:[%s8720_s1 + $0xf0] sm:$0xff]  ;;  %v7121_v47 = vld [vmem:[%s7011_s29 + $0x1c] sm:$0xf]  ;;  %v6630_v48 = vld [vmem:[%s8720_s1 + $0xa8] sm:$0xff] }
  0x1c   : > { %6892 = vmatpush.bf16.msra.mxu2 %v6620_v30  ;;  %518 = vmatpush.bf16.msra.mxu0 %v6620_v30  ;;  %v252_v12 = vrot.slane %v250_v59, 4  ;;  %v255_v14 = vrot.slane %v253_v60, 5  ;;  %v7083_v15 = vrot.slane %v259_v63, 5  ;;  %v265_v16 = vrot.slane %v263_v0, 4  ;;  %v6664_v30 = vld [vmem:[%s8720_s1 + $0x178] sm:$0xff]  ;;  %v6655_v45 = vld [vmem:[%s8720_s1 + $0x130] sm:$0xff] }
  0x1d   : > { %6900 = vmatpush.bf16.msra.mxu3 %v6612_v31  ;;  %663 = vmatpush.bf16.msra.mxu1 %v6612_v31  ;;  %v365_v19 = vshll.u32 %v219_v4, 16  ;;  %v454_v21 = vpack.c.b16 %v443_v3, %v442_v1  ;;  %v352_v23 = vor.u32 %v351_v5, %v348_v2  ;;  %v362_v25 = vor.u32 %v361_v7, %v7075_v6  ;;  %v6663_v46 = vld [vmem:[%s8720_s1 + $0x170] sm:$0xff]  ;;  %v6646_v49 = vld [vmem:[%s8720_s1 + $0xe8] sm:$0xff]  ;;  %v6629_v1 = vld [vmem:[%s8720_s1 + $0xa0] sm:$0xff] }
  0x1e   : > { %v450_v26 = vpack.c.b16 %v435_v11, %v434_v10  ;;  %v256_v28 = vor.u32 %v255_v14, %v252_v12  ;;  %v266_v31 = vor.u32 %v265_v16, %v7083_v15  ;;  %v269_v32 = vshll.u32 %v7092_v20, 16  ;;  %v6654_v63 = vld [vmem:[%s8720_s1 + $0x128] sm:$0xff]  ;;  %v6645_v2 = vld [vmem:[%s8720_s1 + $0xe0] sm:$0xff]  ;;  %v7156_v10 = vld [vmem:[%s7011_s29 + $0x50] sm:$0x1] }
  0x1f   : > { %v367_v35 = vrot.slane %v365_v19, 5  ;;  %v353_v36 = vrot.slane %v352_v23, 4  ;;  %v363_v37 = vrot.slane %v362_v25, 4  ;;  %v379_v53 = vshll.u32 %v195_v39, 16  ;;  %v6662_v0 = vld [vmem:[%s8720_s1 + $0x168] sm:$0xff]  ;;  %v6661_v19 = vld [vmem:[%s8720_s1 + $0x160] sm:$0xff] }
  0x20   : > { %6893 = vmatpush.bf16.msra.mxu2 %v6619_v38  ;;  %519 = vmatpush.bf16.msra.mxu0 %v6619_v38  ;;  %v194_v38 = vld [vmem:[%s7011_s29 + $0x48] sm:$0xf]  ;;  %v257_v40 = vrot.slane %v256_v28, 4  ;;  %v267_v43 = vrot.slane %v266_v31, 4  ;;  %v271_v44 = vrot.slane %v269_v32, 5  ;;  %v383_v54 = vshrl.u32 %v195_v39, 16 }
  0x21   : > { %6901 = vmatpush.bf16.msra.mxu3 %v6611_v41  ;;  %664 = vmatpush.bf16.msra.mxu1 %v6611_v41  ;;  %v186_v41 = vld [vmem:[%s7011_s29 + $0x18] sm:$0xf]  ;;  %v370_v50 = vshrl.u32 %v194_v38, 16  ;;  %v373_v52 = vshll.u32 %v194_v38, 16  ;;  %v358_v55 = vsel %vm7048_vm2, %v353_v36, %v7075_v6  ;;  %v283_v60 = vshll.u32 %v7121_v47, 16  ;;  %v6606_v28 = vld [vmem:[%s7011_s29 + $0x3c] sm:$0xff] }
  0x22   : > { %v262_v58 = vsel %vm7048_vm2, %v257_v40, %v7083_v15  ;;  %v277_v59 = vshll.u32 %v186_v41, 16  ;;  %v287_v61 = vshrl.u32 %v7121_v47, 16  ;;  %v272_v62 = vsel %vm7048_vm2, %v267_v43, %v271_v44  ;;  %v7159_v14 = vld [vmem:[%s7011_s29 + $0x20] sm:$0x1]  ;;  %v6628_v25 = vld [vmem:[%s8720_s1 + $0x98] sm:$0xff]  ;;  %v6602_v31 = vld [vmem:[%s7011_s29 + $0xc] sm:$0xff] }
  0x23   : > { %v372_v3 = vrot.slane %v370_v50, 4  ;;  %v375_v4 = vrot.slane %v373_v52, 5  ;;  %v7153_v5 = vrot.slane %v379_v53, 5  ;;  %v385_v6 = vrot.slane %v383_v54, 4  ;;  %v6627_v39 = vld [vmem:[%s8720_s1 + $0x90] sm:$0xff] }
  0x24   : > { %6894 = vmatpush.bf16.msra.mxu2 %v6618_v56  ;;  %520 = vmatpush.bf16.msra.mxu0 %v6618_v56  ;;  %v368_v56 = vsel %vm7048_vm2, %v363_v37, %v367_v35  ;;  %v444_v7 = vunpack.c.l.b16 %v358_v55  ;;  %v437_v12 = vunpack.c.l.b16 %v272_v62  ;;  %v279_v15 = vrot.slane %v277_v59, 5  ;;  %v6660_v35 = vld [vmem:[%s8720_s1 + $0x158] sm:$0xff]  ;;  %v6643_v40 = vld [vmem:[%s8720_s1 + $0xd0] sm:$0xff]  ;;  %v6626_v59 = vld [vmem:[%s8720_s1 + $0x88] sm:$0xff] }
  0x25   : > { %6902 = vmatpush.bf16.msra.mxu3 %v6610_v57  ;;  %665 = vmatpush.bf16.msra.mxu1 %v6610_v57  ;;  %v274_v57 = vshrl.u32 %v186_v41, 16  ;;  %v7161_v16 = vrot.slane %v283_v60, 5  ;;  %v389_v23 = vshll.u32 %v7156_v10, 16  ;;  %v196_v43 = vld [vmem:[%s7011_s29 + $0x54] sm:$0xf]  ;;  %v737_v53 = vrot.slane %v7017_v13, 5 }
  0x26   : > { %v197_v44 = vld [vmem:[%s7011_s29 + $0x58] sm:$0xf]  ;;  %v6651_v50 = vld [vmem:[%s8720_s1 + $0x110] sm:$0xff]  ;;  %v740_v54 = vrot.slane %v7030_v24, 5  ;;  %v6642_v13 = vld [vmem:[%s8720_s1 + $0xc8] sm:$0xff] }
  0x27   : > { %v276_v11 = vrot.slane %v274_v57, 4  ;;  %v391_v38 = vrot.slane %v389_v23, 5  ;;  %v6659_v52 = vld [vmem:[%s8720_s1 + $0x150] sm:$0xff]  ;;  %v394_v57 = vshrl.u32 %v196_v43, 16  ;;  %v708_v24 = vld [vmem:[%s7011_s29] sm:$0xe] }
  0x28   : > { %6895 = vmatpush.bf16.msra.mxu2 %v6617_v8  ;;  %521 = vmatpush.bf16.msra.mxu0 %v6617_v8  ;;  %v445_v8 = vunpack.c.l.b16 %v368_v56  ;;  %v403_v60 = vshll.u32 %v197_v44, 16  ;;  %v7249_v23 = vld [vmem:[%s7011_s29 + $0x5c] sm:$0x1] }
  0x29   : > { %6903 = vmatpush.bf16.msra.mxu3 %v6609_v9  ;;  %666 = vmatpush.bf16.msra.mxu1 %v6609_v9  ;;  %v436_v9 = vunpack.c.l.b16 %v262_v58  ;;  %v280_v32 = vor.u32 %v279_v15, %v276_v11  ;;  %v397_v58 = vshll.u32 %v196_v43, 16  ;;  %v6603_v43 = vld [vmem:[%s7011_s29 + $0x18] sm:$0xff] }
  0x2b   : > { %542 = vmatmul.bf16.vlgmr.msra.gmra.mxu2 %v454_v21  ;;  %522 = vmatmul.bf16.vlgmr.msra.gmra.mxu0 %v450_v26  ;;  %v376_v21 = vor.u32 %v375_v4, %v372_v3  ;;  %v6644_v26 = vld [vmem:[%s8720_s1 + $0xd8] sm:$0xff]  ;;  %v399_v15 = vrot.slane %v397_v58, 5 }
  0x2c   : > { %888 = vmatpush.bf16.msrb.mxu2 %v6632_v17  ;;  %687 = vmatmul.bf16.vlgmr.msra.gmra.mxu3 %v6605_v22  ;;  %v289_v17 = vrot.slane %v287_v61, 4  ;;  %v386_v22 = vor.u32 %v385_v6, %v7153_v5  ;;  %v407_v61 = vshrl.u32 %v197_v44, 16  ;;  %v6696_v58 = vld [vmem:[%s8720_s1 + $0x238] sm:$0xff] }
  0x2d   : > { %1083 = vmatpush.bf16.msrb.mxu3 %v6648_v18  ;;  %667 = vmatmul.bf16.vlgmr.msra.gmra.mxu1 %v6601_v27  ;;  %v6653_v18 = vld [vmem:[%s8720_s1 + $0x120] sm:$0xff]  ;;  %v455_v27 = vpack.c.b16 %v445_v8, %v444_v7  ;;  %v377_v36 = vrot.slane %v376_v21, 4  ;;  %v6650_v7 = vld [vmem:[%s8720_s1 + $0x108] sm:$0xff] }
  0x2e   : > { %1461 = vmatpush.bf16.msrb.mxu0 %v6656_v29  ;;  %1711 = vmatpush.bf16.msrb.mxu1 %v6664_v30  ;;  %v293_v29 = vshll.u32 %v7159_v14, 16  ;;  %v451_v30 = vpack.c.b16 %v437_v12, %v436_v9  ;;  %v387_v37 = vrot.slane %v386_v22, 4  ;;  %v6658_v8 = vld [vmem:[%s8720_s1 + $0x148] sm:$0xff]  ;;  %v396_v12 = vrot.slane %v394_v57, 4  ;;  %v6688_v57 = vld [vmem:[%s8720_s1 + $0x1f8] sm:$0xff] }
  0x2f   : > { %v382_v55 = vsel %vm7048_vm2, %v377_v36, %v7153_v5  ;;  %v413_v36 = vshll.u32 %v7249_v23, 16 }
  0x30   : > { %889 = vmatpush.bf16.msrb.mxu2 %v6631_v33  ;;  %v290_v33 = vor.u32 %v289_v17, %v7161_v16  ;;  %v295_v41 = vrot.slane %v293_v29, 5  ;;  %v392_v56 = vsel %vm7048_vm2, %v387_v37, %v391_v38  ;;  %v6641_v17 = vld [vmem:[%s8720_s1 + $0xc0] sm:$0xff]  ;;  %v446_v21 = vunpack.c.l.b16 %v382_v55  ;;  %v7262_v37 = vld [vmem:[%s7011_s29 + $0x2c] sm:$0x1] }
  0x31   : > { %1084 = vmatpush.bf16.msrb.mxu3 %v6647_v34  ;;  %v6652_v34 = vld [vmem:[%s8720_s1 + $0x118] sm:$0xff]  ;;  %v447_v22 = vunpack.c.l.b16 %v392_v56  ;;  %v5550_v55 = vld [vmem:[%s7011_s29 + $0xc] sm:$0xf]  ;;  %v7277_v56 = vld [vmem:[%s7011_s29 + $0x10] sm:$0xf] }
  0x32   : > { %1462 = vmatpush.bf16.msrb.mxu0 %v6655_v45  ;;  %1712 = vmatpush.bf16.msrb.mxu1 %v6663_v46  ;;  %v281_v45 = vrot.slane %v280_v32, 4  ;;  %v291_v46 = vrot.slane %v290_v33, 4 }
  0x33   : > { %v456_v38 = vpack.c.b16 %v447_v22, %v446_v21 }
  0x34   : > { %890 = vmatpush.bf16.msrb.mxu2 %v6630_v48  ;;  %v188_v48 = vld [vmem:[%s7011_s29 + $0x24] sm:$0xf] }
  0x35   : > { %1085 = vmatpush.bf16.msrb.mxu3 %v6646_v49  ;;  %v7197_v49 = vld [vmem:[%s7011_s29 + $0x28] sm:$0xf]  ;;  %v298_v3 = vshrl.u32 %v188_v48, 16  ;;  %v301_v4 = vshll.u32 %v188_v48, 16 }
  0x36   : > { %1463 = vmatpush.bf16.msrb.mxu0 %v6654_v63  ;;  %1713 = vmatpush.bf16.msrb.mxu1 %v6662_v0  ;;  %v5398_v63 = vrot.slane %v708_v24, 9  ;;  %v739_v0 = vrot.slane %v737_v53, 4  ;;  %v307_v5 = vshll.u32 %v7197_v49, 16  ;;  %v311_v6 = vshrl.u32 %v7197_v49, 16 }
  0x37   : > { %v747_v24 = vrot.slane %v7092_v20, 5  ;;  %v1182_v20 = vshll.u32 %v7277_v56, 16 }
  0x38   : > { %891 = vmatpush.bf16.msrb.mxu2 %v6629_v1  ;;  %v286_v1 = vsel %vm7048_vm2, %v281_v45, %v7161_v16  ;;  %v738_v9 = vsel %vm7221_vm5, %v5398_v63, %v737_v53  ;;  %v741_v11 = vsel %vm7221_vm5, %v739_v0, %v740_v54  ;;  %v6625_v16 = vld [vmem:[%s8720_s1 + $0x80] sm:$0xff]  ;;  %v7255_v32 = vrot.slane %v307_v5, 5  ;;  %v6680_v54 = vld [vmem:[%s8720_s1 + $0x1b8] sm:$0xff]  ;;  %v709_v0 = vld [vmem:[%s7011_s29 + $0xc] sm:$0xe] }
  0x39   : > { %1086 = vmatpush.bf16.msrb.mxu3 %v6645_v2  ;;  %v296_v2 = vsel %vm7048_vm2, %v291_v46, %v295_v41  ;;  %v313_v33 = vrot.slane %v311_v6, 4  ;;  %v317_v46 = vshll.u32 %v7262_v37, 16  ;;  %v1176_v5 = vshll.u32 %v5550_v55, 16 }
  0x3a   : > { %1464 = vmatpush.bf16.msrb.mxu0 %v6653_v18  ;;  %1714 = vmatpush.bf16.msrb.mxu1 %v6661_v19  ;;  %v808_v18 = vunpack.c.l.b16 %v738_v9  ;;  %v809_v19 = vunpack.c.l.b16 %v741_v11  ;;  %v1186_v6 = vshrl.u32 %v7277_v56, 16  ;;  %v1184_v21 = vrot.slane %v1182_v20, 5 }
  0x3b   : > { %547 = vmatmul.bf16.gmra.mxu2 %v455_v27  ;;  %527 = vmatmul.bf16.gmra.mxu0 %v451_v30  ;;  %v438_v27 = vunpack.c.l.b16 %v286_v1  ;;  %v300_v30 = vrot.slane %v298_v3, 4  ;;  %v314_v45 = vor.u32 %v313_v33, %v7255_v32  ;;  %v319_v63 = vrot.slane %v317_v46, 5  ;;  %v7319_v46 = vld [vmem:[%s7011_s29 + $0x1c] sm:$0xf] }
  0x3c   : > { %892 = vmatpush.bf16.msrb.mxu2 %v6628_v25  ;;  %692 = vmatmul.bf16.gmra.mxu3 %v6606_v28  ;;  %v7251_v25 = vrot.slane %v403_v60, 5  ;;  %v439_v28 = vunpack.c.l.b16 %v296_v2  ;;  %v7253_v29 = vpack.c.b16 %v809_v19, %v808_v18  ;;  %v1173_v2 = vshrl.u32 %v5550_v55, 16 }
  0x3d   : > { %1087 = vmatpush.bf16.msrb.mxu3 %v6644_v26  ;;  %672 = vmatmul.bf16.gmra.mxu1 %v6602_v31  ;;  %v409_v26 = vrot.slane %v407_v61, 4  ;;  %v303_v31 = vrot.slane %v301_v4, 5  ;;  %v315_v61 = vrot.slane %v314_v45, 4  ;;  %v5399_v3 = vrot.slane %v709_v0, 9  ;;  %v6679_v45 = vld [vmem:[%s8720_s1 + $0x1b0] sm:$0xff] }
  0x3e   : > { %1465 = vmatpush.bf16.msrb.mxu0 %v6652_v34  ;;  %1715 = vmatpush.bf16.msrb.mxu1 %v6660_v35  ;;  %v6649_v34 = vld [vmem:[%s8720_s1 + $0x100] sm:$0xff]  ;;  %v400_v35 = vor.u32 %v399_v15, %v396_v12  ;;  %v452_v41 = vpack.c.b16 %v439_v28, %v438_v27  ;;  %v1175_v18 = vrot.slane %v1173_v2, 4  ;;  %v1178_v19 = vrot.slane %v1176_v5, 5  ;;  %v5552_v28 = vld [vmem:[%s7011_s29 + $0x14] sm:$0x1] }
  0x3f   : > { %v304_v44 = vor.u32 %v303_v31, %v300_v30  ;;  %v320_v11 = vsel %vm7048_vm2, %v315_v61, %v319_v63  ;;  %v1188_v22 = vrot.slane %v1186_v6, 4  ;;  %v6608_v31 = vld [vmem:[%s7011_s29 + $0x54] sm:$0xff]  ;;  %v754_v55 = vrot.slane %v7159_v14, 5 }
  0x40   : > { %893 = vmatpush.bf16.msrb.mxu2 %v6627_v39  ;;  %v6607_v39 = vld [vmem:[%s7011_s29 + $0x48] sm:$0xff]  ;;  %v401_v48 = vrot.slane %v400_v35, 4  ;;  %v441_v27 = vunpack.c.l.b16 %v320_v11 }
  0x41   : > { %1088 = vmatpush.bf16.msrb.mxu3 %v6643_v40  ;;  %v410_v40 = vor.u32 %v409_v26, %v7251_v25  ;;  %v305_v60 = vrot.slane %v304_v44, 4  ;;  %v1189_v33 = vor.u32 %v1188_v22, %v1184_v21  ;;  %v1567_v22 = vrot.slane %v7319_v46, 5 }
  0x42   : > { %1466 = vmatpush.bf16.msrb.mxu0 %v6651_v50  ;;  %1716 = vmatpush.bf16.msrb.mxu1 %v6659_v52  ;;  %v415_v50 = vrot.slane %v413_v36, 5  ;;  %v6657_v52 = vld [vmem:[%s8720_s1 + $0x140] sm:$0xff]  ;;  %v406_v1 = vsel %vm7048_vm2, %v401_v48, %v7251_v25 }
  0x43   : > { %v411_v53 = vrot.slane %v410_v40, 4  ;;  %v310_v9 = vsel %vm7048_vm2, %v305_v60, %v7255_v32  ;;  %v1179_v32 = vor.u32 %v1178_v19, %v1175_v18  ;;  %v6604_v36 = vld [vmem:[%s7011_s29 + $0x24] sm:$0xff]  ;;  %v5553_v40 = vld [vmem:[%s7011_s29 + $0x18] sm:$0xf]  ;;  %v1210_v60 = vshrl.u32 %v7319_v46, 16 }
  0x44   : > { %894 = vmatpush.bf16.msrb.mxu2 %v6626_v59  ;;  %v6720_v59 = vld [vmem:[%s8720_s1 + $0x78] sm:$0xff]  ;;  %v440_v26 = vunpack.c.l.b16 %v310_v9 }
  0x45   : > { %1089 = vmatpush.bf16.msrb.mxu3 %v6642_v13  ;;  %v744_v13 = vrot.slane %v7055_v51, 5  ;;  %v416_v51 = vsel %vm7048_vm2, %v411_v53, %v415_v50  ;;  %v6687_v50 = vld [vmem:[%s8720_s1 + $0x1f0] sm:$0xff] }
  0x46   : > { %1467 = vmatpush.bf16.msrb.mxu0 %v6650_v7  ;;  %1717 = vmatpush.bf16.msrb.mxu1 %v6658_v8  ;;  %v453_v35 = vpack.c.b16 %v441_v27, %v440_v26  ;;  %v6719_v53 = vld [vmem:[%s8720_s1 + $0x70] sm:$0xff] }
  0x47   : > { %v746_v4 = vrot.slane %v744_v13, 4  ;;  %v745_v7 = vsel %vm7221_vm5, %v5399_v3, %v744_v13  ;;  %v710_v13 = vld [vmem:[%s7011_s29 + $0x18] sm:$0xe] }
  0x48   : > { %895 = vmatpush.bf16.msrb.mxu2 %v6625_v16  ;;  %v810_v12 = vunpack.c.l.b16 %v745_v7  ;;  %v448_v16 = vunpack.c.l.b16 %v406_v1  ;;  %v5400_v61 = vrot.slane %v710_v13, 9  ;;  %v1212_v7 = vrot.slane %v1210_v60, 4 }
  0x49   : > { %1090 = vmatpush.bf16.msrb.mxu3 %v6641_v17  ;;  %v748_v8 = vsel %vm7221_vm5, %v746_v4, %v747_v24  ;;  %v449_v17 = vunpack.c.l.b16 %v416_v51  ;;  %v1206_v24 = vshll.u32 %v7319_v46, 16 }
  0x4a   : > { %1468 = vmatpush.bf16.msrb.mxu0 %v6649_v34  ;;  %1718 = vmatpush.bf16.msrb.mxu1 %v6657_v52  ;;  %v811_v15 = vunpack.c.l.b16 %v748_v8  ;;  %v1192_v34 = vshll.u32 %v5552_v28, 16  ;;  %v6695_v52 = vld [vmem:[%s8720_s1 + $0x230] sm:$0xff]  ;;  %v5555_v8 = vld [vmem:[%s7011_s29 + $0x20] sm:$0x1] }
  0x4b   : > { %552 = vmatmul.bf16.gmra.mxu2 %v456_v38  ;;  %532 = vmatmul.bf16.gmra.mxu0 %v452_v41  ;;  %v457_v30 = vpack.c.b16 %v449_v17, %v448_v16  ;;  %v5622_v38 = vld [vmem:[%s7011_s29 + $0xc] sm:$0xe]  ;;  %v1180_v41 = vrot.slane %v1179_v32, 4  ;;  %v1208_v6 = vrot.slane %v1206_v24, 5  ;;  %v1216_v19 = vshll.u32 %v5555_v8, 16 }
  0x4c   : > { %697 = vmatmul.bf16.gmra.mxu3 %v6607_v39  ;;  %1906 = vmatpush.bf16.msra.mxu2 %v6680_v54  ;;  %v7307_v25 = vpack.c.b16 %v811_v15, %v810_v12  ;;  %v1560_v39 = vrot.slane %v7277_v56, 5  ;;  %v1194_v44 = vrot.slane %v1192_v34, 5  ;;  %v5630_v48 = vrot.slane %v5622_v38, 9  ;;  %v5556_v38 = vld [vmem:[%s7011_s29 + $0x24] sm:$0xf] }
  0x4d   : > { %677 = vmatmul.bf16.gmra.mxu1 %v6603_v43  ;;  %2284 = vmatpush.bf16.msra.mxu3 %v6688_v57  ;;  %v1190_v43 = vrot.slane %v1189_v33, 4  ;;  %v751_v54 = vrot.slane %v7121_v47, 5  ;;  %v1563_v57 = vrot.slane %v5552_v28, 5  ;;  %v1185_v47 = vsel %vm7048_vm2, %v1180_v41, %v1184_v21  ;;  %v6633_v21 = vld [vmem:[%s7011_s29 + $0xc] sm:$0xff]  ;;  %v5623_v28 = vld [vmem:[%s7011_s29 + $0x18] sm:$0xe] }
  0x4e   : > { %2534 = vmatpush.bf16.msra.mxu0 %v6696_v58  ;;  %3020 = vmatpush.bf16.msra.mxu1 %v6720_v59  ;;  %v1562_v56 = vrot.slane %v1560_v39, 4  ;;  %v1197_v58 = vshrl.u32 %v5553_v40, 16  ;;  %v1200_v59 = vshll.u32 %v5553_v40, 16  ;;  %v1561_v2 = vsel %vm7221_vm5, %v5630_v48, %v1560_v39  ;;  %v6686_v39 = vld [vmem:[%s8720_s1 + $0x1e8] sm:$0xff] }
  0x4f   : > { %v753_v63 = vrot.slane %v751_v54, 4  ;;  %v1195_v14 = vsel %vm7048_vm2, %v1190_v43, %v1194_v44  ;;  %v752_v0 = vsel %vm7221_vm5, %v5400_v61, %v751_v54  ;;  %v1381_v11 = vunpack.c.l.b16 %v1185_v47  ;;  %v6718_v40 = vld [vmem:[%s8720_s1 + $0x68] sm:$0xff] }
  0x50   : > { %1907 = vmatpush.bf16.msra.mxu2 %v6679_v45  ;;  %v1564_v3 = vsel %vm7221_vm5, %v1562_v56, %v1563_v57  ;;  %v812_v4 = vunpack.c.l.b16 %v752_v0  ;;  %v1199_v5 = vrot.slane %v1197_v58, 4  ;;  %v1202_v20 = vrot.slane %v1200_v59, 5  ;;  %v7370_v44 = vld [vmem:[%s7011_s29 + $0x28] sm:$0xf]  ;;  %v711_v45 = vld [vmem:[%s7011_s29 + $0x24] sm:$0xe] }
  0x51   : > { %2285 = vmatpush.bf16.msra.mxu3 %v6687_v50  ;;  %v755_v1 = vsel %vm7221_vm5, %v753_v63, %v754_v55  ;;  %v1382_v12 = vunpack.c.l.b16 %v1195_v14  ;;  %v1631_v15 = vunpack.c.l.b16 %v1561_v2  ;;  %v1632_v16 = vunpack.c.l.b16 %v1564_v3  ;;  %v5558_v3 = vld [vmem:[%s7011_s29 + $0x2c] sm:$0x1] }
  0x52   : > { %2535 = vmatpush.bf16.msra.mxu0 %v6695_v52  ;;  %3021 = vmatpush.bf16.msra.mxu1 %v6719_v53  ;;  %v813_v51 = vunpack.c.l.b16 %v755_v1  ;;  %v1203_v17 = vor.u32 %v1202_v20, %v1199_v5  ;;  %v1213_v18 = vor.u32 %v1212_v7, %v1208_v6  ;;  %v1218_v32 = vrot.slane %v1216_v19, 5  ;;  %v6693_v19 = vld [vmem:[%s8720_s1 + $0x220] sm:$0xff] }
  0x53   : > { %v1397_v26 = vpack.c.b16 %v1382_v12, %v1381_v11  ;;  %v1647_v27 = vpack.c.b16 %v1632_v16, %v1631_v15  ;;  %v5631_v33 = vrot.slane %v5623_v28, 9  ;;  %v1569_v34 = vrot.slane %v1567_v22, 4  ;;  %v5624_v11 = vld [vmem:[%s7011_s29 + $0x24] sm:$0xe]  ;;  %v5560_v28 = vld [vmem:[%s7011_s29 + $0x34] sm:$0xf] }
  0x54   : > { %v7348_v9 = vpack.c.b16 %v813_v51, %v812_v4  ;;  %v758_v41 = vrot.slane %v7197_v49, 5  ;;  %v761_v43 = vrot.slane %v7262_v37, 5  ;;  %v5401_v50 = vrot.slane %v711_v45, 9  ;;  %v6634_v4 = vld [vmem:[%s7011_s29 + $0x18] sm:$0xff]  ;;  %v6677_v12 = vld [vmem:[%s8720_s1 + $0x1a0] sm:$0xff] }
  0x55   : > { %2286 = vmatpush.bf16.msra.mxu3 %v6686_v39  ;;  %v1568_v53 = vsel %vm7221_vm5, %v5631_v33, %v1567_v22  ;;  %v1221_v37 = vshrl.u32 %v5556_v38, 16  ;;  %v1224_v54 = vshll.u32 %v5556_v38, 16  ;;  %v1230_v55 = vshll.u32 %v7370_v44, 16  ;;  %v5561_v45 = vld [vmem:[%s7011_s29 + $0x38] sm:$0x1] }
  0x56   : > { %v760_v52 = vrot.slane %v758_v41, 4  ;;  %3022 = vmatpush.bf16.msra.mxu1 %v6718_v40  ;;  %v1234_v56 = vshrl.u32 %v7370_v44, 16  ;;  %v759_v57 = vsel %vm7221_vm5, %v5401_v50, %v758_v41  ;;  %v1633_v61 = vunpack.c.l.b16 %v1568_v53  ;;  %v6635_v50 = vld [vmem:[%s7011_s29 + $0x24] sm:$0xff] }
  0x57   : > { %v814_v59 = vunpack.c.l.b16 %v759_v57  ;;  %v1223_v14 = vrot.slane %v1221_v37, 4  ;;  %v1226_v0 = vrot.slane %v1224_v54, 5  ;;  %v1232_v1 = vrot.slane %v1230_v55, 5  ;;  %v6676_v57 = vld [vmem:[%s8720_s1 + $0x198] sm:$0xff] }
  0x58   : > { %v762_v58 = vsel %vm7221_vm5, %v760_v52, %v761_v43  ;;  %v1236_v2 = vrot.slane %v1234_v56, 4  ;;  %v1240_v7 = vshll.u32 %v5558_v3, 16  ;;  %v1258_v38 = vshrl.u32 %v5560_v28, 16  ;;  %v5625_v56 = vld [vmem:[%s7011_s29 + $0x30] sm:$0xe] }
  0x59   : > { %v815_v13 = vunpack.c.l.b16 %v762_v58  ;;  %v1227_v20 = vor.u32 %v1226_v0, %v1223_v14  ;;  %v1264_v37 = vshll.u32 %v5561_v45, 16  ;;  %v1581_v55 = vrot.slane %v5560_v28, 5  ;;  %v5562_v58 = vld [vmem:[%s7011_s29 + $0x3c] sm:$0xf] }
  0x5a   : > { %v1269_v0 = vshrl.u32 %v5562_v58, 16 }
  0x5b   : > { %557 = vmatmul.bf16.gmra.mxu2 %v457_v30  ;;  %537 = vmatmul.bf16.gmra.mxu0 %v453_v35  ;;  %v1204_v30 = vrot.slane %v1203_v17, 4  ;;  %v1570_v35 = vrot.slane %v5555_v8, 5  ;;  %v7387_v47 = vpack.c.b16 %v815_v13, %v814_v59  ;;  %v1574_v8 = vrot.slane %v7370_v44, 5  ;;  %v7425_v59 = vld [vmem:[%s7011_s29 + $0x40] sm:$0xf] }
  0x5c   : > { %702 = vmatmul.bf16.gmra.mxu3 %v6608_v31  ;;  %v1214_v31 = vrot.slane %v1213_v18, 4  ;;  %v1228_v15 = vrot.slane %v1227_v20, 4  ;;  %v1242_v17 = vrot.slane %v1240_v7, 5  ;;  %v6685_v18 = vld [vmem:[%s8720_s1 + $0x1e0] sm:$0xff]  ;;  %v1583_v14 = vrot.slane %v1581_v55, 4 }
  0x5d   : > { %682 = vmatmul.bf16.gmra.mxu1 %v6604_v36  ;;  %v6678_v36 = vld [vmem:[%s8720_s1 + $0x1a8] sm:$0xff]  ;;  %v1209_v46 = vsel %vm7048_vm2, %v1204_v30, %v1208_v6  ;;  %v1571_v49 = vsel %vm7221_vm5, %v1569_v34, %v1570_v35  ;;  %v1237_v6 = vor.u32 %v1236_v2, %v1232_v1  ;;  %v1576_v22 = vrot.slane %v1574_v8, 4  ;;  %2287 = vmatpush.bf16.msra.mxu3 %v6685_v18 }
  0x5e   : > { %1908 = vmatpush.bf16.msra.mxu2 %v6678_v36  ;;  %v1219_v48 = vsel %vm7048_vm2, %v1214_v31, %v1218_v32  ;;  %v1383_v24 = vunpack.c.l.b16 %v1209_v46  ;;  %v1634_v63 = vunpack.c.l.b16 %v1571_v49  ;;  %v1233_v30 = vsel %vm7048_vm2, %v1228_v15, %v1232_v1 }
  0x5f   : > { %v1384_v60 = vunpack.c.l.b16 %v1219_v48  ;;  %v1238_v16 = vrot.slane %v1237_v6, 4  ;;  %v1254_v36 = vshll.u32 %v5560_v28, 16  ;;  %v1385_v39 = vunpack.c.l.b16 %v1233_v30  ;;  %v6636_v28 = vld [vmem:[%s7011_s29 + $0x30] sm:$0xff] }
  0x60   : > { %v1648_v5 = vpack.c.b16 %v1634_v63, %v1633_v61  ;;  %v1260_v48 = vrot.slane %v1258_v38, 4  ;;  %v5633_v63 = vrot.slane %v5625_v56, 9  ;;  %v1272_v1 = vshll.u32 %v5562_v58, 16 }
  0x61   : > { %v1398_v51 = vpack.c.b16 %v1384_v60, %v1383_v24  ;;  %v1243_v31 = vsel %vm7048_vm2, %v1238_v16, %v1242_v17  ;;  %v1256_v46 = vrot.slane %v1254_v36, 5  ;;  %v1266_v24 = vrot.slane %v1264_v37, 5  ;;  %v6684_v60 = vld [vmem:[%s8720_s1 + $0x1d8] sm:$0xff] }
  0x62   : > { %1909 = vmatpush.bf16.msra.mxu2 %v6677_v12  ;;  %v1278_v2 = vshll.u32 %v7425_v59, 16  ;;  %2288 = vmatpush.bf16.msra.mxu3 %v6684_v60  ;;  %v1271_v6 = vrot.slane %v1269_v0, 4  ;;  %v1274_v7 = vrot.slane %v1272_v1, 5  ;;  %v6692_v12 = vld [vmem:[%s8720_s1 + $0x218] sm:$0xff] }
  0x63   : > { %v1261_v54 = vor.u32 %v1260_v48, %v1256_v46  ;;  %v6675_v48 = vld [vmem:[%s8720_s1 + $0x190] sm:$0xff] }
  0x65   : > { %v1262_v61 = vrot.slane %v1261_v54, 4 }
  0x66   : > { %1910 = vmatpush.bf16.msra.mxu2 %v6676_v57 }
  0x6a   : > { %1911 = vmatpush.bf16.msra.mxu2 %v6675_v48 }
  0x6b   : > { %896 = vmatmul.bf16.vlgmr.msrb.gmra.mxu2 %v7253_v29  ;;  %1469 = vmatmul.bf16.vlgmr.msrb.gmra.mxu0 %v1397_v26  ;;  %v6694_v29 = vld [vmem:[%s8720_s1 + $0x228] sm:$0xff]  ;;  %v1577_v26 = vrot.slane %v5558_v3, 5  ;;  %v1282_v3 = vshrl.u32 %v7425_v59, 16 }
  0x6c   : > { %1091 = vmatmul.bf16.vlgmr.msrb.gmra.mxu3 %v6633_v21  ;;  %2536 = vmatpush.bf16.msra.mxu0 %v6694_v29  ;;  %v5632_v21 = vrot.slane %v5624_v11, 9  ;;  %v1386_v29 = vunpack.c.l.b16 %v1243_v31  ;;  %v1588_v31 = vrot.slane %v7425_v59, 5 }
  0x6d   : > { %1719 = vmatmul.bf16.vlgmr.msrb.gmra.mxu1 %v1647_v27  ;;  %v5559_v27 = vld [vmem:[%s7011_s29 + $0x30] sm:$0xf]  ;;  %v1578_v35 = vsel %vm7221_vm5, %v1576_v22, %v1577_v26  ;;  %v1284_v11 = vrot.slane %v1282_v3, 4  ;;  %v1275_v26 = vor.u32 %v1274_v7, %v1271_v6  ;;  %v6915_v7 = vld [vmem:[%s7011_s29 + $0x40] sm:$0xf] }
  0x6e   : > { %v1245_v32 = vshrl.u32 %v5559_v27, 16  ;;  %v1248_v33 = vshll.u32 %v5559_v27, 16  ;;  %v1575_v34 = vsel %vm7221_vm5, %v5632_v21, %v1574_v8  ;;  %v1636_v41 = vunpack.c.l.b16 %v1578_v35  ;;  %v6913_v21 = vld [vmem:[%s7011_s29 + $0x34] sm:$0xf]  ;;  %v5626_v35 = vld [vmem:[%s7011_s29 + $0x3c] sm:$0xe] }
  0x6f   : > { %v1635_v40 = vunpack.c.l.b16 %v1575_v34  ;;  %v1399_v52 = vpack.c.b16 %v1386_v29, %v1385_v39  ;;  %v1280_v8 = vrot.slane %v1278_v2, 5  ;;  %v765_v22 = vrot.slane %v6913_v21, 5  ;;  %v6914_v39 = vld [vmem:[%s7011_s29 + $0x38] sm:$0x1] }
  0x70   : > { %2537 = vmatpush.bf16.msra.mxu0 %v6693_v19  ;;  %v1247_v43 = vrot.slane %v1245_v32, 4  ;;  %v1250_v44 = vrot.slane %v1248_v33, 5  ;;  %v5564_v19 = vld [vmem:[%s7011_s29 + $0x44] sm:$0x1]  ;;  %v6716_v32 = vld [vmem:[%s8720_s1 + $0x58] sm:$0xff]  ;;  %v768_v29 = vrot.slane %v6914_v39, 5 }
  0x71   : > { %v1649_v53 = vpack.c.b16 %v1636_v41, %v1635_v40  ;;  %v1285_v27 = vor.u32 %v1284_v11, %v1280_v8  ;;  %v1288_v30 = vshll.u32 %v5564_v19, 16  ;;  %v767_v38 = vrot.slane %v765_v22, 4  ;;  %v6715_v11 = vld [vmem:[%s8720_s1 + $0x50] sm:$0xff]  ;;  %v6682_v39 = vld [vmem:[%s8720_s1 + $0x1c8] sm:$0xff] }
  0x72   : > { %v1251_v49 = vor.u32 %v1250_v44, %v1247_v43  ;;  %v1276_v40 = vrot.slane %v1275_v26, 4  ;;  %v5634_v44 = vrot.slane %v5626_v35, 9  ;;  %v5627_v26 = vld [vmem:[%s7011_s29 + $0x48] sm:$0xe] }
  0x73   : > { %v1286_v41 = vrot.slane %v1285_v27, 4  ;;  %v1290_v43 = vrot.slane %v1288_v30, 5  ;;  %v5568_v27 = vld [vmem:[%s7011_s29 + $0x54] sm:$0xf] }
  0x74   : > { %v1252_v13 = vrot.slane %v1251_v49, 4  ;;  %2538 = vmatpush.bf16.msra.mxu0 %v6692_v12  ;;  %v769_v49 = vsel %vm7221_vm5, %v767_v38, %v768_v29  ;;  %v1281_v37 = vsel %vm7048_vm2, %v1276_v40, %v1280_v8  ;;  %v772_v8 = vrot.slane %v6915_v7, 5 }
  0x75   : > { %v1291_v54 = vsel %vm7048_vm2, %v1286_v41, %v1290_v43  ;;  %v817_v60 = vunpack.c.l.b16 %v769_v49  ;;  %v5635_v29 = vrot.slane %v5627_v26, 9  ;;  %v1317_v43 = vshrl.u32 %v5568_v27, 16 }
  0x76   : > { %v774_v30 = vrot.slane %v772_v8, 4 }
  0x7b   : > { %901 = vmatmul.bf16.gmra.mxu2 %v7307_v25  ;;  %1474 = vmatmul.bf16.gmra.mxu0 %v1398_v51  ;;  %v6717_v25 = vld [vmem:[%s8720_s1 + $0x60] sm:$0xff]  ;;  %v1267_v51 = vsel %vm7048_vm2, %v1262_v61, %v1266_v24  ;;  %v6691_v61 = vld [vmem:[%s8720_s1 + $0x210] sm:$0xff] }
  0x7c   : > { %1096 = vmatmul.bf16.gmra.mxu3 %v6634_v4  ;;  %3023 = vmatpush.bf16.msra.mxu1 %v6717_v25  ;;  %v1257_v4 = vsel %vm7048_vm2, %v1252_v13, %v1256_v46  ;;  %v1388_v16 = vunpack.c.l.b16 %v1267_v51  ;;  %v712_v25 = vld [vmem:[%s7011_s29 + $0x30] sm:$0xe]  ;;  %v1591_v46 = vrot.slane %v5564_v19, 5  ;;  %v5567_v51 = vld [vmem:[%s7011_s29 + $0x50] sm:$0x1] }
  0x7d   : > { %1724 = vmatmul.bf16.gmra.mxu1 %v1648_v5  ;;  %v1582_v5 = vsel %vm7221_vm5, %v5633_v63, %v1581_v55  ;;  %v1387_v15 = vunpack.c.l.b16 %v1257_v4  ;;  %v5402_v36 = vrot.slane %v712_v25, 9  ;;  %v1589_v55 = vsel %vm7221_vm5, %v5634_v44, %v1588_v31  ;;  %2539 = vmatpush.bf16.msra.mxu0 %v6691_v61  ;;  %v6690_v61 = vld [vmem:[%s8720_s1 + $0x208] sm:$0xff] }
  0x7e   : > { %v1637_v17 = vunpack.c.l.b16 %v1582_v5  ;;  %v1389_v63 = vunpack.c.l.b16 %v1281_v37  ;;  %v1598_v41 = vrot.slane %v5567_v51, 5 }
  0x7f   : > { %v1400_v33 = vpack.c.b16 %v1388_v16, %v1387_v15  ;;  %v713_v15 = vld [vmem:[%s7011_s29 + $0x3c] sm:$0xe] }
  0x80   : > { %3024 = vmatpush.bf16.msra.mxu1 %v6716_v32  ;;  %v7500_v32 = vld [vmem:[%s7011_s29 + $0x58] sm:$0xf] }
  0x81   : > { %v1326_v48 = vshll.u32 %v7500_v32, 16  ;;  %2540 = vmatpush.bf16.msra.mxu0 %v6690_v61  ;;  %v6689_v61 = vld [vmem:[%s8720_s1 + $0x200] sm:$0xff] }
  0x84   : > { %3025 = vmatpush.bf16.msra.mxu1 %v6715_v11 }
  0x85   : > { %2541 = vmatpush.bf16.msra.mxu0 %v6689_v61 }
  0x8b   : > { %906 = vmatmul.bf16.gmra.mxu2 %v7348_v9  ;;  %1479 = vmatmul.bf16.gmra.mxu0 %v1399_v52  ;;  %v1584_v9 = vrot.slane %v5561_v45, 5  ;;  %v1590_v45 = vrot.slane %v1588_v31, 4  ;;  %v5565_v52 = vld [vmem:[%s7011_s29 + $0x48] sm:$0xf] }
  0x8c   : > { %1101 = vmatmul.bf16.gmra.mxu3 %v6635_v50  ;;  %v6683_v50 = vld [vmem:[%s8720_s1 + $0x1d0] sm:$0xff]  ;;  %v1293_v57 = vshrl.u32 %v5565_v52, 16  ;;  %v1296_v58 = vshll.u32 %v5565_v52, 16  ;;  %v6674_v31 = vld [vmem:[%s8720_s1 + $0x188] sm:$0xff] }
  0x8d   : > { %1729 = vmatmul.bf16.gmra.mxu1 %v1649_v53  ;;  %v1585_v20 = vsel %vm7221_vm5, %v1583_v14, %v1584_v9  ;;  %v7462_v53 = vld [vmem:[%s7011_s29 + $0x4c] sm:$0xf]  ;;  %2289 = vmatpush.bf16.msra.mxu3 %v6683_v50  ;;  %v1592_v56 = vsel %vm7221_vm5, %v1590_v45, %v1591_v46  ;;  %v1390_v14 = vunpack.c.l.b16 %v1291_v54  ;;  %v1639_v9 = vunpack.c.l.b16 %v1589_v55 }
  0x8e   : > { %v1638_v18 = vunpack.c.l.b16 %v1585_v20  ;;  %v1302_v59 = vshll.u32 %v7462_v53, 16  ;;  %v1306_v13 = vshrl.u32 %v7462_v53, 16  ;;  %v1640_v0 = vunpack.c.l.b16 %v1592_v56  ;;  %v6637_v20 = vld [vmem:[%s7011_s29 + $0x3c] sm:$0xff]  ;;  %1912 = vmatpush.bf16.msra.mxu2 %v6674_v31 }
  0x8f   : > { %v1295_v1 = vrot.slane %v1293_v57, 4  ;;  %v1298_v2 = vrot.slane %v1296_v58, 5  ;;  %v1401_v6 = vpack.c.b16 %v1390_v14, %v1389_v63  ;;  %v1595_v21 = vrot.slane %v7462_v53, 5 }
  0x90   : > { %v1650_v34 = vpack.c.b16 %v1638_v18, %v1637_v17  ;;  %v7481_v3 = vrot.slane %v1302_v59, 5  ;;  %v1308_v4 = vrot.slane %v1306_v13, 4  ;;  %v1651_v12 = vpack.c.b16 %v1640_v0, %v1639_v9 }
  0x91   : > { %v1299_v16 = vor.u32 %v1298_v2, %v1295_v1  ;;  %v1312_v18 = vshll.u32 %v5567_v51, 16  ;;  %v1597_v40 = vrot.slane %v1595_v21, 4  ;;  %v1320_v46 = vshll.u32 %v5568_v27, 16  ;;  %2290 = vmatpush.bf16.msra.mxu3 %v6682_v39 }
  0x92   : > { %v1309_v17 = vor.u32 %v1308_v4, %v7481_v3  ;;  %v1330_v50 = vshrl.u32 %v7500_v32, 16  ;;  %v1596_v56 = vsel %vm7221_vm5, %v5635_v29, %v1595_v21  ;;  %v1319_v58 = vrot.slane %v1317_v43, 4  ;;  %v6917_v4 = vld [vmem:[%s7011_s29 + $0x4c] sm:$0xf]  ;;  %v5628_v21 = vld [vmem:[%s7011_s29 + $0x54] sm:$0xe] }
  0x93   : > { %v1300_v35 = vrot.slane %v1299_v16, 4  ;;  %v1314_v38 = vrot.slane %v1312_v18, 5  ;;  %v1599_v57 = vsel %vm7221_vm5, %v1597_v40, %v1598_v41  ;;  %v1322_v13 = vrot.slane %v1320_v46, 5  ;;  %v6714_v18 = vld [vmem:[%s8720_s1 + $0x48] sm:$0xff]  ;;  %v6673_v29 = vld [vmem:[%s8720_s1 + $0x180] sm:$0xff] }
  0x94   : > { %v1641_v1 = vunpack.c.l.b16 %v1596_v56  ;;  %v1642_v2 = vunpack.c.l.b16 %v1599_v57  ;;  %v779_v51 = vrot.slane %v6917_v4, 5  ;;  %3026 = vmatpush.bf16.msra.mxu1 %v6714_v18  ;;  %v6681_v40 = vld [vmem:[%s8720_s1 + $0x1c0] sm:$0xff]  ;;  %1913 = vmatpush.bf16.msra.mxu2 %v6673_v29 }
  0x95   : > { %v1305_v49 = vsel %vm7048_vm2, %v1300_v35, %v7481_v3  ;;  %v5570_v3 = vld [vmem:[%s7011_s29 + $0x5c] sm:$0x1]  ;;  %v1323_v7 = vor.u32 %v1322_v13, %v1319_v58  ;;  %v7553_v41 = vld [vmem:[%s7011_s29 + $0x64] sm:$0xf]  ;;  %2291 = vmatpush.bf16.msra.mxu3 %v6681_v40 }
  0x96   : > { %v1391_v9 = vunpack.c.l.b16 %v1305_v49  ;;  %v1336_v16 = vshll.u32 %v5570_v3, 16  ;;  %v1605_v39 = vrot.slane %v5570_v3, 5  ;;  %v1354_v56 = vshrl.u32 %v7553_v41, 16 }
  0x98   : > { %v1338_v35 = vrot.slane %v1336_v16, 5  ;;  %v1356_v4 = vrot.slane %v1354_v56, 4  ;;  %v6639_v16 = vld [vmem:[%s7011_s29 + $0x54] sm:$0xff] }
  0x9b   : > { %911 = vmatmul.bf16.gmra.mxu2 %v7387_v47  ;;  %1484 = vmatmul.bf16.gmra.mxu0 %v1400_v33  ;;  %v766_v47 = vsel %vm7221_vm5, %v5402_v36, %v765_v22  ;;  %v6916_v33 = vld [vmem:[%s7011_s29 + $0x44] sm:$0x1]  ;;  %v1310_v36 = vrot.slane %v1309_v17, 4  ;;  %v1602_v17 = vrot.slane %v7500_v32, 5 }
  0x9c   : > { %1106 = vmatmul.bf16.gmra.mxu3 %v6636_v28  ;;  %v816_v24 = vunpack.c.l.b16 %v766_v47  ;;  %v5403_v28 = vrot.slane %v713_v15, 9  ;;  %v6638_v15 = vld [vmem:[%s7011_s29 + $0x48] sm:$0xff] }
  0x9d   : > { %1734 = vmatmul.bf16.gmra.mxu1 %v1650_v34  ;;  %v775_v34 = vrot.slane %v6916_v33, 5  ;;  %v1315_v55 = vsel %vm7048_vm2, %v1310_v36, %v1314_v38  ;;  %v782_v33 = vrot.slane %v7156_v10, 5  ;;  %v5636_v36 = vrot.slane %v5628_v21, 9  ;;  %v5571_v10 = vld [vmem:[%s7011_s29 + $0x60] sm:$0xf] }
  0x9e   : > { %v828_v5 = vpack.c.b16 %v817_v60, %v816_v24  ;;  %v773_v53 = vsel %vm7221_vm5, %v5403_v28, %v772_v8  ;;  %v7525_v24 = vrot.slane %v1326_v48, 5  ;;  %v1332_v60 = vrot.slane %v1330_v50, 4 }
  0x9f   : > { %v776_v47 = vsel %vm7221_vm5, %v774_v30, %v775_v34  ;;  %v818_v63 = vunpack.c.l.b16 %v773_v53  ;;  %v1392_v0 = vunpack.c.l.b16 %v1315_v55  ;;  %v781_v30 = vrot.slane %v779_v51, 4 }
  0xa0   : > { %v819_v14 = vunpack.c.l.b16 %v776_v47  ;;  %v1333_v8 = vor.u32 %v1332_v60, %v7525_v24  ;;  %v1324_v34 = vrot.slane %v1323_v7, 4  ;;  %v1604_v38 = vrot.slane %v1602_v17, 4  ;;  %v6918_v7 = vld [vmem:[%s7011_s29 + $0x58] sm:$0xf] }
  0xa1   : > { %v783_v46 = vsel %vm7221_vm5, %v781_v30, %v782_v33  ;;  %v1603_v47 = vsel %vm7221_vm5, %v5636_v36, %v1602_v17  ;;  %v1350_v55 = vshll.u32 %v7553_v41, 16  ;;  %v1609_v33 = vrot.slane %v7553_v41, 5  ;;  %v5629_v36 = vld [vmem:[%s7011_s29 + $0x60] sm:$0xe] }
  0xa2   : > { %v1334_v32 = vrot.slane %v1333_v8, 4  ;;  %v1329_v48 = vsel %vm7048_vm2, %v1324_v34, %v7525_v24  ;;  %v1606_v49 = vsel %vm7221_vm5, %v1604_v38, %v1605_v39  ;;  %v821_v60 = vunpack.c.l.b16 %v783_v46  ;;  %v5782_v38 = vld [vmem:[%s7011_s29 + $0x18] sm:$0xf] }
  0xa3   : > { %v7577_v3 = vrot.slane %v1350_v55, 5  ;;  %v786_v8 = vrot.slane %v6918_v7, 5  ;;  %v6712_v39 = vld [vmem:[%s8720_s1 + $0x38] sm:$0xff]  ;;  %v5919_v55 = vld [vmem:[%s7011_s29 + $0x64] sm:$0xf] }
  0xa4   : > { %v1339_v53 = vsel %vm7048_vm2, %v1334_v32, %v1338_v35  ;;  %v789_v35 = vrot.slane %v7249_v23, 5  ;;  %v6728_v23 = vld [vmem:[%s8720_s1 + $0xb8] sm:$0xff]  ;;  %3165 = vmatpush.bf16.msrb.mxu2 %v6712_v39 }
  0xa5   : > { %v788_v32 = vrot.slane %v786_v8, 4  ;;  %3390 = vmatpush.bf16.msrb.mxu3 %v6728_v23  ;;  %v5854_v23 = vld [vmem:[%s7011_s29 + $0x18] sm:$0xe] }
  0xa8   : > { %v523_v19 = vpop.f32.mrf.mxu0 }
  0xaa   : > { %v668_v25 = vpop.f32.mrf.mxu1 }
  0xab   : > { %v7492_v22 = vadd.f32 %v668_v25, %v523_v19  ;;  %916 = vmatmul.bf16.gmra.mxu2 %v828_v5  ;;  %1489 = vmatmul.bf16.gmra.mxu0 %v1401_v6  ;;  %v714_v6 = vld [vmem:[%s7011_s29 + $0x48] sm:$0xe]  ;;  %v1402_v19 = vpack.c.b16 %v1392_v0, %v1391_v9  ;;  %v1652_v25 = vpack.c.b16 %v1642_v2, %v1641_v1  ;;  %v1643_v9 = vunpack.c.l.b16 %v1603_v47 }
  0xac   : > { %1111 = vmatmul.bf16.gmra.mxu3 %v6637_v20  ;;  %v5404_v28 = vrot.slane %v714_v6, 9  ;;  %v1644_v0 = vunpack.c.l.b16 %v1606_v49  ;;  %v790_v49 = vsel %vm7221_vm5, %v788_v32, %v789_v35 }
  0xad   : > { %1739 = vmatmul.bf16.gmra.mxu1 %v1651_v12  ;;  %v829_v12 = vpack.c.b16 %v819_v14, %v818_v63  ;;  %v1393_v63 = vunpack.c.l.b16 %v1329_v48  ;;  %v1394_v14 = vunpack.c.l.b16 %v1339_v53  ;;  %v5918_v48 = vld [vmem:[%s7011_s29 + $0x60] sm:$0xf] }
  0xae   : > { %v543_v44 = vpop.f32.mrf.mxu2  ;;  %v1653_v18 = vpack.c.b16 %v1644_v0, %v1643_v9 }
  0xaf   : > { %v688_v45 = vpop.f32.mrf.mxu3  ;;  %v1403_v17 = vpack.c.b16 %v1394_v14, %v1393_v63  ;;  %v2733_v63 = vshrl.u32 %v5918_v48, 16  ;;  %v2736_v14 = vshll.u32 %v5918_v48, 16 }
  0xb0   : > { %v7508_v52 = vadd.f32 %v688_v45, %v543_v44  ;;  %v525_v37 = vpop.f32.mrf.mxu0  ;;  %v780_v45 = vsel %vm7221_vm5, %v5404_v28, %v779_v51  ;;  %v715_v51 = vld [vmem:[%s7011_s29 + $0x54] sm:$0xe] }
  0xb1   : > { %v820_v24 = vunpack.c.l.b16 %v780_v45  ;;  %v1611_v45 = vrot.slane %v1609_v33, 4 }
  0xb2   : > { %v670_v54 = vpop.f32.mrf.mxu1 }
  0xb3   : > { %v7523_v59 = vadd.f32 %v670_v54, %v525_v37  ;;  %v1341_v37 = vshrl.u32 %v5571_v10, 16  ;;  %v1344_v54 = vshll.u32 %v5571_v10, 16 }
  0xb5   : > { %v1343_v1 = vrot.slane %v1341_v37, 4  ;;  %v1346_v2 = vrot.slane %v1344_v54, 5  ;;  %v1996_v37 = vshrl.u32 %v5782_v38, 16  ;;  %v1999_v54 = vshll.u32 %v5782_v38, 16 }
  0xb6   : > { %v545_v5 = vpop.f32.mrf.mxu2 }
  0xb7   : > { %v690_v20 = vpop.f32.mrf.mxu3  ;;  %v1347_v21 = vor.u32 %v1346_v2, %v1343_v1 }
  0xb8   : > { %v7534_v11 = vadd.f32 %v690_v20, %v545_v5  ;;  %v528_v26 = vpop.f32.mrf.mxu0  ;;  %v5573_v5 = vld [vmem:[%s7011_s29 + $0x68] sm:$0x1] }
  0xb9   : > { %v1348_v40 = vrot.slane %v1347_v21, 4  ;;  %v1612_v46 = vrot.slane %v5573_v5, 5  ;;  %v2735_v21 = vrot.slane %v2733_v63, 4 }
  0xba   : > { %v673_v27 = vpop.f32.mrf.mxu1 }
  0xbb   : > { %v7542_v31 = vadd.f32 %v673_v27, %v528_v26  ;;  %921 = vmatmul.bf16.gmra.mxu2 %v829_v12  ;;  %1494 = vmatmul.bf16.gmra.mxu0 %v1402_v19  ;;  %v6713_v19 = vld [vmem:[%s8720_s1 + $0x40] sm:$0xff]  ;;  %v1357_v26 = vor.u32 %v1356_v4, %v7577_v3  ;;  %v1360_v27 = vshll.u32 %v5573_v5, 16  ;;  %v1613_v2 = vsel %vm7221_vm5, %v1611_v45, %v1612_v46 }
  0xbc   : > { %1116 = vmatmul.bf16.gmra.mxu3 %v6638_v15  ;;  %v830_v15 = vpack.c.b16 %v821_v60, %v820_v24  ;;  %3027 = vmatpush.bf16.msra.mxu1 %v6713_v19  ;;  %v1353_v60 = vsel %vm7048_vm2, %v1348_v40, %v7577_v3  ;;  %v2742_v4 = vshll.u32 %v5919_v55, 16  ;;  %v1998_v3 = vrot.slane %v1996_v37, 4 }
  0xbd   : > { %1744 = vmatmul.bf16.gmra.mxu1 %v1652_v25  ;;  %v5405_v25 = vrot.slane %v715_v51, 9  ;;  %v1358_v10 = vrot.slane %v1357_v26, 4  ;;  %v1362_v41 = vrot.slane %v1360_v27, 5  ;;  %v2746_v51 = vshrl.u32 %v5919_v55, 16  ;;  %v5785_v55 = vld [vmem:[%s7011_s29 + $0x24] sm:$0xf] }
  0xbe   : > { %v548_v43 = vpop.f32.mrf.mxu2  ;;  %v1395_v7 = vunpack.c.l.b16 %v1353_v60  ;;  %v2738_v26 = vrot.slane %v2736_v14, 5  ;;  %v7633_v27 = vrot.slane %v2742_v4, 5  ;;  %v6711_v60 = vld [vmem:[%s8720_s1 + $0x30] sm:$0xff]  ;;  %v5920_v4 = vld [vmem:[%s7011_s29 + $0x6c] sm:$0xf] }
  0xbf   : > { %v693_v44 = vpop.f32.mrf.mxu3  ;;  %v787_v29 = vsel %vm7221_vm5, %v5405_v25, %v786_v8  ;;  %v1363_v61 = vsel %vm7048_vm2, %v1358_v10, %v1362_v41  ;;  %v1646_v25 = vunpack.c.l.b16 %v1613_v2  ;;  %v2020_v2 = vshrl.u32 %v5785_v55, 16  ;;  %3166 = vmatpush.bf16.msrb.mxu2 %v6711_v60 }
  0xc0   : > { %v7562_v50 = vadd.f32 %v693_v44, %v548_v43  ;;  %v530_v57 = vpop.f32.mrf.mxu0  ;;  %v7601_v43 = vld [vmem:[%s7011_s29 + $0x1c] sm:$0xf]  ;;  %v5637_v44 = vrot.slane %v5629_v36, 9  ;;  %v1396_v8 = vunpack.c.l.b16 %v1363_v61  ;;  %v5934_v36 = vld [vmem:[%s7011_s29 + $0x68] sm:$0x1]  ;;  %v2739_v45 = vor.u32 %v2738_v26, %v2735_v21 }
  0xc1   : > { %v2009_v24 = vshrl.u32 %v7601_v43, 16  ;;  %v2757_v26 = vshrl.u32 %v5920_v4, 16 }
  0xc2   : > { %v675_v58 = vpop.f32.mrf.mxu1  ;;  %v1610_v1 = vsel %vm7221_vm5, %v5637_v44, %v1609_v33  ;;  %v1404_v10 = vpack.c.b16 %v1396_v8, %v1395_v7  ;;  %v2383_v44 = vrot.slane %v7601_v43, 5  ;;  %v2740_v14 = vrot.slane %v2739_v45, 4  ;;  %v5921_v8 = vld [vmem:[%s7011_s29 + $0x70] sm:$0xf]  ;;  %v7685_v45 = vld [vmem:[%s7011_s29 + $0x2c] sm:$0x1] }
  0xc3   : > { %v7572_v13 = vadd.f32 %v675_v58, %v530_v57  ;;  %v822_v57 = vunpack.c.l.b16 %v787_v29  ;;  %v2005_v58 = vshll.u32 %v7601_v43, 16  ;;  %v1645_v19 = vunpack.c.l.b16 %v1610_v1  ;;  %v6640_v29 = vld [vmem:[%s7011_s29 + $0x60] sm:$0xff]  ;;  %v6752_v43 = vld [vmem:[%s8720_s1 + $0x138] sm:$0xff] }
  0xc4   : > { %v2385_v61 = vrot.slane %v2383_v44, 4  ;;  %3961 = vmatpush.bf16.msrb.mxu1 %v6752_v43  ;;  %v2745_v21 = vsel %vm7048_vm2, %v2740_v14, %v7633_v27 }
  0xc5   : > { %v1654_v41 = vpack.c.b16 %v1646_v25, %v1645_v19 }
  0xc6   : > { %v550_v20 = vpop.f32.mrf.mxu2 }
  0xc7   : > { %v695_v6 = vpop.f32.mrf.mxu3 }
  0xc8   : > { %v7582_v12 = vadd.f32 %v695_v6, %v550_v20  ;;  %v533_v28 = vpop.f32.mrf.mxu0  ;;  %v823_v20 = vunpack.c.l.b16 %v790_v49  ;;  %v2001_v6 = vrot.slane %v1999_v54, 5 }
  0xca   : > { %v678_v30 = vpop.f32.mrf.mxu1  ;;  %v2002_v32 = vor.u32 %v2001_v6, %v1998_v3  ;;  %v831_v39 = vpack.c.b16 %v823_v20, %v822_v57  ;;  %v2023_v3 = vshll.u32 %v5785_v55, 16 }
  0xcb   : > { %v7590_v34 = vadd.f32 %v678_v30, %v533_v28  ;;  %926 = vmatmul.bf16.gmra.mxu2 %v830_v15  ;;  %1499 = vmatmul.bf16.gmra.mxu0 %v1403_v17  ;;  %v7626_v15 = vld [vmem:[%s7011_s29 + $0x20] sm:$0x1]  ;;  %v2011_v17 = vrot.slane %v2009_v24, 4  ;;  %v2748_v28 = vrot.slane %v2746_v51, 4  ;;  %v7651_v24 = vld [vmem:[%s7011_s29 + $0x28] sm:$0xf] }
  0xcc   : > { %1121 = vmatmul.bf16.gmra.mxu3 %v6639_v16  ;;  %v7628_v16 = vrot.slane %v2005_v58, 5  ;;  %v2015_v35 = vshll.u32 %v7626_v15, 16  ;;  %v2003_v37 = vrot.slane %v2002_v32, 4  ;;  %v5862_v58 = vrot.slane %v5854_v23, 9 }
  0xcd   : > { %1749 = vmatmul.bf16.gmra.mxu1 %v1653_v18  ;;  %v6744_v18 = vld [vmem:[%s8720_s1 + $0xf8] sm:$0xff]  ;;  %v2386_v63 = vrot.slane %v7626_v15, 5  ;;  %v2029_v6 = vshll.u32 %v7651_v24, 16  ;;  %v2033_v7 = vshrl.u32 %v7651_v24, 16  ;;  %v2022_v32 = vrot.slane %v2020_v2, 4 }
  0xce   : > { %v553_v53 = vpop.f32.mrf.mxu2  ;;  %3584 = vmatpush.bf16.msrb.mxu0 %v6744_v18  ;;  %v2012_v40 = vor.u32 %v2011_v17, %v7628_v16  ;;  %v2017_v54 = vrot.slane %v2015_v35, 5  ;;  %v2008_v17 = vsel %vm7048_vm2, %v2003_v37, %v7628_v16  ;;  %v2384_v19 = vsel %vm7221_vm5, %v5862_v58, %v2383_v44 }
  0xcf   : > { %v698_v47 = vpop.f32.mrf.mxu3  ;;  %v2387_v25 = vsel %vm7221_vm5, %v2385_v61, %v2386_v63  ;;  %v2766_v35 = vshll.u32 %v5921_v8, 16  ;;  %v2039_v61 = vshll.u32 %v7685_v45, 16  ;;  %v5935_v63 = vld [vmem:[%s7011_s29 + $0x74] sm:$0x1]  ;;  %v2390_v2 = vrot.slane %v7651_v24, 5 }
  0xd0   : > { %v7610_v56 = vadd.f32 %v698_v47, %v553_v53  ;;  %v535_v9 = vpop.f32.mrf.mxu0  ;;  %v2749_v53 = vor.u32 %v2748_v28, %v7633_v27  ;;  %v2752_v47 = vshll.u32 %v5934_v36, 16  ;;  %v2013_v57 = vrot.slane %v2012_v40, 4 }
  0xd1   : > { %v2760_v28 = vshll.u32 %v5920_v4, 16  ;;  %v2770_v36 = vshrl.u32 %v5921_v8, 16  ;;  %v7682_v40 = vrot.slane %v2029_v6, 5  ;;  %v2454_v27 = vunpack.c.l.b16 %v2384_v19 }
  0xd2   : > { %v680_v0 = vpop.f32.mrf.mxu1  ;;  %v2754_v1 = vrot.slane %v2752_v47, 5  ;;  %v2018_v18 = vsel %vm7048_vm2, %v2013_v57, %v2017_v54  ;;  %v2455_v44 = vunpack.c.l.b16 %v2387_v25  ;;  %v2759_v47 = vrot.slane %v2757_v26, 4 }
  0xd3   : > { %v7623_v5 = vadd.f32 %v680_v0, %v535_v9  ;;  %v6727_v9 = vld [vmem:[%s8720_s1 + $0xb0] sm:$0xff]  ;;  %v2750_v0 = vrot.slane %v2749_v53, 4  ;;  %v2205_v23 = vunpack.c.l.b16 %v2018_v18  ;;  %v2762_v37 = vrot.slane %v2760_v28, 5 }
  0xd4   : > { %3391 = vmatpush.bf16.msrb.mxu3 %v6727_v9  ;;  %v7690_v54 = vrot.slane %v2766_v35, 5  ;;  %v2772_v55 = vrot.slane %v2770_v36, 4  ;;  %v6665_v9 = vld [vmem:[%s7011_s29 + $0x18] sm:$0xff]  ;;  %v2470_v4 = vpack.c.b16 %v2455_v44, %v2454_v27  ;;  %v2776_v8 = vshll.u32 %v5935_v63, 16  ;;  %v6751_v28 = vld [vmem:[%s8720_s1 + $0x130] sm:$0xff]  ;;  %v6726_v36 = vld [vmem:[%s8720_s1 + $0xa8] sm:$0xff] }
  0xd5   : > { %v2755_v16 = vsel %vm7048_vm2, %v2750_v0, %v2754_v1  ;;  %v5855_v1 = vld [vmem:[%s7011_s29 + $0x24] sm:$0xe]  ;;  %v2041_v25 = vrot.slane %v2039_v61, 5  ;;  %v2392_v26 = vrot.slane %v2390_v2, 4  ;;  %v2393_v24 = vrot.slane %v7685_v45, 5  ;;  %3962 = vmatpush.bf16.msrb.mxu1 %v6751_v28 }
  0xd6   : > { %v555_v30 = vpop.f32.mrf.mxu2  ;;  %v2941_v53 = vunpack.c.l.b16 %v2755_v16 }
  0xd7   : > { %v700_v33 = vpop.f32.mrf.mxu3 }
  0xd8   : > { %v7637_v38 = vadd.f32 %v700_v33, %v555_v30  ;;  %v538_v46 = vpop.f32.mrf.mxu0  ;;  %3392 = vmatpush.bf16.msrb.mxu3 %v6726_v36 }
  0xda   : > { %v683_v48 = vpop.f32.mrf.mxu1 }
  0xdb   : > { %v7644_v49 = vadd.f32 %v683_v48, %v538_v46  ;;  %931 = vmatmul.bf16.gmra.mxu2 %v831_v39  ;;  %1504 = vmatmul.bf16.gmra.mxu0 %v1404_v10  ;;  %v2035_v10 = vrot.slane %v2033_v7, 4  ;;  %v6743_v46 = vld [vmem:[%s8720_s1 + $0xf0] sm:$0xff]  ;;  %v2940_v48 = vunpack.c.l.b16 %v2745_v21  ;;  %v2773_v7 = vor.u32 %v2772_v55, %v7690_v54 }
  0xdc   : > { %1126 = vmatmul.bf16.gmra.mxu3 %v6640_v29  ;;  %v2025_v29 = vrot.slane %v2023_v3, 5  ;;  %3585 = vmatpush.bf16.msrb.mxu0 %v6743_v46  ;;  %v5863_v21 = vrot.slane %v5855_v1, 9 }
  0xdd   : > { %1754 = vmatmul.bf16.gmra.mxu1 %v1654_v41  ;;  %v2204_v41 = vunpack.c.l.b16 %v2008_v17  ;;  %v2036_v60 = vor.u32 %v2035_v10, %v7682_v40  ;;  %v5788_v17 = vld [vmem:[%s7011_s29 + $0x30] sm:$0xf]  ;;  %v2774_v10 = vrot.slane %v2773_v7, 4 }
  0xde   : > { %v558_v51 = vpop.f32.mrf.mxu2  ;;  %v2026_v43 = vor.u32 %v2025_v29, %v2022_v32  ;;  %v2044_v32 = vshrl.u32 %v5788_v17, 16  ;;  %v2047_v35 = vshll.u32 %v5788_v17, 16  ;;  %v5922_v29 = vld [vmem:[%s7011_s29 + $0x78] sm:$0xf] }
  0xdf   : > { %v703_v20 = vpop.f32.mrf.mxu3  ;;  %v2220_v0 = vpack.c.b16 %v2205_v23, %v2204_v41  ;;  %v2037_v19 = vrot.slane %v2036_v60, 4  ;;  %v2778_v41 = vrot.slane %v2776_v8, 5  ;;  %v2781_v55 = vshrl.u32 %v5922_v29, 16 }
  0xe0   : > { %v7664_v15 = vadd.f32 %v703_v20, %v558_v51  ;;  %v540_v30 = vpop.f32.mrf.mxu0  ;;  %v2956_v51 = vpack.c.b16 %v2941_v53, %v2940_v48  ;;  %v2763_v20 = vor.u32 %v2762_v37, %v2759_v47  ;;  %v2027_v18 = vrot.slane %v2026_v43, 4  ;;  %v5923_v53 = vld [vmem:[%s7011_s29 + $0x7c] sm:$0xf] }
  0xe1   : > { %v2042_v45 = vsel %vm7048_vm2, %v2037_v19, %v2041_v25  ;;  %v2391_v37 = vsel %vm7221_vm5, %v5863_v21, %v2390_v2  ;;  %v2046_v43 = vrot.slane %v2044_v32, 4  ;;  %v2049_v60 = vrot.slane %v2047_v35, 5  ;;  %v6742_v19 = vld [vmem:[%s8720_s1 + $0xe8] sm:$0xff] }
  0xe2   : > { %v685_v33 = vpop.f32.mrf.mxu1  ;;  %v2764_v16 = vrot.slane %v2763_v20, 4  ;;  %v2032_v44 = vsel %vm7048_vm2, %v2027_v18, %v7682_v40  ;;  %v2394_v40 = vsel %vm7221_vm5, %v2392_v26, %v2393_v24  ;;  %v2794_v1 = vshrl.u32 %v5923_v53, 16  ;;  %3586 = vmatpush.bf16.msrb.mxu0 %v6742_v19 }
  0xe3   : > { %v7680_v39 = vadd.f32 %v685_v33, %v540_v30  ;;  %v7709_v30 = vld [vmem:[%s7011_s29 + $0x34] sm:$0xf]  ;;  %v6710_v33 = vld [vmem:[%s8720_s1 + $0x28] sm:$0xff]  ;;  %v2206_v2 = vunpack.c.l.b16 %v2032_v44  ;;  %v2783_v17 = vrot.slane %v2781_v55, 4  ;;  %v2457_v25 = vunpack.c.l.b16 %v2394_v40  ;;  %v5856_v44 = vld [vmem:[%s7011_s29 + $0x30] sm:$0xe] }
  0xe4   : > { %3167 = vmatpush.bf16.msrb.mxu2 %v6710_v33  ;;  %v2053_v46 = vshll.u32 %v7709_v30, 16  ;;  %v2057_v48 = vshrl.u32 %v7709_v30, 16  ;;  %v2050_v24 = vor.u32 %v2049_v60, %v2046_v43  ;;  %v5791_v40 = vld [vmem:[%s7011_s29 + $0x3c] sm:$0xf]  ;;  %v5864_v43 = vrot.slane %v5856_v44, 9 }
  0xe6   : > { %v560_v57 = vpop.f32.mrf.mxu2  ;;  %v7741_v20 = vrot.slane %v2053_v46, 5  ;;  %v2059_v7 = vrot.slane %v2057_v48, 4 }
  0xe7   : > { %v705_v58 = vpop.f32.mrf.mxu3 }
  0xe8   : > { %v7695_v14 = vadd.f32 %v705_v58, %v560_v57  ;;  %v1470_v3 = vpop.f32.mrf.mxu0  ;;  %v2784_v57 = vshll.u32 %v5922_v29, 16  ;;  %v2769_v58 = vsel %vm7048_vm2, %v2764_v16, %v7690_v54  ;;  %v2456_v54 = vunpack.c.l.b16 %v2391_v37 }
  0xe9   : > { %v2942_v21 = vunpack.c.l.b16 %v2769_v58  ;;  %v2796_v16 = vrot.slane %v2794_v1, 4  ;;  %v2060_v36 = vor.u32 %v2059_v7, %v7741_v20  ;;  %v2397_v29 = vrot.slane %v7709_v30, 5  ;;  %v6709_v1 = vld [vmem:[%s8720_s1 + $0x20] sm:$0xff] }
  0xea   : > { %v7700_v6 = vpop.f32.mrf.mxu1  ;;  %v2786_v18 = vrot.slane %v2784_v57, 5  ;;  %v2471_v46 = vpack.c.b16 %v2457_v25, %v2456_v54  ;;  %3168 = vmatpush.bf16.msrb.mxu2 %v6709_v1  ;;  %v5924_v54 = vld [vmem:[%s7011_s29 + $0x84] sm:$0xf] }
  0xeb   : > { %1914 = vmatmul.bf16.vlgmr.msra.gmra.mxu2 %v6665_v9  ;;  %2542 = vmatmul.bf16.vlgmr.msra.gmra.mxu0 %v2470_v4  ;;  %v2207_v4 = vunpack.c.l.b16 %v2042_v45  ;;  %v2061_v58 = vrot.slane %v2060_v36, 4 }
  0xec   : > { %2292 = vmatmul.bf16.vlgmr.msra.gmra.mxu3 %v2220_v0  ;;  %v2790_v0 = vshll.u32 %v5923_v53, 16  ;;  %v2787_v45 = vor.u32 %v2786_v18, %v2783_v17  ;;  %v2051_v53 = vrot.slane %v2050_v24, 4 }
  0xed   : > { %3028 = vmatmul.bf16.vlgmr.msra.gmra.mxu1 %v2956_v51  ;;  %v7739_v51 = vld [vmem:[%s7011_s29 + $0x38] sm:$0x1] }
  0xee   : > { %v897_v23 = vpop.f32.mrf.mxu2  ;;  %v2063_v28 = vshll.u32 %v7739_v51, 16  ;;  %v7747_v33 = vrot.slane %v2790_v0, 5  ;;  %v2400_v60 = vrot.slane %v7739_v51, 5  ;;  %v6750_v0 = vld [vmem:[%s8720_s1 + $0x128] sm:$0xff]  ;;  %v2071_v51 = vshll.u32 %v5791_v40, 16 }
  0xef   : > { %v1092_v27 = vpop.f32.mrf.mxu3  ;;  %v937_v47 = vadd.f32 %v897_v23, %v7492_v22  ;;  %v2779_v22 = vsel %vm7048_vm2, %v2774_v10, %v2778_v41  ;;  %v5936_v10 = vld [vmem:[%s7011_s29 + $0x80] sm:$0x1]  ;;  %v6666_v23 = vld [vmem:[%s7011_s29 + $0x24] sm:$0xff]  ;;  %3963 = vmatpush.bf16.msrb.mxu1 %v6750_v0  ;;  %v2056_v25 = vsel %vm7048_vm2, %v2051_v53, %v7741_v20 }
  0xf0   : > { %v1472_v63 = vpop.f32.mrf.mxu0  ;;  %v2943_v26 = vunpack.c.l.b16 %v2779_v22  ;;  %v2065_v55 = vrot.slane %v2063_v28, 5  ;;  %v2797_v57 = vor.u32 %v2796_v16, %v7747_v33  ;;  %v2800_v30 = vshll.u32 %v5936_v10, 16  ;;  %v5925_v28 = vld [vmem:[%s7011_s29 + $0x88] sm:$0xf] }
  0xf1   : > { %v1132_v61 = vadd.f32 %v1092_v27, %v937_v47  ;;  %v2221_v27 = vpack.c.b16 %v2207_v4, %v2206_v2  ;;  %v2788_v22 = vrot.slane %v2787_v45, 4  ;;  %v7770_v2 = vld [vmem:[%s7011_s29 + $0x40] sm:$0xf]  ;;  %v2068_v4 = vshrl.u32 %v5791_v40, 16 }
  0xf2   : > { %v7734_v9 = vpop.f32.mrf.mxu1  ;;  %v2957_v48 = vpack.c.b16 %v2943_v26, %v2942_v21  ;;  %v2798_v7 = vrot.slane %v2797_v57, 4  ;;  %v2066_v21 = vsel %vm7048_vm2, %v2061_v58, %v2065_v55  ;;  %v2398_v26 = vsel %vm7221_vm5, %v5864_v43, %v2397_v29  ;;  %v7800_v57 = vld [vmem:[%s7011_s29 + $0x44] sm:$0x1] }
  0xf3   : > { %v1510_v8 = vadd.f32 %v1470_v3, %v1132_v61  ;;  %v2793_v16 = vsel %vm7048_vm2, %v2788_v22, %v7747_v33  ;;  %v2081_v20 = vshrl.u32 %v7770_v2, 16  ;;  %v2073_v36 = vrot.slane %v2071_v51, 5  ;;  %v6741_v58 = vld [vmem:[%s8720_s1 + $0xe0] sm:$0xff] }
  0xf4   : > { %v2805_v10 = vshrl.u32 %v5924_v54, 16  ;;  %v2814_v44 = vshll.u32 %v5925_v28, 16  ;;  %v2818_v45 = vshrl.u32 %v5925_v28, 16  ;;  %v2209_v33 = vunpack.c.l.b16 %v2066_v21  ;;  %3587 = vmatpush.bf16.msrb.mxu0 %v6741_v58 }
  0xf5   : > { %v7750_v3 = vadd.f32 %v7700_v6, %v1510_v8  ;;  %v2802_v8 = vrot.slane %v2800_v30, 5  ;;  %v2944_v55 = vunpack.c.l.b16 %v2793_v16  ;;  %v2083_v40 = vrot.slane %v2081_v20, 4 }
  0xf6   : > { %v899_v32 = vpop.f32.mrf.mxu2  ;;  %v7807_v22 = vrot.slane %v2814_v44, 5  ;;  %v2087_v51 = vshll.u32 %v7800_v57, 16 }
  0xf7   : > { %v1094_v35 = vpop.f32.mrf.mxu3  ;;  %v938_v41 = vadd.f32 %v899_v32, %v7523_v59  ;;  %v2399_v59 = vrot.slane %v2397_v29, 4  ;;  %v2077_v32 = vshll.u32 %v7770_v2, 16  ;;  %v2808_v29 = vshll.u32 %v5924_v54, 16 }
  0xf8   : > { %v1475_v6 = vpop.f32.mrf.mxu0  ;;  %v2089_v20 = vrot.slane %v2087_v51, 5 }
  0xf9   : > { %v1133_v47 = vadd.f32 %v1094_v35, %v938_v41  ;;  %v2401_v24 = vsel %vm7221_vm5, %v2399_v59, %v2400_v60  ;;  %v2070_v35 = vrot.slane %v2068_v4, 4  ;;  %v7802_v30 = vrot.slane %v2077_v32, 5 }
  0xfa   : > { %v7758_v37 = vpop.f32.mrf.mxu1  ;;  %v2459_v53 = vunpack.c.l.b16 %v2401_v24  ;;  %v2807_v60 = vrot.slane %v2805_v10, 4 }
  0xfb   : > { %v1511_v61 = vadd.f32 %v1472_v63, %v1133_v47  ;;  %1919 = vmatmul.bf16.gmra.mxu2 %v6666_v23  ;;  %2547 = vmatmul.bf16.gmra.mxu0 %v2471_v46  ;;  %v6725_v63 = vld [vmem:[%s8720_s1 + $0xa0] sm:$0xff]  ;;  %v2208_v46 = vunpack.c.l.b16 %v2056_v25  ;;  %v2074_v59 = vor.u32 %v2073_v36, %v2070_v35  ;;  %v5794_v35 = vld [vmem:[%s7011_s29 + $0x48] sm:$0xf] }
  0xfc   : > { %2297 = vmatmul.bf16.gmra.mxu3 %v2221_v27 }
  0xfd   : > { %3033 = vmatmul.bf16.gmra.mxu1 %v2957_v48  ;;  %v7777_v17 = vadd.f32 %v7734_v9, %v1511_v61  ;;  %3393 = vmatpush.bf16.msrb.mxu3 %v6725_v63  ;;  %v2458_v48 = vunpack.c.l.b16 %v2398_v26  ;;  %v2810_v61 = vrot.slane %v2808_v29, 5  ;;  %v5937_v63 = vld [vmem:[%s7011_s29 + $0x8c] sm:$0x1]  ;;  %v2222_v54 = vpack.c.b16 %v2209_v33, %v2208_v46  ;;  %v5857_v26 = vld [vmem:[%s7011_s29 + $0x3c] sm:$0xe] }
  0xfe   : > { %v902_v18 = vpop.f32.mrf.mxu2  ;;  %v2075_v21 = vrot.slane %v2074_v59, 4  ;;  %v5865_v29 = vrot.slane %v5857_v26, 9  ;;  %v6724_v33 = vld [vmem:[%s8720_s1 + $0x98] sm:$0xff] }
  0xff   : > { %v1097_v19 = vpop.f32.mrf.mxu3  ;;  %v939_v9 = vadd.f32 %v902_v18, %v7542_v31  ;;  %v2803_v31 = vsel %vm7048_vm2, %v2798_v7, %v2802_v8  ;;  %v6667_v8 = vld [vmem:[%s7011_s29 + $0x30] sm:$0xff]  ;;  %v2472_v18 = vpack.c.b16 %v2459_v53, %v2458_v48  ;;  %v2811_v24 = vor.u32 %v2810_v61, %v2807_v60 }
 0x100   : > { %v1477_v23 = vpop.f32.mrf.mxu0  ;;  %v2945_v43 = vunpack.c.l.b16 %v2803_v31  ;;  %v6708_v31 = vld [vmem:[%s8720_s1 + $0x18] sm:$0xff]  ;;  %v5927_v60 = vld [vmem:[%s7011_s29 + $0x94] sm:$0xf] }
 0x101   : > { %v1134_v41 = vadd.f32 %v1097_v19, %v939_v9  ;;  %v2084_v19 = vor.u32 %v2083_v40, %v7802_v30  ;;  %v2812_v46 = vrot.slane %v2811_v24, 4  ;;  %3169 = vmatpush.bf16.msrb.mxu2 %v6708_v31  ;;  %3394 = vmatpush.bf16.msrb.mxu3 %v6724_v33 }
 0x102   : > { %v7795_v27 = vpop.f32.mrf.mxu1  ;;  %v2958_v25 = vpack.c.b16 %v2945_v43, %v2944_v55  ;;  %v2095_v43 = vshll.u32 %v5794_v35, 16 }
 0x103   : > { %v1512_v47 = vadd.f32 %v1475_v6, %v1134_v41  ;;  %v2820_v6 = vrot.slane %v2818_v45, 4  ;;  %v2085_v10 = vrot.slane %v2084_v19, 4  ;;  %v7827_v41 = vld [vmem:[%s7011_s29 + $0x4c] sm:$0xf]  ;;  %v2407_v45 = vrot.slane %v7800_v57, 5 }
 0x104   : > { %v2101_v57 = vshll.u32 %v7827_v41, 16  ;;  %v2105_v59 = vshrl.u32 %v7827_v41, 16  ;;  %v2817_v51 = vsel %vm7048_vm2, %v2812_v46, %v7807_v22  ;;  %v2838_v19 = vshll.u32 %v5927_v60, 16 }
 0x105   : > { %v7810_v0 = vadd.f32 %v7758_v37, %v1512_v47  ;;  %v2404_v37 = vrot.slane %v7770_v2, 5  ;;  %v2821_v32 = vor.u32 %v2820_v6, %v7807_v22  ;;  %v6749_v2 = vld [vmem:[%s8720_s1 + $0x120] sm:$0xff]  ;;  %v5926_v47 = vld [vmem:[%s7011_s29 + $0x90] sm:$0xf]  ;;  %v2090_v6 = vsel %vm7048_vm2, %v2085_v10, %v2089_v20 }
 0x106   : > { %v904_v1 = vpop.f32.mrf.mxu2  ;;  %3964 = vmatpush.bf16.msrb.mxu1 %v6749_v2  ;;  %v2097_v26 = vrot.slane %v2095_v43, 5  ;;  %v2107_v24 = vrot.slane %v2105_v59, 4  ;;  %v7863_v20 = vld [vmem:[%s7011_s29 + $0x50] sm:$0x1]  ;;  %v7868_v31 = vrot.slane %v2838_v19, 5  ;;  %v2411_v43 = vrot.slane %v7827_v41, 5 }
 0x107   : > { %v1099_v4 = vpop.f32.mrf.mxu3  ;;  %v940_v7 = vadd.f32 %v904_v1, %v7572_v13  ;;  %v2824_v13 = vshll.u32 %v5937_v63, 16  ;;  %v2406_v44 = vrot.slane %v2404_v37, 4  ;;  %v2822_v48 = vrot.slane %v2821_v32, 4  ;;  %v6748_v19 = vld [vmem:[%s8720_s1 + $0x118] sm:$0xff] }
 0x108   : > { %v1480_v9 = vpop.f32.mrf.mxu0  ;;  %v2829_v63 = vshrl.u32 %v5926_v47, 16  ;;  %v2211_v32 = vunpack.c.l.b16 %v2090_v6  ;;  %v2413_v41 = vrot.slane %v2411_v43, 4 }
 0x109   : > { %v1135_v28 = vadd.f32 %v1099_v4, %v940_v7  ;;  %v2826_v53 = vrot.slane %v2824_v13, 5  ;;  %v2408_v4 = vsel %vm7221_vm5, %v2406_v44, %v2407_v45  ;;  %v2832_v7 = vshll.u32 %v5926_v47, 16 }
 0x10a   : > { %v7819_v16 = vpop.f32.mrf.mxu1  ;;  %v2461_v13 = vunpack.c.l.b16 %v2408_v4  ;;  %3965 = vmatpush.bf16.msrb.mxu1 %v6748_v19  ;;  %v5939_v19 = vld [vmem:[%s7011_s29 + $0xa4] sm:$0x1] }
 0x10b   : > { %v1513_v36 = vadd.f32 %v1477_v23, %v1135_v28  ;;  %1924 = vmatmul.bf16.gmra.mxu2 %v6667_v8  ;;  %2552 = vmatmul.bf16.gmra.mxu0 %v2472_v18  ;;  %v2080_v23 = vsel %vm7048_vm2, %v2075_v21, %v7802_v30  ;;  %v2092_v30 = vshrl.u32 %v5794_v35, 16  ;;  %v2827_v18 = vsel %vm7048_vm2, %v2822_v48, %v2826_v53  ;;  %v6740_v35 = vld [vmem:[%s8720_s1 + $0xd8] sm:$0xff] }
 0x10c   : > { %2302 = vmatmul.bf16.gmra.mxu3 %v2222_v54  ;;  %v2210_v1 = vunpack.c.l.b16 %v2080_v23  ;;  %v2947_v10 = vunpack.c.l.b16 %v2827_v18  ;;  %v2834_v2 = vrot.slane %v2832_v7, 5  ;;  %3588 = vmatpush.bf16.msrb.mxu0 %v6740_v35  ;;  %v2111_v48 = vshll.u32 %v7863_v20, 16  ;;  %v5938_v53 = vld [vmem:[%s7011_s29 + $0x98] sm:$0x1] }
 0x10d   : > { %3038 = vmatmul.bf16.gmra.mxu1 %v2958_v25  ;;  %v7841_v55 = vadd.f32 %v7795_v27, %v1513_v36  ;;  %v2405_v27 = vsel %vm7221_vm5, %v5865_v29, %v2404_v37  ;;  %v2842_v25 = vshrl.u32 %v5927_v60, 16  ;;  %v2094_v21 = vrot.slane %v2092_v30, 4  ;;  %v5858_v30 = vld [vmem:[%s7011_s29 + $0x48] sm:$0xe] }
 0x10e   : > { %v907_v40 = vpop.f32.mrf.mxu2  ;;  %v7860_v37 = vrot.slane %v2101_v57, 5  ;;  %v2460_v22 = vunpack.c.l.b16 %v2405_v27  ;;  %v2946_v36 = vunpack.c.l.b16 %v2817_v51  ;;  %v2831_v29 = vrot.slane %v2829_v63, 4  ;;  %v5797_v51 = vld [vmem:[%s7011_s29 + $0x54] sm:$0xf] }
 0x10f   : > { %v1102_v58 = vpop.f32.mrf.mxu3  ;;  %v941_v61 = vadd.f32 %v907_v40, %v7590_v34  ;;  %v2844_v23 = vrot.slane %v2842_v25, 4  ;;  %v2098_v46 = vor.u32 %v2097_v26, %v2094_v21  ;;  %v6668_v40 = vld [vmem:[%s7011_s29 + $0x3c] sm:$0xff]  ;;  %v2848_v4 = vshll.u32 %v5938_v53, 16  ;;  %v7889_v25 = vld [vmem:[%s7011_s29 + $0x58] sm:$0xf]  ;;  %v6707_v21 = vld [vmem:[%s8720_s1 + $0x10] sm:$0xff] }
 0x110   : > { %v1482_v54 = vpop.f32.mrf.mxu0  ;;  %v2108_v33 = vor.u32 %v2107_v24, %v7860_v37  ;;  %v2473_v57 = vpack.c.b16 %v2461_v13, %v2460_v22  ;;  %v2959_v59 = vpack.c.b16 %v2947_v10, %v2946_v36  ;;  %v2414_v18 = vrot.slane %v7863_v20, 5  ;;  %3170 = vmatpush.bf16.msrb.mxu2 %v6707_v21 }
 0x111   : > { %v1136_v8 = vadd.f32 %v1102_v58, %v941_v61  ;;  %v2223_v58 = vpack.c.b16 %v2211_v32, %v2210_v1  ;;  %v2845_v27 = vor.u32 %v2844_v23, %v7868_v31  ;;  %v2099_v63 = vrot.slane %v2098_v46, 4  ;;  %v5928_v32 = vld [vmem:[%s7011_s29 + $0x9c] sm:$0xf] }
 0x112   : > { %v7856_v34 = vpop.f32.mrf.mxu1  ;;  %v2109_v7 = vrot.slane %v2108_v33, 4  ;;  %v5866_v1 = vrot.slane %v5858_v30, 9  ;;  %v2116_v24 = vshrl.u32 %v5797_v51, 16  ;;  %v2850_v13 = vrot.slane %v2848_v4, 5 }
 0x113   : > { %v1514_v28 = vadd.f32 %v1480_v9, %v1136_v8  ;;  %v2846_v22 = vrot.slane %v2845_v27, 4  ;;  %v2104_v10 = vsel %vm7048_vm2, %v2099_v63, %v7860_v37  ;;  %v2129_v23 = vshrl.u32 %v7889_v25, 16 }
 0x114   : > { %v2853_v46 = vshrl.u32 %v5928_v32, 16  ;;  %v2856_v33 = vshll.u32 %v5928_v32, 16  ;;  %v2415_v37 = vsel %vm7221_vm5, %v2413_v41, %v2414_v18  ;;  %v2118_v53 = vrot.slane %v2116_v24, 4 }
 0x115   : > { %v7871_v9 = vadd.f32 %v7819_v16, %v1514_v28  ;;  %v2835_v16 = vor.u32 %v2834_v2, %v2831_v29  ;;  %v6723_v28 = vld [vmem:[%s8720_s1 + $0x90] sm:$0xff]  ;;  %v2125_v2 = vshll.u32 %v7889_v25, 16 }
 0x116   : > { %v909_v44 = vpop.f32.mrf.mxu2  ;;  %3395 = vmatpush.bf16.msrb.mxu3 %v6723_v28  ;;  %v2858_v63 = vrot.slane %v2856_v33, 5 }
 0x117   : > { %v1104_v45 = vpop.f32.mrf.mxu3  ;;  %v942_v47 = vadd.f32 %v909_v44, %v7623_v5  ;;  %v2113_v5 = vrot.slane %v2111_v48, 5  ;;  %v2836_v26 = vrot.slane %v2835_v16, 4  ;;  %v5929_v44 = vld [vmem:[%s7011_s29 + $0xa0] sm:$0xf]  ;;  %v7921_v16 = vrot.slane %v2125_v2, 5 }
 0x118   : > { %v1485_v61 = vpop.f32.mrf.mxu0 }
 0x119   : > { %v1137_v60 = vadd.f32 %v1104_v45, %v942_v47  ;;  %v2114_v29 = vsel %vm7048_vm2, %v2109_v7, %v2113_v5  ;;  %v2841_v48 = vsel %vm7048_vm2, %v2836_v26, %v7868_v31  ;;  %v2855_v31 = vrot.slane %v2853_v46, 4  ;;  %v6739_v7 = vld [vmem:[%s8720_s1 + $0xd0] sm:$0xff] }
 0x11a   : > { %v7880_v6 = vpop.f32.mrf.mxu1  ;;  %v2213_v4 = vunpack.c.l.b16 %v2114_v29  ;;  %3589 = vmatpush.bf16.msrb.mxu0 %v6739_v7 }
 0x11b   : > { %v1515_v8 = vadd.f32 %v1482_v54, %v1137_v60  ;;  %1929 = vmatmul.bf16.gmra.mxu2 %v6668_v40  ;;  %2557 = vmatmul.bf16.gmra.mxu0 %v2473_v57  ;;  %v2119_v54 = vshll.u32 %v5797_v51, 16  ;;  %v2866_v57 = vshrl.u32 %v5929_v44, 16  ;;  %v2131_v60 = vrot.slane %v2129_v23, 4  ;;  %v7924_v51 = vld [vmem:[%s7011_s29 + $0x5c] sm:$0x1] }
 0x11c   : > { %2307 = vmatmul.bf16.gmra.mxu3 %v2223_v58  ;;  %v2135_v32 = vshll.u32 %v7924_v51, 16  ;;  %v2859_v29 = vor.u32 %v2858_v63, %v2855_v31 }
 0x11d   : > { %3043 = vmatmul.bf16.gmra.mxu1 %v2959_v59  ;;  %v7899_v20 = vadd.f32 %v7856_v34, %v1515_v8  ;;  %v2412_v34 = vsel %vm7221_vm5, %v5866_v1, %v2411_v43  ;;  %v2121_v47 = vrot.slane %v2119_v54, 5  ;;  %v2862_v43 = vshll.u32 %v5929_v44, 16 }
 0x11e   : > { %v912_v35 = vpop.f32.mrf.mxu2  ;;  %v2212_v59 = vunpack.c.l.b16 %v2104_v10  ;;  %v2462_v5 = vunpack.c.l.b16 %v2412_v34  ;;  %v2463_v1 = vunpack.c.l.b16 %v2415_v37  ;;  %v2948_v8 = vunpack.c.l.b16 %v2841_v48  ;;  %v5859_v10 = vld [vmem:[%s7011_s29 + $0x54] sm:$0xe]  ;;  %v5800_v37 = vld [vmem:[%s7011_s29 + $0x60] sm:$0xf] }
 0x11f   : > { %v1107_v36 = vpop.f32.mrf.mxu3  ;;  %v943_v45 = vadd.f32 %v912_v35, %v7644_v49  ;;  %v2851_v49 = vsel %vm7048_vm2, %v2846_v22, %v2850_v13  ;;  %v2122_v18 = vor.u32 %v2121_v47, %v2118_v53  ;;  %v7930_v21 = vrot.slane %v2862_v43, 5  ;;  %v6669_v35 = vld [vmem:[%s7011_s29 + $0x48] sm:$0xff]  ;;  %v7946_v47 = vld [vmem:[%s7011_s29 + $0x64] sm:$0xf] }
 0x120   : > { %v1487_v58 = vpop.f32.mrf.mxu0  ;;  %v2949_v41 = vunpack.c.l.b16 %v2851_v49  ;;  %v2132_v28 = vor.u32 %v2131_v60, %v7921_v16  ;;  %v2418_v22 = vrot.slane %v7889_v25, 5  ;;  %v2474_v2 = vpack.c.b16 %v2463_v1, %v2462_v5  ;;  %v5930_v60 = vld [vmem:[%s7011_s29 + $0xa8] sm:$0xf] }
 0x121   : > { %v1138_v40 = vadd.f32 %v1107_v36, %v943_v45  ;;  %v2224_v36 = vpack.c.b16 %v2213_v4, %v2212_v59  ;;  %v2123_v46 = vrot.slane %v2122_v18, 4  ;;  %v2137_v48 = vrot.slane %v2135_v32, 5  ;;  %v6706_v59 = vld [vmem:[%s8720_s1 + $0x8] sm:$0xff] }
 0x122   : > { %v7917_v30 = vpop.f32.mrf.mxu1  ;;  %v2960_v23 = vpack.c.b16 %v2949_v41, %v2948_v8  ;;  %v2133_v25 = vrot.slane %v2132_v28, 4  ;;  %v2420_v53 = vrot.slane %v2418_v22, 4  ;;  %v2421_v49 = vrot.slane %v7924_v51, 5  ;;  %v5931_v51 = vld [vmem:[%s7011_s29 + $0xac] sm:$0xf]  ;;  %3171 = vmatpush.bf16.msrb.mxu2 %v6706_v59 }
 0x123   : > { %v1516_v27 = vadd.f32 %v1485_v61, %v1138_v40  ;;  %v2868_v61 = vrot.slane %v2866_v57, 4  ;;  %v2860_v43 = vrot.slane %v2859_v29, 4  ;;  %v6747_v57 = vld [vmem:[%s8720_s1 + $0x110] sm:$0xff]  ;;  %v2140_v4 = vshrl.u32 %v5800_v37, 16 }
 0x124   : > { %v2143_v31 = vshll.u32 %v5800_v37, 16  ;;  %3966 = vmatpush.bf16.msrb.mxu1 %v6747_v57  ;;  %v2149_v7 = vshll.u32 %v7946_v47, 16  ;;  %v2153_v5 = vshrl.u32 %v7946_v47, 16  ;;  %v2128_v18 = vsel %vm7048_vm2, %v2123_v46, %v7921_v16  ;;  %v7985_v46 = vld [vmem:[%s7011_s29 + $0x68] sm:$0x1] }
 0x125   : > { %v7933_v26 = vadd.f32 %v7880_v6, %v1516_v27  ;;  %v2872_v6 = vshll.u32 %v5939_v19, 16  ;;  %v2869_v33 = vor.u32 %v2868_v61, %v7930_v21  ;;  %v2138_v19 = vsel %vm7048_vm2, %v2133_v25, %v2137_v48  ;;  %v5940_v59 = vld [vmem:[%s7011_s29 + $0xb0] sm:$0x1] }
 0x126   : > { %v914_v24 = vpop.f32.mrf.mxu2  ;;  %v2877_v61 = vshrl.u32 %v5930_v60, 16  ;;  %v2890_v32 = vshrl.u32 %v5931_v51, 16  ;;  %v2865_v16 = vsel %vm7048_vm2, %v2860_v43, %v7930_v21 }
 0x127   : > { %v1109_v54 = vpop.f32.mrf.mxu3  ;;  %v944_v13 = vadd.f32 %v914_v24, %v7680_v39  ;;  %v5867_v39 = vrot.slane %v5859_v10, 9  ;;  %v2874_v27 = vrot.slane %v2872_v6, 5  ;;  %v2870_v63 = vrot.slane %v2869_v33, 4 }
 0x128   : > { %v1490_v45 = vpop.f32.mrf.mxu0  ;;  %v2880_v24 = vshll.u32 %v5930_v60, 16  ;;  %v2214_v6 = vunpack.c.l.b16 %v2128_v18  ;;  %v2879_v33 = vrot.slane %v2877_v61, 4  ;;  %v2896_v18 = vshll.u32 %v5940_v59, 16 }
 0x129   : > { %v1139_v44 = vadd.f32 %v1109_v54, %v944_v13  ;;  %v2419_v28 = vsel %vm7221_vm5, %v5867_v39, %v2418_v22  ;;  %v2422_v13 = vsel %vm7221_vm5, %v2420_v53, %v2421_v49  ;;  %v2155_v22 = vrot.slane %v2153_v5, 4  ;;  %v6738_v53 = vld [vmem:[%s8720_s1 + $0xc8] sm:$0xff]  ;;  %v6670_v5 = vld [vmem:[%s7011_s29 + $0x54] sm:$0xff] }
 0x12a   : > { %v7941_v34 = vpop.f32.mrf.mxu1  ;;  %v2882_v37 = vrot.slane %v2880_v24, 5  ;;  %v2464_v25 = vunpack.c.l.b16 %v2419_v28  ;;  %v2892_v39 = vrot.slane %v2890_v32, 4  ;;  %v2950_v49 = vunpack.c.l.b16 %v2865_v16  ;;  %3590 = vmatpush.bf16.msrb.mxu0 %v6738_v53 }
 0x12b   : > { %v1517_v40 = vadd.f32 %v1487_v58, %v1139_v44  ;;  %1934 = vmatmul.bf16.gmra.mxu2 %v6669_v35  ;;  %2562 = vmatmul.bf16.gmra.mxu0 %v2474_v2  ;;  %v6722_v58 = vld [vmem:[%s8720_s1 + $0x88] sm:$0xff]  ;;  %v2142_v35 = vrot.slane %v2140_v4, 4  ;;  %v2215_v44 = vunpack.c.l.b16 %v2138_v19 }
 0x12c   : > { %2312 = vmatmul.bf16.gmra.mxu3 %v2224_v36  ;;  %v2145_v36 = vrot.slane %v2143_v31, 5 }
 0x12d   : > { %3048 = vmatmul.bf16.gmra.mxu1 %v2960_v23  ;;  %v7963_v1 = vadd.f32 %v7917_v30, %v1517_v40  ;;  %3396 = vmatpush.bf16.msrb.mxu3 %v6722_v58  ;;  %v2886_v30 = vshll.u32 %v5931_v51, 16  ;;  %v7982_v23 = vrot.slane %v2149_v7, 5  ;;  %v2465_v40 = vunpack.c.l.b16 %v2422_v13  ;;  %v5860_v58 = vld [vmem:[%s7011_s29 + $0x60] sm:$0xe] }
 0x12e   : > { %v917_v8 = vpop.f32.mrf.mxu2  ;;  %v2146_v57 = vor.u32 %v2145_v36, %v2142_v35  ;;  %v2425_v51 = vrot.slane %v7946_v47, 5  ;;  %v5868_v47 = vrot.slane %v5860_v58, 9 }
 0x12f   : > { %v1112_v41 = vpop.f32.mrf.mxu3  ;;  %v945_v54 = vadd.f32 %v917_v8, %v7508_v52  ;;  %v2875_v52 = vsel %vm7048_vm2, %v2870_v63, %v2874_v27  ;;  %v7987_v48 = vrot.slane %v2886_v30, 5  ;;  %v2156_v60 = vor.u32 %v2155_v22, %v7982_v23  ;;  %v5803_v22 = vld [vmem:[%s7011_s29 + $0x6c] sm:$0xf] }
 0x130   : > { %v1492_v29 = vpop.f32.mrf.mxu0  ;;  %v2951_v43 = vunpack.c.l.b16 %v2875_v52  ;;  %v2159_v27 = vshll.u32 %v7985_v46, 16  ;;  %v2883_v63 = vor.u32 %v2882_v37, %v2879_v33  ;;  %v2225_v8 = vpack.c.b16 %v2215_v44, %v2214_v6  ;;  %v6746_v52 = vld [vmem:[%s8720_s1 + $0x108] sm:$0xff]  ;;  %v6705_v6 = vld [vmem:[%s8720_s1] sm:$0xff]  ;;  %v8017_v44 = vld [vmem:[%s7011_s29 + $0x70] sm:$0xf] }
 0x131   : > { %v1140_v10 = vadd.f32 %v1112_v41, %v945_v54  ;;  %v2893_v41 = vor.u32 %v2892_v39, %v7987_v48  ;;  %v2475_v19 = vpack.c.b16 %v2465_v40, %v2464_v25  ;;  %v2147_v24 = vrot.slane %v2146_v57, 4  ;;  %3967 = vmatpush.bf16.msrb.mxu1 %v6746_v52  ;;  %3172 = vmatpush.bf16.msrb.mxu2 %v6705_v6  ;;  %v5933_v25 = vld [vmem:[%s7011_s29 + $0xb8] sm:$0xf] }
 0x132   : > { %v7978_v2 = vpop.f32.mrf.mxu1  ;;  %v2961_v61 = vpack.c.b16 %v2951_v43, %v2950_v49  ;;  %v2157_v30 = vrot.slane %v2156_v60, 4  ;;  %v2161_v32 = vrot.slane %v2159_v27, 5  ;;  %v2427_v13 = vrot.slane %v2425_v51, 4 }
 0x133   : > { %v1518_v21 = vadd.f32 %v1490_v45, %v1140_v10  ;;  %v2884_v16 = vrot.slane %v2883_v63, 4  ;;  %v2894_v36 = vrot.slane %v2893_v41, 4  ;;  %v2898_v10 = vrot.slane %v2896_v18, 5 }
 0x134   : > { %v2162_v33 = vsel %vm7048_vm2, %v2157_v30, %v2161_v32  ;;  %v2426_v37 = vsel %vm7221_vm5, %v5868_v47, %v2425_v51  ;;  %v2164_v43 = vshrl.u32 %v5803_v22, 16  ;;  %v2167_v57 = vshll.u32 %v5803_v22, 16  ;;  %v5805_v30 = vld [vmem:[%s7011_s29 + $0x74] sm:$0x1] }
 0x135   : > { %v7996_v45 = vadd.f32 %v7941_v34, %v1518_v21  ;;  %v5932_v21 = vld [vmem:[%s7011_s29 + $0xb4] sm:$0xf]  ;;  %v2889_v49 = vsel %vm7048_vm2, %v2884_v16, %v7987_v48  ;;  %v2899_v60 = vsel %vm7048_vm2, %v2894_v36, %v2898_v10  ;;  %v2177_v27 = vshrl.u32 %v8017_v44, 16  ;;  %v5941_v10 = vld [vmem:[%s7011_s29 + $0xbc] sm:$0x1] }
 0x136   : > { %v919_v4 = vpop.f32.mrf.mxu2  ;;  %v2910_v58 = vshll.u32 %v5933_v25, 16  ;;  %v2914_v51 = vshrl.u32 %v5933_v25, 16  ;;  %v2466_v41 = vunpack.c.l.b16 %v2426_v37  ;;  %v2952_v18 = vunpack.c.l.b16 %v2889_v49  ;;  %v6671_v37 = vld [vmem:[%s7011_s29 + $0x60] sm:$0xff] }
 0x137   : > { %v1114_v31 = vpop.f32.mrf.mxu3  ;;  %v946_v7 = vadd.f32 %v919_v4, %v7534_v11  ;;  %v2428_v11 = vrot.slane %v7985_v46, 5  ;;  %v6721_v46 = vld [vmem:[%s8720_s1 + $0x80] sm:$0xff]  ;;  %v2901_v4 = vshrl.u32 %v5932_v21, 16  ;;  %v2179_v47 = vrot.slane %v2177_v27, 4 }
 0x138   : > { %v1495_v34 = vpop.f32.mrf.mxu0  ;;  %3397 = vmatpush.bf16.msrb.mxu3 %v6721_v46  ;;  %v2916_v36 = vrot.slane %v2914_v51, 4  ;;  %v6760_v51 = vld [vmem:[%s8720_s1 + $0x178] sm:$0xff] }
 0x139   : > { %v1141_v54 = vadd.f32 %v1114_v31, %v946_v7  ;;  %v2429_v40 = vsel %vm7221_vm5, %v2427_v13, %v2428_v11  ;;  %v2904_v31 = vshll.u32 %v5932_v21, 16  ;;  %v6737_v13 = vld [vmem:[%s8720_s1 + $0xc0] sm:$0xff]  ;;  %v2903_v11 = vrot.slane %v2901_v4, 4  ;;  %4210 = vmatpush.bf16.msra.mxu2 %v6760_v51 }
 0x13a   : > { %v8003_v28 = vpop.f32.mrf.mxu1  ;;  %3591 = vmatpush.bf16.msrb.mxu0 %v6737_v13 }
 0x13b   : > { %v1519_v35 = vadd.f32 %v1492_v29, %v1141_v54  ;;  %1939 = vmatmul.bf16.gmra.mxu2 %v6670_v5  ;;  %2567 = vmatmul.bf16.gmra.mxu0 %v2475_v19  ;;  %v2152_v29 = vsel %vm7048_vm2, %v2147_v24, %v7982_v23  ;;  %v2166_v19 = vrot.slane %v2164_v43, 4  ;;  %v2953_v54 = vunpack.c.l.b16 %v2899_v60 }
 0x13c   : > { %2317 = vmatmul.bf16.gmra.mxu3 %v2225_v8  ;;  %v2216_v5 = vunpack.c.l.b16 %v2152_v29  ;;  %v2217_v8 = vunpack.c.l.b16 %v2162_v33  ;;  %v2906_v16 = vrot.slane %v2904_v31, 5  ;;  %v2183_v29 = vshll.u32 %v5805_v30, 16 }
 0x13d   : > { %3053 = vmatmul.bf16.gmra.mxu1 %v2961_v61  ;;  %v8029_v39 = vadd.f32 %v7978_v2, %v1519_v35  ;;  %v2173_v2 = vshll.u32 %v8017_v44, 16  ;;  %v2169_v61 = vrot.slane %v2167_v57, 5  ;;  %v8047_v35 = vrot.slane %v2910_v58, 5 }
 0x13e   : > { %v922_v23 = vpop.f32.mrf.mxu2  ;;  %v2226_v22 = vpack.c.b16 %v2217_v8, %v2216_v5  ;;  %v2907_v49 = vor.u32 %v2906_v16, %v2903_v11  ;;  %v2920_v57 = vshll.u32 %v5941_v10, 16 }
 0x13f   : > { %v1117_v53 = vpop.f32.mrf.mxu3  ;;  %v947_v59 = vadd.f32 %v922_v23, %v7562_v50  ;;  %v2467_v50 = vunpack.c.l.b16 %v2429_v40  ;;  %v8042_v32 = vrot.slane %v2173_v2, 5  ;;  %v2170_v6 = vor.u32 %v2169_v61, %v2166_v19  ;;  %v5861_v40 = vld [vmem:[%s7011_s29 + $0x6c] sm:$0xe] }
 0x140   : > { %v1497_v7 = vpop.f32.mrf.mxu0  ;;  %v2432_v23 = vrot.slane %v8017_v44, 5  ;;  %v2917_v43 = vor.u32 %v2916_v36, %v8047_v35  ;;  %v5869_v31 = vrot.slane %v5861_v40, 9  ;;  %v2908_v5 = vrot.slane %v2907_v49, 4 }
 0x141   : > { %v1142_v63 = vadd.f32 %v1117_v53, %v947_v59  ;;  %v2476_v21 = vpack.c.b16 %v2467_v50, %v2466_v41  ;;  %v2180_v25 = vor.u32 %v2179_v47, %v8042_v32  ;;  %v2962_v53 = vpack.c.b16 %v2953_v54, %v2952_v18  ;;  %v6214_v50 = vld [vmem:[%s7011_s29 + $0x6c] sm:$0xf] }
 0x142   : > { %v1747_v48 = vpop.f32.mrf.mxu1  ;;  %v2171_v27 = vrot.slane %v2170_v6, 4  ;;  %v2434_v58 = vrot.slane %v2432_v23, 4  ;;  %v2918_v8 = vrot.slane %v2917_v43, 4  ;;  %v2922_v41 = vrot.slane %v2920_v57, 5  ;;  %v6784_v43 = vld [vmem:[%s8720_s1 + $0x1f8] sm:$0xff] }
 0x143   : > { %v1520_v24 = vadd.f32 %v1495_v34, %v1142_v63  ;;  %v2181_v44 = vrot.slane %v2180_v25, 4  ;;  %v2435_v63 = vrot.slane %v5805_v30, 5  ;;  %v2433_v13 = vsel %vm7221_vm5, %v5869_v31, %v2432_v23  ;;  %4781 = vmatpush.bf16.msra.mxu0 %v6784_v43 }
 0x144   : > { %v2176_v30 = vsel %vm7048_vm2, %v2171_v27, %v8042_v32  ;;  %v2913_v11 = vsel %vm7048_vm2, %v2908_v5, %v8047_v35  ;;  %v3674_v16 = vshrl.u32 %v6214_v50, 16  ;;  %v6919_v27 = vld [vmem:[%s7011_s29 + $0x64] sm:$0xf] }
 0x145   : > { %v8051_v46 = vadd.f32 %v8003_v28, %v1520_v24  ;;  %v2185_v28 = vrot.slane %v2183_v29, 5  ;;  %v6215_v24 = vld [vmem:[%s7011_s29 + $0x70] sm:$0xf]  ;;  %v2218_v29 = vunpack.c.l.b16 %v2176_v30  ;;  %v2954_v25 = vunpack.c.l.b16 %v2913_v11  ;;  %v6217_v30 = vld [vmem:[%s7011_s29 + $0x78] sm:$0xf] }
 0x146   : > { %v924_v52 = vpop.f32.mrf.mxu2  ;;  %v3676_v23 = vrot.slane %v3674_v16, 4 }
 0x147   : > { %v1119_v34 = vpop.f32.mrf.mxu3  ;;  %v948_v33 = vadd.f32 %v924_v52, %v7582_v12  ;;  %v6745_v12 = vld [vmem:[%s8720_s1 + $0x100] sm:$0xff]  ;;  %v2186_v47 = vsel %vm7048_vm2, %v2181_v44, %v2185_v28  ;;  %v3677_v52 = vshll.u32 %v6214_v50, 16  ;;  %v3240_v28 = vrot.slane %v6919_v27, 5  ;;  %v6672_v44 = vld [vmem:[%s7011_s29 + $0x6c] sm:$0xff] }
 0x148   : > { %v1500_v60 = vpop.f32.mrf.mxu0  ;;  %3968 = vmatpush.bf16.msrb.mxu1 %v6745_v12  ;;  %v6216_v12 = vld [vmem:[%s7011_s29 + $0x74] sm:$0x1] }
 0x149   : > { %v1143_v59 = vadd.f32 %v1119_v34, %v948_v33  ;;  %v3683_v34 = vshll.u32 %v6215_v24, 16  ;;  %v2219_v33 = vunpack.c.l.b16 %v2186_v47  ;;  %v3693_v50 = vshll.u32 %v6216_v12, 16  ;;  %v6218_v47 = vld [vmem:[%s7011_s29 + $0x7c] sm:$0xf] }
 0x14a   : > { %v1750_v2 = vpop.f32.mrf.mxu1 }
 0x14b   : > { %v1521_v4 = vadd.f32 %v1497_v7, %v1143_v59  ;;  %1944 = vmatmul.bf16.gmra.mxu2 %v6671_v37  ;;  %2572 = vmatmul.bf16.gmra.mxu0 %v2476_v21  ;;  %v6776_v7 = vld [vmem:[%s8720_s1 + $0x1b8] sm:$0xff]  ;;  %v2468_v37 = vunpack.c.l.b16 %v2433_v13  ;;  %v8087_v40 = vrot.slane %v3683_v34, 5  ;;  %v2227_v31 = vpack.c.b16 %v2219_v33, %v2218_v29  ;;  %v6775_v29 = vld [vmem:[%s8720_s1 + $0x1b0] sm:$0xff] }
 0x14c   : > { %2322 = vmatmul.bf16.gmra.mxu3 %v2226_v22  ;;  %v3687_v22 = vshrl.u32 %v6215_v24, 16  ;;  %v6920_v24 = vld [vmem:[%s7011_s29 + $0x68] sm:$0x1]  ;;  %v3695_v11 = vrot.slane %v3693_v50, 5  ;;  %v3701_v33 = vshll.u32 %v6217_v30, 16  ;;  %v6697_v50 = vld [vmem:[%s7011_s29 + $0x60] sm:$0xff] }
 0x14d   : > { %3058 = vmatmul.bf16.gmra.mxu1 %v2962_v53  ;;  %v8069_v18 = vadd.f32 %v1747_v48, %v1521_v4  ;;  %4404 = vmatpush.bf16.msra.mxu3 %v6776_v7  ;;  %v2436_v48 = vsel %vm7221_vm5, %v2434_v58, %v2435_v63  ;;  %v3679_v53 = vrot.slane %v3677_v52, 5  ;;  %v6054_v58 = vld [vmem:[%s7011_s29 + $0x60] sm:$0xe] }
 0x14e   : > { %v927_v19 = vpop.f32.mrf.mxu2  ;;  %v2469_v21 = vunpack.c.l.b16 %v2436_v48  ;;  %v3689_v49 = vrot.slane %v3687_v22, 4  ;;  %v3703_v27 = vrot.slane %v3701_v33, 5 }
 0x14f   : > { %v1122_v61 = vpop.f32.mrf.mxu3  ;;  %v949_v54 = vadd.f32 %v927_v19, %v7610_v56  ;;  %v2923_v56 = vsel %vm7048_vm2, %v2918_v8, %v2922_v41  ;;  %v3680_v41 = vor.u32 %v3679_v53, %v3676_v23  ;;  %v6062_v19 = vrot.slane %v6054_v58, 9 }
 0x150   : > { %v1502_v10 = vpop.f32.mrf.mxu0  ;;  %v2955_v35 = vunpack.c.l.b16 %v2923_v56  ;;  %v2477_v51 = vpack.c.b16 %v2469_v21, %v2468_v37  ;;  %v3690_v7 = vor.u32 %v3689_v49, %v8087_v40  ;;  %v3707_v37 = vshll.u32 %v6218_v47, 16 }
 0x151   : > { %v1144_v36 = vadd.f32 %v1122_v61, %v949_v54  ;;  %v3242_v61 = vrot.slane %v3240_v28, 4  ;;  %v3243_v54 = vrot.slane %v6920_v24, 5  ;;  %v3681_v13 = vrot.slane %v3680_v41, 4  ;;  %4405 = vmatpush.bf16.msra.mxu3 %v6775_v29 }
 0x152   : > { %v1752_v32 = vpop.f32.mrf.mxu1  ;;  %v2963_v63 = vpack.c.b16 %v2955_v35, %v2954_v25  ;;  %v3691_v48 = vrot.slane %v3690_v7, 4  ;;  %v3241_v52 = vsel %vm7221_vm5, %v6062_v19, %v3240_v28  ;;  %v3711_v21 = vshrl.u32 %v6218_v47, 16  ;;  %v6055_v19 = vld [vmem:[%s7011_s29 + $0x6c] sm:$0xe] }
 0x153   : > { %v1522_v6 = vadd.f32 %v1500_v60, %v1144_v36  ;;  %v3244_v34 = vsel %vm7221_vm5, %v3242_v61, %v3243_v54  ;;  %v3310_v49 = vunpack.c.l.b16 %v3241_v52  ;;  %v3709_v28 = vrot.slane %v3707_v37, 5  ;;  %v6783_v54 = vld [vmem:[%s8720_s1 + $0x1f0] sm:$0xff] }
 0x154   : > { %v3696_v53 = vsel %vm7048_vm2, %v3691_v48, %v3695_v11  ;;  %v3311_v43 = vunpack.c.l.b16 %v3244_v34  ;;  %v3713_v12 = vrot.slane %v3711_v21, 4  ;;  %4782 = vmatpush.bf16.msra.mxu0 %v6783_v54  ;;  %v6063_v48 = vrot.slane %v6055_v19, 9  ;;  %v6922_v11 = vld [vmem:[%s7011_s29 + $0x74] sm:$0x1]  ;;  %v6923_v54 = vld [vmem:[%s7011_s29 + $0x7c] sm:$0xf] }
 0x155   : > { %v8092_v57 = vadd.f32 %v1750_v2, %v1522_v6  ;;  %v6792_v6 = vld [vmem:[%s8720_s1 + $0x238] sm:$0xff] }
 0x156   : > { %v929_v59 = vpop.f32.mrf.mxu2  ;;  %5030 = vmatpush.bf16.msra.mxu1 %v6792_v6  ;;  %v3714_v61 = vor.u32 %v3713_v12, %v3709_v28  ;;  %v6221_v6 = vld [vmem:[%s7011_s29 + $0x88] sm:$0xf] }
 0x157   : > { %v1124_v60 = vpop.f32.mrf.mxu3  ;;  %v950_v4 = vadd.f32 %v929_v59, %v7637_v38 }
 0x158   : > { %v1505_v8 = vpop.f32.mrf.mxu0  ;;  %v3715_v34 = vrot.slane %v3714_v61, 4  ;;  %v6698_v61 = vld [vmem:[%s7011_s29 + $0x6c] sm:$0xff] }
 0x159   : > { %v1145_v5 = vadd.f32 %v1124_v60, %v950_v4 }
 0x15a   : > { %v1755_v2 = vpop.f32.mrf.mxu1 }
 0x15b   : > { %v1523_v38 = vadd.f32 %v1502_v10, %v1145_v5  ;;  %1949 = vmatmul.bf16.gmra.mxu2 %v6672_v44  ;;  %2577 = vmatmul.bf16.gmra.mxu0 %v2477_v51  ;;  %v3698_v10 = vshrl.u32 %v6217_v30, 16  ;;  %v3882_v44 = vunpack.c.l.b16 %v3696_v53  ;;  %v6921_v5 = vld [vmem:[%s7011_s29 + $0x70] sm:$0xf]  ;;  %v6774_v53 = vld [vmem:[%s8720_s1 + $0x1a8] sm:$0xff] }
 0x15c   : > { %2327 = vmatmul.bf16.gmra.mxu3 %v2227_v31  ;;  %v3247_v41 = vrot.slane %v6921_v5, 5 }
 0x15d   : > { %3063 = vmatmul.bf16.gmra.mxu1 %v2963_v63  ;;  %v8103_v56 = vadd.f32 %v1752_v32, %v1523_v38  ;;  %v6759_v32 = vld [vmem:[%s8720_s1 + $0x170] sm:$0xff]  ;;  %v3700_v59 = vrot.slane %v3698_v10, 4  ;;  %v3326_v63 = vpack.c.b16 %v3311_v43, %v3310_v49  ;;  %4406 = vmatpush.bf16.msra.mxu3 %v6774_v53 }
 0x15e   : > { %v932_v16 = vpop.f32.mrf.mxu2  ;;  %4211 = vmatpush.bf16.msra.mxu2 %v6759_v32  ;;  %v6729_v38 = vld [vmem:[%s7011_s29 + $0x6c] sm:$0xff]  ;;  %v3248_v37 = vsel %vm7221_vm5, %v6063_v48, %v3247_v41 }
 0x15f   : > { %v1127_v36 = vpop.f32.mrf.mxu3  ;;  %v951_v22 = vadd.f32 %v932_v16, %v7664_v15  ;;  %v3686_v15 = vsel %vm7048_vm2, %v3681_v13, %v8087_v40  ;;  %v6219_v40 = vld [vmem:[%s7011_s29 + $0x80] sm:$0x1]  ;;  %v3250_v16 = vrot.slane %v6922_v11, 5 }
 0x160   : > { %v1507_v35 = vpop.f32.mrf.mxu0  ;;  %v3881_v4 = vunpack.c.l.b16 %v3686_v15  ;;  %v3717_v24 = vshll.u32 %v6219_v40, 16  ;;  %v6791_v15 = vld [vmem:[%s8720_s1 + $0x230] sm:$0xff] }
 0x161   : > { %v1146_v25 = vadd.f32 %v1127_v36, %v951_v22  ;;  %v6220_v22 = vld [vmem:[%s7011_s29 + $0x84] sm:$0xf]  ;;  %5031 = vmatpush.bf16.msra.mxu1 %v6791_v15 }
 0x162   : > { %v1757_v23 = vpop.f32.mrf.mxu1  ;;  %v3719_v10 = vrot.slane %v3717_v24, 5  ;;  %v3722_v49 = vshrl.u32 %v6220_v22, 16  ;;  %v3725_v43 = vshll.u32 %v6220_v22, 16 }
 0x163   : > { %v1524_v60 = vadd.f32 %v1505_v8, %v1146_v25  ;;  %v3704_v8 = vor.u32 %v3703_v27, %v3700_v59  ;;  %v3731_v59 = vshll.u32 %v6221_v6, 16 }
 0x165   : > { %v8125_v31 = vadd.f32 %v1755_v2, %v1524_v60  ;;  %v3897_v2 = vpack.c.b16 %v3882_v44, %v3881_v4  ;;  %v3705_v52 = vrot.slane %v3704_v8, 4  ;;  %v3735_v60 = vshrl.u32 %v6221_v6, 16 }
 0x166   : > { %v934_v58 = vpop.f32.mrf.mxu2  ;;  %v3312_v4 = vunpack.c.l.b16 %v3248_v37  ;;  %v8162_v5 = vrot.slane %v3731_v59, 5 }
 0x167   : > { %v1129_v51 = vpop.f32.mrf.mxu3  ;;  %v952_v7 = vadd.f32 %v934_v58, %v7695_v14  ;;  %v3249_v14 = vrot.slane %v3247_v41, 4  ;;  %v3710_v25 = vsel %vm7048_vm2, %v3705_v52, %v3709_v28  ;;  %v3737_v41 = vrot.slane %v3735_v60, 4  ;;  %v6224_v60 = vld [vmem:[%s7011_s29 + $0x94] sm:$0xf] }
 0x168   : > { %v2543_v47 = vpop.f32.mrf.mxu0  ;;  %v3883_v40 = vunpack.c.l.b16 %v3710_v25 }
 0x169   : > { %v1147_v30 = vadd.f32 %v1129_v51, %v952_v7  ;;  %v3251_v21 = vsel %vm7221_vm5, %v3249_v14, %v3250_v16  ;;  %v3724_v51 = vrot.slane %v3722_v49, 4  ;;  %v6222_v7 = vld [vmem:[%s7011_s29 + $0x8c] sm:$0x1]  ;;  %v6056_v14 = vld [vmem:[%s7011_s29 + $0x78] sm:$0xe]  ;;  %v3738_v16 = vor.u32 %v3737_v41, %v8162_v5 }
 0x16a   : > { %v8135_v13 = vpop.f32.mrf.mxu1  ;;  %v3313_v44 = vunpack.c.l.b16 %v3251_v21  ;;  %v6064_v6 = vrot.slane %v6056_v14, 9  ;;  %v6223_v49 = vld [vmem:[%s7011_s29 + $0x90] sm:$0xf] }
 0x16b   : > { %v1525_v36 = vadd.f32 %v1507_v35, %v1147_v30  ;;  %3173 = vmatmul.bf16.vlgmr.msrb.gmra.mxu2 %v6697_v50  ;;  %3592 = vmatmul.bf16.vlgmr.msrb.gmra.mxu0 %v6729_v38  ;;  %v3720_v35 = vsel %vm7048_vm2, %v3715_v34, %v3719_v10  ;;  %v3254_v38 = vrot.slane %v6923_v54, 5  ;;  %v6730_v30 = vld [vmem:[%s7011_s29 + $0x78] sm:$0xff]  ;;  %v3739_v21 = vrot.slane %v3738_v16, 4 }
 0x16c   : > { %3398 = vmatmul.bf16.vlgmr.msrb.gmra.mxu3 %v3326_v63  ;;  %v3884_v58 = vunpack.c.l.b16 %v3720_v35  ;;  %v3727_v63 = vrot.slane %v3725_v43, 5  ;;  %v3327_v24 = vpack.c.b16 %v3313_v44, %v3312_v4  ;;  %v6790_v44 = vld [vmem:[%s8720_s1 + $0x228] sm:$0xff]  ;;  %v3749_v41 = vshll.u32 %v6223_v49, 16  ;;  %v6225_v16 = vld [vmem:[%s7011_s29 + $0x98] sm:$0x1] }
 0x16d   : > { %3969 = vmatmul.bf16.vlgmr.msrb.gmra.mxu1 %v3897_v2  ;;  %v8140_v32 = vadd.f32 %v1757_v23, %v1525_v36  ;;  %v6758_v23 = vld [vmem:[%s8720_s1 + $0x168] sm:$0xff]  ;;  %v3741_v36 = vshll.u32 %v6222_v7, 16  ;;  %v3255_v4 = vsel %vm7221_vm5, %v6064_v6, %v3254_v38 }
 0x16e   : > { %v1915_v29 = vpop.f32.mrf.mxu2  ;;  %4212 = vmatpush.bf16.msra.mxu2 %v6758_v23  ;;  %v6782_v2 = vld [vmem:[%s8720_s1 + $0x1e8] sm:$0xff]  ;;  %v3898_v48 = vpack.c.b16 %v3884_v58, %v3883_v40  ;;  %v3728_v11 = vor.u32 %v3727_v63, %v3724_v51  ;;  %v6757_v40 = vld [vmem:[%s8720_s1 + $0x160] sm:$0xff]  ;;  %v3746_v63 = vshrl.u32 %v6223_v49, 16  ;;  %5032 = vmatpush.bf16.msra.mxu1 %v6790_v44  ;;  %v3314_v54 = vunpack.c.l.b16 %v3255_v4 }
 0x16f   : > { %v2293_v33 = vpop.f32.mrf.mxu3  ;;  %v1955_v27 = vadd.f32 %v1915_v29, %v7750_v3  ;;  %4783 = vmatpush.bf16.msra.mxu0 %v6782_v2  ;;  %v3256_v29 = vrot.slane %v3254_v38, 4  ;;  %v3743_v25 = vrot.slane %v3741_v36, 5  ;;  %v6773_v58 = vld [vmem:[%s8720_s1 + $0x1a0] sm:$0xff]  ;;  %v6925_v6 = vld [vmem:[%s7011_s29 + $0x88] sm:$0xf] }
 0x170   : > { %v2545_v28 = vpop.f32.mrf.mxu0  ;;  %v3729_v37 = vrot.slane %v3728_v11, 4  ;;  %4407 = vmatpush.bf16.msra.mxu3 %v6773_v58 }
 0x171   : > { %v2333_v3 = vadd.f32 %v2293_v33, %v1955_v27 }
 0x172   : > { %v8160_v12 = vpop.f32.mrf.mxu1  ;;  %4213 = vmatpush.bf16.msra.mxu2 %v6757_v40  ;;  %v6226_v40 = vld [vmem:[%s7011_s29 + $0x9c] sm:$0xf] }
 0x173   : > { %v2583_v52 = vadd.f32 %v2543_v47, %v2333_v3  ;;  %v6924_v47 = vld [vmem:[%s7011_s29 + $0x80] sm:$0x1] }
 0x174   : > { %v3257_v33 = vrot.slane %v6924_v47, 5 }
 0x175   : > { %v2621_v35 = vmul.f32 %v2583_v52, %v2583_v52 }
 0x176   : > { %v1917_v50 = vpop.f32.mrf.mxu2  ;;  %v3258_v51 = vsel %vm7221_vm5, %v3256_v29, %v3257_v33  ;;  %v3261_v29 = vrot.slane %v6925_v6, 5  ;;  %v6699_v33 = vld [vmem:[%s7011_s29 + $0x78] sm:$0xff] }
 0x177   : > { %v2295_v19 = vpop.f32.mrf.mxu3  ;;  %v1956_v8 = vadd.f32 %v1917_v50, %v7777_v17  ;;  %v3315_v38 = vunpack.c.l.b16 %v3258_v51 }
 0x178   : > { %v2548_v17 = vpop.f32.mrf.mxu0 }
 0x179   : > { %v2334_v34 = vadd.f32 %v2295_v19, %v1956_v8  ;;  %v3744_v19 = vsel %vm7048_vm2, %v3739_v21, %v3743_v25  ;;  %v3755_v8 = vshll.u32 %v6224_v60, 16  ;;  %v6057_v21 = vld [vmem:[%s7011_s29 + $0x84] sm:$0xe] }
 0x17a   : > { %v8175_v10 = vpop.f32.mrf.mxu1  ;;  %v3886_v2 = vunpack.c.l.b16 %v3744_v19  ;;  %v6781_v25 = vld [vmem:[%s8720_s1 + $0x1e0] sm:$0xff] }
 0x17b   : > { %v2584_v22 = vadd.f32 %v2545_v28, %v2334_v34  ;;  %3178 = vmatmul.bf16.gmra.mxu2 %v6698_v61  ;;  %3597 = vmatmul.bf16.gmra.mxu0 %v6730_v30  ;;  %v3759_v61 = vshrl.u32 %v6224_v60, 16  ;;  %v3748_v30 = vrot.slane %v3746_v63, 4  ;;  %v8208_v36 = vrot.slane %v3755_v8, 5 }
 0x17c   : > { %3403 = vmatmul.bf16.gmra.mxu3 %v3327_v24  ;;  %4784 = vmatpush.bf16.msra.mxu0 %v6781_v25  ;;  %v6065_v60 = vrot.slane %v6057_v21, 9 }
 0x17d   : > { %3974 = vmatmul.bf16.gmra.mxu1 %v3898_v48  ;;  %v2599_v15 = vadd.f32 %v2584_v22, %v2583_v52  ;;  %v2622_v23 = vmul.f32 %v2584_v22, %v2584_v22  ;;  %v6796_v53 = vpack.c.bf16 %v2584_v22, %v2583_v52  ;;  %v3751_v48 = vrot.slane %v3749_v41, 5 }
 0x17e   : > { %v1920_v43 = vpop.f32.mrf.mxu2  ;;  %v3761_v52 = vrot.slane %v3759_v61, 4 }
 0x17f   : > { %v2298_v59 = vpop.f32.mrf.mxu3  ;;  %v2637_v27 = vadd.f32 %v2622_v23, %v2621_v35  ;;  %6797 = vst [vmem:[%s8180_s26] sm:$0xff] %v6796_v53   ;;  %v1957_v28 = vadd.f32 %v1920_v43, %v7810_v0  ;;  %v3734_v0 = vsel %vm7048_vm2, %v3729_v37, %v8162_v5  ;;  %v3328_v37 = vpack.c.b16 %v3315_v38, %v3314_v54  ;;  %v6731_v35 = vld [vmem:[%s7011_s29 + $0x84] sm:$0xff] }
 0x180   : > { %v2550_v7 = vpop.f32.mrf.mxu0  ;;  %v3885_v5 = vunpack.c.l.b16 %v3734_v0  ;;  %v3752_v23 = vor.u32 %v3751_v48, %v3748_v30  ;;  %v3765_v53 = vshll.u32 %v6225_v16, 16  ;;  %v6227_v0 = vld [vmem:[%s7011_s29 + $0xa0] sm:$0xf]  ;;  %v3262_v54 = vsel %vm7221_vm5, %v6065_v60, %v3261_v29 }
 0x181   : > { %v2335_v3 = vadd.f32 %v2298_v59, %v1957_v28  ;;  %v6926_v28 = vld [vmem:[%s7011_s29 + $0x8c] sm:$0x1]  ;;  %v3770_v38 = vshrl.u32 %v6226_v40, 16  ;;  %v6789_v48 = vld [vmem:[%s8720_s1 + $0x220] sm:$0xff]  ;;  %v3783_v16 = vshrl.u32 %v6227_v0, 16 }
 0x182   : > { %v8203_v50 = vpop.f32.mrf.mxu1  ;;  %v3264_v4 = vrot.slane %v6926_v28, 5  ;;  %v3753_v58 = vrot.slane %v3752_v23, 4  ;;  %v3767_v51 = vrot.slane %v3765_v53, 5  ;;  %5033 = vmatpush.bf16.msra.mxu1 %v6789_v48 }
 0x183   : > { %v2585_v24 = vadd.f32 %v2548_v17, %v2335_v3 }
 0x185   : > { %v2600_v14 = vadd.f32 %v2599_v15, %v2585_v24  ;;  %v2623_v11 = vmul.f32 %v2585_v24, %v2585_v24  ;;  %v3899_v15 = vpack.c.b16 %v3886_v2, %v3885_v5  ;;  %v3773_v5 = vshll.u32 %v6226_v40, 16  ;;  %v6700_v40 = vld [vmem:[%s7011_s29 + $0x84] sm:$0xff] }
 0x186   : > { %v1922_v34 = vpop.f32.mrf.mxu2 }
 0x187   : > { %v2300_v22 = vpop.f32.mrf.mxu3  ;;  %v2638_v17 = vadd.f32 %v2637_v27, %v2623_v11  ;;  %v1958_v47 = vadd.f32 %v1922_v34, %v7841_v55  ;;  %v3762_v55 = vor.u32 %v3761_v52, %v8208_v36  ;;  %v3263_v27 = vrot.slane %v3261_v29, 4 }
 0x188   : > { %v2553_v43 = vpop.f32.mrf.mxu0  ;;  %v3779_v11 = vshll.u32 %v6227_v0, 16  ;;  %v3316_v29 = vunpack.c.l.b16 %v3262_v54  ;;  %v3775_v21 = vrot.slane %v3773_v5, 5 }
 0x189   : > { %v2336_v49 = vadd.f32 %v2300_v22, %v1958_v47  ;;  %v3763_v19 = vrot.slane %v3762_v55, 4  ;;  %v3772_v47 = vrot.slane %v3770_v38, 4 }
 0x18a   : > { %v8218_v59 = vpop.f32.mrf.mxu1  ;;  %v8247_v25 = vrot.slane %v3779_v11, 5 }
 0x18b   : > { %v2586_v44 = vadd.f32 %v2550_v7, %v2336_v49  ;;  %3183 = vmatmul.bf16.gmra.mxu2 %v6699_v33  ;;  %3602 = vmatmul.bf16.gmra.mxu0 %v6731_v35  ;;  %v3265_v7 = vsel %vm7221_vm5, %v3263_v27, %v3264_v4  ;;  %v3768_v6 = vsel %vm7048_vm2, %v3763_v19, %v3767_v51  ;;  %v3785_v35 = vrot.slane %v3783_v16, 4  ;;  %v6927_v27 = vld [vmem:[%s7011_s29 + $0x94] sm:$0xf]  ;;  %v6229_v16 = vld [vmem:[%s7011_s29 + $0xa8] sm:$0xf] }
 0x18c   : > { %3408 = vmatmul.bf16.gmra.mxu3 %v3328_v37  ;;  %v6228_v37 = vld [vmem:[%s7011_s29 + $0xa4] sm:$0x1]  ;;  %v3268_v28 = vrot.slane %v6927_v27, 5  ;;  %v3776_v51 = vor.u32 %v3775_v21, %v3772_v47  ;;  %v6788_v21 = vld [vmem:[%s8720_s1 + $0x218] sm:$0xff] }
 0x18d   : > { %3979 = vmatmul.bf16.gmra.mxu1 %v3899_v15  ;;  %v2601_v63 = vadd.f32 %v2600_v14, %v2586_v44  ;;  %v2624_v41 = vmul.f32 %v2586_v44, %v2586_v44  ;;  %v6801_v3 = vpack.c.bf16 %v2586_v44, %v2585_v24  ;;  %v6756_v24 = vld [vmem:[%s8720_s1 + $0x158] sm:$0xff]  ;;  %v3789_v4 = vshll.u32 %v6228_v37, 16 }
 0x18e   : > { %v1925_v8 = vpop.f32.mrf.mxu2  ;;  %v6772_v14 = vld [vmem:[%s8720_s1 + $0x198] sm:$0xff]  ;;  %4214 = vmatpush.bf16.msra.mxu2 %v6756_v24  ;;  %v3786_v0 = vor.u32 %v3785_v35, %v8247_v25  ;;  %v6755_v35 = vld [vmem:[%s8720_s1 + $0x150] sm:$0xff]  ;;  %5034 = vmatpush.bf16.msra.mxu1 %v6788_v21 }
 0x18f   : > { %v2303_v61 = vpop.f32.mrf.mxu3  ;;  %v2639_v2 = vadd.f32 %v2638_v17, %v2624_v41  ;;  %6873 = vst [vmem:[%s8180_s26 + $0x8] sm:$0xff] %v6801_v3   ;;  %v1959_v30 = vadd.f32 %v1925_v8, %v7871_v9  ;;  %v3758_v9 = vsel %vm7048_vm2, %v3753_v58, %v8208_v36  ;;  %v3317_v17 = vunpack.c.l.b16 %v3265_v7  ;;  %4408 = vmatpush.bf16.msra.mxu3 %v6772_v14  ;;  %v6058_v58 = vld [vmem:[%s7011_s29 + $0x90] sm:$0xe]  ;;  %v6928_v7 = vld [vmem:[%s7011_s29 + $0x98] sm:$0x1] }
 0x190   : > { %v2555_v34 = vpop.f32.mrf.mxu0  ;;  %v3887_v15 = vunpack.c.l.b16 %v3758_v9  ;;  %v3888_v36 = vunpack.c.l.b16 %v3768_v6  ;;  %v6732_v41 = vld [vmem:[%s7011_s29 + $0x90] sm:$0xff]  ;;  %v6066_v54 = vrot.slane %v6058_v58, 9  ;;  %v3271_v38 = vrot.slane %v6928_v7, 5 }
 0x191   : > { %v2337_v52 = vadd.f32 %v2303_v61, %v1959_v30  ;;  %v3329_v60 = vpack.c.b16 %v3317_v17, %v3316_v29  ;;  %v3787_v30 = vrot.slane %v3786_v0, 4  ;;  %v3791_v48 = vrot.slane %v3789_v4, 5 }
 0x192   : > { %v8239_v22 = vpop.f32.mrf.mxu1  ;;  %v3900_v3 = vpack.c.b16 %v3888_v36, %v3887_v15  ;;  %v3269_v29 = vsel %vm7221_vm5, %v6066_v54, %v3268_v28  ;;  %v6771_v15 = vld [vmem:[%s8720_s1 + $0x190] sm:$0xff]  ;;  %v3797_v36 = vshll.u32 %v6229_v16, 16  ;;  %4215 = vmatpush.bf16.msra.mxu2 %v6755_v35 }
 0x193   : > { %v2587_v33 = vadd.f32 %v2553_v43, %v2337_v52  ;;  %v6230_v52 = vld [vmem:[%s7011_s29 + $0xac] sm:$0xf]  ;;  %4409 = vmatpush.bf16.msra.mxu3 %v6771_v15 }
 0x195   : > { %v2602_v23 = vadd.f32 %v2601_v63, %v2587_v33  ;;  %v2625_v53 = vmul.f32 %v2587_v33, %v2587_v33  ;;  %v6780_v63 = vld [vmem:[%s8720_s1 + $0x1d8] sm:$0xff] }
 0x196   : > { %v1927_v49 = vpop.f32.mrf.mxu2  ;;  %4785 = vmatpush.bf16.msra.mxu0 %v6780_v63 }
 0x197   : > { %v2305_v55 = vpop.f32.mrf.mxu3  ;;  %v2640_v43 = vadd.f32 %v2639_v2, %v2625_v53  ;;  %v1960_v44 = vadd.f32 %v1927_v49, %v7899_v20  ;;  %v3270_v20 = vrot.slane %v3268_v28, 4  ;;  %v3777_v2 = vrot.slane %v3776_v51, 4 }
 0x198   : > { %v2558_v8 = vpop.f32.mrf.mxu0  ;;  %v3807_v53 = vshrl.u32 %v6230_v52, 16 }
 0x199   : > { %v2338_v19 = vadd.f32 %v2305_v55, %v1960_v44  ;;  %v3782_v37 = vsel %vm7048_vm2, %v3777_v2, %v8247_v25 }
 0x19a   : > { %v8258_v61 = vpop.f32.mrf.mxu1  ;;  %v3889_v4 = vunpack.c.l.b16 %v3782_v37  ;;  %v3809_v51 = vrot.slane %v3807_v53, 4 }
 0x19b   : > { %v2588_v5 = vadd.f32 %v2555_v34, %v2338_v19  ;;  %3188 = vmatmul.bf16.gmra.mxu2 %v6700_v40  ;;  %3607 = vmatmul.bf16.gmra.mxu0 %v6732_v41  ;;  %v3272_v34 = vsel %vm7221_vm5, %v3270_v20, %v3271_v38  ;;  %v3799_v40 = vrot.slane %v3797_v36, 5  ;;  %v6231_v19 = vld [vmem:[%s7011_s29 + $0xb0] sm:$0x1]  ;;  %v6232_v36 = vld [vmem:[%s7011_s29 + $0xb4] sm:$0xf] }
 0x19c   : > { %3413 = vmatmul.bf16.gmra.mxu3 %v3329_v60  ;;  %v3318_v60 = vunpack.c.l.b16 %v3269_v29  ;;  %v3319_v28 = vunpack.c.l.b16 %v3272_v34  ;;  %v6779_v38 = vld [vmem:[%s8720_s1 + $0x1d0] sm:$0xff] }
 0x19d   : > { %3984 = vmatmul.bf16.gmra.mxu1 %v3900_v3  ;;  %v2603_v24 = vadd.f32 %v2602_v23, %v2588_v5  ;;  %v2626_v14 = vmul.f32 %v2588_v5, %v2588_v5  ;;  %v6806_v11 = vpack.c.bf16 %v2588_v5, %v2587_v33  ;;  %v3792_v33 = vsel %vm7048_vm2, %v3787_v30, %v3791_v48  ;;  %v6733_v5 = vld [vmem:[%s7011_s29 + $0x9c] sm:$0xff] }
 0x19e   : > { %v1930_v9 = vpop.f32.mrf.mxu2  ;;  %v3803_v23 = vshll.u32 %v6230_v52, 16  ;;  %v3330_v7 = vpack.c.b16 %v3319_v28, %v3318_v60  ;;  %v6059_v30 = vld [vmem:[%s7011_s29 + $0x9c] sm:$0xe]  ;;  %v6929_v48 = vld [vmem:[%s7011_s29 + $0xa0] sm:$0xf]  ;;  %4786 = vmatpush.bf16.msra.mxu0 %v6779_v38 }
 0x19f   : > { %v2308_v6 = vpop.f32.mrf.mxu3  ;;  %v2641_v17 = vadd.f32 %v2640_v43, %v2626_v14  ;;  %6874 = vst [vmem:[%s8180_s26 + $0x10] sm:$0xff] %v6806_v11   ;;  %v1961_v47 = vadd.f32 %v1930_v9, %v7933_v26  ;;  %v3794_v26 = vshrl.u32 %v6229_v16, 16  ;;  %v3890_v43 = vunpack.c.l.b16 %v3792_v33 }
 0x1a0   : > { %v2560_v49 = vpop.f32.mrf.mxu0  ;;  %v8285_v58 = vrot.slane %v3803_v23, 5  ;;  %v3275_v14 = vrot.slane %v6929_v48, 5  ;;  %v6067_v29 = vrot.slane %v6059_v30, 9 }
 0x1a1   : > { %v2339_v25 = vadd.f32 %v2308_v6, %v1961_v47  ;;  %v3796_v44 = vrot.slane %v3794_v26, 4  ;;  %v3901_v2 = vpack.c.b16 %v3890_v43, %v3889_v4  ;;  %v6787_v4 = vld [vmem:[%s8720_s1 + $0x210] sm:$0xff]  ;;  %v6770_v43 = vld [vmem:[%s8720_s1 + $0x188] sm:$0xff] }
 0x1a2   : > { %v8283_v55 = vpop.f32.mrf.mxu1  ;;  %v3810_v11 = vor.u32 %v3809_v51, %v8285_v58  ;;  %v3277_v34 = vrot.slane %v3275_v14, 4  ;;  %v3276_v28 = vsel %vm7221_vm5, %v6067_v29, %v3275_v14  ;;  %v3821_v51 = vshll.u32 %v6232_v36, 16  ;;  %5035 = vmatpush.bf16.msra.mxu1 %v6787_v4  ;;  %4410 = vmatpush.bf16.msra.mxu3 %v6770_v43  ;;  %v6234_v14 = vld [vmem:[%s7011_s29 + $0xbc] sm:$0x1] }
 0x1a3   : > { %v2589_v27 = vadd.f32 %v2558_v8, %v2339_v25  ;;  %v6701_v8 = vld [vmem:[%s7011_s29 + $0x90] sm:$0xff]  ;;  %v6233_v25 = vld [vmem:[%s7011_s29 + $0xb8] sm:$0xf]  ;;  %v6702_v29 = vld [vmem:[%s7011_s29 + $0x9c] sm:$0xff] }
 0x1a4   : > { %v3811_v33 = vrot.slane %v3810_v11, 4 }
 0x1a5   : > { %v2604_v0 = vadd.f32 %v2603_v24, %v2589_v27  ;;  %v2627_v63 = vmul.f32 %v2589_v27, %v2589_v27  ;;  %v3800_v24 = vor.u32 %v3799_v40, %v3796_v44  ;;  %v3818_v40 = vshrl.u32 %v6232_v36, 16 }
 0x1a6   : > { %v1932_v41 = vpop.f32.mrf.mxu2 }
 0x1a7   : > { %v2310_v3 = vpop.f32.mrf.mxu3  ;;  %v2642_v54 = vadd.f32 %v2641_v17, %v2627_v63  ;;  %v1962_v20 = vadd.f32 %v1932_v41, %v7963_v1  ;;  %v3813_v1 = vshll.u32 %v6231_v19, 16  ;;  %v6930_v17 = vld [vmem:[%s7011_s29 + $0xa4] sm:$0x1]  ;;  %v3801_v37 = vrot.slane %v3800_v24, 4 }
 0x1a8   : > { %v2563_v52 = vpop.f32.mrf.mxu0  ;;  %v3278_v47 = vrot.slane %v6930_v17, 5  ;;  %v3827_v19 = vshll.u32 %v6233_v25, 16  ;;  %v6778_v17 = vld [vmem:[%s8720_s1 + $0x1c8] sm:$0xff] }
 0x1a9   : > { %v2340_v16 = vadd.f32 %v2310_v3, %v1962_v20  ;;  %v3815_v26 = vrot.slane %v3813_v1, 5  ;;  %4787 = vmatpush.bf16.msra.mxu0 %v6778_v17 }
 0x1aa   : > { %v8297_v9 = vpop.f32.mrf.mxu1  ;;  %v3279_v44 = vsel %vm7221_vm5, %v3277_v34, %v3278_v47  ;;  %v8325_v24 = vrot.slane %v3827_v19, 5  ;;  %v6734_v47 = vld [vmem:[%s7011_s29 + $0xa8] sm:$0xff] }
 0x1ab   : > { %v2590_v6 = vadd.f32 %v2560_v49, %v2340_v16  ;;  %3193 = vmatmul.bf16.gmra.mxu2 %v6701_v8  ;;  %3612 = vmatmul.bf16.gmra.mxu0 %v6733_v5  ;;  %v3816_v3 = vsel %vm7048_vm2, %v3811_v33, %v3815_v26  ;;  %v3320_v8 = vunpack.c.l.b16 %v3276_v28  ;;  %v3820_v5 = vrot.slane %v3818_v40, 4  ;;  %v6060_v33 = vld [vmem:[%s7011_s29 + $0xa8] sm:$0xe]  ;;  %v6932_v28 = vld [vmem:[%s7011_s29 + $0xb0] sm:$0x1] }
 0x1ac   : > { %3418 = vmatmul.bf16.gmra.mxu3 %v3330_v7  ;;  %v3321_v7 = vunpack.c.l.b16 %v3279_v44  ;;  %v3892_v38 = vunpack.c.l.b16 %v3816_v3  ;;  %v3837_v26 = vshll.u32 %v6234_v14, 16  ;;  %v3285_v4 = vrot.slane %v6932_v28, 5  ;;  %v6777_v28 = vld [vmem:[%s8720_s1 + $0x1c0] sm:$0xff] }
 0x1ad   : > { %3989 = vmatmul.bf16.gmra.mxu1 %v3901_v2  ;;  %v2605_v21 = vadd.f32 %v2604_v0, %v2590_v6  ;;  %v2628_v35 = vmul.f32 %v2590_v6, %v2590_v6  ;;  %v6811_v15 = vpack.c.bf16 %v2590_v6, %v2589_v27  ;;  %v6754_v27 = vld [vmem:[%s8720_s1 + $0x148] sm:$0xff]  ;;  %v3823_v2 = vrot.slane %v3821_v51, 5  ;;  %4788 = vmatpush.bf16.msra.mxu0 %v6777_v28 }
 0x1ae   : > { %v1935_v23 = vpop.f32.mrf.mxu2  ;;  %4216 = vmatpush.bf16.msra.mxu2 %v6754_v27  ;;  %v3331_v34 = vpack.c.b16 %v3321_v7, %v3320_v8  ;;  %v3839_v43 = vrot.slane %v3837_v26, 5 }
 0x1af   : > { %v2313_v53 = vpop.f32.mrf.mxu3  ;;  %v2643_v49 = vadd.f32 %v2642_v54, %v2628_v35  ;;  %6875 = vst [vmem:[%s8180_s26 + $0x18] sm:$0xff] %v6811_v15   ;;  %v1963_v60 = vadd.f32 %v1935_v23, %v7996_v45  ;;  %v3806_v45 = vsel %vm7048_vm2, %v3801_v37, %v8285_v58  ;;  %v3831_v54 = vshrl.u32 %v6233_v25, 16 }
 0x1b0   : > { %v2565_v63 = vpop.f32.mrf.mxu0  ;;  %v3891_v58 = vunpack.c.l.b16 %v3806_v45  ;;  %v3824_v15 = vor.u32 %v3823_v2, %v3820_v5 }
 0x1b1   : > { %v2341_v0 = vadd.f32 %v2313_v53, %v1963_v60  ;;  %v3833_v11 = vrot.slane %v3831_v54, 4 }
 0x1b2   : > { %v8320_v41 = vpop.f32.mrf.mxu1  ;;  %v3902_v37 = vpack.c.b16 %v3892_v38, %v3891_v58  ;;  %v3825_v27 = vrot.slane %v3824_v15, 4  ;;  %v6786_v58 = vld [vmem:[%s8720_s1 + $0x208] sm:$0xff]  ;;  %v6769_v38 = vld [vmem:[%s8720_s1 + $0x180] sm:$0xff] }
 0x1b3   : > { %v2591_v20 = vadd.f32 %v2563_v52, %v2341_v0  ;;  %v6235_v0 = vld [vmem:[%s7011_s29 + $0xc0] sm:$0xf]  ;;  %5036 = vmatpush.bf16.msra.mxu1 %v6786_v58  ;;  %4411 = vmatpush.bf16.msra.mxu3 %v6769_v38 }
 0x1b4   : > { %v3842_v2 = vshrl.u32 %v6235_v0, 16 }
 0x1b5   : > { %v2606_v30 = vadd.f32 %v2605_v21, %v2591_v20  ;;  %v2629_v48 = vmul.f32 %v2591_v20, %v2591_v20  ;;  %v6931_v21 = vld [vmem:[%s7011_s29 + $0xac] sm:$0xf] }
 0x1b6   : > { %v1937_v16 = vpop.f32.mrf.mxu2  ;;  %v3282_v35 = vrot.slane %v6931_v21, 5 }
 0x1b7   : > { %v2315_v1 = vpop.f32.mrf.mxu3  ;;  %v2644_v6 = vadd.f32 %v2643_v49, %v2629_v48  ;;  %v1964_v52 = vadd.f32 %v1937_v16, %v8029_v39  ;;  %v3834_v39 = vor.u32 %v3833_v11, %v8325_v24  ;;  %v6068_v49 = vrot.slane %v6060_v33, 9 }
 0x1b8   : > { %v2568_v23 = vpop.f32.mrf.mxu0  ;;  %v3284_v60 = vrot.slane %v3282_v35, 4 }
 0x1b9   : > { %v2342_v36 = vadd.f32 %v2315_v1, %v1964_v52  ;;  %v3835_v51 = vrot.slane %v3834_v39, 4  ;;  %v3283_v7 = vsel %vm7221_vm5, %v6068_v49, %v3282_v35  ;;  %v6237_v35 = vld [vmem:[%s7011_s29 + $0xc8] sm:$0x1] }
 0x1ba   : > { %v8335_v53 = vpop.f32.mrf.mxu1  ;;  %v3286_v5 = vsel %vm7221_vm5, %v3284_v60, %v3285_v4  ;;  %v6703_v49 = vld [vmem:[%s7011_s29 + $0xa8] sm:$0xff]  ;;  %v6735_v4 = vld [vmem:[%s7011_s29 + $0xb4] sm:$0xff] }
 0x1bb   : > { %v2592_v25 = vadd.f32 %v2565_v63, %v2342_v36  ;;  %3198 = vmatmul.bf16.gmra.mxu2 %v6702_v29  ;;  %3617 = vmatmul.bf16.gmra.mxu0 %v6734_v47  ;;  %v6236_v63 = vld [vmem:[%s7011_s29 + $0xc4] sm:$0xf]  ;;  %v3840_v16 = vsel %vm7048_vm2, %v3835_v51, %v3839_v43  ;;  %v3322_v29 = vunpack.c.l.b16 %v3283_v7  ;;  %v3844_v47 = vrot.slane %v3842_v2, 4  ;;  %v6061_v43 = vld [vmem:[%s7011_s29 + $0xb4] sm:$0xe] }
 0x1bc   : > { %3423 = vmatmul.bf16.gmra.mxu3 %v3331_v34  ;;  %v3851_v1 = vshll.u32 %v6236_v63, 16  ;;  %v3323_v34 = vunpack.c.l.b16 %v3286_v5  ;;  %v3894_v17 = vunpack.c.l.b16 %v3840_v16  ;;  %v3861_v51 = vshll.u32 %v6237_v35, 16  ;;  %v6446_v7 = vld [vmem:[%s7011_s29 + $0x78] sm:$0xf]  ;;  %v8380_v16 = vld [vmem:[%s7011_s29 + $0x7c] sm:$0xf] }
 0x1bd   : > { %3994 = vmatmul.bf16.gmra.mxu1 %v3902_v37  ;;  %v2607_v44 = vadd.f32 %v2606_v30, %v2592_v25  ;;  %v2630_v45 = vmul.f32 %v2592_v25, %v2592_v25  ;;  %v6816_v40 = vpack.c.bf16 %v2592_v25, %v2591_v20  ;;  %v6753_v20 = vld [vmem:[%s8720_s1 + $0x140] sm:$0xff]  ;;  %v3845_v30 = vshll.u32 %v6235_v0, 16 }
 0x1be   : > { %v1940_v3 = vpop.f32.mrf.mxu2  ;;  %4217 = vmatpush.bf16.msra.mxu2 %v6753_v20  ;;  %v3853_v15 = vrot.slane %v3851_v1, 5  ;;  %v3332_v60 = vpack.c.b16 %v3323_v34, %v3322_v29  ;;  %v6934_v20 = vld [vmem:[%s7011_s29 + $0xbc] sm:$0x1]  ;;  %v4494_v29 = vshrl.u32 %v6446_v7, 16  ;;  %v4497_v34 = vshll.u32 %v6446_v7, 16 }
 0x1bf   : > { %v2318_v19 = vpop.f32.mrf.mxu3  ;;  %v2645_v54 = vadd.f32 %v2644_v6, %v2630_v45  ;;  %6876 = vst [vmem:[%s8180_s26 + $0x20] sm:$0xff] %v6816_v40   ;;  %v1965_v8 = vadd.f32 %v1940_v3, %v8051_v46  ;;  %v3830_v46 = vsel %vm7048_vm2, %v3825_v27, %v8325_v24  ;;  %v3855_v6 = vshrl.u32 %v6236_v63, 16 }
 0x1c0   : > { %v2570_v14 = vpop.f32.mrf.mxu0  ;;  %v3893_v24 = vunpack.c.l.b16 %v3830_v46  ;;  %v3847_v37 = vrot.slane %v3845_v30, 5  ;;  %v3292_v38 = vrot.slane %v6934_v20, 5  ;;  %v3863_v46 = vrot.slane %v3861_v51, 5  ;;  %v6736_v20 = vld [vmem:[%s7011_s29 + $0xc0] sm:$0xff] }
 0x1c1   : > { %v2343_v48 = vadd.f32 %v2318_v19, %v1965_v8  ;;  %v3857_v26 = vrot.slane %v3855_v6, 4  ;;  %v6785_v8 = vld [vmem:[%s8720_s1 + $0x200] sm:$0xff] }
 0x1c2   : > { %v8359_v11 = vpop.f32.mrf.mxu1  ;;  %v3903_v27 = vpack.c.b16 %v3894_v17, %v3893_v24  ;;  %v3848_v40 = vor.u32 %v3847_v37, %v3844_v47  ;;  %5037 = vmatpush.bf16.msra.mxu1 %v6785_v8  ;;  %v6704_v8 = vld [vmem:[%s7011_s29 + $0xb4] sm:$0xff] }
 0x1c3   : > { %v2593_v52 = vadd.f32 %v2568_v23, %v2343_v48 }
 0x1c4   : > { %v3849_v5 = vrot.slane %v3848_v40, 4 }
 0x1c5   : > { %v2608_v33 = vadd.f32 %v2607_v44, %v2593_v52  ;;  %v2631_v21 = vmul.f32 %v2593_v52, %v2593_v52  ;;  %v6933_v44 = vld [vmem:[%s7011_s29 + $0xb8] sm:$0xf] }
 0x1c6   : > { %v1942_v36 = vpop.f32.mrf.mxu2  ;;  %v3289_v45 = vrot.slane %v6933_v44, 5 }
 0x1c7   : > { %v2320_v39 = vpop.f32.mrf.mxu3  ;;  %v2646_v25 = vadd.f32 %v2645_v54, %v2631_v21  ;;  %v1966_v23 = vadd.f32 %v1942_v36, %v8069_v18  ;;  %v3858_v18 = vor.u32 %v3857_v26, %v3853_v15  ;;  %v6069_v54 = vrot.slane %v6061_v43, 9 }
 0x1c8   : > { %v2573_v3 = vpop.f32.mrf.mxu0  ;;  %v3291_v58 = vrot.slane %v3289_v45, 4  ;;  %v3854_v36 = vsel %vm7048_vm2, %v3849_v5, %v3853_v15  ;;  %v6448_v15 = vld [vmem:[%s7011_s29 + $0x80] sm:$0x1] }
 0x1c9   : > { %v2344_v0 = vadd.f32 %v2320_v39, %v1966_v23  ;;  %v3290_v47 = vsel %vm7221_vm5, %v6069_v54, %v3289_v45  ;;  %v4496_v39 = vrot.slane %v4494_v29, 4  ;;  %v3895_v28 = vunpack.c.l.b16 %v3854_v36 }
 0x1ca   : > { %v8372_v19 = vpop.f32.mrf.mxu1  ;;  %v3293_v37 = vsel %vm7221_vm5, %v3291_v58, %v3292_v38  ;;  %v6286_v58 = vld [vmem:[%s7011_s29 + $0x6c] sm:$0xe] }
 0x1cb   : > { %v2594_v63 = vadd.f32 %v2570_v14, %v2344_v0  ;;  %3203 = vmatmul.bf16.gmra.mxu2 %v6703_v49  ;;  %3622 = vmatmul.bf16.gmra.mxu0 %v6735_v4  ;;  %v3859_v14 = vrot.slane %v3858_v18, 4  ;;  %v3324_v49 = vunpack.c.l.b16 %v3290_v47  ;;  %v6935_v0 = vld [vmem:[%s7011_s29 + $0x70] sm:$0xf] }
 0x1cc   : > { %3428 = vmatmul.bf16.gmra.mxu3 %v3332_v60  ;;  %v3325_v60 = vunpack.c.l.b16 %v3293_v37  ;;  %v4060_v18 = vrot.slane %v6935_v0, 5 }
 0x1cd   : > { %3999 = vmatmul.bf16.gmra.mxu1 %v3903_v27  ;;  %v2609_v2 = vadd.f32 %v2608_v33, %v2594_v63  ;;  %v2632_v30 = vmul.f32 %v2594_v63, %v2594_v63  ;;  %v6821_v48 = vpack.c.bf16 %v2594_v63, %v2593_v52  ;;  %v4503_v52 = vshll.u32 %v8380_v16, 16 }
 0x1ce   : > { %v1945_v1 = vpop.f32.mrf.mxu2  ;;  %v4507_v33 = vshrl.u32 %v8380_v16, 16  ;;  %v3333_v7 = vpack.c.b16 %v3325_v60, %v3324_v49  ;;  %v4062_v29 = vrot.slane %v4060_v18, 4 }
 0x1cf   : > { %v2323_v6 = vpop.f32.mrf.mxu3  ;;  %v2647_v24 = vadd.f32 %v2646_v25, %v2632_v30  ;;  %6877 = vst [vmem:[%s8180_s26 + $0x28] sm:$0xff] %v6821_v48   ;;  %v1967_v17 = vadd.f32 %v1945_v1, %v8092_v57  ;;  %v3864_v57 = vsel %vm7048_vm2, %v3859_v14, %v3863_v46  ;;  %v4499_v25 = vrot.slane %v4497_v34, 5  ;;  %v6518_v1 = vld [vmem:[%s7011_s29 + $0x78] sm:$0xe]  ;;  %v6936_v34 = vld [vmem:[%s7011_s29 + $0x74] sm:$0x1] }
 0x1d0   : > { %v2575_v35 = vpop.f32.mrf.mxu0  ;;  %v3896_v4 = vunpack.c.l.b16 %v3864_v57  ;;  %v8396_v27 = vrot.slane %v4503_v52, 5  ;;  %v4509_v43 = vrot.slane %v4507_v33, 4  ;;  %v4513_v46 = vshll.u32 %v6448_v15, 16  ;;  %v6449_v33 = vld [vmem:[%s7011_s29 + $0x84] sm:$0xf] }
 0x1d1   : > { %v2345_v21 = vadd.f32 %v2323_v6, %v1967_v17  ;;  %v4500_v63 = vor.u32 %v4499_v25, %v4496_v39  ;;  %v6294_v6 = vrot.slane %v6286_v58, 9  ;;  %v6526_v37 = vrot.slane %v6518_v1, 9  ;;  %v8412_v25 = vld [vmem:[%s7011_s29 + $0x88] sm:$0xf] }
 0x1d2   : > { %v8390_v26 = vpop.f32.mrf.mxu1  ;;  %v3904_v38 = vpack.c.b16 %v3896_v4, %v3895_v28  ;;  %v4510_v5 = vor.u32 %v4509_v43, %v8396_v27  ;;  %v4883_v39 = vrot.slane %v6448_v15, 5 }
 0x1d3   : > { %v2595_v23 = vadd.f32 %v2573_v3, %v2345_v21 }
 0x1d4   : > { %v4511_v47 = vrot.slane %v4510_v5, 4 }
 0x1d5   : > { %v2610_v44 = vadd.f32 %v2609_v2, %v2595_v23  ;;  %v2633_v45 = vmul.f32 %v2595_v23, %v2595_v23  ;;  %v4880_v2 = vrot.slane %v8380_v16, 5  ;;  %v4515_v16 = vrot.slane %v4513_v46, 5 }
 0x1d6   : > { %v1947_v40 = vpop.f32.mrf.mxu2 }
 0x1d7   : > { %v2325_v51 = vpop.f32.mrf.mxu3  ;;  %v2648_v3 = vadd.f32 %v2647_v24, %v2633_v45  ;;  %v1968_v54 = vadd.f32 %v1947_v40, %v8103_v56  ;;  %v4063_v56 = vrot.slane %v6936_v34, 5  ;;  %v4501_v24 = vrot.slane %v4500_v63, 4 }
 0x1d8   : > { %v2578_v48 = vpop.f32.mrf.mxu0  ;;  %v4882_v52 = vrot.slane %v4880_v2, 4  ;;  %v4521_v45 = vshll.u32 %v6449_v33, 16  ;;  %v4516_v15 = vsel %vm7048_vm2, %v4511_v47, %v4515_v16  ;;  %v4527_v40 = vshll.u32 %v8412_v25, 16 }
 0x1d9   : > { %v2346_v30 = vadd.f32 %v2325_v51, %v1968_v54  ;;  %v4064_v28 = vsel %vm7221_vm5, %v4062_v29, %v4063_v56  ;;  %v4506_v4 = vsel %vm7048_vm2, %v4501_v24, %v8396_v27  ;;  %v4531_v51 = vshrl.u32 %v8412_v25, 16  ;;  %v6451_v29 = vld [vmem:[%s7011_s29 + $0x8c] sm:$0x1] }
 0x1da   : > { %v8406_v14 = vpop.f32.mrf.mxu1  ;;  %v4881_v27 = vsel %vm7221_vm5, %v6526_v37, %v4880_v2  ;;  %v4131_v54 = vunpack.c.l.b16 %v4064_v28  ;;  %v4702_v58 = vunpack.c.l.b16 %v4516_v15  ;;  %v6761_v37 = vld [vmem:[%s7011_s29 + $0x78] sm:$0xff] }
 0x1db   : > { %v2596_v17 = vadd.f32 %v2575_v35, %v2346_v30  ;;  %3208 = vmatmul.bf16.gmra.mxu2 %v6704_v8  ;;  %3627 = vmatmul.bf16.gmra.mxu0 %v6736_v20  ;;  %v4061_v35 = vsel %vm7221_vm5, %v6294_v6, %v4060_v18  ;;  %v4701_v8 = vunpack.c.l.b16 %v4506_v4  ;;  %v4950_v5 = vunpack.c.l.b16 %v4881_v27  ;;  %v6519_v4 = vld [vmem:[%s7011_s29 + $0x84] sm:$0xe] }
 0x1dc   : > { %3433 = vmatmul.bf16.gmra.mxu3 %v3333_v7  ;;  %v8433_v30 = vrot.slane %v4527_v40, 5  ;;  %v4533_v1 = vrot.slane %v4531_v51, 4  ;;  %v6452_v40 = vld [vmem:[%s7011_s29 + $0x90] sm:$0xf]  ;;  %v8448_v51 = vld [vmem:[%s7011_s29 + $0x94] sm:$0xf] }
 0x1dd   : > { %4004 = vmatmul.bf16.gmra.mxu1 %v3904_v38  ;;  %v2611_v21 = vadd.f32 %v2610_v44, %v2596_v17  ;;  %v2634_v36 = vmul.f32 %v2596_v17, %v2596_v17  ;;  %v6826_v57 = vpack.c.bf16 %v2596_v17, %v2595_v23  ;;  %v4518_v23 = vshrl.u32 %v6449_v33, 16  ;;  %v6937_v17 = vld [vmem:[%s7011_s29 + $0x7c] sm:$0xf]  ;;  %v6287_v33 = vld [vmem:[%s7011_s29 + $0x78] sm:$0xe] }
 0x1de   : > { %v1950_v49 = vpop.f32.mrf.mxu2  ;;  %v4523_v38 = vrot.slane %v4521_v45, 5  ;;  %v4067_v47 = vrot.slane %v6937_v17, 5  ;;  %v6527_v27 = vrot.slane %v6519_v4, 9 }
 0x1df   : > { %v2328_v60 = vpop.f32.mrf.mxu3  ;;  %v2649_v43 = vadd.f32 %v2648_v3, %v2634_v36  ;;  %6878 = vst [vmem:[%s8180_s26 + $0x30] sm:$0xff] %v6826_v57   ;;  %v1969_v44 = vadd.f32 %v1950_v49, %v8125_v31  ;;  %v4884_v31 = vsel %vm7221_vm5, %v4882_v52, %v4883_v39  ;;  %v4130_v3 = vunpack.c.l.b16 %v4061_v35 }
 0x1e0   : > { %v2580_v18 = vpop.f32.mrf.mxu0  ;;  %v4520_v20 = vrot.slane %v4518_v23, 4  ;;  %v4951_v46 = vunpack.c.l.b16 %v4884_v31  ;;  %v4717_v52 = vpack.c.b16 %v4702_v58, %v4701_v8  ;;  %v4537_v39 = vshll.u32 %v6451_v29, 16  ;;  %v6938_v23 = vld [vmem:[%s7011_s29 + $0x80] sm:$0x1] }
 0x1e1   : > { %v2347_v0 = vadd.f32 %v2328_v60, %v1969_v44  ;;  %v4146_v24 = vpack.c.b16 %v4131_v54, %v4130_v3  ;;  %v4887_v49 = vrot.slane %v8412_v25, 5  ;;  %v4070_v45 = vrot.slane %v6938_v23, 5 }
 0x1e2   : > { %v8427_v63 = vpop.f32.mrf.mxu1  ;;  %v4524_v36 = vor.u32 %v4523_v38, %v4520_v20  ;;  %v4966_v57 = vpack.c.b16 %v4951_v46, %v4950_v5  ;;  %v4542_v38 = vshrl.u32 %v6452_v40, 16  ;;  %v4545_v5 = vshll.u32 %v6452_v40, 16 }
 0x1e3   : > { %v2597_v7 = vadd.f32 %v2578_v48, %v2347_v0  ;;  %v4539_v0 = vrot.slane %v4537_v39, 5  ;;  %v4889_v31 = vrot.slane %v4887_v49, 4  ;;  %v4551_v46 = vshll.u32 %v8448_v51, 16 }
 0x1e4   : > { %v4525_v15 = vrot.slane %v4524_v36, 4 }
 0x1e5   : > { %v2612_v6 = vadd.f32 %v2611_v21, %v2597_v7  ;;  %v2635_v2 = vmul.f32 %v2597_v7, %v2597_v7  ;;  %v4534_v21 = vor.u32 %v4533_v1, %v8433_v30  ;;  %v4555_v1 = vshrl.u32 %v8448_v51, 16 }
 0x1e6   : > { %v1952_v34 = vpop.f32.mrf.mxu2 }
 0x1e7   : > { %v2330_v56 = vpop.f32.mrf.mxu3  ;;  %v2650_v48 = vadd.f32 %v2649_v43, %v2635_v2  ;;  %v1970_v16 = vadd.f32 %v1952_v34, %v8140_v32  ;;  %v6295_v43 = vrot.slane %v6287_v33, 9  ;;  %v4069_v32 = vrot.slane %v4067_v47, 4 }
 0x1e8   : > { %v3593_v35 = vpop.f32.mrf.mxu0  ;;  %v4535_v25 = vrot.slane %v4534_v21, 4  ;;  %v4557_v33 = vrot.slane %v4555_v1, 4  ;;  %v6454_v21 = vld [vmem:[%s7011_s29 + $0x98] sm:$0x1]  ;;  %v6940_v1 = vld [vmem:[%s7011_s29 + $0x8c] sm:$0x1] }
 0x1e9   : > { %v2348_v60 = vadd.f32 %v2330_v56, %v1970_v16  ;;  %v4544_v16 = vrot.slane %v4542_v38, 4 }
 0x1ea   : > { %v8442_v28 = vpop.f32.mrf.mxu1 }
 0x1eb   : > { %v2598_v44 = vadd.f32 %v2580_v18, %v2348_v60  ;;  %4218 = vmatmul.bf16.vlgmr.msra.gmra.mxu2 %v4146_v24  ;;  %4789 = vmatmul.bf16.vlgmr.msra.gmra.mxu0 %v4717_v52  ;;  %v4890_v18 = vrot.slane %v6451_v29, 5  ;;  %v4530_v29 = vsel %vm7048_vm2, %v4525_v15, %v8433_v30  ;;  %v8471_v52 = vrot.slane %v4551_v46, 5 }
 0x1ec   : > { %4412 = vmatmul.bf16.vlgmr.msra.gmra.mxu3 %v6761_v37  ;;  %v4547_v37 = vrot.slane %v4545_v5, 5  ;;  %v4703_v39 = vunpack.c.l.b16 %v4530_v29 }
 0x1ed   : > { %5038 = vmatmul.bf16.vlgmr.msra.gmra.mxu1 %v4966_v57  ;;  %v8450_v3 = vadd.f32 %v2612_v6, %v2598_v44  ;;  %v2636_v54 = vmul.f32 %v2598_v44, %v2598_v44  ;;  %v6831_v8 = vpack.c.bf16 %v2598_v44, %v2597_v7  ;;  %v4068_v6 = vsel %vm7221_vm5, %v6295_v43, %v4067_v47 }
 0x1ee   : > { %v3174_v58 = vpop.f32.mrf.mxu2  ;;  %v4071_v7 = vsel %vm7221_vm5, %v4069_v32, %v4070_v45  ;;  %v4891_v47 = vsel %vm7221_vm5, %v4889_v31, %v4890_v18  ;;  %v4132_v36 = vunpack.c.l.b16 %v4068_v6  ;;  %v6288_v45 = vld [vmem:[%s7011_s29 + $0x84] sm:$0xe]  ;;  %v4548_v15 = vor.u32 %v4547_v37, %v4544_v16  ;;  %v6520_v18 = vld [vmem:[%s7011_s29 + $0x90] sm:$0xe]  ;;  %v8487_v16 = vld [vmem:[%s7011_s29 + $0xa0] sm:$0xf] }
 0x1ef   : > { %v3399_v20 = vpop.f32.mrf.mxu3  ;;  %v8454_v2 = vadd.f32 %v2650_v48, %v2636_v54  ;;  %6879 = vst [vmem:[%s8180_s26 + $0x38] sm:$0xff] %v6831_v8   ;;  %v3175_v34 = vadd.f32 %v3174_v58, %v8135_v13  ;;  %v4540_v48 = vsel %vm7048_vm2, %v4535_v25, %v4539_v0  ;;  %v4888_v13 = vsel %vm7221_vm5, %v6527_v27, %v4887_v49  ;;  %v6939_v49 = vld [vmem:[%s7011_s29 + $0x88] sm:$0xf] }
 0x1f0   : > { %v3595_v24 = vpop.f32.mrf.mxu0  ;;  %v4133_v57 = vunpack.c.l.b16 %v4071_v7  ;;  %v4704_v60 = vunpack.c.l.b16 %v4540_v48  ;;  %v4952_v4 = vunpack.c.l.b16 %v4888_v13  ;;  %v4953_v43 = vunpack.c.l.b16 %v4891_v47  ;;  %v6762_v27 = vld [vmem:[%s7011_s29 + $0x84] sm:$0xff]  ;;  %v6455_v47 = vld [vmem:[%s7011_s29 + $0x9c] sm:$0xf] }
 0x1f1   : > { %v3439_v56 = vadd.f32 %v3399_v20, %v3175_v34  ;;  %v4074_v32 = vrot.slane %v6939_v49, 5  ;;  %v4558_v40 = vor.u32 %v4557_v33, %v8471_v52  ;;  %v4561_v25 = vshll.u32 %v6454_v21, 16 }
 0x1f2   : > { %v3972_v17 = vpop.f32.mrf.mxu1  ;;  %v4147_v0 = vpack.c.b16 %v4133_v57, %v4132_v36  ;;  %v4894_v31 = vrot.slane %v8448_v51, 5  ;;  %v4718_v54 = vpack.c.b16 %v4704_v60, %v4703_v39  ;;  %v4967_v8 = vpack.c.b16 %v4953_v43, %v4952_v4 }
 0x1f3   : > { %v3633_v30 = vadd.f32 %v3593_v35, %v3439_v56  ;;  %v6296_v5 = vrot.slane %v6288_v45, 9  ;;  %v4076_v46 = vrot.slane %v4074_v32, 4  ;;  %v4077_v34 = vrot.slane %v6940_v1, 5 }
 0x1f4   : > { %v4549_v6 = vrot.slane %v4548_v15, 4  ;;  %v4559_v7 = vrot.slane %v4558_v40, 4  ;;  %v4563_v29 = vrot.slane %v4561_v25, 5  ;;  %v6528_v56 = vrot.slane %v6520_v18, 9 }
 0x1f5   : > { %v4896_v51 = vrot.slane %v4894_v31, 4  ;;  %v4897_v48 = vrot.slane %v6454_v21, 5  ;;  %v8483_v13 = vadd.f32 %v8442_v28, %v3633_v30  ;;  %v4078_v57 = vsel %vm7221_vm5, %v4076_v46, %v4077_v34  ;;  %v6763_v34 = vld [vmem:[%s7011_s29 + $0x90] sm:$0xff] }
 0x1f6   : > { %v3176_v44 = vpop.f32.mrf.mxu2  ;;  %v4554_v21 = vsel %vm7048_vm2, %v4549_v6, %v8471_v52  ;;  %v4564_v30 = vsel %vm7048_vm2, %v4559_v7, %v4563_v29  ;;  %v4566_v60 = vshrl.u32 %v6455_v47, 16  ;;  %v4569_v4 = vshll.u32 %v6455_v47, 16 }
 0x1f7   : > { %v3401_v23 = vpop.f32.mrf.mxu3  ;;  %v3177_v35 = vadd.f32 %v3176_v44, %v8160_v12  ;;  %v4898_v39 = vsel %vm7221_vm5, %v4896_v51, %v4897_v48  ;;  %v4575_v43 = vshll.u32 %v8487_v16, 16  ;;  %v4579_v49 = vshrl.u32 %v8487_v16, 16 }
 0x1f8   : > { %v3598_v20 = vpop.f32.mrf.mxu0  ;;  %v4705_v45 = vunpack.c.l.b16 %v4554_v21  ;;  %v4706_v40 = vunpack.c.l.b16 %v4564_v30  ;;  %v8521_v30 = vld [vmem:[%s7011_s29 + $0xac] sm:$0xf] }
 0x1f9   : > { %v3440_v58 = vadd.f32 %v3401_v23, %v3177_v35  ;;  %v4135_v23 = vunpack.c.l.b16 %v4078_v57  ;;  %v4955_v35 = vunpack.c.l.b16 %v4898_v39 }
 0x1fa   : > { %v3975_v38 = vpop.f32.mrf.mxu1  ;;  %v4719_v7 = vpack.c.b16 %v4706_v40, %v4705_v45  ;;  %v4599_v40 = vshll.u32 %v8521_v30, 16 }
 0x1fb   : > { %v3634_v12 = vadd.f32 %v3595_v24, %v3440_v58  ;;  %4223 = vmatmul.bf16.gmra.mxu2 %v4147_v0  ;;  %4794 = vmatmul.bf16.gmra.mxu0 %v4718_v54  ;;  %v4075_v24 = vsel %vm7221_vm5, %v6296_v5, %v4074_v32  ;;  %v4568_v0 = vrot.slane %v4566_v60, 4  ;;  %v4581_v54 = vrot.slane %v4579_v49, 4  ;;  %v6457_v58 = vld [vmem:[%s7011_s29 + $0xa4] sm:$0x1] }
 0x1fc   : > { %4417 = vmatmul.bf16.gmra.mxu3 %v6762_v27  ;;  %v4571_v27 = vrot.slane %v4569_v4, 5 }
 0x1fd   : > { %5043 = vmatmul.bf16.gmra.mxu1 %v4967_v8  ;;  %v8489_v37 = vadd.f32 %v3972_v17, %v3634_v12  ;;  %v4895_v17 = vsel %vm7221_vm5, %v6528_v56, %v4894_v31  ;;  %v8507_v31 = vrot.slane %v4575_v43, 5  ;;  %v6289_v12 = vld [vmem:[%s7011_s29 + $0x90] sm:$0xe] }
 0x1fe   : > { %v3179_v33 = vpop.f32.mrf.mxu2  ;;  %v4954_v25 = vunpack.c.l.b16 %v4895_v17  ;;  %v4572_v56 = vor.u32 %v4571_v27, %v4568_v0  ;;  %v6297_v57 = vrot.slane %v6289_v12, 9  ;;  %v6942_v17 = vld [vmem:[%s7011_s29 + $0x98] sm:$0x1]  ;;  %v6460_v12 = vld [vmem:[%s7011_s29 + $0xb0] sm:$0x1] }
 0x1ff   : > { %v3404_v36 = vpop.f32.mrf.mxu3  ;;  %v3180_v28 = vadd.f32 %v3179_v33, %v8175_v10  ;;  %v4134_v10 = vunpack.c.l.b16 %v4075_v24  ;;  %v4582_v51 = vor.u32 %v4581_v54, %v8507_v31  ;;  %v4084_v39 = vrot.slane %v6942_v17, 5 }
 0x200   : > { %v3600_v52 = vpop.f32.mrf.mxu0  ;;  %v4968_v29 = vpack.c.b16 %v4955_v35, %v4954_v25  ;;  %v4573_v60 = vrot.slane %v4572_v56, 4  ;;  %v4603_v25 = vshrl.u32 %v8521_v30, 16 }
 0x201   : > { %v3441_v32 = vadd.f32 %v3404_v36, %v3180_v28  ;;  %v4148_v1 = vpack.c.b16 %v4135_v23, %v4134_v10  ;;  %v6521_v36 = vld [vmem:[%s7011_s29 + $0x9c] sm:$0xe]  ;;  %v6458_v28 = vld [vmem:[%s7011_s29 + $0xa8] sm:$0xf]  ;;  %v4583_v4 = vrot.slane %v4582_v51, 4  ;;  %v4904_v10 = vrot.slane %v6457_v58, 5 }
 0x202   : > { %v3977_v44 = vpop.f32.mrf.mxu1  ;;  %v6529_v43 = vrot.slane %v6521_v36, 9  ;;  %v4590_v45 = vshrl.u32 %v6458_v28, 16  ;;  %v6943_v36 = vld [vmem:[%s7011_s29 + $0xa0] sm:$0xf] }
 0x203   : > { %v3635_v15 = vadd.f32 %v3598_v20, %v3441_v32  ;;  %v6941_v20 = vld [vmem:[%s7011_s29 + $0x94] sm:$0xf] }
 0x204   : > { %v4081_v6 = vrot.slane %v6941_v20, 5  ;;  %v8542_v20 = vrot.slane %v4599_v40, 5 }
 0x205   : > { %v8510_v5 = vadd.f32 %v3975_v38, %v3635_v15  ;;  %v4585_v38 = vshll.u32 %v6457_v58, 16  ;;  %v4593_v15 = vshll.u32 %v6458_v28, 16 }
 0x206   : > { %v3181_v8 = vpop.f32.mrf.mxu2  ;;  %v4083_v21 = vrot.slane %v4081_v6, 4  ;;  %v4082_v0 = vsel %vm7221_vm5, %v6297_v57, %v4081_v6  ;;  %v4605_v6 = vrot.slane %v4603_v25, 4 }
 0x207   : > { %v3406_v18 = vpop.f32.mrf.mxu3  ;;  %v3182_v46 = vadd.f32 %v3181_v8, %v8203_v50  ;;  %v4901_v50 = vrot.slane %v8487_v16, 5  ;;  %v4587_v49 = vrot.slane %v4585_v38, 5 }
 0x208   : > { %v3603_v47 = vpop.f32.mrf.mxu0  ;;  %v4085_v27 = vsel %vm7221_vm5, %v4083_v21, %v4084_v39  ;;  %v6290_v21 = vld [vmem:[%s7011_s29 + $0x9c] sm:$0xe]  ;;  %v4606_v17 = vor.u32 %v4605_v6, %v8542_v20  ;;  %v4609_v39 = vshll.u32 %v6460_v12, 16 }
 0x209   : > { %v3442_v48 = vadd.f32 %v3406_v18, %v3182_v46  ;;  %v4903_v32 = vrot.slane %v4901_v50, 4  ;;  %v4588_v58 = vsel %vm7048_vm2, %v4583_v4, %v4587_v49  ;;  %v4908_v49 = vrot.slane %v8521_v30, 5 }
 0x20a   : > { %v3980_v33 = vpop.f32.mrf.mxu1  ;;  %v4708_v51 = vunpack.c.l.b16 %v4588_v58  ;;  %v6298_v40 = vrot.slane %v6290_v21, 9  ;;  %v4911_v58 = vrot.slane %v6460_v12, 5 }
 0x20b   : > { %v3636_v24 = vadd.f32 %v3600_v52, %v3442_v48  ;;  %4228 = vmatmul.bf16.gmra.mxu2 %v4148_v1  ;;  %4799 = vmatmul.bf16.gmra.mxu0 %v4719_v7  ;;  %v4905_v46 = vsel %vm7221_vm5, %v4903_v32, %v4904_v10  ;;  %v4592_v1 = vrot.slane %v4590_v45, 4  ;;  %v4136_v7 = vunpack.c.l.b16 %v4082_v0 }
 0x20c   : > { %4422 = vmatmul.bf16.gmra.mxu3 %v6763_v34  ;;  %v4595_v34 = vrot.slane %v4593_v15, 5  ;;  %v4957_v38 = vunpack.c.l.b16 %v4905_v46  ;;  %v4910_v30 = vrot.slane %v4908_v49, 4  ;;  %v8557_v46 = vld [vmem:[%s7011_s29 + $0xb8] sm:$0xf] }
 0x20d   : > { %5048 = vmatmul.bf16.gmra.mxu1 %v4968_v29  ;;  %v8524_v23 = vadd.f32 %v3977_v44, %v3636_v24  ;;  %v4578_v44 = vsel %vm7048_vm2, %v4573_v60, %v8507_v31  ;;  %v4137_v29 = vunpack.c.l.b16 %v4085_v27  ;;  %v4607_v27 = vrot.slane %v4606_v17, 4 }
 0x20e   : > { %v3184_v16 = vpop.f32.mrf.mxu2  ;;  %v4707_v56 = vunpack.c.l.b16 %v4578_v44  ;;  %v4596_v28 = vor.u32 %v4595_v34, %v4592_v1  ;;  %v4611_v44 = vrot.slane %v4609_v39, 5 }
 0x20f   : > { %v3409_v52 = vpop.f32.mrf.mxu3  ;;  %v3185_v35 = vadd.f32 %v3184_v16, %v8218_v59  ;;  %v4902_v59 = vsel %vm7221_vm5, %v6529_v43, %v4901_v50  ;;  %v4088_v50 = vrot.slane %v6943_v36, 5  ;;  %v4149_v4 = vpack.c.b16 %v4137_v29, %v4136_v7  ;;  %v6764_v43 = vld [vmem:[%s7011_s29 + $0x9c] sm:$0xff]  ;;  %v6522_v16 = vld [vmem:[%s7011_s29 + $0xa8] sm:$0xe] }
 0x210   : > { %v3605_v8 = vpop.f32.mrf.mxu0  ;;  %v4956_v48 = vunpack.c.l.b16 %v4902_v59  ;;  %v4720_v32 = vpack.c.b16 %v4708_v51, %v4707_v56  ;;  %v6461_v59 = vld [vmem:[%s7011_s29 + $0xb4] sm:$0xf]  ;;  %v4612_v12 = vsel %vm7048_vm2, %v4607_v27, %v4611_v44  ;;  %v4912_v56 = vsel %vm7221_vm5, %v4910_v30, %v4911_v58 }
 0x211   : > { %v3443_v54 = vadd.f32 %v3409_v52, %v3185_v35  ;;  %v4090_v25 = vrot.slane %v4088_v50, 4  ;;  %v6944_v35 = vld [vmem:[%s7011_s29 + $0xa4] sm:$0x1]  ;;  %v4614_v51 = vshrl.u32 %v6461_v59, 16  ;;  %v4627_v36 = vshrl.u32 %v8557_v46, 16 }
 0x212   : > { %v3982_v18 = vpop.f32.mrf.mxu1  ;;  %v4969_v10 = vpack.c.b16 %v4957_v38, %v4956_v48  ;;  %v4091_v0 = vrot.slane %v6944_v35, 5  ;;  %v4617_v48 = vshll.u32 %v6461_v59, 16  ;;  %v4623_v38 = vshll.u32 %v8557_v46, 16 }
 0x213   : > { %v3637_v31 = vadd.f32 %v3603_v47, %v3443_v54  ;;  %v6530_v54 = vrot.slane %v6522_v16, 9  ;;  %v4710_v17 = vunpack.c.l.b16 %v4612_v12  ;;  %v8591_v12 = vld [vmem:[%s7011_s29 + $0xc4] sm:$0xf] }
 0x215   : > { %v8548_v47 = vadd.f32 %v3980_v33, %v3637_v31  ;;  %v4597_v33 = vrot.slane %v4596_v28, 4  ;;  %v4089_v31 = vsel %vm7221_vm5, %v6298_v40, %v4088_v50 }
 0x216   : > { %v3186_v24 = vpop.f32.mrf.mxu2 }
 0x217   : > { %v3411_v57 = vpop.f32.mrf.mxu3  ;;  %v3187_v60 = vadd.f32 %v3186_v24, %v8239_v22  ;;  %v4602_v7 = vsel %vm7048_vm2, %v4597_v33, %v8542_v20  ;;  %v6945_v33 = vld [vmem:[%s7011_s29 + $0xac] sm:$0xf] }
 0x218   : > { %v3608_v45 = vpop.f32.mrf.mxu0  ;;  %v4709_v21 = vunpack.c.l.b16 %v4602_v7  ;;  %v4095_v27 = vrot.slane %v6945_v33, 5 }
 0x219   : > { %v3444_v52 = vadd.f32 %v3411_v57, %v3187_v60  ;;  %v4959_v60 = vunpack.c.l.b16 %v4912_v56 }
 0x21a   : > { %v3985_v15 = vpop.f32.mrf.mxu1  ;;  %v4097_v7 = vrot.slane %v4095_v27, 4 }
 0x21b   : > { %v3638_v22 = vadd.f32 %v3605_v8, %v3444_v52  ;;  %4233 = vmatmul.bf16.gmra.mxu2 %v4149_v4  ;;  %4804 = vmatmul.bf16.gmra.mxu0 %v4720_v32  ;;  %v4092_v8 = vsel %vm7221_vm5, %v4090_v25, %v4091_v0  ;;  %v4616_v4 = vrot.slane %v4614_v51, 4  ;;  %v4629_v32 = vrot.slane %v4627_v36, 4 }
 0x21c   : > { %4427 = vmatmul.bf16.gmra.mxu3 %v6764_v43  ;;  %v4139_v57 = vunpack.c.l.b16 %v4092_v8  ;;  %v4619_v43 = vrot.slane %v4617_v48, 5  ;;  %v4721_v0 = vpack.c.b16 %v4710_v17, %v4709_v21  ;;  %v4647_v17 = vshll.u32 %v8591_v12, 16 }
 0x21d   : > { %5053 = vmatmul.bf16.gmra.mxu1 %v4969_v10  ;;  %v8559_v1 = vadd.f32 %v3982_v18, %v3638_v22  ;;  %v4909_v18 = vsel %vm7221_vm5, %v6530_v54, %v4908_v49  ;;  %v8577_v49 = vrot.slane %v4623_v38, 5  ;;  %v6463_v10 = vld [vmem:[%s7011_s29 + $0xbc] sm:$0x1]  ;;  %v6291_v22 = vld [vmem:[%s7011_s29 + $0xa8] sm:$0xe] }
 0x21e   : > { %v3189_v34 = vpop.f32.mrf.mxu2  ;;  %v4958_v39 = vunpack.c.l.b16 %v4909_v18  ;;  %v4620_v54 = vor.u32 %v4619_v43, %v4616_v4  ;;  %v4633_v58 = vshll.u32 %v6463_v10, 16  ;;  %v6299_v8 = vrot.slane %v6291_v22, 9  ;;  %v6946_v18 = vld [vmem:[%s7011_s29 + $0xb0] sm:$0x1]  ;;  %v6466_v22 = vld [vmem:[%s7011_s29 + $0xc8] sm:$0x1] }
 0x21f   : > { %v3414_v6 = vpop.f32.mrf.mxu3  ;;  %v3190_v29 = vadd.f32 %v3189_v34, %v8258_v61  ;;  %v4138_v61 = vunpack.c.l.b16 %v4089_v31  ;;  %v4630_v30 = vor.u32 %v4629_v32, %v8577_v49  ;;  %v4098_v56 = vrot.slane %v6946_v18, 5 }
 0x220   : > { %v3610_v20 = vpop.f32.mrf.mxu0  ;;  %v4970_v44 = vpack.c.b16 %v4959_v60, %v4958_v39  ;;  %v4621_v51 = vrot.slane %v4620_v54, 4  ;;  %v4635_v38 = vrot.slane %v4633_v58, 5  ;;  %v4651_v39 = vshrl.u32 %v8591_v12, 16 }
 0x221   : > { %v3445_v50 = vadd.f32 %v3414_v6, %v3190_v29  ;;  %v4150_v35 = vpack.c.b16 %v4139_v57, %v4138_v61  ;;  %v4915_v6 = vrot.slane %v8557_v46, 5  ;;  %v6464_v29 = vld [vmem:[%s7011_s29 + $0xc0] sm:$0xf]  ;;  %v4631_v48 = vrot.slane %v4630_v30, 4 }
 0x222   : > { %v3987_v24 = vpop.f32.mrf.mxu1  ;;  %v4918_v61 = vrot.slane %v6463_v10, 5  ;;  %v4638_v21 = vshrl.u32 %v6464_v29, 16  ;;  %v4096_v4 = vsel %vm7221_vm5, %v6299_v8, %v4095_v27  ;;  %v4099_v43 = vsel %vm7221_vm5, %v4097_v7, %v4098_v56  ;;  %v6292_v7 = vld [vmem:[%s7011_s29 + $0xb4] sm:$0xe] }
 0x223   : > { %v3639_v28 = vadd.f32 %v3608_v45, %v3445_v50  ;;  %v6765_v45 = vld [vmem:[%s7011_s29 + $0xa8] sm:$0xff]  ;;  %v4917_v50 = vrot.slane %v4915_v6, 4  ;;  %v4653_v33 = vrot.slane %v4651_v39, 4  ;;  %v4140_v27 = vunpack.c.l.b16 %v4096_v4 }
 0x224   : > { %v4657_v56 = vshll.u32 %v6466_v22, 16 }
 0x225   : > { %v8580_v40 = vadd.f32 %v3985_v15, %v3639_v28  ;;  %v4641_v28 = vshll.u32 %v6464_v29, 16 }
 0x226   : > { %v3191_v16 = vpop.f32.mrf.mxu2 }
 0x227   : > { %v3416_v52 = vpop.f32.mrf.mxu3  ;;  %v3192_v25 = vadd.f32 %v3191_v16, %v8283_v55  ;;  %v6523_v55 = vld [vmem:[%s7011_s29 + $0xb4] sm:$0xe] }
 0x228   : > { %v3613_v15 = vpop.f32.mrf.mxu0  ;;  %v6531_v36 = vrot.slane %v6523_v55, 9 }
 0x229   : > { %v3446_v59 = vadd.f32 %v3416_v52, %v3192_v25  ;;  %v4636_v52 = vsel %vm7048_vm2, %v4631_v48, %v4635_v38  ;;  %v4919_v25 = vsel %vm7221_vm5, %v4917_v50, %v4918_v61  ;;  %v6766_v38 = vld [vmem:[%s7011_s29 + $0xb4] sm:$0xff] }
 0x22a   : > { %v3990_v34 = vpop.f32.mrf.mxu1  ;;  %v4712_v30 = vunpack.c.l.b16 %v4636_v52  ;;  %v4925_v52 = vrot.slane %v6466_v22, 5 }
 0x22b   : > { %v3640_v31 = vadd.f32 %v3610_v20, %v3446_v59  ;;  %4238 = vmatmul.bf16.gmra.mxu2 %v4150_v35  ;;  %4809 = vmatmul.bf16.gmra.mxu0 %v4721_v0  ;;  %v4640_v35 = vrot.slane %v4638_v21, 4  ;;  %v8612_v0 = vrot.slane %v4647_v17, 5  ;;  %v4961_v59 = vunpack.c.l.b16 %v4919_v25  ;;  %v8627_v25 = vld [vmem:[%s7011_s29 + $0xd0] sm:$0xf] }
 0x22c   : > { %4432 = vmatmul.bf16.gmra.mxu3 %v6765_v45  ;;  %v4643_v45 = vrot.slane %v4641_v28, 5  ;;  %v6300_v17 = vrot.slane %v6292_v7, 9 }
 0x22d   : > { %5058 = vmatmul.bf16.gmra.mxu1 %v4970_v44  ;;  %v8594_v46 = vadd.f32 %v3987_v24, %v3640_v31  ;;  %v4626_v24 = vsel %vm7048_vm2, %v4621_v51, %v8577_v49  ;;  %v4141_v44 = vunpack.c.l.b16 %v4099_v43  ;;  %v4654_v18 = vor.u32 %v4653_v33, %v8612_v0 }
 0x22e   : > { %v3194_v20 = vpop.f32.mrf.mxu2  ;;  %v4711_v54 = vunpack.c.l.b16 %v4626_v24  ;;  %v4644_v29 = vor.u32 %v4643_v45, %v4640_v35  ;;  %v4659_v24 = vrot.slane %v4657_v56, 5 }
 0x22f   : > { %v3419_v57 = vpop.f32.mrf.mxu3  ;;  %v3195_v60 = vadd.f32 %v3194_v20, %v8297_v9  ;;  %v4916_v9 = vsel %vm7221_vm5, %v6531_v36, %v4915_v6  ;;  %v6947_v6 = vld [vmem:[%s7011_s29 + $0xb8] sm:$0xf]  ;;  %v4151_v48 = vpack.c.b16 %v4141_v44, %v4140_v27  ;;  %v4922_v36 = vrot.slane %v8591_v12, 5  ;;  %v6524_v20 = vld [vmem:[%s7011_s29 + $0xc0] sm:$0xe] }
 0x230   : > { %v3615_v10 = vpop.f32.mrf.mxu0  ;;  %v4960_v58 = vunpack.c.l.b16 %v4916_v9  ;;  %v4102_v55 = vrot.slane %v6947_v6, 5  ;;  %v4722_v50 = vpack.c.b16 %v4712_v30, %v4711_v54  ;;  %v4655_v43 = vrot.slane %v4654_v18, 4  ;;  %v6467_v9 = vld [vmem:[%s7011_s29 + $0xcc] sm:$0xf] }
 0x231   : > { %v3447_v32 = vadd.f32 %v3419_v57, %v3195_v60  ;;  %v6948_v60 = vld [vmem:[%s7011_s29 + $0xbc] sm:$0x1]  ;;  %v4924_v12 = vrot.slane %v4922_v36, 4  ;;  %v4662_v30 = vshrl.u32 %v6467_v9, 16  ;;  %v4675_v6 = vshrl.u32 %v8627_v25, 16 }
 0x232   : > { %v3992_v16 = vpop.f32.mrf.mxu1  ;;  %v4971_v61 = vpack.c.b16 %v4961_v59, %v4960_v58  ;;  %v4104_v39 = vrot.slane %v4102_v55, 4  ;;  %v4105_v4 = vrot.slane %v6948_v60, 5  ;;  %v4660_v22 = vsel %vm7048_vm2, %v4655_v43, %v4659_v24 }
 0x233   : > { %v3641_v49 = vadd.f32 %v3613_v15, %v3447_v32  ;;  %v6532_v32 = vrot.slane %v6524_v20, 9  ;;  %v4926_v54 = vsel %vm7221_vm5, %v4924_v12, %v4925_v52  ;;  %v4665_v58 = vshll.u32 %v6467_v9, 16 }
 0x234   : > { %v4671_v59 = vshll.u32 %v8627_v25, 16  ;;  %v4714_v18 = vunpack.c.l.b16 %v4660_v22 }
 0x235   : > { %v8618_v15 = vadd.f32 %v3990_v34, %v3641_v49  ;;  %v4645_v34 = vrot.slane %v4644_v29, 4  ;;  %v4103_v49 = vsel %vm7221_vm5, %v6300_v17, %v4102_v55 }
 0x236   : > { %v3196_v31 = vpop.f32.mrf.mxu2 }
 0x237   : > { %v3421_v8 = vpop.f32.mrf.mxu3  ;;  %v3197_v51 = vadd.f32 %v3196_v31, %v8320_v41  ;;  %v4650_v27 = vsel %vm7048_vm2, %v4645_v34, %v8612_v0  ;;  %v6949_v34 = vld [vmem:[%s7011_s29 + $0xc4] sm:$0xf] }
 0x238   : > { %v3618_v21 = vpop.f32.mrf.mxu0  ;;  %v4713_v7 = vunpack.c.l.b16 %v4650_v27  ;;  %v4109_v43 = vrot.slane %v6949_v34, 5 }
 0x239   : > { %v3448_v57 = vadd.f32 %v3421_v8, %v3197_v51  ;;  %v4963_v51 = vunpack.c.l.b16 %v4926_v54 }
 0x23a   : > { %v3995_v28 = vpop.f32.mrf.mxu1  ;;  %v4111_v27 = vrot.slane %v4109_v43, 4 }
 0x23b   : > { %v3642_v41 = vadd.f32 %v3615_v10, %v3448_v57  ;;  %4243 = vmatmul.bf16.gmra.mxu2 %v4151_v48  ;;  %4814 = vmatmul.bf16.gmra.mxu0 %v4722_v50  ;;  %v4106_v10 = vsel %vm7221_vm5, %v4104_v39, %v4105_v4  ;;  %v4664_v48 = vrot.slane %v4662_v30, 4  ;;  %v4677_v50 = vrot.slane %v4675_v6, 4  ;;  %v6767_v4 = vld [vmem:[%s7011_s29 + $0xc0] sm:$0xff] }
 0x23c   : > { %4437 = vmatmul.bf16.gmra.mxu3 %v6766_v38  ;;  %v4143_v8 = vunpack.c.l.b16 %v4106_v10  ;;  %v4667_v38 = vrot.slane %v4665_v58, 5 }
 0x23d   : > { %5063 = vmatmul.bf16.gmra.mxu1 %v4971_v61  ;;  %v8629_v35 = vadd.f32 %v3992_v16, %v3642_v41  ;;  %v4923_v16 = vsel %vm7221_vm5, %v6532_v32, %v4922_v36  ;;  %v4673_v36 = vrot.slane %v4671_v59, 5  ;;  %v6469_v61 = vld [vmem:[%s7011_s29 + $0xd4] sm:$0x1]  ;;  %v6293_v41 = vld [vmem:[%s7011_s29 + $0xc0] sm:$0xe] }
 0x23e   : > { %v3199_v45 = vpop.f32.mrf.mxu2  ;;  %v4962_v56 = vunpack.c.l.b16 %v4923_v16  ;;  %v4668_v32 = vor.u32 %v4667_v38, %v4664_v48  ;;  %v4681_v52 = vshll.u32 %v6469_v61, 16  ;;  %v4932_v6 = vrot.slane %v6469_v61, 5 }
 0x23f   : > { %v3424_v33 = vpop.f32.mrf.mxu3  ;;  %v3200_v44 = vadd.f32 %v3199_v45, %v8335_v53  ;;  %v4142_v53 = vunpack.c.l.b16 %v4103_v49  ;;  %v4678_v12 = vor.u32 %v4677_v50, %v4673_v36  ;;  %v6525_v49 = vld [vmem:[%s7011_s29 + $0xcc] sm:$0xe] }
 0x240   : > { %v3620_v0 = vpop.f32.mrf.mxu0  ;;  %v4972_v24 = vpack.c.b16 %v4963_v51, %v4962_v56  ;;  %v4669_v16 = vrot.slane %v4668_v32, 4  ;;  %v4683_v30 = vrot.slane %v4681_v52, 5  ;;  %v6533_v58 = vrot.slane %v6525_v49, 9 }
 0x241   : > { %v3449_v55 = vadd.f32 %v3424_v33, %v3200_v44  ;;  %v4152_v60 = vpack.c.b16 %v4143_v8, %v4142_v53  ;;  %v4929_v33 = vrot.slane %v8627_v25, 5  ;;  %v6950_v44 = vld [vmem:[%s7011_s29 + $0xc8] sm:$0x1]  ;;  %v4679_v54 = vrot.slane %v4678_v12, 4 }
 0x242   : > { %v3997_v31 = vpop.f32.mrf.mxu1  ;;  %v4112_v22 = vrot.slane %v6950_v44, 5 }
 0x243   : > { %v3643_v29 = vadd.f32 %v3618_v21, %v3449_v55  ;;  %v4723_v21 = vpack.c.b16 %v4714_v18, %v4713_v7  ;;  %v4931_v59 = vrot.slane %v4929_v33, 4  ;;  %v4930_v48 = vsel %vm7221_vm5, %v6533_v58, %v4929_v33 }
 0x244   : > { %v4113_v7 = vsel %vm7221_vm5, %v4111_v27, %v4112_v22 }
 0x245   : > { %v8648_v20 = vadd.f32 %v3995_v28, %v3643_v29  ;;  %v4674_v29 = vsel %vm7048_vm2, %v4669_v16, %v4673_v36  ;;  %v4145_v61 = vunpack.c.l.b16 %v4113_v7 }
 0x246   : > { %v3201_v57 = vpop.f32.mrf.mxu2 }
 0x247   : > { %v3426_v17 = vpop.f32.mrf.mxu3  ;;  %v3202_v39 = vadd.f32 %v3201_v57, %v8359_v11  ;;  %v6301_v11 = vrot.slane %v6293_v41, 9  ;;  %v4715_v57 = vunpack.c.l.b16 %v4674_v29 }
 0x248   : > { %v3623_v45 = vpop.f32.mrf.mxu0 }
 0x249   : > { %v3450_v9 = vadd.f32 %v3426_v17, %v3202_v39  ;;  %v4110_v8 = vsel %vm7221_vm5, %v6301_v11, %v4109_v43  ;;  %v4964_v39 = vunpack.c.l.b16 %v4930_v48  ;;  %v6768_v43 = vld [vmem:[%s7011_s29 + $0xcc] sm:$0xff]  ;;  %s5285_s29 = sshll.u32 %s8728_s13, 1 }
 0x24a   : > { %v4000_v28 = vpop.f32.mrf.mxu1  ;;  %v4144_v50 = vunpack.c.l.b16 %v4110_v8  ;;  %s181_s23 = scalar_lea.vmem %s8722_s3, %s5285_s29 }
 0x24b   : > { %v3644_v10 = vadd.f32 %v3620_v0, %v3450_v9  ;;  %4248 = vmatmul.bf16.gmra.mxu2 %v4152_v60  ;;  %4819 = vmatmul.bf16.gmra.mxu0 %v4723_v21 }
 0x24c   : > { %4442 = vmatmul.bf16.gmra.mxu3 %v6767_v4  ;;  %v4153_v34 = vpack.c.b16 %v4145_v61, %v4144_v50 }
 0x24d   : > { %5068 = vmatmul.bf16.gmra.mxu1 %v4972_v24  ;;  %v8657_v55 = vadd.f32 %v3997_v31, %v3644_v10  ;;  %v4684_v31 = vsel %vm7048_vm2, %v4679_v54, %v4683_v30 }
 0x24e   : > { %v3204_v53 = vpop.f32.mrf.mxu2  ;;  %v4716_v17 = vunpack.c.l.b16 %v4684_v31 }
 0x24f   : > { %v3429_v25 = vpop.f32.mrf.mxu3  ;;  %v3205_v0 = vadd.f32 %v3204_v53, %v8372_v19  ;;  %v4933_v19 = vsel %vm7221_vm5, %v4931_v59, %v4932_v6 }
 0x250   : > { %v3625_v56 = vpop.f32.mrf.mxu0  ;;  %v4965_v36 = vunpack.c.l.b16 %v4933_v19  ;;  %v4724_v24 = vpack.c.b16 %v4716_v17, %v4715_v57 }
 0x251   : > { %v3451_v18 = vadd.f32 %v3429_v25, %v3205_v0 }
 0x252   : > { %v4002_v51 = vpop.f32.mrf.mxu1  ;;  %v4973_v41 = vpack.c.b16 %v4965_v36, %v4964_v39 }
 0x253   : > { %v3645_v38 = vadd.f32 %v3623_v45, %v3451_v18 }
 0x255   : > { %v8672_v60 = vadd.f32 %v4000_v28, %v3645_v38 }
 0x256   : > { %v3206_v4 = vpop.f32.mrf.mxu2 }
 0x257   : > { %v3431_v21 = vpop.f32.mrf.mxu3  ;;  %v3207_v42 = vadd.f32 %v3206_v4, %v8390_v26 }
 0x258   : > { %v3628_v62 = vpop.f32.mrf.mxu0 }
 0x259   : > { %v3452_v32 = vadd.f32 %v3431_v21, %v3207_v42 }
 0x25a   : > { %v4005_v12 = vpop.f32.mrf.mxu1 }
 0x25b   : > { %v3646_v52 = vadd.f32 %v3625_v56, %v3452_v32  ;;  %4253 = vmatmul.bf16.gmra.mxu2 %v4153_v34  ;;  %4824 = vmatmul.bf16.gmra.mxu0 %v4724_v24 }
 0x25c   : > { %4447 = vmatmul.bf16.gmra.mxu3 %v6768_v43 }
 0x25d   : > { %5073 = vmatmul.bf16.gmra.mxu1 %v4973_v41  ;;  %v8676_v9 = vadd.f32 %v4002_v51, %v3646_v52 }
 0x25e   : > { %v3209_v45 = vpop.f32.mrf.mxu2 }
 0x25f   : > { %v3434_v28 = vpop.f32.mrf.mxu3  ;;  %v3210_v33 = vadd.f32 %v3209_v45, %v8406_v14 }
 0x260   : > { %v3630_v26 = vpop.f32.mrf.mxu0 }
 0x261   : > { %v3453_v49 = vadd.f32 %v3434_v28, %v3210_v33 }
 0x262   : > { %v4007_v10 = vpop.f32.mrf.mxu1 }
 0x263   : > { %v3647_v11 = vadd.f32 %v3628_v62, %v3453_v49 }
 0x265   : > { %v8679_v27 = vadd.f32 %v4005_v12, %v3647_v11 }
 0x266   : > { %v3211_v44 = vpop.f32.mrf.mxu2 }
 0x267   : > { %v3436_v22 = vpop.f32.mrf.mxu3  ;;  %v3212_v16 = vadd.f32 %v3211_v44, %v8427_v63 }
 0x268   : > { %v4790_v30 = vpop.f32.mrf.mxu0 }
 0x269   : > { %v3454_v54 = vadd.f32 %v3436_v22, %v3212_v16 }
 0x26a   : > { %v5039_v58 = vpop.f32.mrf.mxu1 }
 0x26b   : > { %v3648_v59 = vadd.f32 %v3630_v26, %v3454_v54 }
 0x26d   : > { %v8682_v6 = vadd.f32 %v4007_v10, %v3648_v59 }
 0x26e   : > { %v4219_v53 = vpop.f32.mrf.mxu2 }
 0x26f   : > { %v4413_v25 = vpop.f32.mrf.mxu3  ;;  %v4259_v14 = vadd.f32 %v4219_v53, %v8483_v13 }
 0x270   : > { %v4792_v0 = vpop.f32.mrf.mxu0 }
 0x271   : > { %v4453_v7 = vadd.f32 %v4413_v25, %v4259_v14 }
 0x272   : > { %v5041_v8 = vpop.f32.mrf.mxu1 }
 0x273   : > { %v4830_v29 = vadd.f32 %v4790_v30, %v4453_v7 }
 0x275   : > { %v5079_v19 = vadd.f32 %v5039_v58, %v4830_v29 }
 0x276   : > { %v4221_v18 = vpop.f32.mrf.mxu2 }
 0x277   : > { %v4415_v56 = vpop.f32.mrf.mxu3  ;;  %v4260_v51 = vadd.f32 %v4221_v18, %v8489_v37  ;;  %v5117_v61 = vmul.f32 %v5079_v19, %v5079_v19 }
 0x278   : > { %v4795_v31 = vpop.f32.mrf.mxu0 }
 0x279   : > { %v4454_v63 = vadd.f32 %v4415_v56, %v4260_v51 }
 0x27a   : > { %v5044_v48 = vpop.f32.mrf.mxu1 }
 0x27b   : > { %v4831_v38 = vadd.f32 %v4792_v0, %v4454_v63 }
 0x27d   : > { %v5080_v50 = vadd.f32 %v5041_v8, %v4831_v38 }
 0x27e   : > { %v4224_v57 = vpop.f32.mrf.mxu2 }
 0x27f   : > { %v4418_v17 = vpop.f32.mrf.mxu3  ;;  %v5095_v39 = vadd.f32 %v5080_v50, %v5079_v19  ;;  %v5118_v13 = vmul.f32 %v5080_v50, %v5080_v50  ;;  %v6836_v36 = vpack.c.bf16 %v5080_v50, %v5079_v19  ;;  %v4261_v4 = vadd.f32 %v4224_v57, %v8510_v5 }
 0x280   : > { %v4797_v34 = vpop.f32.mrf.mxu0 }
 0x281   : > { %v5133_v21 = vadd.f32 %v5118_v13, %v5117_v61  ;;  %6880 = vst [vmem:[%s8180_s26 + $0x40] sm:$0xff] %v6836_v36   ;;  %v4455_v42 = vadd.f32 %v4418_v17, %v4261_v4 }
 0x282   : > { %v5046_v43 = vpop.f32.mrf.mxu1 }
 0x283   : > { %v4832_v37 = vadd.f32 %v4795_v31, %v4455_v42 }
 0x285   : > { %v5081_v24 = vadd.f32 %v5044_v48, %v4832_v37 }
 0x286   : > { %v4226_v41 = vpop.f32.mrf.mxu2 }
 0x287   : > { %v4420_v32 = vpop.f32.mrf.mxu3  ;;  %v5096_v62 = vadd.f32 %v5095_v39, %v5081_v24  ;;  %v5119_v12 = vmul.f32 %v5081_v24, %v5081_v24  ;;  %v4262_v52 = vadd.f32 %v4226_v41, %v8524_v23 }
 0x288   : > { %v4800_v33 = vpop.f32.mrf.mxu0 }
 0x289   : > { %v5134_v45 = vadd.f32 %v5133_v21, %v5119_v12  ;;  %v4456_v28 = vadd.f32 %v4420_v32, %v4262_v52 }
 0x28a   : > { %v5049_v49 = vpop.f32.mrf.mxu1 }
 0x28b   : > { %v4833_v26 = vadd.f32 %v4797_v34, %v4456_v28 }
 0x28d   : > { %v5082_v5 = vadd.f32 %v5046_v43, %v4833_v26 }
 0x28e   : > { %v4229_v10 = vpop.f32.mrf.mxu2 }
 0x28f   : > { %v4423_v11 = vpop.f32.mrf.mxu3  ;;  %v5097_v44 = vadd.f32 %v5096_v62, %v5082_v5  ;;  %v5120_v22 = vmul.f32 %v5082_v5, %v5082_v5  ;;  %v6841_v16 = vpack.c.bf16 %v5082_v5, %v5081_v24  ;;  %v4263_v54 = vadd.f32 %v4229_v10, %v8548_v47 }
 0x290   : > { %v4802_v59 = vpop.f32.mrf.mxu0 }
 0x291   : > { %v5135_v30 = vadd.f32 %v5134_v45, %v5120_v22  ;;  %6881 = vst [vmem:[%s8180_s26 + $0x48] sm:$0xff] %v6841_v16   ;;  %v4457_v58 = vadd.f32 %v4423_v11, %v4263_v54 }
 0x292   : > { %v5051_v53 = vpop.f32.mrf.mxu1 }
 0x293   : > { %v4834_v25 = vadd.f32 %v4800_v33, %v4457_v58 }
 0x295   : > { %v5083_v23 = vadd.f32 %v5049_v49, %v4834_v25 }
 0x296   : > { %v4231_v14 = vpop.f32.mrf.mxu2 }
 0x297   : > { %v4425_v0 = vpop.f32.mrf.mxu3  ;;  %v5098_v8 = vadd.f32 %v5097_v44, %v5083_v23  ;;  %v5121_v7 = vmul.f32 %v5083_v23, %v5083_v23  ;;  %v4264_v29 = vadd.f32 %v4231_v14, %v8559_v1 }
 0x298   : > { %v4805_v51 = vpop.f32.mrf.mxu0 }
 0x299   : > { %v5136_v18 = vadd.f32 %v5135_v30, %v5121_v7  ;;  %v4458_v56 = vadd.f32 %v4425_v0, %v4264_v29 }
 0x29a   : > { %v5054_v63 = vpop.f32.mrf.mxu1 }
 0x29b   : > { %v4835_v31 = vadd.f32 %v4802_v59, %v4458_v56 }
 0x29d   : > { %v5084_v47 = vadd.f32 %v5051_v53, %v4835_v31 }
 0x29e   : > { %v4234_v48 = vpop.f32.mrf.mxu2 }
 0x29f   : > { %v4428_v19 = vpop.f32.mrf.mxu3  ;;  %v5099_v38 = vadd.f32 %v5098_v8, %v5084_v47  ;;  %v5122_v50 = vmul.f32 %v5084_v47, %v5084_v47  ;;  %v6846_v61 = vpack.c.bf16 %v5084_v47, %v5083_v23  ;;  %v4265_v57 = vadd.f32 %v4234_v48, %v8580_v40 }
 0x2a0   : > { %v4807_v13 = vpop.f32.mrf.mxu0 }
 0x2a1   : > { %v5137_v17 = vadd.f32 %v5136_v18, %v5122_v50  ;;  %6882 = vst [vmem:[%s8180_s26 + $0x50] sm:$0xff] %v6846_v61   ;;  %v4459_v39 = vadd.f32 %v4428_v19, %v4265_v57 }
 0x2a2   : > { %v5056_v36 = vpop.f32.mrf.mxu1 }
 0x2a3   : > { %v4836_v4 = vadd.f32 %v4805_v51, %v4459_v39 }
 0x2a5   : > { %v5085_v1 = vadd.f32 %v5054_v63, %v4836_v4 }
 0x2a6   : > { %v4236_v21 = vpop.f32.mrf.mxu2 }
 0x2a7   : > { %v4430_v42 = vpop.f32.mrf.mxu3  ;;  %v5100_v34 = vadd.f32 %v5099_v38, %v5085_v1  ;;  %v5123_v43 = vmul.f32 %v5085_v1, %v5085_v1  ;;  %v4266_v37 = vadd.f32 %v4236_v21, %v8594_v46 }
 0x2a8   : > { %v4810_v32 = vpop.f32.mrf.mxu0 }
 0x2a9   : > { %v5138_v24 = vadd.f32 %v5137_v17, %v5123_v43  ;;  %v4460_v41 = vadd.f32 %v4430_v42, %v4266_v37 }
 0x2aa   : > { %v5059_v62 = vpop.f32.mrf.mxu1 }
 0x2ab   : > { %v4837_v12 = vadd.f32 %v4807_v13, %v4460_v41 }
 0x2ad   : > { %v5086_v40 = vadd.f32 %v5056_v36, %v4837_v12 }
 0x2ae   : > { %v4239_v52 = vpop.f32.mrf.mxu2 }
 0x2af   : > { %v4433_v45 = vpop.f32.mrf.mxu3  ;;  %v5101_v28 = vadd.f32 %v5100_v34, %v5086_v40  ;;  %v5124_v33 = vmul.f32 %v5086_v40, %v5086_v40  ;;  %v6851_v49 = vpack.c.bf16 %v5086_v40, %v5085_v1  ;;  %v4267_v26 = vadd.f32 %v4239_v52, %v8618_v15 }
 0x2b0   : > { %v4812_v11 = vpop.f32.mrf.mxu0 }
 0x2b1   : > { %v5139_v5 = vadd.f32 %v5138_v24, %v5124_v33  ;;  %6883 = vst [vmem:[%s8180_s26 + $0x58] sm:$0xff] %v6851_v49   ;;  %v4461_v10 = vadd.f32 %v4433_v45, %v4267_v26 }
 0x2b2   : > { %v5061_v44 = vpop.f32.mrf.mxu1 }
 0x2b3   : > { %v4838_v22 = vadd.f32 %v4810_v32, %v4461_v10 }
 0x2b5   : > { %v5087_v46 = vadd.f32 %v5059_v62, %v4838_v22 }
 0x2b6   : > { %v4241_v16 = vpop.f32.mrf.mxu2 }
 0x2b7   : > { %v4435_v54 = vpop.f32.mrf.mxu3  ;;  %v5102_v30 = vadd.f32 %v5101_v28, %v5087_v46  ;;  %v5125_v58 = vmul.f32 %v5087_v46, %v5087_v46  ;;  %v4268_v59 = vadd.f32 %v4241_v16, %v8629_v35 }
 0x2b8   : > { %v4815_v23 = vpop.f32.mrf.mxu0 }
 0x2b9   : > { %v5140_v53 = vadd.f32 %v5139_v5, %v5125_v58  ;;  %v4462_v25 = vadd.f32 %v4435_v54, %v4268_v59 }
 0x2ba   : > { %v5064_v14 = vpop.f32.mrf.mxu1 }
 0x2bb   : > { %v4839_v0 = vadd.f32 %v4812_v11, %v4462_v25 }
 0x2bd   : > { %v5088_v15 = vadd.f32 %v5061_v44, %v4839_v0 }
 0x2be   : > { %v4244_v8 = vpop.f32.mrf.mxu2 }
 0x2bf   : > { %v4438_v7 = vpop.f32.mrf.mxu3  ;;  %v5103_v29 = vadd.f32 %v5102_v30, %v5088_v15  ;;  %v5126_v18 = vmul.f32 %v5088_v15, %v5088_v15  ;;  %v6856_v56 = vpack.c.bf16 %v5088_v15, %v5087_v46  ;;  %v4269_v51 = vadd.f32 %v4244_v8, %v8648_v20 }
 0x2c0   : > { %v4817_v47 = vpop.f32.mrf.mxu0 }
 0x2c1   : > { %v5141_v63 = vadd.f32 %v5140_v53, %v5126_v18  ;;  %6884 = vst [vmem:[%s8180_s26 + $0x60] sm:$0xff] %v6856_v56   ;;  %v4463_v31 = vadd.f32 %v4438_v7, %v4269_v51 }
 0x2c2   : > { %v5066_v19 = vpop.f32.mrf.mxu1 }
 0x2c3   : > { %v4840_v48 = vadd.f32 %v4815_v23, %v4463_v31 }
 0x2c5   : > { %v5089_v35 = vadd.f32 %v5064_v14, %v4840_v48  ;;  %v2614_v14 = vrot.slane %v8450_v3, 4 }
 0x2c6   : > { %v4246_v38 = vpop.f32.mrf.mxu2 }
 0x2c7   : > { %v4440_v50 = vpop.f32.mrf.mxu3  ;;  %v5104_v61 = vadd.f32 %v5103_v29, %v5089_v35  ;;  %v5127_v57 = vmul.f32 %v5089_v35, %v5089_v35  ;;  %v4270_v17 = vadd.f32 %v4246_v38, %v8657_v55  ;;  %v2652_v29 = vrot.slane %v8454_v2, 4 }
 0x2c8   : > { %v4820_v4 = vpop.f32.mrf.mxu0  ;;  %v2615_v51 = vadd.f32 %v2614_v14, %v8450_v3 }
 0x2c9   : > { %v5142_v39 = vadd.f32 %v5141_v63, %v5127_v57  ;;  %v4464_v13 = vadd.f32 %v4440_v50, %v4270_v17 }
 0x2ca   : > { %v5069_v20 = vpop.f32.mrf.mxu1 }
 0x2cb   : > { %v4841_v36 = vadd.f32 %v4817_v47, %v4464_v13  ;;  %v2653_v47 = vadd.f32 %v2652_v29, %v8454_v2 }
 0x2cd   : > { %v5090_v1 = vadd.f32 %v5066_v19, %v4841_v36  ;;  %v2616_v19 = vrot.slane %v2615_v51, 2 }
 0x2ce   : > { %v4249_v21 = vpop.f32.mrf.mxu2 }
 0x2cf   : > { %v4443_v42 = vpop.f32.mrf.mxu3  ;;  %v5105_v34 = vadd.f32 %v5104_v61, %v5090_v1  ;;  %v5128_v43 = vmul.f32 %v5090_v1, %v5090_v1  ;;  %v6861_v37 = vpack.c.bf16 %v5090_v1, %v5089_v35  ;;  %v4271_v24 = vadd.f32 %v4249_v21, %v8672_v60 }
 0x2d0   : > { %v4822_v40 = vpop.f32.mrf.mxu0  ;;  %v2654_v61 = vrot.slane %v2653_v47, 2  ;;  %v2617_v17 = vadd.f32 %v2616_v19, %v2615_v51 }
 0x2d1   : > { %v5143_v41 = vadd.f32 %v5142_v39, %v5128_v43  ;;  %6885 = vst [vmem:[%s8180_s26 + $0x68] sm:$0xff] %v6861_v37   ;;  %v4465_v32 = vadd.f32 %v4443_v42, %v4271_v24 }
 0x2d2   : > { %v5071_v49 = vpop.f32.mrf.mxu1  ;;  %v2655_v36 = vadd.f32 %v2654_v61, %v2653_v47  ;;  %v2618_v1 = vrot.slane %v2617_v17, 1 }
 0x2d3   : > { %v4842_v62 = vadd.f32 %v4820_v4, %v4465_v32 }
 0x2d4   : > { %v2656_v2 = vrot.slane %v2655_v36, 1  ;;  %v2619_v43 = vadd.f32 %v2618_v1, %v2617_v17 }
 0x2d5   : > { %v5091_v12 = vadd.f32 %v5069_v20, %v4842_v62 }
 0x2d6   : > { %v4251_v55 = vpop.f32.mrf.mxu2 }
 0x2d7   : > { %v4445_v52 = vpop.f32.mrf.mxu3  ;;  %v5106_v45 = vadd.f32 %v5105_v34, %v5091_v12  ;;  %v5129_v28 = vmul.f32 %v5091_v12, %v5091_v12  ;;  %v4272_v33 = vadd.f32 %v4251_v55, %v8676_v9 }
 0x2d8   : > { %v4825_v30 = vpop.f32.mrf.mxu0 }
 0x2d9   : > { %v5144_v26 = vadd.f32 %v5143_v41, %v5129_v28  ;;  %v4466_v5 = vadd.f32 %v4445_v52, %v4272_v33  ;;  %v2657_v41 = vadd.f32 %v2656_v2, %v2655_v36 }
 0x2da   : > { %v5074_v53 = vpop.f32.mrf.mxu1 }
 0x2db   : > { %v4843_v10 = vadd.f32 %v4822_v40, %v4466_v5 }
 0x2dd   : > { %v5092_v11 = vadd.f32 %v5071_v49, %v4843_v10 }
 0x2de   : > { %v4254_v44 = vpop.f32.mrf.mxu2 }
 0x2df   : > { %v4448_v60 = vpop.f32.mrf.mxu3  ;;  %v5107_v22 = vadd.f32 %v5106_v45, %v5092_v11  ;;  %v5130_v46 = vmul.f32 %v5092_v11, %v5092_v11  ;;  %v6866_v16 = vpack.c.bf16 %v5092_v11, %v5091_v12  ;;  %v4273_v54 = vadd.f32 %v4254_v44, %v8679_v27 }
 0x2e0   : > { %v4827_v56 = vpop.f32.mrf.mxu0 }
 0x2e1   : > { %v5145_v58 = vadd.f32 %v5144_v26, %v5130_v46  ;;  %6886 = vst [vmem:[%s8180_s26 + $0x70] sm:$0xff] %v6866_v16   ;;  %v4467_v59 = vadd.f32 %v4448_v60, %v4273_v54 }
 0x2e2   : > { %v5076_v31 = vpop.f32.mrf.mxu1 }
 0x2e3   : > { %v4844_v25 = vadd.f32 %v4825_v30, %v4467_v59 }
 0x2e5   : > { %v5093_v23 = vadd.f32 %v5074_v53, %v4844_v25 }
 0x2e6   : > { %v4256_v9 = vpop.f32.mrf.mxu2 }
 0x2e7   : > { %v5108_v0 = vadd.f32 %v5107_v22, %v5093_v23  ;;  %v5131_v15 = vmul.f32 %v5093_v23, %v5093_v23  ;;  %v4274_v8 = vadd.f32 %v4256_v9, %v8682_v6  ;;  %v4450_v7 = vpop.f32.mrf.mxu3 }
 0x2e9   : > { %v5146_v18 = vadd.f32 %v5145_v58, %v5131_v15  ;;  %v4468_v27 = vadd.f32 %v4450_v7, %v4274_v8 }
 0x2eb   : > { %v4845_v63 = vadd.f32 %v4827_v56, %v4468_v27 }
 0x2ed   : > { %v5094_v48 = vadd.f32 %v5076_v31, %v4845_v63 }
 0x2ef   : > { %v5109_v35 = vadd.f32 %v5108_v0, %v5094_v48  ;;  %v5132_v38 = vmul.f32 %v5094_v48, %v5094_v48  ;;  %v6871_v50 = vpack.c.bf16 %v5094_v48, %v5093_v23 }
 0x2f1   : > { %v5110_v6 = vrot.slane %v5109_v35, 4  ;;  %v5147_v57 = vadd.f32 %v5146_v18, %v5132_v38  ;;  %6887 = vst [vmem:[%s8180_s26 + $0x78] sm:$0xff] %v6871_v50  }
 0x2f3   : > { %v5111_v39 = vadd.f32 %v5110_v6, %v5109_v35  ;;  %v5148_v13 = vrot.slane %v5147_v57, 4 }
 0x2f5   : > { %v5112_v4 = vrot.slane %v5111_v39, 2  ;;  %v5149_v3 = vadd.f32 %v5148_v13, %v5147_v57 }
 0x2f7   : > { %v5113_v20 = vadd.f32 %v5112_v4, %v5111_v39  ;;  %v5150_v21 = vrot.slane %v5149_v3, 2 }
 0x2f9   : > { %v5114_v42 = vrot.slane %v5113_v20, 1  ;;  %v5151_v34 = vadd.f32 %v5150_v21, %v5149_v3 }
 0x2fb   : > { %v5115_v37 = vadd.f32 %v5114_v42, %v5113_v20  ;;  %v5152_v24 = vrot.slane %v5151_v34, 1 }
 0x2fd   : > { %v5116_v32 = vadd.f32 %v5115_v37, %v2619_v43  ;;  %v5153_v62 = vadd.f32 %v5152_v24, %v5151_v34 }
 0x2ff   : > { %v5154_v12 = vadd.f32 %v5153_v62, %v2657_v41 }
 0x301   : > { %v5189_v40 = vsel %vm5188_vm6, %v5116_v32, %v5154_v12 }
 0x302   : > { %5190 = vst [vmem:[%s181_s23] sm:$0x3] %v5189_v40 }
 0x303 PF: > { %s14_s12 = sadd.s32 1, %s6957_s12  }
 0x304   : > { %p11_p4 = scmp.ge.s32.totalorder %s14_s12, 4  }
 0x306   :  { %13 = sbr.rel (!%p11_p4) target bundleno = 1 (0x1), region = 84 }

// kernel: residual_block_forward.4
= control target key start
LH: loop header
LB: loop body
LE: loop exit
PB: predicated region body
PF: predicated region fallthrough
CT: control target
= control target key end

     0   :  { %s7654_s18 = smov 0   ;;  %s10023_s0 = inlined_call_operand.vmem [shape: bf16[2,16,16,128], index: 0, kind: input, shape index: {}]   ;;  %s10024_s1 = inlined_call_operand.vmem [shape: f32[1,1,128], index: 1, kind: input, shape index: {}]   ;;  %s10025_s2 = inlined_call_operand.vmem [shape: f32[1,1,128], index: 2, kind: input, shape index: {}]   ;;  %s10026_s3 = inlined_call_operand.vmem [shape: bf16[9,128,128], index: 3, kind: input, shape index: {}]   ;;  %s10027_s4 = inlined_call_operand.vmem [shape: bf16[2,16,16,128], index: 4, kind: output, shape index: {0}]   ;;  %s10028_s5 = inlined_call_operand.vmem [shape: f32[2,2,128], index: 5, kind: output, shape index: {1}]  }
   0x1 LB: > { %s6088_s19 = sadd.s32 4294967295, %s7621_s18   ;;  %p6092_p0 = scmp.ge.s32.totalorder %s7621_s18, 1  ;;  %s7621_s18 = sphi %s7654_s18, %s16_s18  }
   0x2   : > { %p190_p1 = scmp.lt.s32.totalorder %s7621_s18, 3 }
   0x4   : > { %p191_p2 = pnand %p6092_p0, %p190_p1 }
   0x6   : > { %194 = sbr.rel (%p191_p2) target bundleno = 797 (0x31d), region = 36 }
   0xb   : > { %v7205_v0 = vld [vmem:[%s10026_s3 + $0x38] sm:$0xff]  ;;  %p222_p3 = scmp.lt.s32.totalorder %s6088_s19, 1  ;;  %v7204_v2 = vld [vmem:[%s10026_s3 + $0x30] sm:$0xff]  ;;  %vm412_vm0 = vcmask 1040384   ;;  %vm413_vm1 = vsmask.f32 256 }
   0xc   : > { %v7213_v1 = vld [vmem:[%s10026_s3 + $0x78] sm:$0xff]  ;;  %7564 = vmatpush.bf16.msra.mxu3 %v7205_v0  ;;  %v7212_v3 = vld [vmem:[%s10026_s3 + $0x70] sm:$0xff]  ;;  %1471 = vmatpush.bf16.msra.mxu1 %v7205_v0  ;;  %v7203_v4 = vld [vmem:[%s10026_s3 + $0x28] sm:$0xff]  ;;  %vm469_vm2 = vsmask.f32 7938  ;;  %v10037_v13 = vmov 0 }
   0xd   : > { %7556 = vmatpush.bf16.msra.mxu2 %v7213_v1  ;;  %s10113_s19 = smov (!%p222_p3, %s6088_s19), 1  ;;  %1326 = vmatpush.bf16.msra.mxu0 %v7213_v1  ;;  %v7690_v5 = vld [vmem:[%s10024_s1] ss:$0 sm:$0xff]  ;;  %v7211_v6 = vld [vmem:[%s10026_s3 + $0x68] sm:$0xff]  ;;  %vm7698_vm3 = vmand %vm412_vm0, %vm413_vm1  ;;  %v7623_v14 = vmov 0   ;;  %vm880_vm5 = vcmask 1043456  }
   0xe   : > { %s7188_s30 = sshll.u32 %s10113_s19, 7  ;;  %v7705_v11 = vld [vmem:[%s10025_s2] ss:$0 sm:$0xff]  ;;  %v427_v12 = vld [vmem:[#allocation2 + $0x30] sm:$0x1]  ;;  %vm7709_vm4 = vmand %vm412_vm0, %vm469_vm2  ;;  %vm1544_vm12 = vcmask 1042432  }
   0xf   : > { %s7685_s8 = scalar_lea.vmem %s10023_s0, %s7188_s30  ;;  %v10038_v13 = vsel %vm7709_vm4, 4294967295, %v10037_v13  ;;  %405 = vst [vmem:[#allocation2] sm:$0xf] %v7623_v14  ;;  %v7202_v15 = vld [vmem:[%s10026_s3 + $0x20] sm:$0xff]  ;;  %v428_v16 = vsel %vm7698_vm3, 0, %v427_v12  ;;  %v7201_v35 = vld [vmem:[%s10026_s3 + $0x18] sm:$0xff]  ;;  %vm7802_vm8 = vmand %vm880_vm5, %vm469_vm2  ;;  %s9317_s28 = scalar_lea.vmem %s10027_s4, %s7188_s30 }
  0x10   : > { %7565 = vmatpush.bf16.msra.mxu3 %v7204_v2  ;;  %v7528_v7 = vld [vmem:[%s7685_s8 + $0x18] sm:$0xff]   ;;  %1472 = vmatpush.bf16.msra.mxu1 %v7204_v2  ;;  %10039 = vst [vmem:[#allocation3_spill] sm:$0xff] %v10038_v13  ;;  %v7529_v18 = vld [vmem:[%s7685_s8 + $0x20] sm:$0xff]   ;;  %v7737_v34 = vld [vmem:[#allocation2 + $0xc] sm:$0x1]  ;;  %vm1545_vm13 = vcmask 1046532  }
  0x11   : > { %7557 = vmatpush.bf16.msra.mxu2 %v7212_v3  ;;  %1327 = vmatpush.bf16.msra.mxu0 %v7212_v3  ;;  %v7396_v9 = vunpack.c.l.bf16 %v7528_v7  ;;  %v7397_v10 = vunpack.c.h.bf16 %v7528_v7  ;;  %v483_v17 = vld [vmem:[#allocation2 + $0x38] sm:$0x1]  ;;  %406 = vst [vmem:[#allocation2 + $0x4] sm:$0xf] %v7623_v14  ;;  %v7400_v22 = vunpack.c.l.bf16 %v7529_v18  ;;  %v7723_v23 = vld [vmem:[#allocation2 + $0x3c] sm:$0x1]  ;;  %v7401_v26 = vunpack.c.h.bf16 %v7529_v18  ;;  %vm8083_vm14 = vmor %vm1544_vm12, %vm1545_vm13 }
  0x12   : > { %429 = vst [vmem:[#allocation2 + $0x30] sm:$0x1] %v428_v16  ;;  %v484_v21 = vsel %vm7709_vm4, 0, %v483_v17  ;;  %v7383_v24 = vld [vmem:[%s7685_s8] sm:$0xff]   ;;  %v431_v27 = vsel %vm7698_vm3, 0, %v7723_v23  ;;  %v7209_v36 = vld [vmem:[%s10026_s3 + $0x58] sm:$0xff] }
  0x13   : > { %v311_v19 = vmul.f32 %v7690_v5, %v7396_v9  ;;  %v312_v20 = vmul.f32 %v7690_v5, %v7397_v10  ;;  %v7210_v25 = vld [vmem:[%s10026_s3 + $0x60] sm:$0xff]  ;;  %485 = vst [vmem:[#allocation2 + $0x38] sm:$0x1] %v484_v21  ;;  %v7384_v29 = vunpack.c.l.bf16 %v7383_v24  ;;  %v7385_v30 = vunpack.c.h.bf16 %v7383_v24  ;;  %v7756_v45 = vld [vmem:[%s7685_s8 + $0x28] sm:$0xff]   ;;  %v7200_v59 = vld [vmem:[%s10026_s3 + $0x10] sm:$0xff]  ;;  %s6097_s10 = sshll.u32 %s10113_s19, 1 }
  0x14   : > { %7566 = vmatpush.bf16.msra.mxu3 %v7203_v4  ;;  %v7732_v28 = vld [vmem:[#allocation2 + $0x44] sm:$0x1]  ;;  %1473 = vmatpush.bf16.msra.mxu1 %v7203_v4  ;;  %407 = vst [vmem:[#allocation2 + $0x8] sm:$0x1] %v7623_v14  ;;  %v313_v33 = vmul.f32 %v7690_v5, %v7400_v22  ;;  %v314_v37 = vmul.f32 %v7690_v5, %v7401_v26  ;;  %v419_v44 = vsel %vm7698_vm3, 0, %v7737_v34  ;;  %v7404_v57 = vunpack.c.l.bf16 %v7756_v45  ;;  %v7208_v0 = vld [vmem:[%s10026_s3 + $0x50] sm:$0xff]  ;;  %s235_s12 = scalar_lea.vmem %s10028_s5, %s6097_s10 }
  0x15   : > { %7558 = vmatpush.bf16.msra.mxu2 %v7211_v6  ;;  %1328 = vmatpush.bf16.msra.mxu0 %v7211_v6  ;;  %v347_v31 = vadd.f32 %v7705_v11, %v311_v19  ;;  %v348_v32 = vadd.f32 %v7705_v11, %v312_v20  ;;  %409 = vst [vmem:[#allocation2 + $0xcc] sm:$0xf] %v7623_v14  ;;  %v487_v38 = vsel %vm7709_vm4, 0, %v7732_v28  ;;  %vm557_vm6 = vsmask.f32 4368  ;;  %v7199_v16 = vld [vmem:[%s10026_s3 + $0x8] sm:$0xff] }
  0x16   : > { %v305_v39 = vmul.f32 %v7690_v5, %v7384_v29  ;;  %v306_v40 = vmul.f32 %v7690_v5, %v7385_v30  ;;  %410 = vst [vmem:[#allocation2 + $0xd0] sm:$0xf] %v7623_v14  ;;  %v349_v43 = vadd.f32 %v7705_v11, %v313_v33  ;;  %v415_v46 = vld [vmem:[#allocation2] sm:$0x1]  ;;  %v350_v47 = vadd.f32 %v7705_v11, %v314_v37  ;;  %vm7783_vm7 = vmor %vm413_vm1, %vm557_vm6  ;;  %v7207_v17 = vld [vmem:[%s10026_s3 + $0x48] sm:$0xff] }
  0x17   : > { %v379_v41 = vmax.f32 %v347_v31, 0.0  ;;  %v380_v42 = vmax.f32 %v348_v32, 0.0  ;;  %411 = vst [vmem:[#allocation2 + $0xd4] sm:$0x1] %v7623_v14  ;;  %v416_v52 = vsel %vm7698_vm3, 0, %v415_v46  ;;  %v7405_v58 = vunpack.c.h.bf16 %v7756_v45  ;;  %v7198_v34 = vld [vmem:[%s10026_s3] sm:$0xff] }
  0x18   : > { %7567 = vmatpush.bf16.msra.mxu3 %v7202_v15  ;;  %v7760_v48 = vadd.f32 %v7705_v11, %v305_v39  ;;  %v7763_v49 = vadd.f32 %v7705_v11, %v306_v40  ;;  %1474 = vmatpush.bf16.msra.mxu1 %v7202_v15  ;;  %v7767_v53 = vld [vmem:[#allocation2 + $0x4] sm:$0xf]  ;;  %v381_v54 = vmax.f32 %v349_v43, 0.0  ;;  %417 = vst [vmem:[#allocation2] sm:$0x1] %v416_v52  ;;  %v382_v6 = vmax.f32 %v350_v47, 0.0 }
  0x19   : > { %7559 = vmatpush.bf16.msra.mxu2 %v7210_v25  ;;  %1329 = vmatpush.bf16.msra.mxu0 %v7210_v25  ;;  %v531_v50 = vpack.c.bf16 %v379_v41, %v379_v41  ;;  %v532_v51 = vpack.c.bf16 %v380_v42, %v380_v42  ;;  %v1047_v55 = vshll.u32 %v7767_v53, 16  ;;  %v1051_v56 = vshrl.u32 %v7767_v53, 16  ;;  %v903_v1 = vld [vmem:[#allocation2 + $0x30] sm:$0xf]  ;;  %432 = vst [vmem:[#allocation2 + $0x3c] sm:$0x1] %v431_v27 }
  0x1a   : > { %v533_v7 = vpack.c.bf16 %v381_v54, %v381_v54  ;;  %v315_v15 = vmul.f32 %v7690_v5, %v7404_v57  ;;  %v907_v19 = vld [vmem:[#allocation2 + $0x38] sm:$0x1]  ;;  %vm1034_vm9 = vsmask.f32 3328  ;;  %vm1035_vm10 = vsmask.f32 7440 }
  0x1b   : > { %v611_v60 = vshrl.u32 %v531_v50, 16  ;;  %v614_v61 = vshll.u32 %v531_v50, 16  ;;  %v619_v62 = vshrl.u32 %v532_v51, 16  ;;  %v622_v63 = vshll.u32 %v532_v51, 16  ;;  %v471_v2 = vld [vmem:[#allocation2 + $0x8] sm:$0x1]  ;;  %vm7877_vm11 = vmor %vm1034_vm9, %vm1035_vm10 }
  0x1c   : > { %7568 = vmatpush.bf16.msra.mxu3 %v7201_v35  ;;  %v7779_v3 = vrot.slane %v1047_v55, 5  ;;  %v1053_v4 = vrot.slane %v1051_v56, 4  ;;  %1475 = vmatpush.bf16.msra.mxu1 %v7201_v35  ;;  %v472_v14 = vsel %vm7709_vm4, 0, %v471_v2  ;;  %v534_v21 = vpack.c.bf16 %v382_v6, %v382_v6  ;;  %488 = vst [vmem:[#allocation2 + $0x44] sm:$0x1] %v487_v38  ;;  %v7206_v39 = vld [vmem:[%s10026_s3 + $0x40] sm:$0xff] }
  0x1d   : > { %7560 = vmatpush.bf16.msra.mxu2 %v7209_v36  ;;  %1330 = vmatpush.bf16.msra.mxu0 %v7209_v36  ;;  %v613_v10 = vrot.slane %v611_v60, 7  ;;  %v621_v12 = vrot.slane %v619_v62, 7  ;;  %473 = vst [vmem:[#allocation2 + $0x8] sm:$0x1] %v472_v14  ;;  %v628_v22 = vshrl.u32 %v533_v7, 16  ;;  %v631_v23 = vshll.u32 %v533_v7, 16 }
  0x1e   : > { %v1054_v20 = vor.u32 %v1053_v4, %v7779_v3  ;;  %v474_v29 = vld [vmem:[#allocation2 + $0x14] sm:$0x1]  ;;  %v636_v32 = vshrl.u32 %v534_v21, 16  ;;  %v639_v33 = vshll.u32 %v534_v21, 16  ;;  %420 = vst [vmem:[#allocation2 + $0xc] sm:$0x1] %v419_v44  ;;  %v316_v56 = vmul.f32 %v7690_v5, %v7405_v58 }
  0x1f   : > { %v616_v24 = vor.u32 %v614_v61, %v613_v10  ;;  %v617_v25 = vrot.slane %v613_v10, 4  ;;  %v624_v26 = vor.u32 %v622_v63, %v621_v12  ;;  %v626_v27 = vrot.slane %v621_v12, 4  ;;  %v994_v37 = vld [vmem:[#allocation2] sm:$0xf]  ;;  %v7834_v50 = vld [vmem:[%s7685_s8 + $0x8] sm:$0xff]   ;;  %v7221_v51 = vld [vmem:[%s10026_s3 + $0xb8] sm:$0xff] }
  0x20   : > { %7569 = vmatpush.bf16.msra.mxu3 %v7200_v59  ;;  %v7811_v30 = vrot.slane %v1054_v20, 4  ;;  %v630_v31 = vrot.slane %v628_v22, 7  ;;  %1476 = vmatpush.bf16.msra.mxu1 %v7200_v59  ;;  %v373_v38 = vmax.f32 %v7760_v48, 0.0  ;;  %v1038_v40 = vshrl.u32 %v994_v37, 16  ;;  %v7237_v55 = vld [vmem:[%s10026_s3 + $0xf8] sm:$0xff] }
  0x21   : > { %7561 = vmatpush.bf16.msra.mxu2 %v7208_v0  ;;  %1331 = vmatpush.bf16.msra.mxu0 %v7208_v0  ;;  %v625_v35 = vsel %vm7783_vm7, %v617_v25, %v624_v26  ;;  %v904_v28 = vsel %vm7802_vm8, %v616_v24, %v903_v1  ;;  %v908_v36 = vsel %vm7698_vm3, %v626_v27, %v907_v19  ;;  %v1041_v41 = vshll.u32 %v994_v37, 16  ;;  %v7245_v6 = vld [vmem:[%s10026_s3 + $0x138] sm:$0xff]  ;;  %v7220_v19 = vld [vmem:[%s10026_s3 + $0xb0] sm:$0xff] }
  0x22   : > { %905 = vst [vmem:[#allocation2 + $0x30] sm:$0xf] %v904_v28  ;;  %v633_v42 = vor.u32 %v631_v23, %v630_v31  ;;  %v634_v43 = vrot.slane %v630_v31, 4  ;;  %v638_v44 = vrot.slane %v636_v32, 7  ;;  %v374_v46 = vmax.f32 %v7763_v49, 0.0  ;;  %v7253_v7 = vld [vmem:[%s10026_s3 + $0x178] sm:$0xff] }
  0x23   : > { %906 = vst [vmem:[#allocation2 + $0x34] sm:$0xf] %v625_v35  ;;  %v475_v47 = vsel %vm7709_vm4, 0, %v474_v29  ;;  %v525_v48 = vpack.c.bf16 %v373_v38, %v373_v38  ;;  %v1040_v52 = vrot.slane %v1038_v40, 4  ;;  %v1043_v54 = vrot.slane %v1041_v41, 5  ;;  %v7236_v37 = vld [vmem:[%s10026_s3 + $0xf0] sm:$0xff] }
  0x24   : > { %7570 = vmatpush.bf16.msra.mxu3 %v7199_v16  ;;  %909 = vst [vmem:[#allocation2 + $0x38] sm:$0x1] %v908_v36  ;;  %v910_v49 = vld [vmem:[#allocation2 + $0x3c] sm:$0xf]  ;;  %v7846_v57 = vadd.f32 %v7705_v11, %v315_v15  ;;  %1477 = vmatpush.bf16.msra.mxu1 %v7199_v16  ;;  %v7848_v59 = vld [vmem:[#allocation2 + $0x8] sm:$0x1]  ;;  %v641_v60 = vor.u32 %v639_v33, %v638_v44  ;;  %v7388_v22 = vunpack.c.l.bf16 %v7834_v50  ;;  %v7389_v29 = vunpack.c.h.bf16 %v7834_v50 }
  0x25   : > { %7562 = vmatpush.bf16.msra.mxu2 %v7207_v17  ;;  %1332 = vmatpush.bf16.msra.mxu0 %v7207_v17  ;;  %v643_v61 = vrot.slane %v638_v44, 4  ;;  %v911_v62 = vsel %vm7802_vm8, %v633_v42, %v910_v49  ;;  %476 = vst [vmem:[#allocation2 + $0x14] sm:$0x1] %v475_v47  ;;  %v560_v63 = vshrl.u32 %v525_v48, 16  ;;  %v1044_v0 = vor.u32 %v1043_v54, %v1040_v52  ;;  %v914_v45 = vld [vmem:[#allocation2 + $0x44] sm:$0x1] }
  0x26   : > { %v1057_v1 = vshll.u32 %v7848_v59, 16  ;;  %912 = vst [vmem:[#allocation2 + $0x3c] sm:$0xf] %v911_v62  ;;  %v7853_v58 = vpack.c.bf16 %v374_v46, %v374_v46  ;;  %v563_v2 = vshll.u32 %v525_v48, 16  ;;  %v642_v4 = vsel %vm7783_vm7, %v634_v43, %v641_v60  ;;  %v7190_v17 = vld [vmem:[#allocation2] sm:$0xff]  ;;  %v7219_v44 = vld [vmem:[%s10026_s3 + $0xa8] sm:$0xff] }
  0x27   : > { %v915_v10 = vsel %vm7698_vm3, %v643_v61, %v914_v45  ;;  %v7865_v12 = vrot.slane %v560_v63, 7  ;;  %v7868_v14 = vadd.f32 %v7705_v11, %v316_v56  ;;  %v1045_v15 = vrot.slane %v1044_v0, 4  ;;  %913 = vst [vmem:[#allocation2 + $0x40] sm:$0xf] %v642_v4  ;;  %v882_v21 = vld [vmem:[#allocation2 + $0xc] sm:$0xf] }
  0x28   : > { %7571 = vmatpush.bf16.msra.mxu3 %v7198_v34  ;;  %v1059_v16 = vrot.slane %v1057_v1, 5  ;;  %v568_v20 = vshrl.u32 %v7853_v58, 16  ;;  %1478 = vmatpush.bf16.msra.mxu1 %v7198_v34  ;;  %916 = vst [vmem:[#allocation2 + $0x44] sm:$0x1] %v915_v10  ;;  %v571_v27 = vshll.u32 %v7853_v58, 16  ;;  %v7244_v47 = vld [vmem:[%s10026_s3 + $0x130] sm:$0xff] }
  0x29   : > { %7563 = vmatpush.bf16.msra.mxu2 %v7206_v39  ;;  %1333 = vmatpush.bf16.msra.mxu0 %v7206_v39  ;;  %v1002_v23 = vld [vmem:[#allocation2 + $0x30] sm:$0xf]  ;;  %v565_v25 = vor.u32 %v563_v2, %v7865_v12  ;;  %v566_v26 = vrot.slane %v7865_v12, 4  ;;  %v1050_v28 = vsel %vm7877_vm11, %v1045_v15, %v7779_v3  ;;  %v7235_v63 = vld [vmem:[%s10026_s3 + $0xe8] sm:$0xff]  ;;  %v383_v2 = vmax.f32 %v7846_v57, 0.0 }
  0x2a   : > { %v7194_v31 = vld [vmem:[#allocation2 + $0x30] sm:$0xff]  ;;  %v1134_v33 = vshrl.u32 %v1002_v23, 16  ;;  %v1137_v35 = vshll.u32 %v1002_v23, 16  ;;  %v1060_v36 = vsel %vm7877_vm11, %v7811_v30, %v1059_v16  ;;  %v1246_v40 = vunpack.c.l.b16 %v1050_v28  ;;  %v7243_v4 = vld [vmem:[%s10026_s3 + $0x128] sm:$0xff] }
  0x2b   : > { %v1003_v32 = vld [vmem:[#allocation2 + $0x34] sm:$0xf]  ;;  %v1030_v38 = vld [vmem:[#allocation2 + $0x38] sm:$0x1]  ;;  %v1247_v41 = vunpack.c.l.b16 %v1060_v36  ;;  %1499 = vmatmul.bf16.vlgmr.msra.gmra.mxu3 %v7194_v31  ;;  %1479 = vmatmul.bf16.vlgmr.msra.gmra.mxu1 %v7190_v17  ;;  %v570_v46 = vrot.slane %v568_v20, 7 }
  0x2c   : > { %1894 = vmatpush.bf16.msrb.mxu3 %v7237_v55  ;;  %v1143_v34 = vshll.u32 %v1003_v32, 16  ;;  %v1147_v39 = vshrl.u32 %v1003_v32, 16  ;;  %2522 = vmatpush.bf16.msrb.mxu1 %v7253_v7  ;;  %v7252_v3 = vld [vmem:[%s10026_s3 + $0x170] sm:$0xff]  ;;  %v1136_v42 = vrot.slane %v1134_v33, 4  ;;  %v1139_v43 = vrot.slane %v1137_v35, 5  ;;  %v7218_v32 = vld [vmem:[%s10026_s3 + $0xa0] sm:$0xff] }
  0x2d   : > { %1700 = vmatpush.bf16.msrb.mxu2 %v7221_v51  ;;  %2272 = vmatpush.bf16.msrb.mxu0 %v7245_v6  ;;  %v1153_v30 = vshll.u32 %v1030_v38, 16  ;;  %v1262_v52 = vpack.c.b16 %v1247_v41, %v1246_v40  ;;  %v1004_v54 = vld [vmem:[#allocation2 + $0x3c] sm:$0xf]  ;;  %v883_v55 = vsel %vm7802_vm8, %v565_v25, %v882_v21  ;;  %v886_v49 = vld [vmem:[#allocation2 + $0x14] sm:$0x1]  ;;  %v573_v45 = vor.u32 %v571_v27, %v570_v46  ;;  %v7251_v6 = vld [vmem:[%s10026_s3 + $0x168] sm:$0xff] }
  0x2e   : > { %v1145_v48 = vrot.slane %v1143_v34, 5  ;;  %v1149_v51 = vrot.slane %v1147_v39, 4  ;;  %v1140_v56 = vor.u32 %v1139_v43, %v1136_v42  ;;  %v1158_v61 = vshrl.u32 %v1004_v54, 16  ;;  %884 = vst [vmem:[#allocation2 + $0xc] sm:$0xf] %v883_v55  ;;  %v7195_v55 = vld [vmem:[#allocation2 + $0x3c] sm:$0xff] }
  0x2f   : > { %v1155_v60 = vrot.slane %v1153_v30, 5  ;;  %v1161_v62 = vshll.u32 %v1004_v54, 16  ;;  %1334 = vmatmul.bf16.vlgmr.msra.gmra.mxu0 %v1262_v52  ;;  %v1005_v1 = vld [vmem:[#allocation2 + $0x40] sm:$0xf]  ;;  %v575_v58 = vrot.slane %v570_v46, 4  ;;  %v574_v57 = vsel %vm7783_vm7, %v566_v26, %v573_v45 }
  0x30   : > { %1895 = vmatpush.bf16.msrb.mxu3 %v7236_v37  ;;  %v1150_v0 = vor.u32 %v1149_v51, %v1145_v48  ;;  %2523 = vmatpush.bf16.msrb.mxu1 %v7252_v3  ;;  %v1141_v7 = vrot.slane %v1140_v56, 4  ;;  %v1031_v10 = vld [vmem:[#allocation2 + $0x44] sm:$0x1]  ;;  %v1160_v12 = vrot.slane %v1158_v61, 4  ;;  %v1167_v16 = vshll.u32 %v1005_v1, 16 }
  0x31   : > { %1701 = vmatpush.bf16.msrb.mxu2 %v7220_v19  ;;  %v1163_v15 = vrot.slane %v1161_v62, 5  ;;  %2273 = vmatpush.bf16.msrb.mxu0 %v7244_v47  ;;  %v1171_v19 = vshrl.u32 %v1005_v1, 16  ;;  %v1177_v20 = vshll.u32 %v1031_v10, 16  ;;  %v433_v21 = vld [vmem:[#allocation2 + $0x48] sm:$0x1]  ;;  %v887_v31 = vsel %vm7698_vm3, %v575_v58, %v886_v49  ;;  %v7234_v37 = vld [vmem:[%s10026_s3 + $0xe0] sm:$0xff] }
  0x32   : > { %v1151_v17 = vrot.slane %v1150_v0, 4  ;;  %v1146_v23 = vsel %vm7877_vm11, %v1141_v7, %v1145_v48  ;;  %v1169_v27 = vrot.slane %v1167_v16, 5  ;;  %885 = vst [vmem:[#allocation2 + $0x10] sm:$0xf] %v574_v57  ;;  %v489_v33 = vld [vmem:[#allocation2 + $0x50] sm:$0x1]  ;;  %v535_v42 = vpack.c.bf16 %v383_v2, %v383_v2 }
  0x33   : > { %v1164_v25 = vor.u32 %v1163_v15, %v1160_v12  ;;  %v1254_v26 = vunpack.c.l.b16 %v1146_v23  ;;  %v1173_v28 = vrot.slane %v1171_v19, 4  ;;  %v1179_v36 = vrot.slane %v1177_v20, 5  ;;  %888 = vst [vmem:[#allocation2 + $0x14] sm:$0x1] %v887_v31 }
  0x34   : > { %v1156_v35 = vsel %vm7877_vm11, %v1151_v17, %v1155_v60  ;;  %1896 = vmatpush.bf16.msrb.mxu3 %v7235_v63  ;;  %2524 = vmatpush.bf16.msrb.mxu1 %v7251_v6  ;;  %v384_v39 = vmax.f32 %v7868_v14, 0.0  ;;  %v434_v40 = vsel %vm7698_vm3, 0, %v433_v21  ;;  %v490_v43 = vsel %vm7709_vm4, 0, %v489_v33  ;;  %v477_v17 = vld [vmem:[#allocation2 + $0x20] sm:$0x1] }
  0x35   : > { %1702 = vmatpush.bf16.msrb.mxu2 %v7219_v44  ;;  %v1255_v38 = vunpack.c.l.b16 %v1156_v35  ;;  %v1165_v34 = vrot.slane %v1164_v25, 4  ;;  %2274 = vmatpush.bf16.msrb.mxu0 %v7243_v4  ;;  %v1174_v41 = vor.u32 %v1173_v28, %v1169_v27  ;;  %v996_v3 = vld [vmem:[#allocation2 + $0xc] sm:$0xf]  ;;  %435 = vst [vmem:[#allocation2 + $0x48] sm:$0x1] %v434_v40  ;;  %v307_v30 = vmul.f32 %v7690_v5, %v7388_v22  ;;  %v7217_v22 = vld [vmem:[%s10026_s3 + $0x98] sm:$0xff] }
  0x36   : > { %v1062_v14 = vshrl.u32 %v996_v3, 16  ;;  %v1065_v47 = vshll.u32 %v996_v3, 16  ;;  %491 = vst [vmem:[#allocation2 + $0x50] sm:$0x1] %v490_v43  ;;  %v536_v52 = vpack.c.bf16 %v384_v39, %v384_v39  ;;  %v645_v54 = vshrl.u32 %v535_v42, 16  ;;  %v7531_v35 = vld [vmem:[%s7685_s8 + $0x30] sm:$0xff]  }
  0x37   : > { %v1266_v44 = vpack.c.b16 %v1255_v38, %v1254_v26  ;;  %v1170_v46 = vsel %vm7877_vm11, %v1165_v34, %v1169_v27  ;;  %v1175_v48 = vrot.slane %v1174_v41, 4  ;;  %v648_v60 = vshll.u32 %v535_v42, 16  ;;  %v436_v38 = vld [vmem:[#allocation2 + $0x54] sm:$0x1]  ;;  %v492_v34 = vld [vmem:[#allocation2 + $0x5c] sm:$0x1] }
  0x38   : > { %v7939_v51 = vunpack.c.l.b16 %v1170_v46  ;;  %1897 = vmatpush.bf16.msrb.mxu3 %v7234_v37  ;;  %v1064_v49 = vrot.slane %v1062_v14, 4  ;;  %v1067_v56 = vrot.slane %v1065_v47, 5  ;;  %v308_v61 = vmul.f32 %v7690_v5, %v7389_v29  ;;  %v421_v29 = vld [vmem:[#allocation2 + $0x18] sm:$0x1]  ;;  %v7527_v42 = vld [vmem:[%s7685_s8 + $0x10] sm:$0xff]  }
  0x39   : > { %1703 = vmatpush.bf16.msrb.mxu2 %v7218_v32  ;;  %v1180_v62 = vsel %vm7877_vm11, %v1175_v48, %v1179_v36  ;;  %v7949_v63 = vld [vmem:[#allocation2 + $0x10] sm:$0xf]  ;;  %v647_v1 = vrot.slane %v645_v54, 7  ;;  %v653_v45 = vshrl.u32 %v536_v52, 16  ;;  %v656_v58 = vshll.u32 %v536_v52, 16 }
  0x3a   : > { %1354 = vmatmul.bf16.vlgmr.msra.gmra.mxu2 %v1266_v44  ;;  %v7191_v0 = vld [vmem:[#allocation2 + $0xc] sm:$0xff]  ;;  %v7951_v2 = vunpack.c.l.b16 %v1180_v62  ;;  %v7953_v4 = vld [vmem:[#allocation2 + $0x14] sm:$0x1]  ;;  %v1068_v6 = vor.u32 %v1067_v56, %v1064_v49  ;;  %v1071_v7 = vshll.u32 %v7949_v63, 16  ;;  %v1075_v50 = vshrl.u32 %v7949_v63, 16  ;;  %v7233_v56 = vld [vmem:[%s10026_s3 + $0xd8] sm:$0xff] }
  0x3b   : > { %v1081_v10 = vshll.u32 %v7953_v4, 16  ;;  %v650_v12 = vor.u32 %v648_v60, %v647_v1  ;;  %v651_v15 = vrot.slane %v647_v1, 4  ;;  %v655_v16 = vrot.slane %v653_v45, 7  ;;  %1504 = vmatmul.bf16.gmra.mxu3 %v7195_v55  ;;  %1484 = vmatmul.bf16.gmra.mxu1 %v7191_v0  ;;  %v7242_v60 = vld [vmem:[%s10026_s3 + $0x120] sm:$0xff]  ;;  %v7216_v0 = vld [vmem:[%s10026_s3 + $0x90] sm:$0xff] }
  0x3c   : > { %v1267_v19 = vpack.c.b16 %v7951_v2, %v7939_v51  ;;  %v1069_v20 = vrot.slane %v1068_v6, 4  ;;  %v1073_v57 = vrot.slane %v1071_v7, 5  ;;  %v1077_v21 = vrot.slane %v1075_v50, 4  ;;  %v917_v23 = vld [vmem:[#allocation2 + $0x48] sm:$0xf]  ;;  %1898 = vmatpush.bf16.msrb.mxu3 %v7233_v56  ;;  %2275 = vmatpush.bf16.msrb.mxu0 %v7242_v60 }
  0x3d   : > { %1704 = vmatpush.bf16.msrb.mxu2 %v7217_v22  ;;  %v1083_v25 = vrot.slane %v1081_v10, 5  ;;  %v658_v27 = vor.u32 %v656_v58, %v655_v16  ;;  %v660_v31 = vrot.slane %v655_v16, 4  ;;  %v918_v32 = vsel %vm7802_vm8, %v650_v12, %v917_v23  ;;  %v921_v33 = vld [vmem:[#allocation2 + $0x50] sm:$0x1]  ;;  %v7250_v22 = vld [vmem:[%s10026_s3 + $0x160] sm:$0xff] }
  0x3e   : > { %v1074_v26 = vsel %vm7877_vm11, %v1069_v20, %v1073_v57  ;;  %v1078_v28 = vor.u32 %v1077_v21, %v1073_v57  ;;  %919 = vst [vmem:[#allocation2 + $0x48] sm:$0xf] %v918_v32  ;;  %v343_v36 = vadd.f32 %v7705_v11, %v307_v30  ;;  %v344_v37 = vadd.f32 %v7705_v11, %v308_v61  ;;  %v7232_v58 = vld [vmem:[%s10026_s3 + $0xd0] sm:$0xff]  ;;  %v7241_v20 = vld [vmem:[%s10026_s3 + $0x118] sm:$0xff]  ;;  %v424_v56 = vld [vmem:[#allocation2 + $0x24] sm:$0x1] }
  0x3f   : > { %v1248_v39 = vunpack.c.l.b16 %v1074_v26  ;;  %v659_v40 = vsel %vm7783_vm7, %v651_v15, %v658_v27  ;;  %v922_v41 = vsel %vm7698_vm3, %v660_v31, %v921_v33  ;;  %v422_v3 = vsel %vm7698_vm3, 0, %v421_v29  ;;  %2525 = vmatpush.bf16.msrb.mxu1 %v7250_v22  ;;  %v7249_v57 = vld [vmem:[%s10026_s3 + $0x158] sm:$0xff] }
  0x40   : > { %v1079_v43 = vrot.slane %v1078_v28, 4  ;;  %920 = vst [vmem:[#allocation2 + $0x4c] sm:$0xf] %v659_v40  ;;  %v375_v44 = vmax.f32 %v343_v36, 0.0  ;;  %v376_v46 = vmax.f32 %v344_v37, 0.0  ;;  %v478_v30 = vsel %vm7709_vm4, 0, %v477_v17  ;;  %1899 = vmatpush.bf16.msrb.mxu3 %v7232_v58  ;;  %2276 = vmatpush.bf16.msrb.mxu0 %v7241_v20 }
  0x41   : > { %923 = vst [vmem:[#allocation2 + $0x50] sm:$0x1] %v922_v41  ;;  %v7408_v14 = vunpack.c.l.bf16 %v7531_v35  ;;  %v7409_v47 = vunpack.c.h.bf16 %v7531_v35  ;;  %v437_v48 = vsel %vm7698_vm3, 0, %v436_v38  ;;  %v493_v52 = vsel %vm7709_vm4, 0, %v492_v34  ;;  %1705 = vmatpush.bf16.msrb.mxu2 %v7216_v0  ;;  %v480_v0 = vld [vmem:[#allocation2 + $0x2c] sm:$0x1] }
  0x42   : > { %v1084_v54 = vsel %vm7877_vm11, %v1079_v43, %v1083_v25  ;;  %423 = vst [vmem:[#allocation2 + $0x18] sm:$0x1] %v422_v3  ;;  %v527_v55 = vpack.c.bf16 %v375_v44, %v375_v44  ;;  %v528_v49 = vpack.c.bf16 %v376_v46, %v376_v46  ;;  %v7392_v61 = vunpack.c.l.bf16 %v7527_v42 }
  0x43   : > { %v1249_v62 = vunpack.c.l.b16 %v1084_v54  ;;  %479 = vst [vmem:[#allocation2 + $0x20] sm:$0x1] %v478_v30  ;;  %v317_v1 = vmul.f32 %v7690_v5, %v7408_v14  ;;  %v318_v45 = vmul.f32 %v7690_v5, %v7409_v47  ;;  %v7393_v6 = vunpack.c.h.bf16 %v7527_v42  ;;  %2526 = vmatpush.bf16.msrb.mxu1 %v7249_v57 }
  0x44   : > { %v577_v7 = vshrl.u32 %v527_v55, 16  ;;  %v580_v50 = vshll.u32 %v527_v55, 16  ;;  %v585_v29 = vshrl.u32 %v528_v49, 16  ;;  %v588_v10 = vshll.u32 %v528_v49, 16  ;;  %438 = vst [vmem:[#allocation2 + $0x54] sm:$0x1] %v437_v48 }
  0x45   : > { %v1263_v12 = vpack.c.b16 %v1249_v62, %v1248_v39  ;;  %v1006_v15 = vld [vmem:[#allocation2 + $0x48] sm:$0xf]  ;;  %v353_v16 = vadd.f32 %v7705_v11, %v317_v1  ;;  %v354_v17 = vadd.f32 %v7705_v11, %v318_v45  ;;  %494 = vst [vmem:[#allocation2 + $0x5c] sm:$0x1] %v493_v52  ;;  %v309_v26 = vmul.f32 %v7690_v5, %v7392_v61 }
  0x46   : > { %v1182_v21 = vshrl.u32 %v1006_v15, 16  ;;  %v1185_v23 = vshll.u32 %v1006_v15, 16  ;;  %v579_v25 = vrot.slane %v577_v7, 7  ;;  %v587_v27 = vrot.slane %v585_v29, 7  ;;  %v7215_v48 = vld [vmem:[%s10026_s3 + $0x88] sm:$0xff] }
  0x47   : > { %1339 = vmatmul.bf16.gmra.mxu0 %v1263_v12  ;;  %v7196_v31 = vld [vmem:[#allocation2 + $0x48] sm:$0xff]  ;;  %v385_v33 = vmax.f32 %v353_v16, 0.0  ;;  %v386_v35 = vmax.f32 %v354_v17, 0.0  ;;  %v310_v28 = vmul.f32 %v7690_v5, %v7393_v6  ;;  %1706 = vmatpush.bf16.msrb.mxu2 %v7215_v48  ;;  %v345_v61 = vadd.f32 %v7705_v11, %v309_v26 }
  0x48   : > { %v1007_v32 = vld [vmem:[#allocation2 + $0x4c] sm:$0xf]  ;;  %v1032_v36 = vld [vmem:[#allocation2 + $0x50] sm:$0x1]  ;;  %v1184_v37 = vrot.slane %v1182_v21, 4  ;;  %v1187_v38 = vrot.slane %v1185_v23, 5  ;;  %v582_v41 = vor.u32 %v580_v50, %v579_v25  ;;  %v590_v42 = vor.u32 %v588_v10, %v587_v27 }
  0x49   : > { %v1191_v34 = vshll.u32 %v1007_v32, 16  ;;  %v1195_v39 = vshrl.u32 %v1007_v32, 16  ;;  %v1201_v40 = vshll.u32 %v1032_v36, 16  ;;  %v583_v3 = vrot.slane %v579_v25, 4  ;;  %v889_v43 = vld [vmem:[#allocation2 + $0x18] sm:$0xf] }
  0x4a   : > { %1359 = vmatmul.bf16.gmra.mxu2 %v1267_v19  ;;  %v1188_v44 = vor.u32 %v1187_v38, %v1184_v37  ;;  %v592_v30 = vrot.slane %v587_v27, 4  ;;  %v893_v14 = vld [vmem:[#allocation2 + $0x20] sm:$0x1]  ;;  %v890_v19 = vsel %vm7802_vm8, %v582_v41, %v889_v43  ;;  %v537_v47 = vpack.c.bf16 %v385_v33, %v385_v33  ;;  %v7231_v37 = vld [vmem:[%s10026_s3 + $0xc8] sm:$0xff] }
  0x4b   : > { %v1193_v46 = vrot.slane %v1191_v34, 5  ;;  %v1197_v5 = vrot.slane %v1195_v39, 4  ;;  %v1203_v51 = vrot.slane %v1201_v40, 5  ;;  %v591_v2 = vsel %vm7783_vm7, %v583_v3, %v590_v42  ;;  %1509 = vmatmul.bf16.gmra.mxu3 %v7196_v31  ;;  %891 = vst [vmem:[#allocation2 + $0x18] sm:$0xf] %v890_v19  ;;  %v7240_v42 = vld [vmem:[%s10026_s3 + $0x110] sm:$0xff] }
  0x4c   : > { %v1189_v52 = vrot.slane %v1188_v44, 4  ;;  %v894_v55 = vsel %vm7698_vm3, %v592_v30, %v893_v14  ;;  %v538_v49 = vpack.c.bf16 %v386_v35, %v386_v35  ;;  %892 = vst [vmem:[#allocation2 + $0x1c] sm:$0xf] %v591_v2  ;;  %v662_v60 = vshrl.u32 %v537_v47, 16  ;;  %v924_v16 = vld [vmem:[#allocation2 + $0x54] sm:$0xf]  ;;  %1900 = vmatpush.bf16.msrb.mxu3 %v7231_v37  ;;  %2277 = vmatpush.bf16.msrb.mxu0 %v7240_v42 }
  0x4d   : > { %v1198_v54 = vor.u32 %v1197_v5, %v1193_v46  ;;  %v665_v22 = vshll.u32 %v537_v47, 16  ;;  %v346_v62 = vadd.f32 %v7705_v11, %v310_v28  ;;  %895 = vst [vmem:[#allocation2 + $0x20] sm:$0x1] %v894_v55  ;;  %v377_v29 = vmax.f32 %v345_v61, 0.0  ;;  %v928_v23 = vld [vmem:[#allocation2 + $0x5c] sm:$0x1] }
  0x4e   : > { %v1194_v1 = vsel %vm7877_vm11, %v1189_v52, %v1193_v46  ;;  %v670_v58 = vshrl.u32 %v538_v49, 16  ;;  %v673_v6 = vshll.u32 %v538_v49, 16  ;;  %v664_v50 = vrot.slane %v662_v60, 7  ;;  %v7230_v60 = vld [vmem:[%s10026_s3 + $0xc0] sm:$0xff] }
  0x4f   : > { %v1199_v45 = vrot.slane %v1198_v54, 4  ;;  %v1258_v7 = vunpack.c.l.b16 %v1194_v1  ;;  %v378_v10 = vmax.f32 %v346_v62, 0.0  ;;  %v425_v11 = vsel %vm7698_vm3, 0, %v424_v56  ;;  %v7248_v56 = vld [vmem:[%s10026_s3 + $0x150] sm:$0xff] }
  0x50   : > { %v672_v15 = vrot.slane %v670_v58, 7  ;;  %v481_v17 = vsel %vm7709_vm4, 0, %v480_v0  ;;  %v667_v57 = vor.u32 %v665_v22, %v664_v50  ;;  %v668_v21 = vrot.slane %v664_v50, 4  ;;  %426 = vst [vmem:[#allocation2 + $0x24] sm:$0x1] %v425_v11  ;;  %v7214_v0 = vld [vmem:[%s10026_s3 + $0x80] sm:$0xff]  ;;  %2527 = vmatpush.bf16.msrb.mxu1 %v7248_v56  ;;  %1901 = vmatpush.bf16.msrb.mxu3 %v7230_v60 }
  0x51   : > { %v1204_v12 = vsel %vm7877_vm11, %v1199_v45, %v1203_v51  ;;  %v529_v25 = vpack.c.bf16 %v377_v29, %v377_v29  ;;  %482 = vst [vmem:[#allocation2 + $0x2c] sm:$0x1] %v481_v17  ;;  %v530_v32 = vpack.c.bf16 %v378_v10, %v378_v10  ;;  %v7238_v50 = vld [vmem:[%s10026_s3 + $0x100] sm:$0xff]  ;;  %v1549_v29 = vrot.slane %v7767_v53, 5  ;;  %1707 = vmatpush.bf16.msrb.mxu2 %v7214_v0  ;;  %v1960_v56 = vld [vmem:[#allocation2 + $0x10] sm:$0xf] }
  0x52   : > { %v1259_v20 = vunpack.c.l.b16 %v1204_v12  ;;  %v675_v27 = vor.u32 %v673_v6, %v672_v15  ;;  %v677_v31 = vrot.slane %v672_v15, 4  ;;  %v998_v35 = vld [vmem:[#allocation2 + $0x18] sm:$0xf]  ;;  %v925_v26 = vsel %vm7802_vm8, %v667_v57, %v924_v16  ;;  %v7239_v6 = vld [vmem:[%s10026_s3 + $0x108] sm:$0xff]  ;;  %v1520_v16 = vld [vmem:[#allocation2] sm:$0xe] }
  0x53   : > { %v594_v28 = vshrl.u32 %v529_v25, 16  ;;  %v597_v36 = vshll.u32 %v529_v25, 16  ;;  %v8036_v38 = vld [vmem:[#allocation2 + $0x1c] sm:$0xf]  ;;  %v1086_v34 = vshrl.u32 %v998_v35, 16  ;;  %v1089_v39 = vshll.u32 %v998_v35, 16  ;;  %2278 = vmatpush.bf16.msrb.mxu0 %v7239_v6 }
  0x54   : > { %v1268_v33 = vpack.c.b16 %v1259_v20, %v1258_v7  ;;  %v7192_v40 = vld [vmem:[#allocation2 + $0x18] sm:$0xff]  ;;  %v676_v41 = vsel %vm7783_vm7, %v668_v21, %v675_v27  ;;  %v929_v3 = vsel %vm7698_vm3, %v677_v31, %v928_v23  ;;  %v8045_v43 = vld [vmem:[#allocation2 + $0x20] sm:$0x1]  ;;  %v1095_v44 = vshll.u32 %v8036_v38, 16  ;;  %926 = vst [vmem:[#allocation2 + $0x54] sm:$0xf] %v925_v26 }
  0x55   : > { %v1099_v46 = vshrl.u32 %v8036_v38, 16  ;;  %v1088_v5 = vrot.slane %v1086_v34, 4  ;;  %v1091_v30 = vrot.slane %v1089_v39, 5  ;;  %v1105_v14 = vshll.u32 %v8045_v43, 16  ;;  %1489 = vmatmul.bf16.gmra.mxu1 %v7192_v40  ;;  %927 = vst [vmem:[#allocation2 + $0x58] sm:$0xf] %v676_v41 }
  0x56   : > { %v596_v51 = vrot.slane %v594_v28, 7  ;;  %v1097_v2 = vrot.slane %v1095_v44, 5  ;;  %930 = vst [vmem:[#allocation2 + $0x5c] sm:$0x1] %v929_v3  ;;  %v602_v47 = vshrl.u32 %v530_v32, 16  ;;  %v605_v48 = vshll.u32 %v530_v32, 16 }
  0x57   : > { %v1101_v19 = vrot.slane %v1099_v46, 4  ;;  %v1092_v52 = vor.u32 %v1091_v30, %v1088_v5  ;;  %v1107_v54 = vrot.slane %v1105_v14, 5  ;;  %v896_v49 = vld [vmem:[#allocation2 + $0x24] sm:$0xf]  ;;  %v7247_v7 = vld [vmem:[%s10026_s3 + $0x148] sm:$0xff]  ;;  %v6210_v20 = vrot.slane %v1520_v16, 9  ;;  %2279 = vmatpush.bf16.msrb.mxu0 %v7238_v50 }
  0x58   : > { %v599_v55 = vor.u32 %v597_v36, %v596_v51  ;;  %v600_v61 = vrot.slane %v596_v51, 4  ;;  %v604_v62 = vrot.slane %v602_v47, 7  ;;  %v900_v58 = vld [vmem:[#allocation2 + $0x2c] sm:$0x1]  ;;  %v1551_v57 = vrot.slane %v1549_v29, 4  ;;  %v7269_v23 = vld [vmem:[%s10026_s3 + $0x1b8] sm:$0xff]  ;;  %2528 = vmatpush.bf16.msrb.mxu1 %v7247_v7 }
  0x59   : > { %v1102_v22 = vor.u32 %v1101_v19, %v1097_v2  ;;  %v1093_v1 = vrot.slane %v1092_v52, 4  ;;  %v1552_v21 = vrot.slane %v7848_v59, 5  ;;  %2717 = vmatpush.bf16.msra.mxu2 %v7269_v23  ;;  %v7246_v34 = vld [vmem:[%s10026_s3 + $0x140] sm:$0xff]  ;;  %v1550_v5 = vsel %vm8083_vm14, %v6210_v20, %v1549_v29  ;;  %v7277_v0 = vld [vmem:[%s10026_s3 + $0x1f8] sm:$0xff] }
  0x5a   : > { %1364 = vmatmul.bf16.gmra.mxu2 %v1268_v33  ;;  %v897_v45 = vsel %vm7802_vm8, %v599_v55, %v896_v49  ;;  %v607_v12 = vor.u32 %v605_v48, %v604_v62  ;;  %v609_v15 = vrot.slane %v604_v62, 4  ;;  %v1620_v51 = vunpack.c.l.b16 %v1550_v5  ;;  %v7309_v7 = vld [vmem:[%s10026_s3 + $0x78] sm:$0xff]  ;;  %3095 = vmatpush.bf16.msra.mxu3 %v7277_v0 }
  0x5b   : > { %v1103_v10 = vrot.slane %v1102_v22, 4  ;;  %898 = vst [vmem:[#allocation2 + $0x24] sm:$0xf] %v897_v45  ;;  %v1098_v11 = vsel %vm7877_vm11, %v1093_v1, %v1097_v2  ;;  %v1008_v17 = vld [vmem:[#allocation2 + $0x54] sm:$0xf]  ;;  %v1553_v14 = vsel %vm8083_vm14, %v1551_v57, %v1552_v21  ;;  %v7285_v1 = vld [vmem:[%s10026_s3 + $0x238] sm:$0xff] }
  0x5c   : > { %v1250_v25 = vunpack.c.l.b16 %v1098_v11  ;;  %v7197_v27 = vld [vmem:[#allocation2 + $0x54] sm:$0xff]  ;;  %v1206_v32 = vshrl.u32 %v1008_v17, 16  ;;  %v1209_v33 = vshll.u32 %v1008_v17, 16  ;;  %v608_v37 = vsel %vm7783_vm7, %v600_v61, %v607_v12  ;;  %v1959_v2 = vld [vmem:[#allocation2 + $0xc] sm:$0xf]  ;;  %2529 = vmatpush.bf16.msrb.mxu1 %v7246_v34  ;;  %3345 = vmatpush.bf16.msra.mxu0 %v7285_v1 }
  0x5d   : > { %v1108_v53 = vsel %vm7877_vm11, %v1103_v10, %v1107_v54  ;;  %v8079_v31 = vld [vmem:[#allocation2 + $0x58] sm:$0xf]  ;;  %v8087_v26 = vld [vmem:[#allocation2 + $0x5c] sm:$0x1]  ;;  %1514 = vmatmul.bf16.gmra.mxu3 %v7197_v27  ;;  %899 = vst [vmem:[#allocation2 + $0x28] sm:$0xf] %v608_v37  ;;  %v901_v3 = vsel %vm7698_vm3, %v609_v15, %v900_v58  ;;  %v1621_v52 = vunpack.c.l.b16 %v1553_v14 }
  0x5e   : > { %v1251_v59 = vunpack.c.l.b16 %v1108_v53  ;;  %v1215_v28 = vshll.u32 %v8079_v31, 16  ;;  %v1219_v36 = vshrl.u32 %v8079_v31, 16  ;;  %v1208_v39 = vrot.slane %v1206_v32, 4  ;;  %902 = vst [vmem:[#allocation2 + $0x2c] sm:$0x1] %v901_v3  ;;  %v7222_v3 = vld [vmem:[#allocation2 + $0xc] sm:$0xff] }
  0x5f   : > { %v1211_v40 = vrot.slane %v1209_v33, 5  ;;  %v1225_v41 = vshll.u32 %v8087_v26, 16  ;;  %v8103_v22 = vpack.c.b16 %v1621_v52, %v1620_v51  ;;  %v1984_v61 = vshrl.u32 %v1959_v2, 16  ;;  %v2337_v27 = vld [vmem:[#allocation2 + $0xc] sm:$0xe] }
  0x60   : > { %v1264_v42 = vpack.c.b16 %v1251_v59, %v1250_v25  ;;  %v1217_v44 = vrot.slane %v1215_v28, 5  ;;  %v1221_v46 = vrot.slane %v1219_v36, 4  ;;  %v1987_v62 = vshll.u32 %v1959_v2, 16  ;;  %3831 = vmatpush.bf16.msra.mxu1 %v7309_v7  ;;  %v1521_v34 = vld [vmem:[#allocation2 + $0xc] sm:$0xe] }
  0x61   : > { %v1212_v30 = vor.u32 %v1211_v40, %v1208_v39  ;;  %v1227_v47 = vrot.slane %v1225_v41, 5  ;;  %v1993_v15 = vshll.u32 %v1960_v56, 16  ;;  %v1997_v16 = vshrl.u32 %v1960_v56, 16 }
  0x62   : > { %1344 = vmatmul.bf16.gmra.mxu0 %v1264_v42  ;;  %v1222_v19 = vor.u32 %v1221_v46, %v1217_v44  ;;  %v1000_v48 = vld [vmem:[#allocation2 + $0x24] sm:$0xf]  ;;  %v1986_v53 = vrot.slane %v1984_v61, 4  ;;  %v1989_v25 = vrot.slane %v1987_v62, 5  ;;  %v1961_v42 = vld [vmem:[#allocation2 + $0x14] sm:$0x1] }
  0x63   : > { %v1213_v54 = vrot.slane %v1212_v30, 4  ;;  %v1110_v55 = vshrl.u32 %v1000_v48, 16  ;;  %v1113_v49 = vshll.u32 %v1000_v48, 16  ;;  %v8125_v36 = vrot.slane %v1993_v15, 5  ;;  %v7268_v46 = vld [vmem:[%s10026_s3 + $0x1b0] sm:$0xff] }
  0x64   : > { %v1223_v60 = vrot.slane %v1222_v19, 4  ;;  %v8118_v10 = vld [vmem:[#allocation2 + $0x28] sm:$0xf]  ;;  %v1999_v37 = vrot.slane %v1997_v16, 4  ;;  %v2371_v5 = vrot.slane %v1960_v56, 5  ;;  %v2374_v30 = vrot.slane %v1961_v42, 5  ;;  %2718 = vmatpush.bf16.msra.mxu2 %v7268_v46 }
  0x65   : > { %v1218_v45 = vsel %vm7877_vm11, %v1213_v54, %v1217_v44  ;;  %v1112_v58 = vrot.slane %v1110_v55, 4  ;;  %v1115_v6 = vrot.slane %v1113_v49, 5  ;;  %v7193_v12 = vld [vmem:[#allocation2 + $0x24] sm:$0xff]  ;;  %v8120_v17 = vld [vmem:[#allocation2 + $0x2c] sm:$0x1]  ;;  %v1119_v57 = vshll.u32 %v8118_v10, 16 }
  0x66   : > { %v1228_v50 = vsel %vm7877_vm11, %v1223_v60, %v1227_v47  ;;  %v1260_v29 = vunpack.c.l.b16 %v1218_v45  ;;  %v1123_v21 = vshrl.u32 %v8118_v10, 16  ;;  %v1129_v23 = vshll.u32 %v8120_v17, 16  ;;  %1494 = vmatmul.bf16.gmra.mxu1 %v7193_v12  ;;  %v1963_v15 = vld [vmem:[#allocation2 + $0x1c] sm:$0xf]  ;;  %v7276_v16 = vld [vmem:[%s10026_s3 + $0x1f0] sm:$0xff] }
  0x67   : > { %v1261_v11 = vunpack.c.l.b16 %v1228_v50  ;;  %v1116_v20 = vor.u32 %v1115_v6, %v1112_v58  ;;  %v1121_v59 = vrot.slane %v1119_v57, 5  ;;  %v6394_v44 = vrot.slane %v2337_v27, 9  ;;  %3096 = vmatpush.bf16.msra.mxu3 %v7276_v16 }
  0x68   : > { %v1125_v28 = vrot.slane %v1123_v21, 4  ;;  %v1131_v41 = vrot.slane %v1129_v23, 5  ;;  %v1990_v51 = vor.u32 %v1989_v25, %v1986_v53  ;;  %v6211_v2 = vrot.slane %v1521_v34, 9  ;;  %v7284_v21 = vld [vmem:[%s10026_s3 + $0x230] sm:$0xff]  ;;  %v2338_v53 = vld [vmem:[#allocation2 + $0x18] sm:$0xe] }
  0x69   : > { %v1269_v32 = vpack.c.b16 %v1261_v11, %v1260_v29  ;;  %v1117_v33 = vrot.slane %v1116_v20, 4  ;;  %v1556_v19 = vrot.slane %v7949_v63, 5  ;;  %v2372_v48 = vsel %vm8083_vm14, %v6394_v44, %v2371_v5  ;;  %v1962_v20 = vld [vmem:[#allocation2 + $0x18] sm:$0xf]  ;;  %v7308_v23 = vld [vmem:[%s10026_s3 + $0x70] sm:$0xff]  ;;  %3346 = vmatpush.bf16.msra.mxu0 %v7284_v21 }
  0x6a   : > { %v1126_v40 = vor.u32 %v1125_v28, %v1121_v59  ;;  %v2373_v52 = vrot.slane %v2371_v5, 4  ;;  %v1559_v54 = vrot.slane %v7953_v4, 5  ;;  %v2000_v49 = vor.u32 %v1999_v37, %v8125_v36  ;;  %3832 = vmatpush.bf16.msra.mxu1 %v7308_v23 }
  0x6b   : > { %1369 = vmatmul.bf16.gmra.mxu2 %v1269_v32  ;;  %v1122_v39 = vsel %vm7877_vm11, %v1117_v33, %v1121_v59  ;;  %v2003_v56 = vshll.u32 %v1961_v42, 16  ;;  %v1557_v60 = vsel %vm8083_vm14, %v6211_v2, %v1556_v19  ;;  %v2442_v62 = vunpack.c.l.b16 %v2372_v48  ;;  %v1964_v32 = vld [vmem:[#allocation2 + $0x20] sm:$0x1]  ;;  %v7223_v42 = vld [vmem:[#allocation2 + $0x18] sm:$0xff] }
  0x6c   : > { %v1127_v14 = vrot.slane %v1126_v40, 4  ;;  %v1252_v47 = vunpack.c.l.b16 %v1122_v39  ;;  %v2375_v63 = vsel %vm8083_vm14, %v2373_v52, %v2374_v30  ;;  %v1558_v0 = vrot.slane %v1556_v19, 4 }
  0x6d   : > { %1902 = vmatmul.bf16.vlgmr.msrb.gmra.mxu3 %v7222_v3  ;;  %v2443_v1 = vunpack.c.l.b16 %v2375_v63  ;;  %v1622_v45 = vunpack.c.l.b16 %v1557_v60  ;;  %v1991_v6 = vrot.slane %v1990_v51, 4  ;;  %v2001_v7 = vrot.slane %v2000_v49, 4  ;;  %v7275_v63 = vld [vmem:[%s10026_s3 + $0x1e8] sm:$0xff] }
  0x6e   : > { %v1132_v55 = vsel %vm7877_vm11, %v1127_v14, %v1131_v41  ;;  %v1560_v4 = vsel %vm8083_vm14, %v1558_v0, %v1559_v54  ;;  %v2005_v50 = vrot.slane %v2003_v56, 5  ;;  %v2378_v57 = vrot.slane %v1963_v15, 5  ;;  %3097 = vmatpush.bf16.msra.mxu3 %v7275_v63 }
  0x6f   : > { %v1253_v61 = vunpack.c.l.b16 %v1132_v55  ;;  %v1623_v29 = vunpack.c.l.b16 %v1560_v4  ;;  %v2458_v12 = vpack.c.b16 %v2443_v1, %v2442_v62  ;;  %v1996_v25 = vsel %vm7877_vm11, %v1991_v6, %v8125_v36  ;;  %v7267_v36 = vld [vmem:[%s10026_s3 + $0x1a8] sm:$0xff]  ;;  %v1965_v55 = vld [vmem:[#allocation2 + $0x24] sm:$0xf] }
  0x70   : > { %v2006_v27 = vsel %vm7877_vm11, %v2001_v7, %v2005_v50  ;;  %v2008_v33 = vshrl.u32 %v1962_v20, 16  ;;  %v2011_v59 = vshll.u32 %v1962_v20, 16  ;;  %v2017_v28 = vshll.u32 %v1963_v15, 16  ;;  %2719 = vmatpush.bf16.msra.mxu2 %v7267_v36  ;;  %v7283_v62 = vld [vmem:[%s10026_s3 + $0x228] sm:$0xff]  ;;  %v1522_v50 = vld [vmem:[#allocation2 + $0x18] sm:$0xe] }
  0x71   : > { %v1265_v58 = vpack.c.b16 %v1253_v61, %v1252_v47  ;;  %v8148_v11 = vpack.c.b16 %v1623_v29, %v1622_v45  ;;  %v2021_v37 = vshrl.u32 %v1963_v15, 16  ;;  %v6395_v34 = vrot.slane %v2338_v53, 9  ;;  %v1966_v61 = vld [vmem:[#allocation2 + $0x28] sm:$0xf]  ;;  %v2339_v45 = vld [vmem:[#allocation2 + $0x24] sm:$0xe]  ;;  %3347 = vmatpush.bf16.msra.mxu0 %v7283_v62 }
  0x72   : > { %v2380_v39 = vrot.slane %v2378_v57, 4  ;;  %v2381_v40 = vrot.slane %v1964_v32, 5  ;;  %v2192_v41 = vunpack.c.l.b16 %v1996_v25  ;;  %v2193_v3 = vunpack.c.l.b16 %v2006_v27  ;;  %v7307_v1 = vld [vmem:[%s10026_s3 + $0x68] sm:$0xff]  ;;  %v7266_v27 = vld [vmem:[%s10026_s3 + $0x1a0] sm:$0xff] }
  0x73   : > { %1349 = vmatmul.bf16.gmra.mxu0 %v1265_v58  ;;  %v2010_v44 = vrot.slane %v2008_v33, 4  ;;  %v2013_v46 = vrot.slane %v2011_v59, 5  ;;  %v2019_v5 = vrot.slane %v2017_v28, 5  ;;  %v2023_v30 = vrot.slane %v2021_v37, 4  ;;  %3833 = vmatpush.bf16.msra.mxu1 %v7307_v1  ;;  %v1967_v29 = vld [vmem:[#allocation2 + $0x2c] sm:$0x1] }
  0x74   : > { %v2379_v14 = vsel %vm8083_vm14, %v6395_v34, %v2378_v57  ;;  %v2382_v51 = vsel %vm8083_vm14, %v2380_v39, %v2381_v40  ;;  %v2208_v2 = vpack.c.b16 %v2193_v3, %v2192_v41  ;;  %v2385_v0 = vrot.slane %v1966_v61, 5  ;;  %2720 = vmatpush.bf16.msra.mxu2 %v7266_v27  ;;  %v1970_v1 = vld [vmem:[#allocation2 + $0x38] sm:$0x1]  ;;  %v1971_v27 = vld [vmem:[#allocation2 + $0x3c] sm:$0xf] }
  0x75   : > { %v2014_v19 = vor.u32 %v2013_v46, %v2010_v44  ;;  %v2024_v47 = vor.u32 %v2023_v30, %v2019_v5  ;;  %v2444_v48 = vunpack.c.l.b16 %v2379_v14  ;;  %v2445_v52 = vunpack.c.l.b16 %v2382_v51  ;;  %v1968_v14 = vld [vmem:[#allocation2 + $0x30] sm:$0xf] }
  0x76   : > { %2530 = vmatmul.bf16.vlgmr.msrb.gmra.mxu1 %v2458_v12  ;;  %v1563_v58 = vrot.slane %v8036_v38, 5  ;;  %v2032_v4 = vshrl.u32 %v1965_v55, 16  ;;  %v2035_v12 = vshll.u32 %v1965_v55, 16  ;;  %v2041_v15 = vshll.u32 %v1966_v61, 16  ;;  %v7224_v38 = vld [vmem:[#allocation2 + $0x24] sm:$0xff] }
  0x77   : > { %v2015_v49 = vrot.slane %v2014_v19, 4  ;;  %v2025_v56 = vrot.slane %v2024_v47, 4  ;;  %v2459_v60 = vpack.c.b16 %v2445_v52, %v2444_v48  ;;  %v2045_v16 = vshrl.u32 %v1966_v61, 16  ;;  %v7274_v19 = vld [vmem:[%s10026_s3 + $0x1e0] sm:$0xff] }
  0x78   : > { %v6396_v20 = vrot.slane %v2339_v45, 9  ;;  %v2387_v57 = vrot.slane %v2385_v0, 4  ;;  %v2388_v21 = vrot.slane %v1967_v29, 5  ;;  %v6212_v23 = vrot.slane %v1522_v50, 9  ;;  %v7282_v47 = vld [vmem:[%s10026_s3 + $0x220] sm:$0xff]  ;;  %3098 = vmatpush.bf16.msra.mxu3 %v7274_v19 }
  0x79   : > { %v2020_v6 = vsel %vm7877_vm11, %v2015_v49, %v2019_v5  ;;  %v1565_v53 = vrot.slane %v1563_v58, 4  ;;  %v1566_v25 = vrot.slane %v8045_v43, 5  ;;  %v2034_v59 = vrot.slane %v2032_v4, 4  ;;  %v7306_v55 = vld [vmem:[%s10026_s3 + $0x60] sm:$0xff]  ;;  %v2340_v49 = vld [vmem:[#allocation2 + $0x30] sm:$0xe]  ;;  %3348 = vmatpush.bf16.msra.mxu0 %v7282_v47 }
  0x7a   : > { %v2037_v28 = vrot.slane %v2035_v12, 5  ;;  %v2043_v37 = vrot.slane %v2041_v15, 5  ;;  %v2047_v34 = vrot.slane %v2045_v16, 4  ;;  %v2386_v39 = vsel %vm8083_vm14, %v6396_v20, %v2385_v0  ;;  %3834 = vmatpush.bf16.msra.mxu1 %v7306_v55  ;;  %v1523_v0 = vld [vmem:[#allocation2 + $0x24] sm:$0xe]  ;;  %v7281_v47 = vld [vmem:[%s10026_s3 + $0x218] sm:$0xff] }
  0x7b   : > { %1708 = vmatmul.bf16.vlgmr.msrb.gmra.mxu2 %v8103_v22  ;;  %v2027_v22 = vshll.u32 %v1964_v32, 16  ;;  %v2194_v32 = vunpack.c.l.b16 %v2020_v6  ;;  %v1564_v43 = vsel %vm8083_vm14, %v6212_v23, %v1563_v58  ;;  %v1567_v40 = vsel %vm8083_vm14, %v1565_v53, %v1566_v25  ;;  %v2341_v19 = vld [vmem:[#allocation2 + $0x3c] sm:$0xe] }
  0x7c   : > { %v2038_v3 = vor.u32 %v2037_v28, %v2034_v59  ;;  %v2048_v44 = vor.u32 %v2047_v34, %v2043_v37  ;;  %v2051_v46 = vshll.u32 %v1967_v29, 16  ;;  %v1624_v5 = vunpack.c.l.b16 %v1564_v43 }
  0x7d   : > { %1907 = vmatmul.bf16.gmra.mxu3 %v7223_v42  ;;  %v2029_v54 = vrot.slane %v2027_v22, 5  ;;  %v2446_v42 = vunpack.c.l.b16 %v2386_v39  ;;  %v1625_v30 = vunpack.c.l.b16 %v1567_v40  ;;  %v1969_v22 = vld [vmem:[#allocation2 + $0x34] sm:$0xf]  ;;  %v2056_v61 = vshrl.u32 %v1968_v14, 16  ;;  %3349 = vmatpush.bf16.msra.mxu0 %v7281_v47 }
  0x7e   : > { %v2039_v51 = vrot.slane %v2038_v3, 4  ;;  %v2049_v48 = vrot.slane %v2048_v44, 4  ;;  %v2053_v52 = vrot.slane %v2051_v46, 5  ;;  %v2059_v63 = vshll.u32 %v1968_v14, 16  ;;  %v1524_v46 = vld [vmem:[#allocation2 + $0x30] sm:$0xe] }
  0x7f   : > { %v2030_v7 = vsel %vm7877_vm11, %v2025_v56, %v2029_v54  ;;  %v2392_v54 = vrot.slane %v1969_v22, 5  ;;  %v1638_v56 = vpack.c.b16 %v1625_v30, %v1624_v5  ;;  %v2065_v45 = vshll.u32 %v1969_v22, 16 }
  0x80   : > { %v2195_v33 = vunpack.c.l.b16 %v2030_v7  ;;  %v2044_v62 = vsel %vm7877_vm11, %v2039_v51, %v2043_v37  ;;  %v2069_v58 = vshrl.u32 %v1969_v22, 16  ;;  %v2054_v4 = vsel %vm7877_vm11, %v2049_v48, %v2053_v52  ;;  %v7583_v51 = vld [vmem:[#allocation2 + $0x34] sm:$0xf]  ;;  %v7273_v22 = vld [vmem:[%s10026_s3 + $0x1d8] sm:$0xff] }
  0x81   : > { %v6397_v6 = vrot.slane %v2340_v49, 9  ;;  %v2394_v7 = vrot.slane %v2392_v54, 4  ;;  %v2395_v50 = vrot.slane %v1970_v1, 5  ;;  %v1573_v29 = vrot.slane %v8120_v17, 5  ;;  %v7305_v49 = vld [vmem:[%s10026_s3 + $0x58] sm:$0xff]  ;;  %3099 = vmatpush.bf16.msra.mxu3 %v7273_v22 }
  0x82   : > { %v2209_v41 = vpack.c.b16 %v2195_v33, %v2194_v32  ;;  %v6213_v12 = vrot.slane %v1523_v0, 9  ;;  %v2058_v16 = vrot.slane %v2056_v61, 4  ;;  %v2061_v20 = vrot.slane %v2059_v63, 5  ;;  %3835 = vmatpush.bf16.msra.mxu1 %v7305_v49 }
  0x83   : > { %2280 = vmatmul.bf16.vlgmr.msrb.gmra.mxu0 %v2208_v2  ;;  %v2067_v23 = vrot.slane %v2065_v45, 5  ;;  %v2071_v53 = vrot.slane %v2069_v58, 4  ;;  %v2393_v25 = vsel %vm8083_vm14, %v6397_v6, %v2392_v54  ;;  %v2396_v17 = vsel %vm8083_vm14, %v2394_v7, %v2395_v50 }
  0x84   : > { %v2062_v59 = vor.u32 %v2061_v20, %v2058_v16  ;;  %v2075_v28 = vshll.u32 %v1970_v1, 16  ;;  %v2448_v39 = vunpack.c.l.b16 %v2393_v25  ;;  %v2080_v43 = vshrl.u32 %v1971_v27, 16 }
  0x85   : > { %v2072_v34 = vor.u32 %v2071_v53, %v2067_v23  ;;  %v2083_v40 = vshll.u32 %v1971_v27, 16  ;;  %v6398_v63 = vrot.slane %v2341_v19, 9  ;;  %v6214_v45 = vrot.slane %v1524_v46, 9  ;;  %v8259_v46 = vld [vmem:[%s10024_s1] ss:$0 sm:$0xff] }
  0x86   : > { %2535 = vmatmul.bf16.gmra.mxu1 %v2459_v60  ;;  %v1570_v60 = vrot.slane %v8118_v10, 5  ;;  %v7225_v10 = vld [vmem:[#allocation2 + $0x30] sm:$0xff]  ;;  %v2077_v44 = vrot.slane %v2075_v28, 5  ;;  %v2082_v48 = vrot.slane %v2080_v43, 4 }
  0x87   : > { %v2073_v30 = vrot.slane %v2072_v34, 4  ;;  %v2085_v52 = vrot.slane %v2083_v40, 5  ;;  %v7585_v40 = vld [vmem:[#allocation2 + $0x40] sm:$0xf] }
  0x88   : > { %v1572_v15 = vrot.slane %v1570_v60, 4  ;;  %v1571_v32 = vsel %vm8083_vm14, %v6213_v12, %v1570_v60  ;;  %v1973_v60 = vld [vmem:[#allocation2 + $0x44] sm:$0x1] }
  0x89   : > { %v2402_v0 = vrot.slane %v1973_v60, 5  ;;  %v2078_v1 = vsel %vm7877_vm11, %v2073_v30, %v2077_v44  ;;  %v2086_v7 = vor.u32 %v2085_v52, %v2082_v48  ;;  %v8269_v48 = vld [vmem:[%s10025_s2] ss:$0 sm:$0xff] }
  0x8a   : > { %v1574_v33 = vsel %vm8083_vm14, %v1572_v15, %v1573_v29  ;;  %v2199_v12 = vunpack.c.l.b16 %v2078_v1  ;;  %v7226_v15 = vld [vmem:[#allocation2 + $0x3c] sm:$0xff]  ;;  %v7272_v1 = vld [vmem:[%s10026_s3 + $0x1d0] sm:$0xff] }
  0x8b   : > { %1713 = vmatmul.bf16.gmra.mxu2 %v8148_v11  ;;  %v2389_v11 = vsel %vm8083_vm14, %v2387_v57, %v2388_v21  ;;  %v7265_v57 = vld [vmem:[%s10026_s3 + $0x198] sm:$0xff]  ;;  %v2196_v21 = vunpack.c.l.b16 %v2044_v62  ;;  %v1627_v3 = vunpack.c.l.b16 %v1574_v33  ;;  %v1974_v33 = vld [vmem:[#allocation2 + $0x48] sm:$0xf]  ;;  %3100 = vmatpush.bf16.msra.mxu3 %v7272_v1 }
  0x8c   : > { %v2447_v36 = vunpack.c.l.b16 %v2389_v11  ;;  %2721 = vmatpush.bf16.msra.mxu2 %v7265_v57  ;;  %v2449_v11 = vunpack.c.l.b16 %v2396_v17  ;;  %v2087_v17 = vrot.slane %v2086_v7, 4  ;;  %v2107_v44 = vshll.u32 %v1974_v33, 16  ;;  %v1526_v1 = vld [vmem:[#allocation2 + $0x48] sm:$0xe] }
  0x8d   : > { %1912 = vmatmul.bf16.gmra.mxu3 %v7224_v38  ;;  %v2197_v38 = vunpack.c.l.b16 %v2054_v4  ;;  %v7584_v4 = vld [vmem:[#allocation2 + $0x38] sm:$0x1] }
  0x8e   : > { %v2460_v2 = vpack.c.b16 %v2447_v36, %v2446_v42  ;;  %v1972_v42 = vld [vmem:[#allocation2 + $0x40] sm:$0xf]  ;;  %v2063_v36 = vrot.slane %v2062_v59, 4  ;;  %v2461_v14 = vpack.c.b16 %v2449_v11, %v2448_v39  ;;  %v1580_v6 = vrot.slane %v7584_v4, 5  ;;  %v7532_v59 = vld [vmem:[%s7685_s8 + $0x38] sm:$0xff]  }
  0x8f   : > { %v2210_v37 = vpack.c.b16 %v2197_v38, %v2196_v21  ;;  %v2399_v5 = vrot.slane %v1972_v42, 5  ;;  %v2089_v54 = vshll.u32 %v1972_v42, 16  ;;  %v2093_v55 = vshrl.u32 %v1972_v42, 16  ;;  %v7264_v21 = vld [vmem:[%s10026_s3 + $0x190] sm:$0xff]  ;;  %v8254_v42 = vld [vmem:[#allocation2 + $0x4c] sm:$0xf] }
  0x90   : > { %v2068_v61 = vsel %vm7877_vm11, %v2063_v36, %v2067_v23  ;;  %2722 = vmatpush.bf16.msra.mxu2 %v7264_v21  ;;  %v7412_v34 = vunpack.c.l.bf16 %v7532_v59  ;;  %v7413_v39 = vunpack.c.h.bf16 %v7532_v59  ;;  %v2104_v36 = vshrl.u32 %v1974_v33, 16  ;;  %v1976_v59 = vld [vmem:[#allocation2 + $0x50] sm:$0x1] }
  0x91   : > { %v2401_v62 = vrot.slane %v2399_v5, 4  ;;  %v8235_v50 = vrot.slane %v2089_v54, 5  ;;  %v2095_v29 = vrot.slane %v2093_v55, 4  ;;  %v2400_v20 = vsel %vm8083_vm14, %v6398_v63, %v2399_v5 }
  0x92   : > { %v2450_v28 = vunpack.c.l.b16 %v2400_v20  ;;  %v319_v5 = vmul.f32 %v8259_v46, %v7412_v34  ;;  %v320_v30 = vmul.f32 %v8259_v46, %v7413_v39  ;;  %v8274_v63 = vrot.slane %v2104_v36, 4  ;;  %v8295_v20 = vld [vmem:[#allocation2 + $0x58] sm:$0xf] }
  0x93   : > { %2285 = vmatmul.bf16.gmra.mxu0 %v2209_v41  ;;  %v1626_v41 = vunpack.c.l.b16 %v1571_v32  ;;  %v2403_v57 = vsel %vm8083_vm14, %v2401_v62, %v2402_v0  ;;  %v2096_v27 = vor.u32 %v2095_v29, %v8235_v50  ;;  %v2099_v32 = vshll.u32 %v1973_v60, 16 }
  0x94   : > { %v2092_v19 = vsel %vm7877_vm11, %v2087_v17, %v8235_v50  ;;  %v355_v52 = vadd.f32 %v8269_v48, %v319_v5  ;;  %v356_v54 = vadd.f32 %v8269_v48, %v320_v30  ;;  %v8276_v62 = vrot.slane %v2107_v44, 5  ;;  %v2342_v50 = vld [vmem:[#allocation2 + $0x48] sm:$0xe] }
  0x95   : > { %v2101_v22 = vrot.slane %v2099_v32, 5  ;;  %v2117_v0 = vshrl.u32 %v8254_v42, 16  ;;  %v2406_v29 = vrot.slane %v8254_v42, 5  ;;  %v2141_v32 = vshrl.u32 %v8295_v20, 16 }
  0x96   : > { %2540 = vmatmul.bf16.gmra.mxu1 %v2460_v2  ;;  %v1577_v2 = vrot.slane %v7583_v51, 5 }
  0x98   : > { %v1579_v58 = vrot.slane %v1577_v2, 4  ;;  %v1578_v23 = vsel %vm8083_vm14, %v6214_v45, %v1577_v2  ;;  %v2097_v2 = vrot.slane %v2096_v27, 4  ;;  %v7280_v45 = vld [vmem:[%s10026_s3 + $0x210] sm:$0xff]  ;;  %v2137_v27 = vshll.u32 %v8295_v20, 16 }
  0x99   : > { %3350 = vmatpush.bf16.msra.mxu0 %v7280_v45 }
  0x9a   : > { %v1581_v53 = vsel %vm8083_vm14, %v1579_v58, %v1580_v6  ;;  %v387_v58 = vmax.f32 %v355_v52, 0.0  ;;  %v2102_v6 = vsel %vm7877_vm11, %v2097_v2, %v2101_v22  ;;  %v2110_v2 = vor.u32 %v8276_v62, %v8274_v63  ;;  %v7589_v63 = vld [vmem:[#allocation2 + $0x4c] sm:$0xf] }
  0x9b   : > { %1718 = vmatmul.bf16.gmra.mxu2 %v1638_v56  ;;  %v1639_v56 = vpack.c.b16 %v1627_v3, %v1626_v41  ;;  %v1584_v41 = vrot.slane %v7585_v40, 5  ;;  %v1525_v3 = vld [vmem:[#allocation2 + $0x3c] sm:$0xe]  ;;  %v1629_v51 = vunpack.c.l.b16 %v1581_v53  ;;  %v8303_v33 = vunpack.c.l.b16 %v2102_v6 }
  0x9c   : > { %v6215_v55 = vrot.slane %v1525_v3, 9  ;;  %v2408_v40 = vrot.slane %v2406_v29, 4  ;;  %v2409_v3 = vrot.slane %v1976_v59, 5  ;;  %v8319_v22 = vrot.slane %v2137_v27, 5 }
  0x9d   : > { %1917 = vmatmul.bf16.gmra.mxu3 %v7225_v10  ;;  %v2198_v10 = vunpack.c.l.b16 %v2068_v61  ;;  %v1586_v49 = vrot.slane %v1584_v41, 4  ;;  %v2113_v61 = vshll.u32 %v8254_v42, 16  ;;  %v1591_v62 = vrot.slane %v7589_v63, 5 }
  0x9e   : > { %v8309_v39 = vsel %vm8083_vm14, %v6215_v55, %v1584_v41  ;;  %v2123_v41 = vshll.u32 %v1976_v59, 16  ;;  %v6216_v27 = vrot.slane %v1526_v1, 9 }
  0x9f   : > { %v2211_v11 = vpack.c.b16 %v2199_v12, %v2198_v10  ;;  %v7304_v10 = vld [vmem:[%s10026_s3 + $0x50] sm:$0xff]  ;;  %v439_v12 = vld [vmem:[#allocation2 + $0x60] sm:$0x1] }
  0xa0   : > { %v440_v21 = vsel %vm7698_vm3, 0, %v439_v12  ;;  %3836 = vmatpush.bf16.msra.mxu1 %v7304_v10  ;;  %v2125_v10 = vrot.slane %v2123_v41, 5 }
  0xa1   : > { %441 = vst [vmem:[#allocation2 + $0x60] sm:$0x1] %v440_v21  ;;  %v7263_v21 = vld [vmem:[%s10026_s3 + $0x188] sm:$0xff] }
  0xa2   : > { %2723 = vmatpush.bf16.msra.mxu2 %v7263_v21 }
  0xa3   : > { %2290 = vmatmul.bf16.gmra.mxu0 %v2210_v37  ;;  %v2451_v37 = vunpack.c.l.b16 %v2403_v57  ;;  %v388_v57 = vmax.f32 %v356_v54, 0.0  ;;  %v8325_v54 = vld [vmem:[#allocation2 + $0x5c] sm:$0x1] }
  0xa4   : > { %v2147_v12 = vshll.u32 %v8325_v54, 16 }
  0xa5   : > { %v2462_v47 = vpack.c.b16 %v2451_v37, %v2450_v28  ;;  %v8305_v28 = vrot.slane %v2113_v61, 5  ;;  %v2119_v37 = vrot.slane %v2117_v0, 4  ;;  %v540_v30 = vpack.c.bf16 %v388_v57, %v388_v57 }
  0xa6   : > { %2545 = vmatmul.bf16.gmra.mxu1 %v2461_v14  ;;  %v1628_v14 = vunpack.c.l.b16 %v1578_v23  ;;  %v2410_v61 = vsel %vm8083_vm14, %v2408_v40, %v2409_v3 }
  0xa7   : > { %v2120_v52 = vor.u32 %v2119_v37, %v8305_v28  ;;  %v2453_v57 = vunpack.c.l.b16 %v2410_v61  ;;  %v2343_v37 = vld [vmem:[#allocation2 + $0x54] sm:$0xe]  ;;  %v690_v3 = vshll.u32 %v540_v30, 16 }
  0xa8   : > { %v1480_v16 = vpop.f32.mrf.mxu1  ;;  %v1640_v4 = vpack.c.b16 %v1629_v51, %v1628_v14  ;;  %v7227_v51 = vld [vmem:[#allocation2 + $0x48] sm:$0xff] }
  0xab   : > { %1723 = vmatmul.bf16.gmra.mxu2 %v1639_v56  ;;  %v7588_v56 = vld [vmem:[#allocation2 + $0x44] sm:$0x1] }
  0xac   : > { %v1335_v38 = vpop.f32.mrf.mxu0  ;;  %v1587_v60 = vrot.slane %v7588_v56, 5 }
  0xad   : > { %v8248_v25 = vadd.f32 %v1480_v16, %v1335_v38  ;;  %1922 = vmatmul.bf16.gmra.mxu3 %v7226_v15  ;;  %v8293_v15 = vunpack.c.l.b16 %v2092_v19  ;;  %v1977_v16 = vld [vmem:[#allocation2 + $0x54] sm:$0xf]  ;;  %v539_v38 = vpack.c.bf16 %v387_v58, %v387_v58  ;;  %v2143_v19 = vrot.slane %v2141_v32, 4 }
  0xae   : > { %v8252_v43 = vpop.f32.mrf.mxu3  ;;  %v2128_v53 = vshrl.u32 %v1977_v16, 16  ;;  %v2131_v17 = vshll.u32 %v1977_v16, 16  ;;  %v8315_v36 = vsel %vm8083_vm14, %v1586_v49, %v1587_v60  ;;  %v687_v58 = vshrl.u32 %v540_v30, 16 }
  0xaf   : > { %v679_v34 = vshrl.u32 %v539_v38, 16  ;;  %v682_v49 = vshll.u32 %v539_v38, 16  ;;  %v2212_v56 = vpack.c.b16 %v8303_v33, %v8293_v15  ;;  %v1631_v0 = vunpack.c.l.b16 %v8315_v36  ;;  %v7590_v33 = vld [vmem:[#allocation2 + $0x50] sm:$0x1] }
  0xb0   : > { %v8287_v7 = vpop.f32.mrf.mxu1  ;;  %v2130_v44 = vrot.slane %v2128_v53, 4  ;;  %v2133_v5 = vrot.slane %v2131_v17, 5  ;;  %v2121_v15 = vrot.slane %v2120_v52, 4  ;;  %v931_v53 = vld [vmem:[#allocation2 + $0x60] sm:$0xf]  ;;  %v1593_v32 = vrot.slane %v1591_v62, 4 }
  0xb1   : > { %v681_v55 = vrot.slane %v679_v34, 7  ;;  %v495_v17 = vld [vmem:[#allocation2 + $0x68] sm:$0x1]  ;;  %v1594_v59 = vrot.slane %v7590_v33, 5  ;;  %v2413_v34 = vrot.slane %v8295_v20, 5  ;;  %v8343_v40 = vrot.slane %v687_v58, 7 }
  0xb2   : > { %v2134_v45 = vor.u32 %v2133_v5, %v2130_v44  ;;  %v2149_v5 = vrot.slane %v2147_v12, 5  ;;  %v6400_v30 = vrot.slane %v2343_v37, 9  ;;  %v2126_v61 = vsel %vm7877_vm11, %v2121_v15, %v2125_v10 }
  0xb3   : > { %2295 = vmatmul.bf16.gmra.mxu0 %v2211_v11  ;;  %v6399_v11 = vrot.slane %v2342_v50, 9  ;;  %v2111_v50 = vrot.slane %v2110_v2, 4  ;;  %v684_v38 = vor.u32 %v682_v49, %v681_v55  ;;  %v692_v52 = vor.u32 %v690_v3, %v8343_v40 }
  0xb4   : > { %v8311_v42 = vpop.f32.mrf.mxu0  ;;  %v2414_v58 = vsel %vm8083_vm14, %v6400_v30, %v2413_v34  ;;  %v1598_v12 = vrot.slane %v8079_v31, 5 }
  0xb5   : > { %v2407_v60 = vsel %vm8083_vm14, %v6399_v11, %v2406_v29  ;;  %v2144_v29 = vor.u32 %v2143_v19, %v8319_v22  ;;  %v685_v11 = vrot.slane %v681_v55, 4  ;;  %v7271_v19 = vld [vmem:[%s10026_s3 + $0x1c8] sm:$0xff]  ;;  %v2116_v49 = vsel %vm7877_vm11, %v2111_v50, %v8305_v28 }
  0xb6   : > { %v8299_v23 = vpop.f32.mrf.mxu3  ;;  %2550 = vmatmul.bf16.gmra.mxu1 %v2462_v47  ;;  %v2452_v16 = vunpack.c.l.b16 %v2407_v60  ;;  %3101 = vmatpush.bf16.msra.mxu3 %v7271_v19  ;;  %v1595_v28 = vsel %vm8083_vm14, %v1593_v32, %v1594_v59  ;;  %v8387_v50 = vunpack.c.l.b16 %v2126_v61  ;;  %v1600_v33 = vrot.slane %v1598_v12, 4 }
  0xb7   : > { %v2145_v44 = vrot.slane %v2144_v29, 4  ;;  %v693_v63 = vsel %vm7783_vm7, %v685_v11, %v692_v52  ;;  %v694_v29 = vrot.slane %v8343_v40, 4  ;;  %v1601_v59 = vrot.slane %v8087_v26, 5 }
  0xb8   : > { %v1485_v6 = vpop.f32.mrf.mxu1  ;;  %v2463_v41 = vpack.c.b16 %v2453_v57, %v2452_v16  ;;  %934 = vst [vmem:[#allocation2 + $0x64] sm:$0xf] %v693_v63  ;;  %v1633_v16 = vunpack.c.l.b16 %v1595_v28 }
  0xbb   : > { %1728 = vmatmul.bf16.gmra.mxu2 %v1640_v4 }
  0xbd   : > { %v1355_v14 = vpop.f32.mrf.mxu2  ;;  %1927 = vmatmul.bf16.gmra.mxu3 %v7227_v51  ;;  %v496_v51 = vsel %vm7709_vm4, 0, %v495_v17  ;;  %v7228_v17 = vld [vmem:[#allocation2 + $0x54] sm:$0xff] }
  0xbe   : > { %v8322_v47 = vadd.f32 %v8252_v43, %v1355_v14  ;;  %v1630_v43 = vunpack.c.l.b16 %v8309_v39  ;;  %v8335_v4 = vpop.f32.mrf.mxu3  ;;  %v2135_v39 = vrot.slane %v2134_v45, 4  ;;  %v932_v14 = vsel %vm7802_vm8, %v684_v38, %v931_v53  ;;  %497 = vst [vmem:[#allocation2 + $0x68] sm:$0x1] %v496_v51  ;;  %v1527_v38 = vld [vmem:[#allocation2 + $0x54] sm:$0xe] }
  0xbf   : > { %933 = vst [vmem:[#allocation2 + $0x60] sm:$0xf] %v932_v14  ;;  %v1592_v45 = vsel %vm8083_vm14, %v6216_v27, %v1591_v62  ;;  %v7279_v62 = vld [vmem:[%s10026_s3 + $0x208] sm:$0xff]  ;;  %v2454_v27 = vunpack.c.l.b16 %v2414_v58  ;;  %v6217_v32 = vrot.slane %v1527_v38, 9  ;;  %v8424_v58 = vld [vmem:[#allocation2 + $0x20] sm:$0x1] }
  0xc0   : > { %v1641_v60 = vpack.c.b16 %v1631_v0, %v1630_v43  ;;  %v2150_v43 = vsel %vm7877_vm11, %v2145_v44, %v2149_v5  ;;  %v8377_v0 = vunpack.c.l.b16 %v2116_v49  ;;  %v1632_v15 = vunpack.c.l.b16 %v1592_v45  ;;  %3351 = vmatpush.bf16.msra.mxu0 %v7279_v62  ;;  %v1981_v5 = vld [vmem:[#allocation2 + $0x64] sm:$0xf] }
  0xc1   : > { %v8397_v21 = vunpack.c.l.b16 %v2150_v43  ;;  %v1599_v3 = vsel %vm8083_vm14, %v6217_v32, %v1598_v12  ;;  %v8409_v44 = vadd.f32 %v8287_v7, %v8311_v42  ;;  %v2165_v19 = vshrl.u32 %v1981_v5, 16 }
  0xc2   : > { %v2213_v26 = vpack.c.b16 %v8387_v50, %v8377_v0  ;;  %v2420_v52 = vrot.slane %v1981_v5, 5  ;;  %v1642_v49 = vpack.c.b16 %v1633_v16, %v1632_v15  ;;  %v7262_v0 = vld [vmem:[%s10026_s3 + $0x180] sm:$0xff] }
  0xc3   : > { %2300 = vmatmul.bf16.gmra.mxu0 %v2212_v56  ;;  %v2415_v56 = vrot.slane %v2413_v34, 4  ;;  %v2167_v45 = vrot.slane %v2165_v19, 4  ;;  %2724 = vmatpush.bf16.msra.mxu2 %v7262_v0  ;;  %v7302_v0 = vld [vmem:[%s10026_s3 + $0x40] sm:$0xff] }
  0xc4   : > { %v1340_v20 = vpop.f32.mrf.mxu0  ;;  %v2422_v16 = vrot.slane %v2420_v52, 4 }
  0xc5   : > { %v1357_v36 = vpop.f32.mrf.mxu2  ;;  %v8356_v55 = vadd.f32 %v1485_v6, %v1340_v20  ;;  %v7303_v6 = vld [vmem:[%s10026_s3 + $0x48] sm:$0xff] }
  0xc6   : > { %v8350_v2 = vadd.f32 %v8299_v23, %v1357_v36  ;;  %v2416_v23 = vrot.slane %v8325_v54, 5  ;;  %v8366_v1 = vpop.f32.mrf.mxu3  ;;  %v2140_v54 = vsel %vm7877_vm11, %v2135_v39, %v8319_v22  ;;  %2555 = vmatmul.bf16.gmra.mxu1 %v2463_v41  ;;  %v8389_v22 = vpop.f32.mrf.mxu1  ;;  %v1980_v37 = vld [vmem:[#allocation2 + $0x60] sm:$0xf]  ;;  %v935_v39 = vld [vmem:[#allocation2 + $0x68] sm:$0x1]  ;;  %v2161_v41 = vshll.u32 %v1981_v5, 16 }
  0xc7   : > { %v8395_v57 = vunpack.c.l.b16 %v2140_v54  ;;  %3837 = vmatpush.bf16.msra.mxu1 %v7303_v6  ;;  %v2152_v11 = vshrl.u32 %v1980_v37, 16  ;;  %v2155_v40 = vshll.u32 %v1980_v37, 16  ;;  %v936_v36 = vsel %vm7698_vm3, %v694_v29, %v935_v39  ;;  %v2344_v30 = vld [vmem:[#allocation2 + $0x60] sm:$0xe] }
  0xc8   : > { %v2417_v10 = vsel %vm8083_vm14, %v2415_v56, %v2416_v23  ;;  %937 = vst [vmem:[#allocation2 + $0x68] sm:$0x1] %v936_v36  ;;  %v1634_v56 = vunpack.c.l.b16 %v1599_v3  ;;  %v2782_v23 = vld [vmem:[#allocation2 + $0x18] sm:$0xf]  ;;  %v2163_v63 = vrot.slane %v2161_v41, 5  ;;  %v6401_v28 = vrot.slane %v2344_v30, 9 }
  0xc9   : > { %v2455_v34 = vunpack.c.l.b16 %v2417_v10  ;;  %v2154_v14 = vrot.slane %v2152_v11, 4  ;;  %v2157_v20 = vrot.slane %v2155_v40, 5  ;;  %v2214_v7 = vpack.c.b16 %v8397_v21, %v8395_v57 }
  0xca   : > { %v2807_v62 = vshrl.u32 %v2782_v23, 16  ;;  %v2810_v6 = vshll.u32 %v2782_v23, 16  ;;  %v2168_v15 = vor.u32 %v2167_v45, %v2163_v63  ;;  %v3503_v23 = vld [vmem:[#allocation2 + $0x60] sm:$0xf] }
  0xcb   : > { %1733 = vmatmul.bf16.gmra.mxu2 %v1641_v60  ;;  %v2464_v42 = vpack.c.b16 %v2455_v34, %v2454_v27  ;;  %v8419_v60 = vld [vmem:[#allocation2 + $0x1c] sm:$0xf]  ;;  %v2158_v61 = vor.u32 %v2157_v20, %v2154_v14  ;;  %v2421_v34 = vsel %vm8083_vm14, %v6401_v28, %v2420_v52  ;;  %v8447_v14 = vld [vmem:[%s7685_s8 + $0x40] sm:$0xff]   ;;  %v3544_v28 = vshrl.u32 %v3503_v23, 16  ;;  %3838 = vmatpush.bf16.msra.mxu1 %v7302_v0  ;;  %v8500_v0 = vld [vmem:[#allocation2 + $0x2c] sm:$0x1] }
  0xcc   : > { %v1342_v54 = vpop.f32.mrf.mxu0  ;;  %v2816_v50 = vshll.u32 %v8419_v60, 16  ;;  %v2820_v38 = vshrl.u32 %v8419_v60, 16  ;;  %v2809_v27 = vrot.slane %v2807_v62, 4  ;;  %v2812_v32 = vrot.slane %v2810_v6, 5 }
  0xcd   : > { %v1360_v53 = vpop.f32.mrf.mxu2  ;;  %1932 = vmatmul.bf16.gmra.mxu3 %v7228_v17  ;;  %v2159_v12 = vrot.slane %v2158_v61, 4  ;;  %v7270_v17 = vld [vmem:[%s10026_s3 + $0x1c0] sm:$0xff]  ;;  %v2169_v11 = vrot.slane %v2168_v15, 4  ;;  %v2456_v30 = vunpack.c.l.b16 %v2421_v34 }
  0xce   : > { %v8401_v31 = vadd.f32 %v8335_v4, %v1360_v53  ;;  %v1602_v4 = vsel %vm8083_vm14, %v1600_v33, %v1601_v59  ;;  %v8415_v51 = vpop.f32.mrf.mxu3  ;;  %v2818_v33 = vrot.slane %v2816_v50, 5  ;;  %v8437_v59 = vadd.f32 %v8389_v22, %v1342_v54  ;;  %3102 = vmatpush.bf16.msra.mxu3 %v7270_v17  ;;  %v3504_v61 = vld [vmem:[#allocation2 + $0x64] sm:$0xf] }
  0xcf   : > { %v1635_v43 = vunpack.c.l.b16 %v1602_v4  ;;  %v1982_v37 = vld [vmem:[#allocation2 + $0x68] sm:$0x1]  ;;  %v2822_v39 = vrot.slane %v2820_v38, 4  ;;  %v2813_v36 = vor.u32 %v2812_v32, %v2809_v27  ;;  %v2164_v4 = vsel %vm7877_vm11, %v2159_v12, %v2163_v63  ;;  %v7229_v12 = vld [vmem:[#allocation2 + $0x60] sm:$0xff] }
  0xd0   : > { %v2171_v40 = vshll.u32 %v1982_v37, 16  ;;  %v2423_v3 = vrot.slane %v1982_v37, 5  ;;  %v3547_v54 = vshll.u32 %v3503_v23, 16  ;;  %v3553_v62 = vshll.u32 %v3504_v61, 16  ;;  %v3535_v34 = vld [vmem:[#allocation2 + $0x68] sm:$0x1] }
  0xd1   : > { %v2823_v5 = vor.u32 %v2822_v39, %v2818_v33  ;;  %v2814_v52 = vrot.slane %v2813_v36, 4  ;;  %v3557_v6 = vshrl.u32 %v3504_v61, 16  ;;  %v7416_v38 = vunpack.c.l.bf16 %v8447_v14 }
  0xd2   : > { %v8427_v29 = vpop.f32.mrf.mxu1  ;;  %v2173_v41 = vrot.slane %v2171_v40, 5  ;;  %v2424_v19 = vsel %vm8083_vm14, %v2422_v16, %v2423_v3  ;;  %v7417_v17 = vunpack.c.h.bf16 %v8447_v14  ;;  %v3194_v37 = vrot.slane %v8419_v60, 5 }
  0xd3   : > { %2305 = vmatmul.bf16.gmra.mxu0 %v2213_v26  ;;  %v8442_v26 = vpack.c.b16 %v1635_v43, %v1634_v56  ;;  %v2457_v56 = vunpack.c.l.b16 %v2424_v19  ;;  %v2824_v45 = vrot.slane %v2823_v5, 4  ;;  %v8455_v43 = vunpack.c.l.b16 %v2164_v4  ;;  %v2785_v5 = vld [vmem:[#allocation2 + $0x24] sm:$0xf]  ;;  %v8484_v19 = vld [vmem:[#allocation2 + $0x28] sm:$0xf] }
  0xd4   : > { %v2174_v63 = vsel %vm7877_vm11, %v2169_v11, %v2173_v41  ;;  %v2819_v16 = vsel %vm7877_vm11, %v2814_v52, %v2818_v33  ;;  %v3546_v39 = vrot.slane %v3544_v28, 4  ;;  %v3197_v11 = vrot.slane %v8424_v58, 5 }
  0xd5   : > { %v1362_v10 = vpop.f32.mrf.mxu2  ;;  %v8465_v15 = vunpack.c.l.b16 %v2174_v63  ;;  %v3549_v40 = vrot.slane %v3547_v54, 5  ;;  %v8480_v3 = vunpack.c.l.b16 %v2819_v16  ;;  %v3555_v36 = vrot.slane %v3553_v62, 5 }
  0xd6   : > { %v8431_v53 = vadd.f32 %v8366_v1, %v1362_v10  ;;  %v2826_v1 = vshll.u32 %v8424_v58, 16  ;;  %2560 = vmatmul.bf16.gmra.mxu1 %v2464_v42  ;;  %v8449_v20 = vpop.f32.mrf.mxu3  ;;  %v7278_v42 = vld [vmem:[%s10026_s3 + $0x200] sm:$0xff]  ;;  %v3559_v4 = vrot.slane %v3557_v6, 4  ;;  %v3563_v60 = vshll.u32 %v3535_v34, 16  ;;  %v442_v34 = vld [vmem:[#allocation2 + $0x6c] sm:$0x1] }
  0xd7   : > { %3352 = vmatpush.bf16.msra.mxu0 %v7278_v42  ;;  %v3550_v41 = vor.u32 %v3549_v40, %v3546_v39  ;;  %v2215_v58 = vpack.c.b16 %v8465_v15, %v8455_v43  ;;  %v2834_v62 = vshll.u32 %v2785_v5, 16  ;;  %v2840_v6 = vshll.u32 %v8484_v19, 16 }
  0xd8   : > { %v2828_v22 = vrot.slane %v2826_v1, 5  ;;  %v8477_v1 = vpack.c.b16 %v2457_v56, %v2456_v30  ;;  %v2831_v30 = vshrl.u32 %v2785_v5, 16  ;;  %v3560_v61 = vor.u32 %v3559_v4, %v3555_v36  ;;  %v7301_v56 = vld [vmem:[%s10026_s3 + $0x38] sm:$0xff]  ;;  %v7534_v4 = vld [vmem:[%s7685_s8 + $0x48] sm:$0xff]  }
  0xd9   : > { %v3551_v28 = vrot.slane %v3550_v41, 4  ;;  %v3565_v54 = vrot.slane %v3563_v60, 5  ;;  %3976 = vmatpush.bf16.msrb.mxu2 %v7301_v56  ;;  %v2842_v21 = vrot.slane %v2840_v6, 5  ;;  %v443_v60 = vsel %vm7698_vm3, 0, %v442_v34 }
  0xda   : > { %v8463_v10 = vpop.f32.mrf.mxu1  ;;  %v2829_v32 = vsel %vm7877_vm11, %v2824_v45, %v2828_v22  ;;  %v2833_v63 = vrot.slane %v2831_v30, 4  ;;  %v445_v30 = vld [vmem:[#allocation2 + $0x78] sm:$0x1]  ;;  %444 = vst [vmem:[#allocation2 + $0x6c] sm:$0x1] %v443_v60 }
  0xdb   : > { %1738 = vmatmul.bf16.gmra.mxu2 %v1642_v49  ;;  %v3160_v49 = vld [vmem:[#allocation2 + $0x18] sm:$0xe]  ;;  %v8482_v14 = vunpack.c.l.b16 %v2829_v32  ;;  %v3556_v32 = vsel %vm7877_vm11, %v3551_v28, %v3555_v36  ;;  %v498_v36 = vld [vmem:[#allocation2 + $0x74] sm:$0x1]  ;;  %v7420_v28 = vunpack.c.l.bf16 %v7534_v4 }
  0xdc   : > { %v6578_v33 = vrot.slane %v3160_v49, 9  ;;  %v2850_v49 = vshll.u32 %v8500_v0, 16  ;;  %v8522_v5 = vunpack.c.l.b16 %v3556_v32 }
  0xdd   : > { %v1365_v50 = vpop.f32.mrf.mxu2  ;;  %1937 = vmatmul.bf16.gmra.mxu3 %v7229_v12 }
  0xde   : > { %v8472_v27 = vadd.f32 %v8415_v51, %v1365_v50  ;;  %v3196_v51 = vrot.slane %v3194_v37, 4  ;;  %v3195_v23 = vsel %vm8083_vm14, %v6578_v33, %v3194_v37  ;;  %v2844_v50 = vshrl.u32 %v8484_v19, 16 }
  0xdf   : > { %v1345_v22 = vpop.f32.mrf.mxu0  ;;  %v3265_v16 = vunpack.c.l.b16 %v3195_v23  ;;  %v321_v37 = vmul.f32 %v8259_v46, %v7416_v38  ;;  %v2852_v56 = vrot.slane %v2850_v49, 5 }
  0xe0   : > { %v8487_v52 = vadd.f32 %v8427_v29, %v1345_v22  ;;  %v3198_v45 = vsel %vm8083_vm14, %v3196_v51, %v3197_v11  ;;  %v8498_v42 = vpop.f32.mrf.mxu3  ;;  %v3561_v29 = vrot.slane %v3560_v61, 4  ;;  %v7317_v11 = vld [vmem:[%s10026_s3 + $0xb8] sm:$0xff]  ;;  %v2836_v51 = vrot.slane %v2834_v62, 5 }
  0xe1   : > { %v3266_v33 = vunpack.c.l.b16 %v3198_v45  ;;  %4201 = vmatpush.bf16.msrb.mxu3 %v7317_v11  ;;  %v322_v22 = vmul.f32 %v8259_v46, %v7417_v17  ;;  %v357_v41 = vadd.f32 %v8269_v48, %v321_v37  ;;  %v499_v45 = vsel %vm7709_vm4, 0, %v498_v36 }
  0xe2   : > { %v3566_v40 = vsel %vm7877_vm11, %v3561_v29, %v3565_v54  ;;  %500 = vst [vmem:[#allocation2 + $0x74] sm:$0x1] %v499_v45  ;;  %v3031_v62 = vpack.c.b16 %v8482_v14, %v8480_v3 }
  0xe3   : > { %2310 = vmatmul.bf16.gmra.mxu0 %v2214_v7  ;;  %v8520_v38 = vpop.f32.mrf.mxu1  ;;  %v8524_v57 = vunpack.c.l.b16 %v3566_v40  ;;  %v2846_v7 = vrot.slane %v2844_v50, 4  ;;  %v389_v29 = vmax.f32 %v357_v41, 0.0  ;;  %v7333_v50 = vld [vmem:[%s10026_s3 + $0xf8] sm:$0xff]  ;;  %v8549_v49 = vpack.c.b16 %v3266_v33, %v3265_v16  ;;  %v3161_v33 = vld [vmem:[#allocation2 + $0x24] sm:$0xe] }
  0xe4   : > { %4395 = vmatpush.bf16.msrb.mxu0 %v7333_v50  ;;  %v3201_v40 = vrot.slane %v8484_v19, 5  ;;  %v323_v16 = vmul.f32 %v8259_v46, %v7420_v28  ;;  %v3204_v41 = vrot.slane %v8500_v0, 5  ;;  %v8577_v0 = vld [vmem:[#allocation2 + $0x34] sm:$0xf] }
  0xe5   : > { %v1367_v12 = vpop.f32.mrf.mxu2  ;;  %v2847_v61 = vor.u32 %v2846_v7, %v2842_v21  ;;  %v541_v37 = vpack.c.bf16 %v389_v29, %v389_v29  ;;  %v3767_v34 = vpack.c.b16 %v8524_v57, %v8522_v5  ;;  %v7340_v5 = vld [vmem:[%s10026_s3 + $0x130] sm:$0xff] }
  0xe6   : > { %v8512_v39 = vadd.f32 %v8449_v20, %v1367_v12  ;;  %v2837_v20 = vor.u32 %v2836_v51, %v2833_v63  ;;  %2565 = vmatmul.bf16.gmra.mxu1 %v8477_v1  ;;  %v358_v63 = vadd.f32 %v8269_v48, %v322_v22  ;;  %v7421_v12 = vunpack.c.h.bf16 %v7534_v4 }
  0xe7   : > { %v1347_v23 = vpop.f32.mrf.mxu0  ;;  %v2848_v6 = vrot.slane %v2847_v61, 4  ;;  %v446_v1 = vsel %vm7698_vm3, 0, %v445_v30  ;;  %v696_v36 = vshrl.u32 %v541_v37, 16  ;;  %v699_v4 = vshll.u32 %v541_v37, 16 }
  0xe8   : > { %v8533_v54 = vadd.f32 %v8463_v10, %v1347_v23  ;;  %v2838_v17 = vrot.slane %v2837_v20, 4  ;;  %v7341_v10 = vld [vmem:[%s10026_s3 + $0x138] sm:$0xff]  ;;  %v8547_v32 = vpop.f32.mrf.mxu3  ;;  %v390_v14 = vmax.f32 %v358_v63, 0.0  ;;  %447 = vst [vmem:[#allocation2 + $0x78] sm:$0x1] %v446_v1  ;;  %v6579_v20 = vrot.slane %v3161_v33, 9 }
  0xe9   : > { %v2853_v11 = vsel %vm7877_vm11, %v2848_v6, %v2852_v56  ;;  %4772 = vmatpush.bf16.msrb.mxu1 %v7341_v10  ;;  %v3203_v22 = vrot.slane %v3201_v40, 4  ;;  %v698_v19 = vrot.slane %v696_v36, 7  ;;  %v2788_v63 = vld [vmem:[#allocation2 + $0x30] sm:$0xf]  ;;  %v359_v29 = vadd.f32 %v8269_v48, %v323_v16  ;;  %v942_v36 = vld [vmem:[#allocation2 + $0x74] sm:$0x1] }
  0xea   : > { %v2843_v3 = vsel %vm7877_vm11, %v2838_v17, %v2842_v21  ;;  %v542_v51 = vpack.c.bf16 %v390_v14, %v390_v14  ;;  %v324_v21 = vmul.f32 %v8259_v46, %v7421_v12  ;;  %v8566_v30 = vunpack.c.l.b16 %v2853_v11  ;;  %v938_v17 = vld [vmem:[#allocation2 + $0x6c] sm:$0xf]  ;;  %v7300_v12 = vld [vmem:[%s10026_s3 + $0x30] sm:$0xff]  ;;  %v501_v11 = vld [vmem:[#allocation2 + $0x80] sm:$0x1] }
  0xeb   : > { %1743 = vmatmul.bf16.gmra.mxu2 %v8442_v26  ;;  %v8561_v7 = vpop.f32.mrf.mxu1  ;;  %v8563_v26 = vunpack.c.l.b16 %v2843_v3  ;;  %v8573_v45 = vsel %vm8083_vm14, %v6579_v20, %v3201_v40  ;;  %v3205_v28 = vsel %vm8083_vm14, %v3203_v22, %v3204_v41  ;;  %v701_v50 = vor.u32 %v699_v4, %v698_v19  ;;  %v8593_v4 = vld [vmem:[#allocation2 + $0x38] sm:$0x1] }
  0xec   : > { %v704_v23 = vshrl.u32 %v542_v51, 16  ;;  %v707_v61 = vshll.u32 %v542_v51, 16  ;;  %v3267_v6 = vunpack.c.l.b16 %v8573_v45  ;;  %v702_v10 = vrot.slane %v698_v19, 4  ;;  %3977 = vmatpush.bf16.msrb.mxu2 %v7300_v12 }
  0xed   : > { %3103 = vmatmul.bf16.vlgmr.msra.gmra.mxu3 %v3031_v62  ;;  %v2855_v3 = vshrl.u32 %v2788_v63, 16  ;;  %v2858_v14 = vshll.u32 %v2788_v63, 16  ;;  %v2864_v37 = vshll.u32 %v8577_v0, 16  ;;  %v3268_v33 = vunpack.c.l.b16 %v3205_v28  ;;  %4773 = vmatpush.bf16.msrb.mxu1 %v7340_v5 }
  0xee   : > { %v1370_v60 = vpop.f32.mrf.mxu2  ;;  %v706_v1 = vrot.slane %v704_v23, 7  ;;  %v939_v51 = vsel %vm7802_vm8, %v701_v50, %v938_v17  ;;  %v2874_v45 = vshll.u32 %v8593_v4, 16  ;;  %v391_v28 = vmax.f32 %v359_v29, 0.0  ;;  %v8604_v17 = vld [vmem:[%s7685_s8 + $0x50] sm:$0xff]  }
  0xef   : > { %v8569_v56 = vadd.f32 %v8498_v42, %v1370_v60  ;;  %v360_v42 = vadd.f32 %v8269_v48, %v324_v21  ;;  %v2868_v21 = vshrl.u32 %v8577_v0, 16  ;;  %940 = vst [vmem:[#allocation2 + $0x6c] sm:$0xf] %v939_v51  ;;  %v2857_v41 = vrot.slane %v2855_v3, 4 }
  0xf0   : > { %v1350_v62 = vpop.f32.mrf.mxu0  ;;  %v8589_v16 = vpop.f32.mrf.mxu3  ;;  %v709_v20 = vor.u32 %v707_v61, %v706_v1  ;;  %v711_v22 = vrot.slane %v706_v1, 4  ;;  %v2860_v60 = vrot.slane %v2858_v14, 5  ;;  %v2866_v19 = vrot.slane %v2864_v37, 5  ;;  %v7254_v14 = vld [vmem:[#allocation2 + $0x18] sm:$0xff] }
  0xf1   : > { %v8587_v40 = vadd.f32 %v8520_v38, %v1350_v62  ;;  %v7316_v38 = vld [vmem:[%s10026_s3 + $0xb0] sm:$0xff]  ;;  %v2870_v23 = vrot.slane %v2868_v21, 4  ;;  %v2876_v12 = vrot.slane %v2874_v45, 5  ;;  %v502_v29 = vsel %vm7709_vm4, 0, %v501_v11 }
  0xf2   : > { %v710_v63 = vsel %vm7783_vm7, %v702_v10, %v709_v20  ;;  %v943_v43 = vsel %vm7698_vm3, %v711_v22, %v942_v36  ;;  %v2861_v15 = vor.u32 %v2860_v60, %v2857_v41  ;;  %4202 = vmatpush.bf16.msrb.mxu3 %v7316_v38  ;;  %v543_v1 = vpack.c.bf16 %v391_v28, %v391_v28  ;;  %v7332_v41 = vld [vmem:[%s10026_s3 + $0xf0] sm:$0xff] }
  0xf3   : > { %2315 = vmatmul.bf16.gmra.mxu0 %v2215_v58  ;;  %v8606_v61 = vpop.f32.mrf.mxu1  ;;  %v392_v58 = vmax.f32 %v360_v42, 0.0  ;;  %941 = vst [vmem:[#allocation2 + $0x70] sm:$0xf] %v710_v63  ;;  %v2871_v62 = vor.u32 %v2870_v23, %v2866_v19  ;;  %v7424_v51 = vunpack.c.l.bf16 %v8604_v17  ;;  %v3032_v42 = vpack.c.b16 %v8566_v30, %v8563_v26  ;;  %v3162_v63 = vld [vmem:[#allocation2 + $0x30] sm:$0xe] }
  0xf4   : > { %10048 = vst [vmem:[#allocation4_spill] sm:$0xff] %v8606_v61  ;;  %v2862_v10 = vrot.slane %v2861_v15, 4  ;;  %v713_v11 = vshrl.u32 %v543_v1, 16  ;;  %v716_v21 = vshll.u32 %v543_v1, 16  ;;  %v8625_v20 = vpack.c.b16 %v3268_v33, %v3267_v6  ;;  %4396 = vmatpush.bf16.msrb.mxu0 %v7332_v41  ;;  %v945_v41 = vld [vmem:[#allocation2 + $0x78] sm:$0xf] }
  0xf5   : > { %944 = vst [vmem:[#allocation2 + $0x74] sm:$0x1] %v943_v43  ;;  %v8617_v37 = vpack.c.bf16 %v392_v58, %v392_v58  ;;  %v2872_v36 = vrot.slane %v2871_v62, 4  ;;  %v3208_v45 = vrot.slane %v8577_v0, 5  ;;  %v8649_v28 = vmul.f32 %v8259_v46, %v7424_v51 }
  0xf6   : > { %v1372_v50 = vpop.f32.mrf.mxu2  ;;  %3839 = vmatmul.bf16.vlgmr.msra.gmra.mxu1 %v3767_v34  ;;  %503 = vst [vmem:[#allocation2 + $0x80] sm:$0x1] %v502_v29  ;;  %v2867_v22 = vsel %vm7877_vm11, %v2862_v10, %v2866_v19  ;;  %v7425_v34 = vunpack.c.h.bf16 %v8604_v17  ;;  %v3505_v6 = vld [vmem:[#allocation2 + $0x6c] sm:$0xf]  ;;  %v8644_v60 = vrot.slane %v713_v11, 7  ;;  %v6580_v29 = vrot.slane %v3162_v63, 9 }
  0xf7   : > { %v8615_v3 = vadd.f32 %v8547_v32, %v1372_v50  ;;  %v721_v57 = vshrl.u32 %v8617_v37, 16  ;;  %v2877_v33 = vsel %vm7877_vm11, %v2872_v36, %v2876_v12  ;;  %v724_v38 = vshll.u32 %v8617_v37, 16 }
  0xf8   : > { %v1352_v32 = vpop.f32.mrf.mxu0  ;;  %v8640_v30 = vpop.f32.mrf.mxu3  ;;  %v3568_v19 = vshrl.u32 %v3505_v6, 16  ;;  %v3571_v23 = vshll.u32 %v3505_v6, 16  ;;  %v8653_v17 = vunpack.c.l.b16 %v2877_v33  ;;  %v718_v43 = vor.u32 %v716_v21, %v8644_v60  ;;  %v2791_v33 = vld [vmem:[#allocation2 + $0x3c] sm:$0xf] }
  0xf9   : > { %v8638_v26 = vadd.f32 %v8561_v7, %v1352_v32  ;;  %v8651_v7 = vunpack.c.l.b16 %v2867_v22  ;;  %v719_v15 = vrot.slane %v8644_v60, 4  ;;  %v723_v0 = vrot.slane %v721_v57, 7 }
  0xfa   : > { %v3506_v50 = vld [vmem:[#allocation2 + $0x70] sm:$0xf]  ;;  %v3570_v62 = vrot.slane %v3568_v19, 4  ;;  %v3573_v12 = vrot.slane %v3571_v23, 5  ;;  %v3210_v51 = vrot.slane %v3208_v45, 4  ;;  %v3211_v36 = vrot.slane %v8593_v4, 5 }
  0xfb   : > { %2725 = vmatmul.bf16.vlgmr.msra.gmra.mxu2 %v7254_v14  ;;  %v8657_v58 = vpop.f32.mrf.mxu1  ;;  %v3577_v10 = vshll.u32 %v3506_v50, 16  ;;  %v3581_v37 = vshrl.u32 %v3506_v50, 16  ;;  %v8663_v22 = vsel %vm8083_vm14, %v6580_v29, %v3208_v45  ;;  %v326_v60 = vmul.f32 %v8259_v46, %v7425_v34  ;;  %v7299_v23 = vld [vmem:[%s10026_s3 + $0x28] sm:$0xff]  ;;  %v8683_v34 = vld [vmem:[#allocation2 + $0x40] sm:$0xf] }
  0xfc   : > { %10049 = vst [vmem:[#allocation5_spill] sm:$0xff] %v8657_v58  ;;  %v3536_v14 = vld [vmem:[#allocation2 + $0x74] sm:$0x1]  ;;  %v3574_v21 = vor.u32 %v3573_v12, %v3570_v62  ;;  %v8667_v57 = vsel %vm8083_vm14, %v3210_v51, %v3211_v36  ;;  %v3269_v45 = vunpack.c.l.b16 %v8663_v22  ;;  %v726_v12 = vor.u32 %v724_v38, %v723_v0  ;;  %3978 = vmatpush.bf16.msrb.mxu2 %v7299_v23  ;;  %v7255_v23 = vld [vmem:[#allocation2 + $0x24] sm:$0xff] }
  0xfd   : > { %3108 = vmatmul.bf16.gmra.mxu3 %v3032_v42  ;;  %v3587_v32 = vshll.u32 %v3536_v14, 16  ;;  %v3579_v5 = vrot.slane %v3577_v10, 5  ;;  %v3583_v6 = vrot.slane %v3581_v37, 4  ;;  %v949_v63 = vld [vmem:[#allocation2 + $0x80] sm:$0x1]  ;;  %v728_v29 = vrot.slane %v723_v0, 4 }
  0xfe   : > { %v1709_v1 = vpop.f32.mrf.mxu2  ;;  %v3575_v42 = vrot.slane %v3574_v21, 4  ;;  %v946_v46 = vsel %vm7802_vm8, %v718_v43, %v945_v41  ;;  %v8688_v14 = vld [vmem:[#allocation2 + $0x44] sm:$0x1]  ;;  %v2879_v10 = vshrl.u32 %v2791_v33, 16  ;;  %v2882_v37 = vshll.u32 %v2791_v33, 16  ;;  %v7315_v43 = vld [vmem:[%s10026_s3 + $0xa8] sm:$0xff] }
  0xff   : > { %v1749_v11 = vadd.f32 %v1709_v1, %v8248_v25  ;;  %v3589_v19 = vrot.slane %v3587_v32, 5  ;;  %v3584_v62 = vor.u32 %v3583_v6, %v3579_v5  ;;  %v3270_v1 = vunpack.c.l.b16 %v8667_v57  ;;  %947 = vst [vmem:[#allocation2 + $0x78] sm:$0xf] %v946_v46  ;;  %4203 = vmatpush.bf16.msrb.mxu3 %v7315_v43  ;;  %v448_v33 = vld [vmem:[#allocation2 + $0x84] sm:$0x1] }
 0x100   : > { %v8670_v4 = vpop.f32.mrf.mxu0  ;;  %v8679_v50 = vpop.f32.mrf.mxu3  ;;  %v727_v51 = vsel %vm7783_vm7, %v719_v15, %v726_v12  ;;  %v950_v36 = vsel %vm7698_vm3, %v728_v29, %v949_v63  ;;  %v2881_v21 = vrot.slane %v2879_v10, 4  ;;  %v2884_v32 = vrot.slane %v2882_v37, 5  ;;  %v504_v29 = vld [vmem:[#allocation2 + $0x8c] sm:$0x1]  ;;  %v8964_v58 = vld [vmem:[#allocation2 + $0x64] sm:$0xf] }
 0x101   : > { %v8673_v25 = vadd.f32 %v8589_v16, %v1749_v11  ;;  %v3580_v16 = vsel %vm7877_vm11, %v3575_v42, %v3579_v5  ;;  %v3585_v38 = vrot.slane %v3584_v62, 4  ;;  %948 = vst [vmem:[#allocation2 + $0x7c] sm:$0xf] %v727_v51  ;;  %v2888_v22 = vshll.u32 %v8683_v34, 16 }
 0x102   : > { %v3753_v0 = vunpack.c.l.b16 %v3580_v16  ;;  %951 = vst [vmem:[#allocation2 + $0x80] sm:$0x1] %v950_v36  ;;  %v2898_v15 = vshll.u32 %v8688_v14, 16  ;;  %v361_v6 = vadd.f32 %v8269_v48, %v8649_v28  ;;  %v362_v57 = vadd.f32 %v8269_v48, %v326_v60 }
 0x103   : > { %3353 = vmatmul.bf16.vlgmr.msra.gmra.mxu0 %v8549_v49  ;;  %v8698_v11 = vpop.f32.mrf.mxu1  ;;  %v2892_v49 = vshrl.u32 %v8683_v34, 16  ;;  %v3590_v5 = vsel %vm7877_vm11, %v3585_v38, %v3589_v19  ;;  %v2885_v62 = vor.u32 %v2884_v32, %v2881_v21  ;;  %v2890_v12 = vrot.slane %v2888_v22, 5  ;;  %v7339_v38 = vld [vmem:[%s10026_s3 + $0x128] sm:$0xff] }
 0x104   : > { %10050 = vst [vmem:[#allocation6_spill] sm:$0xff] %v8698_v11  ;;  %v3754_v63 = vunpack.c.l.b16 %v3590_v5  ;;  %v3033_v19 = vpack.c.b16 %v8653_v17, %v8651_v7  ;;  %v393_v16 = vmax.f32 %v361_v6, 0.0  ;;  %v394_v10 = vmax.f32 %v362_v57, 0.0  ;;  %4774 = vmatpush.bf16.msrb.mxu1 %v7339_v38  ;;  %v8743_v38 = vld [vmem:[%s7685_s8 + $0x58] sm:$0xff]  }
 0x105   : > { %v2894_v46 = vrot.slane %v2892_v49, 4  ;;  %v2886_v60 = vrot.slane %v2885_v62, 4  ;;  %v449_v7 = vsel %vm7698_vm3, 0, %v448_v33  ;;  %v2900_v36 = vrot.slane %v2898_v15, 5  ;;  %v3163_v15 = vld [vmem:[#allocation2 + $0x3c] sm:$0xe] }
 0x106   : > { %v1711_v41 = vpop.f32.mrf.mxu2  ;;  %v3768_v48 = vpack.c.b16 %v3754_v63, %v3753_v0  ;;  %v3507_v43 = vld [vmem:[#allocation2 + $0x78] sm:$0xf]  ;;  %450 = vst [vmem:[#allocation2 + $0x84] sm:$0x1] %v449_v7  ;;  %v545_v0 = vpack.c.bf16 %v393_v16, %v393_v16  ;;  %v8728_v21 = vpack.c.b16 %v3270_v1, %v3269_v45  ;;  %v3215_v57 = vrot.slane %v8683_v34, 5 }
 0x107   : > { %v1750_v42 = vadd.f32 %v1711_v41, %v8409_v44  ;;  %v7331_v44 = vld [vmem:[%s10026_s3 + $0xe8] sm:$0xff]  ;;  %v2895_v51 = vor.u32 %v2894_v46, %v2890_v12  ;;  %v3592_v32 = vshrl.u32 %v3507_v43, 16  ;;  %v3595_v22 = vshll.u32 %v3507_v43, 16 }
 0x108   : > { %v8711_v37 = vpop.f32.mrf.mxu0  ;;  %v8724_v17 = vpop.f32.mrf.mxu3  ;;  %3844 = vmatmul.bf16.gmra.mxu1 %v3768_v48  ;;  %v2891_v49 = vsel %vm7877_vm11, %v2886_v60, %v2890_v12  ;;  %v3508_v41 = vld [vmem:[#allocation2 + $0x7c] sm:$0xf]  ;;  %4397 = vmatpush.bf16.msrb.mxu0 %v7331_v44  ;;  %v8735_v33 = vpack.c.bf16 %v394_v10, %v394_v10  ;;  %v6581_v16 = vrot.slane %v3163_v15, 9  ;;  %v730_v48 = vshrl.u32 %v545_v0, 16 }
 0x109   : > { %10051 = vst [vmem:[#allocation7_spill] sm:$0xff] %v8711_v37  ;;  %v8714_v28 = vadd.f32 %v8640_v30, %v1750_v42  ;;  %v505_v30 = vsel %vm7709_vm4, 0, %v504_v29  ;;  %v2896_v5 = vrot.slane %v2895_v51, 4  ;;  %v8732_v6 = vunpack.c.l.b16 %v2891_v49  ;;  %v3537_v45 = vld [vmem:[#allocation2 + $0x80] sm:$0x1] }
 0x10a   : > { %506 = vst [vmem:[#allocation2 + $0x8c] sm:$0x1] %v505_v30  ;;  %v3594_v1 = vrot.slane %v3592_v32, 4  ;;  %v3601_v63 = vshll.u32 %v3508_v41, 16  ;;  %v3605_v62 = vshrl.u32 %v3508_v41, 16  ;;  %v3611_v29 = vshll.u32 %v3537_v45, 16 }
 0x10b   : > { %10052 = vst [vmem:[#allocation8_spill] sm:$0xff] %v8714_v28  ;;  %2730 = vmatmul.bf16.gmra.mxu2 %v7255_v23  ;;  %v8737_v42 = vpop.f32.mrf.mxu1  ;;  %v3597_v23 = vrot.slane %v3595_v22, 5  ;;  %v2901_v46 = vsel %vm7877_vm11, %v2896_v5, %v2900_v36  ;;  %v8749_v43 = vsel %vm8083_vm14, %v6581_v16, %v3215_v57  ;;  %v3217_v51 = vrot.slane %v3215_v57, 4  ;;  %v7298_v49 = vld [vmem:[%s10026_s3 + $0x20] sm:$0xff]  ;;  %v2794_v45 = vld [vmem:[#allocation2 + $0x48] sm:$0xf] }
 0x10c   : > { %10053 = vst [vmem:[#allocation9_spill] sm:$0xff] %v8737_v42  ;;  %v3603_v10 = vrot.slane %v3601_v63, 5  ;;  %v3607_v44 = vrot.slane %v3605_v62, 4  ;;  %v8745_v7 = vunpack.c.l.b16 %v2901_v46  ;;  %v3218_v30 = vrot.slane %v8688_v14, 5  ;;  %3979 = vmatpush.bf16.msrb.mxu2 %v7298_v49  ;;  %v7314_v46 = vld [vmem:[%s10026_s3 + $0xa0] sm:$0xff] }
 0x10d   : > { %3113 = vmatmul.bf16.gmra.mxu3 %v3033_v19  ;;  %v3598_v34 = vor.u32 %v3597_v23, %v3594_v1  ;;  %v3613_v22 = vrot.slane %v3611_v29, 5  ;;  %v732_v15 = vrot.slane %v730_v48, 7  ;;  %v733_v57 = vshll.u32 %v545_v0, 16  ;;  %v952_v62 = vld [vmem:[#allocation2 + $0x84] sm:$0xf] }
 0x10e   : > { %v1714_v12 = vpop.f32.mrf.mxu2  ;;  %v3608_v19 = vor.u32 %v3607_v44, %v3603_v10  ;;  %v7428_v14 = vunpack.c.l.bf16 %v8743_v38  ;;  %v738_v63 = vshrl.u32 %v8735_v33, 16  ;;  %v8774_v0 = vsel %vm8083_vm14, %v3217_v51, %v3218_v30  ;;  %4204 = vmatpush.bf16.msrb.mxu3 %v7314_v46  ;;  %v507_v42 = vld [vmem:[#allocation2 + $0x98] sm:$0x1] }
 0x10f   : > { %v1751_v60 = vadd.f32 %v1714_v12, %v8356_v55  ;;  %v3599_v55 = vrot.slane %v3598_v34, 4  ;;  %v8769_v12 = vld [vmem:[#allocation2 + $0x4c] sm:$0xf]  ;;  %v735_v16 = vor.u32 %v733_v57, %v732_v15  ;;  %v741_v48 = vshll.u32 %v8735_v33, 16 }
 0x110   : > { %v8752_v36 = vpop.f32.mrf.mxu0  ;;  %v8760_v41 = vpop.f32.mrf.mxu3  ;;  %v3609_v1 = vrot.slane %v3608_v19, 4  ;;  %v736_v44 = vrot.slane %v732_v15, 4  ;;  %v2906_v57 = vshll.u32 %v2794_v45, 16  ;;  %v2912_v33 = vshll.u32 %v8769_v12, 16  ;;  %v451_v15 = vld [vmem:[#allocation2 + $0x90] sm:$0x1] }
 0x111   : > { %10054 = vst [vmem:[#allocation10_spill] sm:$0xff] %v8752_v36  ;;  %v8755_v32 = vadd.f32 %v8679_v50, %v1751_v60  ;;  %v3604_v50 = vsel %vm7877_vm11, %v3599_v55, %v3603_v10  ;;  %v7256_v60 = vld [vmem:[#allocation2 + $0x30] sm:$0xff]  ;;  %v2903_v55 = vshrl.u32 %v2794_v45, 16  ;;  %v953_v51 = vsel %vm7802_vm8, %v735_v16, %v952_v62  ;;  %v956_v30 = vld [vmem:[#allocation2 + $0x8c] sm:$0x1] }
 0x112   : > { %v3755_v29 = vunpack.c.l.b16 %v3604_v50  ;;  %v3614_v10 = vsel %vm7877_vm11, %v3609_v1, %v3613_v22  ;;  %v8786_v50 = vld [vmem:[#allocation2 + $0x50] sm:$0x1]  ;;  %954 = vst [vmem:[#allocation2 + $0x84] sm:$0xf] %v953_v51  ;;  %v2916_v46 = vshrl.u32 %v8769_v12, 16  ;;  %v452_v51 = vsel %vm7698_vm3, 0, %v451_v15 }
 0x113   : > { %10055 = vst [vmem:[#allocation11_spill] sm:$0xff] %v8755_v32  ;;  %3358 = vmatmul.bf16.gmra.mxu0 %v8625_v20  ;;  %v8780_v34 = vpop.f32.mrf.mxu1  ;;  %v740_v20 = vrot.slane %v738_v63, 7  ;;  %v3756_v49 = vunpack.c.l.b16 %v3614_v10  ;;  %v2905_v22 = vrot.slane %v2903_v55, 4  ;;  %v2908_v63 = vrot.slane %v2906_v57, 5 }
 0x114   : > { %10056 = vst [vmem:[#allocation12_spill] sm:$0xff] %v8780_v34  ;;  %v2914_v10 = vrot.slane %v2912_v33, 5  ;;  %v3164_v33 = vld [vmem:[#allocation2 + $0x48] sm:$0xe] }
 0x115   : > { %v743_v23 = vor.u32 %v741_v48, %v740_v20  ;;  %v745_v34 = vrot.slane %v740_v20, 4  ;;  %v3769_v1 = vpack.c.b16 %v3756_v49, %v3755_v29  ;;  %v2922_v48 = vshll.u32 %v8786_v50, 16  ;;  %v7330_v29 = vld [vmem:[%s10026_s3 + $0xe0] sm:$0xff]  ;;  %453 = vst [vmem:[#allocation2 + $0x90] sm:$0x1] %v452_v51 }
 0x116   : > { %v1716_v19 = vpop.f32.mrf.mxu2  ;;  %v7338_v20 = vld [vmem:[%s10026_s3 + $0x120] sm:$0xff]  ;;  %v3222_v49 = vrot.slane %v8769_v12, 5  ;;  %4398 = vmatpush.bf16.msrb.mxu0 %v7330_v29 }
 0x117   : > { %v1752_v5 = vadd.f32 %v1716_v19, %v8437_v59  ;;  %v744_v45 = vsel %vm7783_vm7, %v736_v44, %v743_v23  ;;  %v957_v59 = vsel %vm7698_vm3, %v745_v34, %v956_v30  ;;  %v7429_v23 = vunpack.c.h.bf16 %v8743_v38  ;;  %v8813_v34 = vld [vmem:[%s10024_s1] ss:$0 sm:$0xff]  ;;  %4775 = vmatpush.bf16.msrb.mxu1 %v7338_v20 }
 0x118   : > { %v8791_v62 = vpop.f32.mrf.mxu0  ;;  %v8807_v55 = vpop.f32.mrf.mxu3  ;;  %955 = vst [vmem:[#allocation2 + $0x88] sm:$0xf] %v744_v45  ;;  %v327_v44 = vmul.f32 %v8813_v34, %v7428_v14  ;;  %3849 = vmatmul.bf16.gmra.mxu1 %v3769_v1  ;;  %v2924_v19 = vrot.slane %v2922_v48, 5  ;;  %v508_v30 = vsel %vm7709_vm4, 0, %v507_v42  ;;  %v8825_v14 = vld [vmem:[%s10025_s2] ss:$0 sm:$0xff] }
 0x119   : > { %v8794_v16 = vadd.f32 %v8724_v17, %v1752_v5  ;;  %v2909_v17 = vor.u32 %v2908_v63, %v2905_v22  ;;  %v2918_v5 = vrot.slane %v2916_v46, 4  ;;  %958 = vst [vmem:[#allocation2 + $0x8c] sm:$0x1] %v957_v59  ;;  %v328_v22 = vmul.f32 %v8813_v34, %v7429_v23  ;;  %v3509_v45 = vld [vmem:[#allocation2 + $0x84] sm:$0xf] }
 0x11a   : > { %v363_v12 = vadd.f32 %v8825_v14, %v327_v44  ;;  %v6582_v1 = vrot.slane %v3164_v33, 9  ;;  %v3224_v42 = vrot.slane %v3222_v49, 4  ;;  %v3225_v63 = vrot.slane %v8786_v50, 5  ;;  %509 = vst [vmem:[#allocation2 + $0x98] sm:$0x1] %v508_v30  ;;  %v8842_v51 = vld [vmem:[%s7685_s8 + $0x60] sm:$0xff]  }
 0x11b   : > { %2735 = vmatmul.bf16.gmra.mxu2 %v7256_v60  ;;  %v2910_v38 = vrot.slane %v2909_v17, 4  ;;  %v2919_v57 = vor.u32 %v2918_v5, %v2914_v10  ;;  %v8828_v60 = vpop.f32.mrf.mxu1  ;;  %v364_v29 = vadd.f32 %v8825_v14, %v328_v22  ;;  %v10058_v5 = vpack.c.b16 %v8745_v7, %v8732_v6 }
 0x11c   : > { %10057 = vst [vmem:[#allocation13_spill] sm:$0xff] %v8828_v60  ;;  %v395_v20 = vmax.f32 %v363_v12, 0.0  ;;  %v3616_v23 = vshrl.u32 %v3509_v45, 16  ;;  %v3619_v44 = vshll.u32 %v3509_v45, 16  ;;  %v959_v11 = vld [vmem:[#allocation2 + $0x90] sm:$0xf] }
 0x11d   : > { %v2915_v59 = vsel %vm7877_vm11, %v2910_v38, %v2914_v10  ;;  %v2920_v48 = vrot.slane %v2919_v57, 4  ;;  %3118 = vmatmul.bf16.gmra.mxu3 %v10058_v5  ;;  %v8848_v38 = vsel %vm8083_vm14, %v6582_v1, %v3222_v49  ;;  %v396_v30 = vmax.f32 %v364_v29, 0.0 }
 0x11e   : > { %v1719_v46 = vpop.f32.mrf.mxu2  ;;  %v8839_v50 = vunpack.c.l.b16 %v2915_v59  ;;  %v3618_v33 = vrot.slane %v3616_v23, 4  ;;  %v3621_v22 = vrot.slane %v3619_v44, 5  ;;  %v547_v29 = vpack.c.bf16 %v395_v20, %v395_v20 }
 0x11f   : > { %v1753_v17 = vadd.f32 %v1719_v46, %v8487_v52  ;;  %v2925_v10 = vsel %vm7877_vm11, %v2920_v48, %v2924_v19  ;;  %v8852_v52 = vsel %vm8083_vm14, %v3224_v42, %v3225_v63  ;;  %v3510_v57 = vld [vmem:[#allocation2 + $0x88] sm:$0xf]  ;;  %v7297_v19 = vld [vmem:[%s10026_s3 + $0x18] sm:$0xff] }
 0x120   : > { %v8854_v6 = vpop.f32.mrf.mxu0  ;;  %v8859_v12 = vunpack.c.l.b16 %v2925_v10  ;;  %v8864_v49 = vpop.f32.mrf.mxu3  ;;  %v3538_v1 = vld [vmem:[#allocation2 + $0x8c] sm:$0x1]  ;;  %v3625_v42 = vshll.u32 %v3510_v57, 16  ;;  %v3629_v63 = vshrl.u32 %v3510_v57, 16  ;;  %3980 = vmatpush.bf16.msrb.mxu2 %v7297_v19  ;;  %v7313_v10 = vld [vmem:[%s10026_s3 + $0x98] sm:$0xff]  ;;  %v548_v57 = vpack.c.bf16 %v396_v30, %v396_v30 }
 0x121   : > { %10059 = vst [vmem:[#allocation14_spill] sm:$0xff] %v8854_v6  ;;  %v8857_v7 = vadd.f32 %v8760_v41, %v1753_v17  ;;  %v3622_v41 = vor.u32 %v3621_v22, %v3618_v33  ;;  %v3635_v59 = vshll.u32 %v3538_v1, 16  ;;  %v2797_v17 = vld [vmem:[#allocation2 + $0x54] sm:$0xf]  ;;  %v747_v19 = vshrl.u32 %v547_v29, 16  ;;  %v7257_v48 = vld [vmem:[#allocation2 + $0x3c] sm:$0xff]  ;;  %4205 = vmatpush.bf16.msrb.mxu3 %v7313_v10 }
 0x122   : > { %v3627_v5 = vrot.slane %v3625_v42, 5  ;;  %v3631_v23 = vrot.slane %v3629_v63, 4  ;;  %v750_v1 = vshll.u32 %v547_v29, 16  ;;  %v758_v42 = vshll.u32 %v548_v57, 16  ;;  %v2798_v30 = vld [vmem:[#allocation2 + $0x58] sm:$0xf] }
 0x123   : > { %10060 = vst [vmem:[#allocation15_spill] sm:$0xff] %v8857_v7  ;;  %3363 = vmatmul.bf16.gmra.mxu0 %v8728_v21  ;;  %v8875_v46 = vpop.f32.mrf.mxu1  ;;  %v3623_v33 = vrot.slane %v3622_v41, 4  ;;  %v3637_v22 = vrot.slane %v3635_v59, 5  ;;  %v755_v21 = vshrl.u32 %v548_v57, 16  ;;  %v2927_v63 = vshrl.u32 %v2797_v17, 16 }
 0x124   : > { %v3632_v45 = vor.u32 %v3631_v23, %v3627_v5  ;;  %v749_v60 = vrot.slane %v747_v19, 7  ;;  %v8880_v6 = vld [vmem:[#allocation2 + $0x5c] sm:$0x1]  ;;  %v2930_v41 = vshll.u32 %v2797_v17, 16 }
 0x125   : > { %v3628_v44 = vsel %vm7877_vm11, %v3623_v33, %v3627_v5  ;;  %v757_v29 = vrot.slane %v755_v21, 7  ;;  %v2929_v36 = vrot.slane %v2927_v63, 4  ;;  %v7329_v5 = vld [vmem:[%s10026_s3 + $0xd8] sm:$0xff]  ;;  %v2940_v21 = vshrl.u32 %v2798_v30, 16 }
 0x126   : > { %v1721_v20 = vpop.f32.mrf.mxu2  ;;  %v3633_v59 = vrot.slane %v3632_v45, 4  ;;  %v3757_v7 = vunpack.c.l.b16 %v3628_v44  ;;  %v752_v57 = vor.u32 %v750_v1, %v749_v60  ;;  %v2932_v32 = vrot.slane %v2930_v41, 5  ;;  %v7337_v45 = vld [vmem:[%s10026_s3 + $0x118] sm:$0xff]  ;;  %4399 = vmatpush.bf16.msrb.mxu0 %v7329_v5 }
 0x127   : > { %v1754_v15 = vadd.f32 %v1721_v20, %v8533_v54  ;;  %v753_v54 = vrot.slane %v749_v60, 4  ;;  %v963_v20 = vld [vmem:[#allocation2 + $0x98] sm:$0x1]  ;;  %v760_v33 = vor.u32 %v758_v42, %v757_v29  ;;  %v454_v63 = vld [vmem:[#allocation2 + $0x9c] sm:$0x1]  ;;  %v2946_v42 = vshll.u32 %v8880_v6, 16  ;;  %4776 = vmatpush.bf16.msrb.mxu1 %v7337_v45 }
 0x128   : > { %v8882_v23 = vpop.f32.mrf.mxu0  ;;  %v3638_v17 = vsel %vm7877_vm11, %v3633_v59, %v3637_v22  ;;  %v8895_v44 = vpop.f32.mrf.mxu3  ;;  %v960_v19 = vsel %vm7802_vm8, %v752_v57, %v959_v11  ;;  %v2933_v1 = vor.u32 %v2932_v32, %v2929_v36  ;;  %v2942_v36 = vrot.slane %v2940_v21, 4 }
 0x129   : > { %v8885_v10 = vadd.f32 %v8807_v55, %v1754_v15  ;;  %v762_v55 = vrot.slane %v757_v29, 4  ;;  %v2936_v15 = vshll.u32 %v2798_v30, 16  ;;  %v3758_v60 = vunpack.c.l.b16 %v3638_v17  ;;  %961 = vst [vmem:[#allocation2 + $0x90] sm:$0xf] %v960_v19  ;;  %v510_v19 = vld [vmem:[#allocation2 + $0xa4] sm:$0x1] }
 0x12a   : > { %v761_v41 = vsel %vm7783_vm7, %v753_v54, %v760_v33  ;;  %v2934_v11 = vrot.slane %v2933_v1, 4  ;;  %v2948_v5 = vrot.slane %v2946_v42, 5  ;;  %v3229_v54 = vrot.slane %v2798_v30, 5 }
 0x12b   : > { %2740 = vmatmul.bf16.gmra.mxu2 %v7257_v48  ;;  %v964_v22 = vsel %vm7698_vm3, %v762_v55, %v963_v20  ;;  %v2938_v59 = vrot.slane %v2936_v15, 5  ;;  %v3165_v48 = vld [vmem:[#allocation2 + $0x54] sm:$0xe]  ;;  %v3770_v29 = vpack.c.b16 %v3758_v60, %v3757_v7  ;;  %v8904_v17 = vpop.f32.mrf.mxu1  ;;  %962 = vst [vmem:[#allocation2 + $0x94] sm:$0xf] %v761_v41  ;;  %v3232_v33 = vrot.slane %v8880_v6, 5 }
 0x12c   : > { %10061 = vst [vmem:[#allocation16_spill] sm:$0xff] %v8904_v17  ;;  %v6583_v32 = vrot.slane %v3165_v48, 9  ;;  %v7433_v20 = vunpack.c.h.bf16 %v8842_v51  ;;  %v10062_v7 = vpack.c.b16 %v8859_v12, %v8839_v50  ;;  %v455_v60 = vsel %vm7698_vm3, 0, %v454_v63  ;;  %v2800_v41 = vld [vmem:[#allocation2 + $0x60] sm:$0xf] }
 0x12d   : > { %965 = vst [vmem:[#allocation2 + $0x98] sm:$0x1] %v964_v22  ;;  %3854 = vmatmul.bf16.gmra.mxu1 %v3770_v29  ;;  %v2939_v45 = vsel %vm7877_vm11, %v2934_v11, %v2938_v59  ;;  %v2943_v15 = vor.u32 %v2942_v36, %v2938_v59  ;;  %v10063_v30 = vunpack.c.l.b16 %v8749_v43  ;;  %v10064_v6 = vunpack.c.l.b16 %v8774_v0 }
 0x12e   : > { %v1724_v57 = vpop.f32.mrf.mxu2  ;;  %3123 = vmatmul.bf16.gmra.mxu3 %v10062_v7  ;;  %v3231_v21 = vrot.slane %v3229_v54, 4  ;;  %v10065_v50 = vunpack.c.l.bf16 %v8842_v51  ;;  %456 = vst [vmem:[#allocation2 + $0x9c] sm:$0x1] %v455_v60  ;;  %v10066_v43 = vunpack.c.l.b16 %v8848_v38  ;;  %v10067_v0 = vunpack.c.l.b16 %v8852_v52  ;;  %v7296_v51 = vld [vmem:[%s10026_s3 + $0x10] sm:$0xff] }
 0x12f   : > { %v1755_v55 = vadd.f32 %v1724_v57, %v8587_v40  ;;  %v3284_v1 = vpack.c.b16 %v10064_v6, %v10063_v30  ;;  %v8922_v40 = vsel %vm8083_vm14, %v6583_v32, %v3229_v54  ;;  %v2944_v42 = vrot.slane %v2943_v15, 4  ;;  %3981 = vmatpush.bf16.msrb.mxu2 %v7296_v51  ;;  %v7312_v60 = vld [vmem:[%s10026_s3 + $0x90] sm:$0xff] }
 0x130   : > { %v329_v12 = vmul.f32 %v8813_v34, %v10065_v50  ;;  %v8927_v22 = vpop.f32.mrf.mxu0  ;;  %v8936_v59 = vpack.c.b16 %v10067_v0, %v10066_v43  ;;  %v330_v48 = vmul.f32 %v8813_v34, %v7433_v20  ;;  %v8942_v29 = vpop.f32.mrf.mxu3  ;;  %v8944_v11 = vunpack.c.l.b16 %v2939_v45  ;;  %v3511_v52 = vld [vmem:[#allocation2 + $0x90] sm:$0xf]  ;;  %4206 = vmatpush.bf16.msrb.mxu3 %v7312_v60 }
 0x131   : > { %v8930_v63 = vadd.f32 %v8864_v49, %v1755_v55  ;;  %v511_v38 = vsel %vm7709_vm4, 0, %v510_v19  ;;  %v2949_v32 = vsel %vm7877_vm11, %v2944_v42, %v2948_v5  ;;  %v8954_v57 = vsel %vm8083_vm14, %v3231_v21, %v3232_v33  ;;  %v7336_v60 = vld [vmem:[%s10026_s3 + $0x110] sm:$0xff] }
 0x132   : > { %v365_v36 = vadd.f32 %v8825_v14, %v329_v12  ;;  %v366_v54 = vadd.f32 %v8825_v14, %v330_v48  ;;  %512 = vst [vmem:[#allocation2 + $0xa4] sm:$0x1] %v511_v38  ;;  %v2951_v20 = vshrl.u32 %v2800_v41, 16  ;;  %v3512_v55 = vld [vmem:[#allocation2 + $0x94] sm:$0xf]  ;;  %v3640_v7 = vshrl.u32 %v3511_v52, 16  ;;  %4777 = vmatpush.bf16.msrb.mxu1 %v7336_v60 }
 0x133   : > { %3368 = vmatmul.bf16.gmra.mxu0 %v3284_v1  ;;  %v3643_v45 = vshll.u32 %v3511_v52, 16  ;;  %v3026_v15 = vunpack.c.l.b16 %v2949_v32  ;;  %v8960_v5 = vpop.f32.mrf.mxu1  ;;  %v3649_v6 = vshll.u32 %v3512_v55, 16  ;;  %v3653_v33 = vshrl.u32 %v3512_v55, 16  ;;  %v7258_v48 = vld [vmem:[#allocation2 + $0x48] sm:$0xff] }
 0x134   : > { %v397_v19 = vmax.f32 %v365_v36, 0.0  ;;  %v3539_v30 = vld [vmem:[#allocation2 + $0x98] sm:$0x1]  ;;  %v398_v21 = vmax.f32 %v366_v54, 0.0  ;;  %v2954_v50 = vshll.u32 %v2800_v41, 16  ;;  %v3642_v43 = vrot.slane %v3640_v7, 4 }
 0x135   : > { %v3645_v0 = vrot.slane %v3643_v45, 5  ;;  %v3659_v1 = vshll.u32 %v3539_v30, 16  ;;  %v3036_v42 = vpack.c.b16 %v3026_v15, %v8944_v11  ;;  %v3651_v38 = vrot.slane %v3649_v6, 5  ;;  %v8971_v15 = vld [vmem:[#allocation2 + $0x68] sm:$0x1] }
 0x136   : > { %v1726_v12 = vpop.f32.mrf.mxu2  ;;  %v3655_v52 = vrot.slane %v3653_v33, 4  ;;  %v549_v36 = vpack.c.bf16 %v397_v19, %v397_v19  ;;  %v550_v17 = vpack.c.bf16 %v398_v21, %v398_v21  ;;  %v2953_v54 = vrot.slane %v2951_v20, 4 }
 0x137   : > { %v1756_v51 = vadd.f32 %v1726_v12, %v8638_v26  ;;  %v3646_v32 = vor.u32 %v3645_v0, %v3642_v43  ;;  %v3661_v49 = vrot.slane %v3659_v1, 5  ;;  %v7328_v26 = vld [vmem:[%s10026_s3 + $0xd0] sm:$0xff]  ;;  %v2960_v12 = vshll.u32 %v8964_v58, 16 }
 0x138   : > { %v8966_v41 = vpop.f32.mrf.mxu0  ;;  %v3656_v7 = vor.u32 %v3655_v52, %v3651_v38  ;;  %v764_v11 = vshrl.u32 %v549_v36, 16  ;;  %v767_v45 = vshll.u32 %v549_v36, 16  ;;  %v8979_v20 = vpop.f32.mrf.mxu3  ;;  %v772_v30 = vshrl.u32 %v550_v17, 16  ;;  %4400 = vmatpush.bf16.msrb.mxu0 %v7328_v26 }
 0x139   : > { %v8969_v55 = vadd.f32 %v8895_v44, %v1756_v51  ;;  %v3647_v19 = vrot.slane %v3646_v32, 4  ;;  %v775_v6 = vshll.u32 %v550_v17, 16  ;;  %v2956_v44 = vrot.slane %v2954_v50, 5  ;;  %v966_v51 = vld [vmem:[#allocation2 + $0x9c] sm:$0xf] }
 0x13a   : > { %v3657_v33 = vrot.slane %v3656_v7, 4  ;;  %v766_v21 = vrot.slane %v764_v11, 7  ;;  %v2964_v43 = vshrl.u32 %v8964_v58, 16  ;;  %v774_v1 = vrot.slane %v772_v30, 7  ;;  %v970_v11 = vld [vmem:[#allocation2 + $0xa4] sm:$0x1] }
 0x13b   : > { %2745 = vmatmul.bf16.gmra.mxu2 %v7258_v48  ;;  %v3652_v0 = vsel %vm7877_vm11, %v3647_v19, %v3651_v38  ;;  %v2957_v52 = vor.u32 %v2956_v44, %v2953_v54  ;;  %v2970_v36 = vshll.u32 %v8971_v15, 16  ;;  %v8988_v48 = vpop.f32.mrf.mxu1  ;;  %v2962_v30 = vrot.slane %v2960_v12, 5  ;;  %v7538_v44 = vld [vmem:[%s7685_s8 + $0x68] sm:$0xff]  }
 0x13c   : > { %v3662_v17 = vsel %vm7877_vm11, %v3657_v33, %v3661_v49  ;;  %v3759_v50 = vunpack.c.l.b16 %v3652_v0  ;;  %10068 = vst [vmem:[#allocation17_spill] sm:$0xff] %v8988_v48  ;;  %v769_v32 = vor.u32 %v767_v45, %v766_v21  ;;  %v770_v7 = vrot.slane %v766_v21, 4  ;;  %v457_v21 = vld [vmem:[#allocation2 + $0xa8] sm:$0x1] }
 0x13d   : > { %v3760_v37 = vunpack.c.l.b16 %v3662_v17  ;;  %v777_v28 = vor.u32 %v775_v6, %v774_v1  ;;  %v779_v38 = vrot.slane %v774_v1, 4  ;;  %v2958_v19 = vrot.slane %v2957_v52, 4  ;;  %v513_v1 = vld [vmem:[#allocation2 + $0xb0] sm:$0x1]  ;;  %v2803_v52 = vld [vmem:[#allocation2 + $0x6c] sm:$0xf] }
 0x13e   : > { %v1729_v26 = vpop.f32.mrf.mxu2  ;;  %3128 = vmatmul.bf16.gmra.mxu3 %v3036_v42  ;;  %v967_v60 = vsel %vm7802_vm8, %v769_v32, %v966_v51  ;;  %v2966_v49 = vrot.slane %v2964_v43, 4  ;;  %v3276_v0 = vunpack.c.l.b16 %v8954_v57  ;;  %v2972_v43 = vrot.slane %v2970_v36, 5 }
 0x13f   : > { %v1757_v54 = vadd.f32 %v1729_v26, %v8322_v47  ;;  %v3771_v33 = vpack.c.b16 %v3760_v37, %v3759_v50  ;;  %v778_v45 = vsel %vm7783_vm7, %v770_v7, %v777_v28  ;;  %968 = vst [vmem:[#allocation2 + $0x9c] sm:$0xf] %v967_v60  ;;  %v971_v6 = vsel %vm7698_vm3, %v779_v38, %v970_v11  ;;  %v7295_v37 = vld [vmem:[%s10026_s3 + $0x8] sm:$0xff] }
 0x140   : > { %v8999_v47 = vpop.f32.mrf.mxu0  ;;  %969 = vst [vmem:[#allocation2 + $0xa0] sm:$0xf] %v778_v45  ;;  %v2967_v12 = vor.u32 %v2966_v49, %v2962_v30  ;;  %v9007_v28 = vpop.f32.mrf.mxu3  ;;  %v2963_v57 = vsel %vm7877_vm11, %v2958_v19, %v2962_v30  ;;  %v7436_v51 = vunpack.c.l.bf16 %v7538_v44  ;;  %3982 = vmatpush.bf16.msrb.mxu2 %v7295_v37  ;;  %v7437_v50 = vunpack.c.h.bf16 %v7538_v44  ;;  %v7311_v26 = vld [vmem:[%s10026_s3 + $0x88] sm:$0xff] }
 0x141   : > { %v9002_v42 = vadd.f32 %v8942_v29, %v1757_v54  ;;  %3859 = vmatmul.bf16.gmra.mxu1 %v3771_v33  ;;  %972 = vst [vmem:[#allocation2 + $0xa4] sm:$0x1] %v971_v6  ;;  %v9011_v29 = vld [vmem:[#allocation2 + $0x60] sm:$0xe]  ;;  %v458_v36 = vsel %vm7698_vm3, 0, %v457_v21  ;;  %v514_v32 = vsel %vm7709_vm4, 0, %v513_v1  ;;  %v10069_v7 = vunpack.c.l.b16 %v8922_v40  ;;  %4207 = vmatpush.bf16.msrb.mxu3 %v7311_v26 }
 0x142   : > { %v2968_v17 = vrot.slane %v2967_v12, 4  ;;  %v331_v38 = vmul.f32 %v8813_v34, %v7436_v51  ;;  %459 = vst [vmem:[#allocation2 + $0xa8] sm:$0x1] %v458_v36  ;;  %v2975_v19 = vshrl.u32 %v2803_v52, 16  ;;  %v3027_v30 = vunpack.c.l.b16 %v2963_v57  ;;  %v7259_v21 = vld [vmem:[#allocation2 + $0x54] sm:$0xff] }
 0x143   : > { %3373 = vmatmul.bf16.gmra.mxu0 %v8936_v59  ;;  %v9020_v11 = vpack.c.b16 %v3276_v0, %v10069_v7  ;;  %v9026_v54 = vpop.f32.mrf.mxu1  ;;  %v332_v59 = vmul.f32 %v8813_v34, %v7437_v50  ;;  %515 = vst [vmem:[#allocation2 + $0xb0] sm:$0x1] %v514_v32  ;;  %v2978_v40 = vshll.u32 %v2803_v52, 16  ;;  %v10031_v0 = vrot.slane %v8964_v58, 5 }
 0x144   : > { %10070 = vst [vmem:[#allocation18_spill] sm:$0xff] %v9026_v54  ;;  %v2973_v60 = vsel %vm7877_vm11, %v2968_v17, %v2972_v43  ;;  %v367_v45 = vadd.f32 %v8825_v14, %v331_v38  ;;  %v2977_v43 = vrot.slane %v2975_v19, 4  ;;  %v9048_v19 = vld [vmem:[#allocation2 + $0x70] sm:$0xf] }
 0x145   : > { %v3028_v44 = vunpack.c.l.b16 %v2973_v60  ;;  %v368_v12 = vadd.f32 %v8825_v14, %v332_v59  ;;  %v2980_v37 = vrot.slane %v2978_v40, 5 }
 0x146   : > { %v1731_v49 = vpop.f32.mrf.mxu2  ;;  %v3513_v1 = vld [vmem:[#allocation2 + $0x9c] sm:$0xf]  ;;  %v399_v50 = vmax.f32 %v367_v45, 0.0 }
 0x147   : > { %v1758_v6 = vadd.f32 %v1731_v49, %v8350_v2  ;;  %v9036_v57 = vld [vmem:[#allocation2 + $0xa0] sm:$0xf]  ;;  %v3664_v51 = vshrl.u32 %v3513_v1, 16  ;;  %v3667_v52 = vshll.u32 %v3513_v1, 16  ;;  %v3037_v38 = vpack.c.b16 %v3028_v44, %v3027_v30 }
 0x148   : > { %10071 = vst [vmem:[#allocation19_spill] sm:$0xff] %v9036_v57  ;;  %v9039_v36 = vpop.f32.mrf.mxu0  ;;  %v9044_v7 = vld [vmem:[#allocation2 + $0xa4] sm:$0x1]  ;;  %v3673_v2 = vshll.u32 %v9036_v57, 16  ;;  %v3677_v26 = vshrl.u32 %v9036_v57, 16  ;;  %v9051_v49 = vpop.f32.mrf.mxu3  ;;  %v400_v45 = vmax.f32 %v368_v12, 0.0  ;;  %v551_v44 = vpack.c.bf16 %v399_v50, %v399_v50 }
 0x149   : > { %v9042_v32 = vadd.f32 %v8979_v20, %v1758_v6  ;;  %10072 = vst [vmem:[#allocation20_spill] sm:$0xff] %v9044_v7  ;;  %v3666_v60 = vrot.slane %v3664_v51, 4  ;;  %v3669_v59 = vrot.slane %v3667_v52, 5  ;;  %v3683_v40 = vshll.u32 %v9044_v7, 16  ;;  %v7327_v20 = vld [vmem:[%s10026_s3 + $0xc8] sm:$0xff] }
 0x14a   : > { %v7335_v6 = vld [vmem:[%s10026_s3 + $0x108] sm:$0xff]  ;;  %v3675_v1 = vrot.slane %v3673_v2, 5  ;;  %v3679_v30 = vrot.slane %v3677_v26, 4  ;;  %v2981_v17 = vor.u32 %v2980_v37, %v2977_v43  ;;  %v3238_v52 = vrot.slane %v10031_v0, 4  ;;  %4401 = vmatpush.bf16.msrb.mxu0 %v7327_v20 }
 0x14b   : > { %2750 = vmatmul.bf16.gmra.mxu2 %v7259_v21  ;;  %v3670_v51 = vor.u32 %v3669_v59, %v3666_v60  ;;  %v552_v33 = vpack.c.bf16 %v400_v45, %v400_v45  ;;  %v2984_v12 = vshll.u32 %v9048_v19, 16  ;;  %4778 = vmatpush.bf16.msrb.mxu1 %v7335_v6  ;;  %v3685_v7 = vrot.slane %v3683_v40, 5  ;;  %v9062_v57 = vpop.f32.mrf.mxu1  ;;  %v9064_v21 = vld [vmem:[#allocation2 + $0x74] sm:$0x1] }
 0x14c   : > { %v3680_v48 = vor.u32 %v3679_v30, %v3675_v1  ;;  %10073 = vst [vmem:[#allocation21_spill] sm:$0xff] %v9062_v57  ;;  %v781_v54 = vshrl.u32 %v551_v44, 16  ;;  %v784_v61 = vshll.u32 %v551_v44, 16  ;;  %v2982_v26 = vrot.slane %v2981_v17, 4  ;;  %v973_v30 = vld [vmem:[#allocation2 + $0xa8] sm:$0xf] }
 0x14d   : > { %v3671_v50 = vrot.slane %v3670_v51, 4  ;;  %v789_v43 = vshrl.u32 %v552_v33, 16  ;;  %v792_v37 = vshll.u32 %v552_v33, 16  ;;  %v2988_v20 = vshrl.u32 %v9048_v19, 16  ;;  %v977_v17 = vld [vmem:[#allocation2 + $0xb0] sm:$0x1] }
 0x14e   : > { %v1734_v2 = vpop.f32.mrf.mxu2  ;;  %v3681_v59 = vrot.slane %v3680_v48, 4  ;;  %3133 = vmatmul.bf16.gmra.mxu3 %v3037_v38  ;;  %v783_v45 = vrot.slane %v781_v54, 7  ;;  %v2986_v44 = vrot.slane %v2984_v12, 5  ;;  %v2994_v0 = vshll.u32 %v9064_v21, 16  ;;  %v7294_v38 = vld [vmem:[%s10026_s3] sm:$0xff]  ;;  %v7539_v57 = vld [vmem:[%s7685_s8 + $0x70] sm:$0xff]  }
 0x14f   : > { %v1759_v60 = vadd.f32 %v1734_v2, %v8401_v31  ;;  %v3676_v40 = vsel %vm7877_vm11, %v3671_v50, %v3675_v1  ;;  %v791_v6 = vrot.slane %v789_v43, 7  ;;  %3983 = vmatpush.bf16.msrb.mxu2 %v7294_v38  ;;  %v7441_v38 = vunpack.c.h.bf16 %v7539_v57 }
 0x150   : > { %v9071_v51 = vpop.f32.mrf.mxu0  ;;  %v3686_v31 = vsel %vm7877_vm11, %v3681_v59, %v3685_v7  ;;  %v3761_v48 = vunpack.c.l.b16 %v3676_v40  ;;  %v786_v54 = vor.u32 %v784_v61, %v783_v45  ;;  %v9081_v2 = vpop.f32.mrf.mxu3  ;;  %v787_v12 = vrot.slane %v783_v45, 4  ;;  %v516_v45 = vld [vmem:[#allocation2 + $0xbc] sm:$0x1] }
 0x151   : > { %v9074_v33 = vadd.f32 %v9007_v28, %v1759_v60  ;;  %v3762_v1 = vunpack.c.l.b16 %v3686_v31  ;;  %v794_v50 = vor.u32 %v792_v37, %v791_v6  ;;  %v796_v43 = vrot.slane %v791_v6, 4  ;;  %v460_v37 = vld [vmem:[#allocation2 + $0xb4] sm:$0x1] }
 0x152   : > { %v10074_v28 = vrot.slane %v8964_v58, 5  ;;  %v10075_v60 = vrot.slane %v9011_v29, 9  ;;  %v10076_v61 = vrot.slane %v8971_v15, 5  ;;  %v974_v40 = vsel %vm7802_vm8, %v786_v54, %v973_v30 }
 0x153   : > { %v2990_v31 = vrot.slane %v2988_v20, 4  ;;  %3378 = vmatmul.bf16.gmra.mxu0 %v9020_v11  ;;  %v3772_v58 = vpack.c.b16 %v3762_v1, %v3761_v48  ;;  %v795_v29 = vsel %vm7783_vm7, %v787_v12, %v794_v50  ;;  %975 = vst [vmem:[#allocation2 + $0xa8] sm:$0xf] %v974_v40  ;;  %v978_v15 = vsel %vm7698_vm3, %v796_v43, %v977_v17  ;;  %v9104_v6 = vpop.f32.mrf.mxu1  ;;  %v7260_v50 = vld [vmem:[#allocation2 + $0x60] sm:$0xff] }
 0x154   : > { %v3237_v7 = vsel %vm8083_vm14, %v10075_v60, %v10074_v28  ;;  %v3240_v59 = vsel %vm8083_vm14, %v3238_v52, %v10076_v61  ;;  %v7310_v52 = vld [vmem:[%s10026_s3 + $0x80] sm:$0xff]  ;;  %976 = vst [vmem:[#allocation2 + $0xac] sm:$0xf] %v795_v29  ;;  %v2987_v20 = vsel %vm7877_vm11, %v2982_v26, %v2986_v44  ;;  %v2996_v11 = vrot.slane %v2994_v0, 5  ;;  %v3167_v60 = vld [vmem:[#allocation2 + $0x6c] sm:$0xe] }
 0x155   : > { %v2991_v30 = vor.u32 %v2990_v31, %v2986_v44  ;;  %v7440_v48 = vunpack.c.l.bf16 %v7539_v57  ;;  %3864 = vmatmul.bf16.gmra.mxu1 %v3772_v58  ;;  %979 = vst [vmem:[#allocation2 + $0xb0] sm:$0x1] %v978_v15  ;;  %4208 = vmatpush.bf16.msrb.mxu3 %v7310_v52  ;;  %v461_v17 = vsel %vm7698_vm3, 0, %v460_v37  ;;  %v517_v1 = vsel %vm7709_vm4, 0, %v516_v45 }
 0x156   : > { %v1736_v54 = vpop.f32.mrf.mxu2  ;;  %v3277_v43 = vunpack.c.l.b16 %v3237_v7  ;;  %v3243_v26 = vrot.slane %v9048_v19, 5  ;;  %462 = vst [vmem:[#allocation2 + $0xb4] sm:$0x1] %v461_v17  ;;  %v3278_v0 = vunpack.c.l.b16 %v3240_v59  ;;  %v3029_v44 = vunpack.c.l.b16 %v2987_v20  ;;  %v7365_v19 = vld [vmem:[%s10026_s3 + $0x1b8] sm:$0xff] }
 0x157   : > { %v1760_v12 = vadd.f32 %v1736_v54, %v8431_v53  ;;  %v2992_v28 = vrot.slane %v2991_v30, 4  ;;  %v333_v61 = vmul.f32 %v8813_v34, %v7440_v48  ;;  %v334_v57 = vmul.f32 %v8813_v34, %v7441_v38  ;;  %518 = vst [vmem:[#allocation2 + $0xbc] sm:$0x1] %v517_v1  ;;  %v4025_v54 = vld [vmem:[#allocation2 + $0x60] sm:$0xe] }
 0x158   : > { %v9116_v40 = vpop.f32.mrf.mxu0  ;;  %v9123_v7 = vpop.f32.mrf.mxu3  ;;  %v6585_v29 = vrot.slane %v3167_v60, 9  ;;  %v3245_v34 = vrot.slane %v3243_v26, 4  ;;  %v3246_v15 = vrot.slane %v9064_v21, 5  ;;  %v3287_v52 = vpack.c.b16 %v3278_v0, %v3277_v43 }
 0x159   : > { %v9119_v31 = vadd.f32 %v9051_v49, %v1760_v12  ;;  %v2997_v53 = vsel %vm7877_vm11, %v2992_v28, %v2996_v11  ;;  %v369_v59 = vadd.f32 %v8825_v14, %v333_v61  ;;  %v370_v45 = vadd.f32 %v8825_v14, %v334_v57  ;;  %v7593_v28 = vld [vmem:[#allocation2 + $0x64] sm:$0xf]  ;;  %5215 = vmatpush.bf16.msra.mxu3 %v7365_v19 }
 0x15a   : > { %v3030_v37 = vunpack.c.l.b16 %v2997_v53  ;;  %v3515_v58 = vld [vmem:[#allocation2 + $0xa8] sm:$0xf]  ;;  %v9132_v49 = vadd.f32 %v8791_v62, %v8794_v16  ;;  %v4051_v0 = vrot.slane %v7593_v28, 5  ;;  %v7326_v53 = vld [vmem:[%s10026_s3 + $0xc0] sm:$0xff]  ;;  %v9195_v19 = vadd.f32 %v8882_v23, %v8885_v10 }
 0x15b   : > { %2755 = vmatmul.bf16.gmra.mxu2 %v7260_v50  ;;  %v9134_v20 = vld [vmem:[#allocation2 + $0xac] sm:$0xf]  ;;  %v3688_v30 = vshrl.u32 %v3515_v58, 16  ;;  %v3691_v11 = vshll.u32 %v3515_v58, 16  ;;  %v9140_v1 = vpop.f32.mrf.mxu1  ;;  %v401_v21 = vmax.f32 %v369_v59, 0.0  ;;  %v402_v12 = vmax.f32 %v370_v45, 0.0  ;;  %4402 = vmatpush.bf16.msrb.mxu0 %v7326_v53 }
 0x15c   : > { %v3038_v48 = vpack.c.b16 %v3030_v37, %v3029_v44  ;;  %v9136_v14 = vld [vmem:[#allocation2 + $0xb0] sm:$0x1]  ;;  %v3697_v38 = vshll.u32 %v9134_v20, 16  ;;  %v3701_v17 = vshrl.u32 %v9134_v20, 16  ;;  %v7334_v37 = vld [vmem:[%s10026_s3 + $0x100] sm:$0xff]  ;;  %v3247_v53 = vsel %vm8083_vm14, %v3245_v34, %v3246_v15 }
 0x15d   : > { %v3690_v62 = vrot.slane %v3688_v30, 4  ;;  %v3693_v16 = vrot.slane %v3691_v11, 5  ;;  %v3707_v43 = vshll.u32 %v9136_v14, 16  ;;  %v553_v57 = vpack.c.bf16 %v401_v21, %v401_v21  ;;  %4779 = vmatpush.bf16.msrb.mxu1 %v7334_v37  ;;  %v7349_v21 = vld [vmem:[%s10026_s3 + $0x178] sm:$0xff] }
 0x15e   : > { %v1739_v50 = vpop.f32.mrf.mxu2  ;;  %v3699_v60 = vrot.slane %v3697_v38, 5  ;;  %v3703_v61 = vrot.slane %v3701_v17, 4  ;;  %3138 = vmatmul.bf16.gmra.mxu3 %v3038_v48  ;;  %v554_v58 = vpack.c.bf16 %v402_v12, %v402_v12  ;;  %v6746_v30 = vrot.slane %v4025_v54, 9  ;;  %5021 = vmatpush.bf16.msra.mxu2 %v7349_v21 }
 0x15f   : > { %v1761_v44 = vadd.f32 %v1739_v50, %v8472_v27  ;;  %v3694_v59 = vor.u32 %v3693_v16, %v3690_v62  ;;  %v3709_v45 = vrot.slane %v3707_v43, 5  ;;  %v798_v48 = vshrl.u32 %v553_v57, 16 }
 0x160   : > { %v9150_v11 = vpop.f32.mrf.mxu0  ;;  %v3704_v38 = vor.u32 %v3703_v61, %v3699_v60  ;;  %v801_v17 = vshll.u32 %v553_v57, 16  ;;  %v9158_v28 = vpop.f32.mrf.mxu3  ;;  %v806_v62 = vshrl.u32 %v554_v58, 16  ;;  %v809_v12 = vshll.u32 %v554_v58, 16 }
 0x161   : > { %v9153_v27 = vadd.f32 %v9081_v2, %v1761_v44  ;;  %v3695_v50 = vrot.slane %v3694_v59, 4  ;;  %v4053_v54 = vrot.slane %v4051_v0, 4  ;;  %v3244_v2 = vsel %vm8083_vm14, %v6585_v29, %v3243_v26  ;;  %v7594_v44 = vld [vmem:[#allocation2 + $0x68] sm:$0x1]  ;;  %v980_v59 = vld [vmem:[#allocation2 + $0xb4] sm:$0xf] }
 0x162   : > { %v3705_v16 = vrot.slane %v3704_v38, 4  ;;  %v800_v43 = vrot.slane %v798_v48, 7  ;;  %v4054_v61 = vrot.slane %v7594_v44, 5  ;;  %v808_v37 = vrot.slane %v806_v62, 7  ;;  %v984_v48 = vld [vmem:[#allocation2 + $0xbc] sm:$0x1] }
 0x163   : > { %3383 = vmatmul.bf16.gmra.mxu0 %v3287_v52  ;;  %v3700_v57 = vsel %vm7877_vm11, %v3695_v50, %v3699_v60  ;;  %v4052_v58 = vsel %vm8083_vm14, %v6746_v30, %v4051_v0  ;;  %v9175_v52 = vpop.f32.mrf.mxu1  ;;  %v7261_v62 = vld [vmem:[#allocation2 + $0x6c] sm:$0xff] }
 0x164   : > { %v3710_v26 = vsel %vm7877_vm11, %v3705_v16, %v3709_v45  ;;  %v3763_v29 = vunpack.c.l.b16 %v3700_v57  ;;  %v803_v38 = vor.u32 %v801_v17, %v800_v43  ;;  %v804_v60 = vrot.slane %v800_v43, 4 }
 0x165   : > { %v3764_v21 = vunpack.c.l.b16 %v3710_v26  ;;  %v811_v15 = vor.u32 %v809_v12, %v808_v37  ;;  %v813_v50 = vrot.slane %v808_v37, 4  ;;  %v4055_v0 = vsel %vm8083_vm14, %v4053_v54, %v4054_v61 }
 0x166   : > { %v1741_v34 = vpop.f32.mrf.mxu2  ;;  %v981_v45 = vsel %vm7802_vm8, %v803_v38, %v980_v59  ;;  %v4121_v16 = vunpack.c.l.b16 %v4052_v58  ;;  %v4122_v44 = vunpack.c.l.b16 %v4055_v0  ;;  %v3280_v61 = vunpack.c.l.b16 %v3247_v53  ;;  %v4460_v58 = vld [vmem:[#allocation2 + $0x6c] sm:$0xf] }
 0x167   : > { %v1762_v30 = vadd.f32 %v1741_v34, %v8512_v39  ;;  %v3773_v57 = vpack.c.b16 %v3764_v21, %v3763_v29  ;;  %v812_v17 = vsel %vm7783_vm7, %v804_v60, %v811_v15  ;;  %982 = vst [vmem:[#allocation2 + $0xb4] sm:$0xf] %v981_v45  ;;  %v985_v12 = vsel %vm7698_vm3, %v813_v50, %v984_v48  ;;  %v4461_v29 = vld [vmem:[#allocation2 + $0x70] sm:$0xf]  ;;  %v4026_v48 = vld [vmem:[#allocation2 + $0x6c] sm:$0xe] }
 0x168   : > { %v9186_v43 = vpop.f32.mrf.mxu0  ;;  %983 = vst [vmem:[#allocation2 + $0xb8] sm:$0xf] %v812_v17  ;;  %v3279_v39 = vunpack.c.l.b16 %v3244_v2  ;;  %v9191_v37 = vpop.f32.mrf.mxu3  ;;  %v4137_v59 = vpack.c.b16 %v4122_v44, %v4121_v16  ;;  %v2327_v26 = vadd.f32 %v8927_v22, %v8930_v63  ;;  %v4485_v60 = vshrl.u32 %v4460_v58, 16  ;;  %v7373_v21 = vld [vmem:[%s10026_s3 + $0x1f8] sm:$0xff]  ;;  %v7348_v17 = vld [vmem:[%s10026_s3 + $0x170] sm:$0xff] }
 0x169   : > { %v9189_v54 = vadd.f32 %v9123_v7, %v1762_v30  ;;  %3869 = vmatmul.bf16.gmra.mxu1 %v3773_v57  ;;  %986 = vst [vmem:[#allocation2 + $0xbc] sm:$0x1] %v985_v12  ;;  %v4488_v34 = vshll.u32 %v4460_v58, 16  ;;  %v4494_v22 = vshll.u32 %v4461_v29, 16  ;;  %v7381_v63 = vld [vmem:[%s10026_s3 + $0x238] sm:$0xff]  ;;  %v6747_v30 = vrot.slane %v4026_v48, 9  ;;  %5592 = vmatpush.bf16.msra.mxu0 %v7373_v21 }
 0x16a   : > { %v9202_v38 = vadd.f32 %v8875_v46, %v2327_v26  ;;  %v3288_v2 = vpack.c.b16 %v3280_v61, %v3279_v39  ;;  %v9213_v46 = vadd.f32 %v8966_v41, %v8969_v55  ;;  %v4498_v55 = vshrl.u32 %v4461_v29, 16  ;;  %5841 = vmatpush.bf16.msra.mxu1 %v7381_v63  ;;  %5022 = vmatpush.bf16.msra.mxu2 %v7348_v17 }
 0x16b   : > { %2760 = vmatmul.bf16.gmra.mxu2 %v7261_v62  ;;  %v9199_v7 = vpop.f32.mrf.mxu1  ;;  %v7595_v62 = vld [vmem:[#allocation2 + $0x70] sm:$0xf]  ;;  %v4487_v21 = vrot.slane %v4485_v60, 4 }
 0x16c   : > { %v4058_v45 = vrot.slane %v7595_v62, 5  ;;  %v4490_v62 = vrot.slane %v4488_v34, 5 }
 0x16e   : > { %v1744_v53 = vpop.f32.mrf.mxu2  ;;  %v3517_v10 = vld [vmem:[#allocation2 + $0xb4] sm:$0xf]  ;;  %4209 = vmatmul.bf16.vlgmr.msrb.gmra.mxu3 %v4137_v59  ;;  %v4059_v29 = vsel %vm8083_vm14, %v6747_v30, %v4058_v45  ;;  %v2329_v30 = vadd.f32 %v8999_v47, %v9002_v42 }
 0x16f   : > { %v1763_v23 = vadd.f32 %v1744_v53, %v8569_v56  ;;  %v9215_v15 = vld [vmem:[#allocation2 + $0xb8] sm:$0xf]  ;;  %v3712_v50 = vshrl.u32 %v3517_v10, 16  ;;  %v3715_v0 = vshll.u32 %v3517_v10, 16  ;;  %v7364_v10 = vld [vmem:[%s10026_s3 + $0x1b0] sm:$0xff] }
 0x170   : > { %v9217_v56 = vpop.f32.mrf.mxu0  ;;  %v9222_v44 = vld [vmem:[#allocation2 + $0xbc] sm:$0x1]  ;;  %v3721_v57 = vshll.u32 %v9215_v15, 16  ;;  %v3725_v41 = vshrl.u32 %v9215_v15, 16  ;;  %v9230_v59 = vpop.f32.mrf.mxu3  ;;  %5216 = vmatpush.bf16.msra.mxu3 %v7364_v10 }
 0x171   : > { %v9220_v16 = vadd.f32 %v9158_v28, %v1763_v23  ;;  %v3714_v12 = vrot.slane %v3712_v50, 4  ;;  %v3717_v39 = vrot.slane %v3715_v0, 5  ;;  %v3731_v61 = vshll.u32 %v9222_v44, 16  ;;  %v7596_v28 = vld [vmem:[#allocation2 + $0x74] sm:$0x1] }
 0x172   : > { %v4061_v58 = vrot.slane %v7596_v28, 5  ;;  %v3723_v26 = vrot.slane %v3721_v57, 5  ;;  %v3727_v53 = vrot.slane %v3725_v41, 4  ;;  %v4060_v23 = vrot.slane %v4058_v45, 4 }
 0x173   : > { %3388 = vmatmul.bf16.gmra.mxu0 %v3288_v2  ;;  %v3718_v48 = vor.u32 %v3717_v39, %v3714_v12  ;;  %v3733_v50 = vrot.slane %v3731_v61, 5  ;;  %v9237_v0 = vpop.f32.mrf.mxu1  ;;  %v9239_v28 = vrot.slane %v4494_v22, 5  ;;  %v4500_v2 = vrot.slane %v4498_v55, 4  ;;  %v7286_v12 = vld [vmem:[#allocation2 + $0x60] sm:$0xff]  ;;  %v4462_v39 = vld [vmem:[#allocation2 + $0x74] sm:$0x1] }
 0x174   : > { %v3728_v63 = vor.u32 %v3727_v53, %v3723_v26  ;;  %v4062_v60 = vsel %vm8083_vm14, %v4060_v23, %v4061_v58  ;;  %v4123_v61 = vunpack.c.l.b16 %v4059_v29  ;;  %v4504_v42 = vshll.u32 %v4462_v39, 16 }
 0x175   : > { %v3719_v57 = vrot.slane %v3718_v48, 4  ;;  %v4124_v53 = vunpack.c.l.b16 %v4062_v60  ;;  %v4491_v29 = vor.u32 %v4490_v62, %v4487_v21  ;;  %v7372_v21 = vld [vmem:[%s10026_s3 + $0x1f0] sm:$0xff]  ;;  %v9270_v62 = vadd.f32 %v9039_v36, %v9042_v32 }
 0x176   : > { %v1746_v41 = vpop.f32.mrf.mxu2  ;;  %v3729_v45 = vrot.slane %v3728_v63, 4  ;;  %v9261_v63 = vadd.f32 %v8960_v5, %v2329_v30  ;;  %v10078_v5 = vld [vmem:[#allocation4_spill] sm:$0xff]  ;;  %5593 = vmatpush.bf16.msra.mxu0 %v7372_v21 }
 0x177   : > { %v1764_v17 = vadd.f32 %v1746_v41, %v8615_v3  ;;  %v3724_v34 = vsel %vm7877_vm11, %v3719_v57, %v3723_v26  ;;  %v2321_v3 = vadd.f32 %v8670_v4, %v8673_v25  ;;  %v4501_v26 = vor.u32 %v4500_v2, %v9239_v28  ;;  %v4463_v57 = vld [vmem:[#allocation2 + $0x78] sm:$0xf]  ;;  %v7597_v4 = vld [vmem:[#allocation2 + $0x7c] sm:$0xf] }
 0x178   : > { %v3734_v22 = vsel %vm7877_vm11, %v3729_v45, %v3733_v50  ;;  %v3765_v55 = vunpack.c.l.b16 %v3724_v34  ;;  %v9250_v48 = vpop.f32.mrf.mxu0  ;;  %v9257_v23 = vpop.f32.mrf.mxu3  ;;  %v4138_v10 = vpack.c.b16 %v4124_v53, %v4123_v61  ;;  %v4506_v41 = vrot.slane %v4504_v42, 5  ;;  %v4027_v45 = vld [vmem:[#allocation2 + $0x78] sm:$0xe]  ;;  %v7380_v61 = vld [vmem:[%s10026_s3 + $0x230] sm:$0xff] }
 0x179   : > { %v9253_v58 = vadd.f32 %v9191_v37, %v1764_v17  ;;  %v3766_v47 = vunpack.c.l.b16 %v3734_v22  ;;  %v4065_v25 = vrot.slane %v7597_v4, 5  ;;  %v2571_v2 = vadd.f32 %v10078_v5, %v2321_v3  ;;  %v7318_v53 = vld [vmem:[#allocation2 + $0x6c] sm:$0xff]  ;;  %v10080_v3 = vld [vmem:[#allocation7_spill] sm:$0xff]  ;;  %5842 = vmatpush.bf16.msra.mxu1 %v7380_v61 }
 0x17a   : > { %v4492_v30 = vrot.slane %v4491_v29, 4  ;;  %v4502_v17 = vrot.slane %v4501_v26, 4  ;;  %v4509_v39 = vshrl.u32 %v4463_v57, 16  ;;  %v4512_v34 = vshll.u32 %v4463_v57, 16  ;;  %v7347_v26 = vld [vmem:[%s10026_s3 + $0x168] sm:$0xff] }
 0x17b   : > { %3984 = vmatmul.bf16.vlgmr.msrb.gmra.mxu2 %v7286_v12  ;;  %v3774_v50 = vpack.c.b16 %v3766_v47, %v3765_v55  ;;  %v9263_v60 = vpop.f32.mrf.mxu1  ;;  %v4464_v12 = vld [vmem:[#allocation2 + $0x7c] sm:$0xf]  ;;  %v6748_v22 = vrot.slane %v4027_v45, 9  ;;  %v4067_v55 = vrot.slane %v4065_v25, 4  ;;  %v7598_v47 = vld [vmem:[#allocation2 + $0x80] sm:$0x1] }
 0x17c   : > { %10077 = vst [vmem:[#allocation22_spill] sm:$0xff] %v9263_v60  ;;  %v4068_v42 = vrot.slane %v7598_v47, 5  ;;  %v4518_v4 = vshll.u32 %v4464_v12, 16  ;;  %v4497_v57 = vsel %vm7877_vm11, %v4492_v30, %v9239_v28  ;;  %v4507_v45 = vsel %vm7877_vm11, %v4502_v17, %v4506_v41  ;;  %5023 = vmatpush.bf16.msra.mxu2 %v7347_v26  ;;  %v7363_v47 = vld [vmem:[%s10026_s3 + $0x1a8] sm:$0xff] }
 0x17d   : > { %3874 = vmatmul.bf16.gmra.mxu1 %v3774_v50  ;;  %v10079_v50 = vld [vmem:[#allocation8_spill] sm:$0xff]  ;;  %v4522_v21 = vshrl.u32 %v4464_v12, 16  ;;  %v4514_v5 = vrot.slane %v4512_v34, 5  ;;  %v10081_v30 = vld [vmem:[#allocation5_spill] sm:$0xff]  ;;  %v4692_v41 = vunpack.c.l.b16 %v4497_v57  ;;  %v4693_v17 = vunpack.c.l.b16 %v4507_v45  ;;  %5217 = vmatpush.bf16.msra.mxu3 %v7363_v47 }
 0x17e   : > { %v2726_v37 = vpop.f32.mrf.mxu2  ;;  %4214 = vmatmul.bf16.gmra.mxu3 %v4138_v10  ;;  %v2322_v29 = vadd.f32 %v10080_v3, %v10079_v50  ;;  %v4069_v61 = vsel %vm8083_vm14, %v4067_v55, %v4068_v42  ;;  %v7287_v34 = vld [vmem:[#allocation2 + $0x6c] sm:$0xff] }
 0x17f   : > { %v2766_v32 = vadd.f32 %v2726_v37, %v2571_v2  ;;  %v4511_v37 = vrot.slane %v4509_v39, 4  ;;  %v4066_v2 = vsel %vm8083_vm14, %v6748_v22, %v4065_v25  ;;  %v2331_v25 = vadd.f32 %v9071_v51, %v9074_v33  ;;  %v4465_v22 = vld [vmem:[#allocation2 + $0x80] sm:$0x1] }
 0x180   : > { %v3354_v36 = vpop.f32.mrf.mxu0  ;;  %v9281_v10 = vpop.f32.mrf.mxu3  ;;  %v2572_v50 = vadd.f32 %v10081_v30, %v2322_v29  ;;  %v4524_v55 = vrot.slane %v4522_v21, 4  ;;  %v4125_v42 = vunpack.c.l.b16 %v4066_v2  ;;  %v4126_v3 = vunpack.c.l.b16 %v4069_v61  ;;  %v10084_v30 = vld [vmem:[#allocation18_spill] sm:$0xff] }
 0x181   : > { %v3144_v28 = vadd.f32 %v9230_v59, %v2766_v32  ;;  %v10082_v59 = vld [vmem:[#allocation11_spill] sm:$0xff]  ;;  %v10083_v32 = vld [vmem:[#allocation10_spill] sm:$0xff]  ;;  %v4515_v57 = vor.u32 %v4514_v5, %v4511_v37  ;;  %v9307_v60 = vadd.f32 %v10084_v30, %v2331_v25  ;;  %v4708_v51 = vpack.c.b16 %v4693_v17, %v4692_v41 }
 0x182   : > { %v2323_v29 = vadd.f32 %v10083_v32, %v10082_v59  ;;  %v4528_v33 = vshll.u32 %v4465_v22, 16  ;;  %v4139_v61 = vpack.c.b16 %v4126_v3, %v4125_v42  ;;  %v7599_v22 = vld [vmem:[#allocation2 + $0x88] sm:$0xf] }
 0x183   : > { %4403 = vmatmul.bf16.vlgmr.msrb.gmra.mxu0 %v7318_v53  ;;  %v9297_v53 = vrot.slane %v4518_v4, 5  ;;  %v3394_v45 = vadd.f32 %v3354_v36, %v3144_v28  ;;  %v10085_v36 = vld [vmem:[#allocation6_spill] sm:$0xff]  ;;  %v4516_v37 = vrot.slane %v4515_v57, 4  ;;  %v4467_v32 = vld [vmem:[#allocation2 + $0x88] sm:$0xf] }
 0x184   : > { %v4530_v25 = vrot.slane %v4528_v33, 5  ;;  %v7379_v57 = vld [vmem:[%s10026_s3 + $0x228] sm:$0xff] }
 0x185   : > { %v9301_v26 = vpop.f32.mrf.mxu1  ;;  %v4525_v2 = vor.u32 %v4524_v55, %v9297_v53  ;;  %v3432_v5 = vmul.f32 %v3394_v45, %v3394_v45  ;;  %v4072_v55 = vrot.slane %v7599_v22, 5  ;;  %v7600_v33 = vld [vmem:[#allocation2 + $0x8c] sm:$0x1]  ;;  %5843 = vmatpush.bf16.msra.mxu1 %v7379_v57 }
 0x186   : > { %v2728_v12 = vpop.f32.mrf.mxu2  ;;  %v4468_v57 = vld [vmem:[#allocation2 + $0x8c] sm:$0x1] }
 0x187   : > { %v2767_v39 = vadd.f32 %v2728_v12, %v2572_v50  ;;  %v4526_v59 = vrot.slane %v4525_v2, 4 }
 0x188   : > { %v3356_v4 = vpop.f32.mrf.mxu0  ;;  %v9309_v50 = vpop.f32.mrf.mxu3 }
 0x189   : > { %v3145_v47 = vadd.f32 %v9257_v23, %v2767_v39  ;;  %v2573_v23 = vadd.f32 %v10085_v36, %v2323_v29  ;;  %v4466_v39 = vld [vmem:[#allocation2 + $0x84] sm:$0xf]  ;;  %v7371_v29 = vld [vmem:[%s10026_s3 + $0x1e8] sm:$0xff]  ;;  %v4521_v36 = vsel %vm7877_vm11, %v4516_v37, %v9297_v53 }
 0x18a   : > { %5594 = vmatpush.bf16.msra.mxu0 %v7371_v29  ;;  %v10087_v53 = vld [vmem:[#allocation9_spill] sm:$0xff] }
 0x18b   : > { %v3395_v21 = vadd.f32 %v3356_v4, %v3145_v47  ;;  %3989 = vmatmul.bf16.gmra.mxu2 %v7287_v34  ;;  %v4028_v34 = vld [vmem:[#allocation2 + $0x84] sm:$0xe]  ;;  %v7319_v4 = vld [vmem:[#allocation2 + $0x78] sm:$0xff]  ;;  %v2574_v37 = vadd.f32 %v10087_v53, %v9132_v49  ;;  %v10089_v53 = vld [vmem:[#allocation14_spill] sm:$0xff] }
 0x18c   : > { %v6749_v30 = vrot.slane %v4028_v34, 9  ;;  %v4694_v34 = vunpack.c.l.b16 %v4521_v36 }
 0x18d   : > { %v3410_v28 = vadd.f32 %v3395_v21, %v3394_v45  ;;  %v3433_v41 = vmul.f32 %v3395_v21, %v3395_v21  ;;  %v7449_v17 = vpack.c.bf16 %v3395_v21, %v3394_v45  ;;  %4780 = vmatmul.bf16.vlgmr.msrb.gmra.mxu1 %v4708_v51  ;;  %v9329_v45 = vadd.f32 %v9116_v40, %v9119_v31  ;;  %v9331_v47 = vpop.f32.mrf.mxu1  ;;  %v7346_v40 = vld [vmem:[%s10026_s3 + $0x160] sm:$0xff] }
 0x18e   : > { %v2731_v12 = vpop.f32.mrf.mxu2  ;;  %4219 = vmatmul.bf16.gmra.mxu3 %v4139_v61  ;;  %10086 = vst [vmem:[#allocation4_spill] sm:$0xff] %v9331_v47  ;;  %v4074_v51 = vrot.slane %v4072_v55, 4  ;;  %v4075_v21 = vrot.slane %v7600_v33, 5  ;;  %5024 = vmatpush.bf16.msra.mxu2 %v7346_v40 }
 0x18f   : > { %v3448_v42 = vadd.f32 %v3433_v41, %v3432_v5  ;;  %7450 = vst [vmem:[%s9317_s28] sm:$0xff] %v7449_v17   ;;  %v2768_v3 = vadd.f32 %v2731_v12, %v2573_v23  ;;  %v4533_v23 = vshrl.u32 %v4466_v39, 16  ;;  %v4536_v5 = vshll.u32 %v4466_v39, 16 }
 0x190   : > { %v3359_v2 = vpop.f32.mrf.mxu0  ;;  %v9340_v31 = vpop.f32.mrf.mxu3  ;;  %v4542_v41 = vshll.u32 %v4467_v32, 16  ;;  %v4546_v17 = vshrl.u32 %v4467_v32, 16  ;;  %v4073_v39 = vsel %vm8083_vm14, %v6749_v30, %v4072_v55  ;;  %v4076_v22 = vsel %vm8083_vm14, %v4074_v51, %v4075_v21  ;;  %v7288_v21 = vld [vmem:[#allocation2 + $0x78] sm:$0xff] }
 0x191   : > { %v3146_v61 = vadd.f32 %v9281_v10, %v2768_v3  ;;  %v4531_v10 = vsel %vm7877_vm11, %v4526_v59, %v4530_v25  ;;  %v7362_v3 = vld [vmem:[%s10026_s3 + $0x1a0] sm:$0xff]  ;;  %v4535_v25 = vrot.slane %v4533_v23, 4  ;;  %v4538_v59 = vrot.slane %v4536_v5, 5 }
 0x192   : > { %v4548_v49 = vrot.slane %v4546_v17, 4  ;;  %5218 = vmatpush.bf16.msra.mxu3 %v7362_v3  ;;  %v2333_v55 = vadd.f32 %v9150_v11, %v9153_v27  ;;  %v4128_v36 = vunpack.c.l.b16 %v4076_v22  ;;  %v4552_v5 = vshll.u32 %v4468_v57, 16  ;;  %v4469_v57 = vld [vmem:[#allocation2 + $0x90] sm:$0xf] }
 0x193   : > { %v3396_v12 = vadd.f32 %v3359_v2, %v3146_v61  ;;  %4408 = vmatmul.bf16.gmra.mxu0 %v7319_v4  ;;  %v4695_v4 = vunpack.c.l.b16 %v4531_v10  ;;  %v9353_v2 = vrot.slane %v4542_v41, 5  ;;  %v4127_v61 = vunpack.c.l.b16 %v4073_v39  ;;  %v10090_v39 = vld [vmem:[#allocation12_spill] sm:$0xff] }
 0x194   : > { %v4539_v47 = vor.u32 %v4538_v59, %v4535_v25  ;;  %v9363_v17 = vadd.f32 %v9104_v6, %v2333_v55 }
 0x195   : > { %v3411_v32 = vadd.f32 %v3410_v28, %v3396_v12  ;;  %v3434_v29 = vmul.f32 %v3396_v12, %v3396_v12  ;;  %v9357_v40 = vpop.f32.mrf.mxu1  ;;  %v10088_v28 = vld [vmem:[#allocation15_spill] sm:$0xff]  ;;  %v4709_v3 = vpack.c.b16 %v4695_v4, %v4694_v34  ;;  %v4549_v11 = vor.u32 %v4548_v49, %v9353_v2  ;;  %v4470_v34 = vld [vmem:[#allocation2 + $0x94] sm:$0xf]  ;;  %v4029_v4 = vld [vmem:[#allocation2 + $0x90] sm:$0xe] }
 0x196   : > { %v2733_v33 = vpop.f32.mrf.mxu2  ;;  %v2325_v23 = vadd.f32 %v10089_v53, %v10088_v28  ;;  %v4540_v25 = vrot.slane %v4539_v47, 4  ;;  %v7601_v49 = vld [vmem:[#allocation2 + $0x94] sm:$0xf]  ;;  %v7378_v47 = vld [vmem:[%s10026_s3 + $0x220] sm:$0xff]  ;;  %v4560_v53 = vshll.u32 %v4469_v57, 16 }
 0x197   : > { %v3449_v30 = vadd.f32 %v3448_v42, %v3434_v29  ;;  %v2769_v51 = vadd.f32 %v2733_v33, %v2574_v37  ;;  %v4140_v37 = vpack.c.b16 %v4128_v36, %v4127_v61  ;;  %v4554_v29 = vrot.slane %v4552_v5, 5  ;;  %v7370_v36 = vld [vmem:[%s10026_s3 + $0x1e0] sm:$0xff]  ;;  %v7602_v5 = vld [vmem:[#allocation2 + $0x98] sm:$0x1]  ;;  %5844 = vmatpush.bf16.msra.mxu1 %v7378_v47 }
 0x198   : > { %v3361_v10 = vpop.f32.mrf.mxu0  ;;  %v9366_v27 = vpop.f32.mrf.mxu3  ;;  %v2575_v22 = vadd.f32 %v10090_v39, %v2325_v23  ;;  %v4550_v59 = vrot.slane %v4549_v11, 4  ;;  %v4079_v55 = vrot.slane %v7601_v49, 5  ;;  %v4557_v61 = vshrl.u32 %v4469_v57, 16  ;;  %5595 = vmatpush.bf16.msra.mxu0 %v7370_v36  ;;  %v10091_v57 = vld [vmem:[#allocation13_spill] sm:$0xff] }
 0x199   : > { %v3147_v41 = vadd.f32 %v9309_v50, %v2769_v51  ;;  %v6750_v23 = vrot.slane %v4029_v4, 9  ;;  %v4566_v11 = vshll.u32 %v4470_v34, 16 }
 0x19b   : > { %v3397_v42 = vadd.f32 %v3361_v10, %v3147_v41  ;;  %3994 = vmatmul.bf16.gmra.mxu2 %v7288_v21  ;;  %v4082_v10 = vrot.slane %v7602_v5, 5 }
 0x19d   : > { %v3412_v33 = vadd.f32 %v3411_v32, %v3397_v42  ;;  %v3435_v28 = vmul.f32 %v3397_v42, %v3397_v42  ;;  %v7454_v50 = vpack.c.bf16 %v3397_v42, %v3396_v12  ;;  %4785 = vmatmul.bf16.gmra.mxu1 %v4709_v3  ;;  %v9378_v12 = vadd.f32 %v9186_v43, %v9189_v54  ;;  %v7320_v32 = vld [vmem:[#allocation2 + $0x84] sm:$0xff]  ;;  %v9384_v39 = vpop.f32.mrf.mxu1 }
 0x19e   : > { %v2736_v6 = vpop.f32.mrf.mxu2  ;;  %4224 = vmatmul.bf16.gmra.mxu3 %v4140_v37  ;;  %v4570_v42 = vshrl.u32 %v4470_v34, 16  ;;  %v7345_v37 = vld [vmem:[%s10026_s3 + $0x158] sm:$0xff]  ;;  %v4080_v34 = vsel %vm8083_vm14, %v6750_v23, %v4079_v55 }
 0x19f   : > { %v3450_v51 = vadd.f32 %v3449_v30, %v3435_v28  ;;  %7541 = vst [vmem:[%s9317_s28 + $0x8] sm:$0xff] %v7454_v50   ;;  %v2770_v21 = vadd.f32 %v2736_v6, %v2575_v22  ;;  %v4081_v30 = vrot.slane %v4079_v55, 4  ;;  %v4545_v22 = vsel %vm7877_vm11, %v4540_v25, %v9353_v2  ;;  %5025 = vmatpush.bf16.msra.mxu2 %v7345_v37  ;;  %v7361_v2 = vld [vmem:[%s10026_s3 + $0x198] sm:$0xff] }
 0x1a0   : > { %v3364_v41 = vpop.f32.mrf.mxu0  ;;  %v9386_v43 = vpop.f32.mrf.mxu3  ;;  %v2576_v28 = vadd.f32 %v10091_v57, %v9195_v19  ;;  %v4559_v50 = vrot.slane %v4557_v61, 4  ;;  %v4562_v6 = vrot.slane %v4560_v53, 5  ;;  %v4572_v19 = vrot.slane %v4570_v42, 4  ;;  %5219 = vmatpush.bf16.msra.mxu3 %v7361_v2  ;;  %v7289_v53 = vld [vmem:[#allocation2 + $0x84] sm:$0xff] }
 0x1a1   : > { %v3148_v3 = vadd.f32 %v9340_v31, %v2770_v21  ;;  %v4555_v31 = vsel %vm7877_vm11, %v4550_v59, %v4554_v29  ;;  %v4083_v4 = vsel %vm8083_vm14, %v4081_v30, %v4082_v10  ;;  %v4471_v29 = vld [vmem:[#allocation2 + $0x98] sm:$0x1]  ;;  %v9402_v59 = vrot.slane %v4566_v11, 5 }
 0x1a2   : > { %v4696_v21 = vunpack.c.l.b16 %v4545_v22  ;;  %v4697_v36 = vunpack.c.l.b16 %v4555_v31  ;;  %v2335_v55 = vadd.f32 %v9217_v56, %v9220_v16  ;;  %v4129_v23 = vunpack.c.l.b16 %v4080_v34  ;;  %v4472_v34 = vld [vmem:[#allocation2 + $0x9c] sm:$0xf] }
 0x1a3   : > { %v3398_v54 = vadd.f32 %v3364_v41, %v3148_v3  ;;  %4413 = vmatmul.bf16.gmra.mxu0 %v7320_v32  ;;  %v4130_v30 = vunpack.c.l.b16 %v4083_v4  ;;  %v4563_v5 = vor.u32 %v4562_v6, %v4559_v50  ;;  %v4576_v10 = vshll.u32 %v4471_v29, 16  ;;  %v10092_v4 = vld [vmem:[#allocation19_spill] sm:$0xff] }
 0x1a4   : > { %v4573_v3 = vor.u32 %v4572_v19, %v9402_v59  ;;  %v9409_v11 = vadd.f32 %v9175_v52, %v2335_v55  ;;  %v4710_v42 = vpack.c.b16 %v4697_v36, %v4696_v21  ;;  %v4030_v52 = vld [vmem:[#allocation2 + $0x9c] sm:$0xe]  ;;  %v4086_v2 = vrot.slane %v10092_v4, 5  ;;  %v4473_v19 = vld [vmem:[#allocation2 + $0xa0] sm:$0xf]  ;;  %v7321_v36 = vld [vmem:[#allocation2 + $0x90] sm:$0xff] }
 0x1a5   : > { %v3413_v25 = vadd.f32 %v3412_v33, %v3398_v54  ;;  %v3436_v49 = vmul.f32 %v3398_v54, %v3398_v54  ;;  %v4141_v56 = vpack.c.b16 %v4130_v30, %v4129_v23  ;;  %v4578_v31 = vrot.slane %v4576_v10, 5  ;;  %v7369_v21 = vld [vmem:[%s10026_s3 + $0x1d8] sm:$0xff] }
 0x1a6   : > { %v2738_v61 = vpop.f32.mrf.mxu2  ;;  %v4088_v55 = vrot.slane %v4086_v2, 4  ;;  %5596 = vmatpush.bf16.msra.mxu0 %v7369_v21  ;;  %v4584_v10 = vshll.u32 %v4472_v34, 16  ;;  %v7290_v21 = vld [vmem:[#allocation2 + $0x90] sm:$0xff] }
 0x1a7   : > { %v3451_v47 = vadd.f32 %v3450_v51, %v3436_v49  ;;  %v2771_v32 = vadd.f32 %v2738_v61, %v2576_v28  ;;  %v4564_v51 = vrot.slane %v4563_v5, 4  ;;  %v6751_v61 = vrot.slane %v4030_v52, 9 }
 0x1a8   : > { %v3366_v33 = vpop.f32.mrf.mxu0  ;;  %v9411_v37 = vpop.f32.mrf.mxu3  ;;  %v4581_v5 = vshrl.u32 %v4472_v34, 16  ;;  %v9451_v34 = vld [vmem:[#allocation2 + $0xa4] sm:$0x1]  ;;  %v4586_v52 = vrot.slane %v4584_v10, 5 }
 0x1a9   : > { %v3149_v41 = vadd.f32 %v9366_v27, %v2771_v32  ;;  %v4574_v27 = vrot.slane %v4573_v3, 4  ;;  %v4569_v23 = vsel %vm7877_vm11, %v4564_v51, %v9402_v59  ;;  %v10094_v59 = vld [vmem:[#allocation16_spill] sm:$0xff] }
 0x1aa   : > { %v9413_v16 = vpop.f32.mrf.mxu1  ;;  %v2578_v3 = vadd.f32 %v10094_v59, %v9213_v46  ;;  %v4583_v46 = vrot.slane %v4581_v5, 4  ;;  %v4476_v59 = vld [vmem:[#allocation2 + $0xac] sm:$0xf] }
 0x1ab   : > { %v3399_v22 = vadd.f32 %v3366_v33, %v3149_v41  ;;  %3999 = vmatmul.bf16.gmra.mxu2 %v7289_v53  ;;  %v4579_v30 = vsel %vm7877_vm11, %v4574_v27, %v4578_v31  ;;  %v4590_v33 = vshll.u32 %v4473_v19, 16  ;;  %v4594_v41 = vshrl.u32 %v4473_v19, 16 }
 0x1ad   : > { %v3414_v57 = vadd.f32 %v3413_v25, %v3399_v22  ;;  %v3437_v28 = vmul.f32 %v3399_v22, %v3399_v22  ;;  %v7459_v50 = vpack.c.bf16 %v3399_v22, %v3398_v54  ;;  %4790 = vmatmul.bf16.gmra.mxu1 %v4710_v42  ;;  %v7377_v54 = vld [vmem:[%s10026_s3 + $0x218] sm:$0xff]  ;;  %v9426_v25 = vadd.f32 %v9250_v48, %v9253_v58  ;;  %v7344_v48 = vld [vmem:[%s10026_s3 + $0x150] sm:$0xff] }
 0x1ae   : > { %v2741_v6 = vpop.f32.mrf.mxu2  ;;  %4229 = vmatmul.bf16.gmra.mxu3 %v4141_v56  ;;  %5845 = vmatpush.bf16.msra.mxu1 %v7377_v54  ;;  %v4087_v42 = vsel %vm8083_vm14, %v6751_v61, %v4086_v2  ;;  %v7360_v56 = vld [vmem:[%s10026_s3 + $0x190] sm:$0xff]  ;;  %v9453_v4 = vrot.slane %v4590_v33, 5  ;;  %v4596_v2 = vrot.slane %v4594_v41, 4 }
 0x1af   : > { %v3452_v49 = vadd.f32 %v3451_v47, %v3437_v28  ;;  %7542 = vst [vmem:[%s9317_s28 + $0x10] sm:$0xff] %v7459_v50   ;;  %v2772_v29 = vadd.f32 %v2741_v6, %v9202_v38  ;;  %v10093_v47 = vld [vmem:[#allocation20_spill] sm:$0xff]  ;;  %5026 = vmatpush.bf16.msra.mxu2 %v7344_v48  ;;  %v4698_v28 = vunpack.c.l.b16 %v4569_v23  ;;  %v4699_v50 = vunpack.c.l.b16 %v4579_v30  ;;  %5220 = vmatpush.bf16.msra.mxu3 %v7360_v56 }
 0x1b0   : > { %v4089_v32 = vrot.slane %v10093_v47, 5  ;;  %v3369_v38 = vpop.f32.mrf.mxu0  ;;  %v4131_v54 = vunpack.c.l.b16 %v4087_v42  ;;  %v4597_v23 = vor.u32 %v4596_v2, %v9453_v4  ;;  %v4093_v42 = vrot.slane %v9134_v20, 5 }
 0x1b1   : > { %v3150_v53 = vadd.f32 %v9386_v43, %v2772_v29  ;;  %v9438_v58 = vpop.f32.mrf.mxu3  ;;  %v4711_v47 = vpack.c.b16 %v4699_v50, %v4698_v28  ;;  %v4096_v2 = vrot.slane %v9136_v14, 5 }
 0x1b2   : > { %v4090_v22 = vsel %vm8083_vm14, %v4088_v55, %v4089_v32  ;;  %v9449_v27 = vpop.f32.mrf.mxu1  ;;  %v4600_v55 = vshll.u32 %v9451_v34, 16  ;;  %v4587_v32 = vor.u32 %v4586_v52, %v4583_v46  ;;  %v4598_v28 = vrot.slane %v4597_v23, 4 }
 0x1b3   : > { %v3400_v43 = vadd.f32 %v3369_v38, %v3150_v53  ;;  %4418 = vmatmul.bf16.gmra.mxu0 %v7321_v36  ;;  %v4132_v36 = vunpack.c.l.b16 %v4090_v22  ;;  %v4095_v52 = vrot.slane %v4093_v42, 4 }
 0x1b4   : > { %v4602_v33 = vrot.slane %v4600_v55, 5  ;;  %v10095_v55 = vld [vmem:[#allocation17_spill] sm:$0xff] }
 0x1b5   : > { %v3415_v51 = vadd.f32 %v3414_v57, %v3400_v43  ;;  %v3438_v31 = vmul.f32 %v3400_v43, %v3400_v43  ;;  %v4142_v30 = vpack.c.b16 %v4132_v36, %v4131_v54  ;;  %v7343_v54 = vld [vmem:[%s10026_s3 + $0x148] sm:$0xff]  ;;  %v4097_v23 = vsel %vm8083_vm14, %v4095_v52, %v4096_v2 }
 0x1b6   : > { %v2743_v6 = vpop.f32.mrf.mxu2  ;;  %v4603_v14 = vsel %vm7877_vm11, %v4598_v28, %v4602_v33  ;;  %5027 = vmatpush.bf16.msra.mxu2 %v7343_v54  ;;  %v4134_v28 = vunpack.c.l.b16 %v4097_v23  ;;  %v7367_v23 = vld [vmem:[%s10026_s3 + $0x1c8] sm:$0xff] }
 0x1b7   : > { %v3453_v29 = vadd.f32 %v3452_v49, %v3438_v31  ;;  %v2773_v19 = vadd.f32 %v2743_v6, %v2578_v3  ;;  %v4475_v49 = vld [vmem:[#allocation2 + $0xa8] sm:$0xf]  ;;  %v7322_v6 = vld [vmem:[#allocation2 + $0x9c] sm:$0xff] }
 0x1b8   : > { %v3371_v57 = vpop.f32.mrf.mxu0  ;;  %v4031_v3 = vld [vmem:[#allocation2 + $0xa8] sm:$0xe]  ;;  %v4605_v50 = vshrl.u32 %v4475_v49, 16  ;;  %v4608_v46 = vshll.u32 %v4475_v49, 16 }
 0x1b9   : > { %v3151_v61 = vadd.f32 %v9411_v37, %v2773_v19  ;;  %v9457_v38 = vpop.f32.mrf.mxu3  ;;  %v4588_v37 = vrot.slane %v4587_v32, 4  ;;  %v6752_v20 = vrot.slane %v4031_v3, 9  ;;  %v4614_v19 = vshll.u32 %v4476_v59, 16  ;;  %v7291_v3 = vld [vmem:[#allocation2 + $0x9c] sm:$0xff] }
 0x1ba   : > { %v4610_v32 = vrot.slane %v4608_v46, 5 }
 0x1bb   : > { %v3401_v53 = vadd.f32 %v3371_v57, %v3151_v61  ;;  %4004 = vmatmul.bf16.gmra.mxu2 %v7290_v21  ;;  %v4618_v21 = vshrl.u32 %v4476_v59, 16  ;;  %v4593_v61 = vsel %vm7877_vm11, %v4588_v37, %v9453_v4  ;;  %v9489_v4 = vrot.slane %v4614_v19, 5 }
 0x1bc   : > { %v4700_v33 = vunpack.c.l.b16 %v4593_v61 }
 0x1bd   : > { %v3416_v48 = vadd.f32 %v3415_v51, %v3401_v53  ;;  %v3439_v5 = vmul.f32 %v3401_v53, %v3401_v53  ;;  %v7464_v10 = vpack.c.bf16 %v3401_v53, %v3400_v43  ;;  %4795 = vmatmul.bf16.gmra.mxu1 %v4711_v47  ;;  %v7368_v43 = vld [vmem:[%s10026_s3 + $0x1d0] sm:$0xff]  ;;  %v4607_v47 = vrot.slane %v4605_v50, 4 }
 0x1be   : > { %v2746_v41 = vpop.f32.mrf.mxu2  ;;  %v9462_v56 = vpop.f32.mrf.mxu1  ;;  %4234 = vmatmul.bf16.gmra.mxu3 %v4142_v30  ;;  %v7376_v51 = vld [vmem:[%s10026_s3 + $0x210] sm:$0xff]  ;;  %5597 = vmatpush.bf16.msra.mxu0 %v7368_v43  ;;  %v4094_v53 = vsel %vm8083_vm14, %v6752_v20, %v4093_v42  ;;  %v7359_v42 = vld [vmem:[%s10026_s3 + $0x188] sm:$0xff] }
 0x1bf   : > { %v3454_v22 = vadd.f32 %v3453_v29, %v3439_v5  ;;  %7543 = vst [vmem:[%s9317_s28 + $0x18] sm:$0xff] %v7464_v10   ;;  %v2774_v31 = vadd.f32 %v2746_v41, %v9261_v63  ;;  %5846 = vmatpush.bf16.msra.mxu1 %v7376_v51  ;;  %v9487_v5 = vld [vmem:[#allocation2 + $0xb0] sm:$0x1]  ;;  %v4620_v10 = vrot.slane %v4618_v21, 4  ;;  %v4701_v41 = vunpack.c.l.b16 %v4603_v14  ;;  %5221 = vmatpush.bf16.msra.mxu3 %v7359_v42  ;;  %v10096_v42 = vld [vmem:[#allocation21_spill] sm:$0xff] }
 0x1c0   : > { %v3374_v29 = vpop.f32.mrf.mxu0  ;;  %v4611_v50 = vor.u32 %v4610_v32, %v4607_v47  ;;  %v4032_v32 = vld [vmem:[#allocation2 + $0xb4] sm:$0xe] }
 0x1c1   : > { %v3152_v63 = vadd.f32 %v9438_v58, %v2774_v31  ;;  %v3129_v36 = vpop.f32.mrf.mxu3  ;;  %v2580_v58 = vadd.f32 %v10095_v55, %v9270_v62  ;;  %v4133_v31 = vunpack.c.l.b16 %v4094_v53  ;;  %v4621_v46 = vor.u32 %v4620_v10, %v9489_v4  ;;  %v4478_v55 = vld [vmem:[#allocation2 + $0xb4] sm:$0xf]  ;;  %v7375_v10 = vld [vmem:[%s10026_s3 + $0x208] sm:$0xff] }
 0x1c2   : > { %v4100_v53 = vrot.slane %v9215_v15, 5  ;;  %5598 = vmatpush.bf16.msra.mxu0 %v7367_v23 }
 0x1c3   : > { %v3402_v57 = vadd.f32 %v3374_v29, %v3152_v63  ;;  %4423 = vmatmul.bf16.gmra.mxu0 %v7322_v6  ;;  %v4143_v2 = vpack.c.b16 %v4134_v28, %v4133_v31  ;;  %v4612_v29 = vrot.slane %v4611_v50, 4  ;;  %v4622_v61 = vrot.slane %v4621_v46, 4  ;;  %5847 = vmatpush.bf16.msra.mxu1 %v7375_v10 }
 0x1c4   : > { %v2582_v50 = vadd.f32 %v10096_v42, %v9329_v45 }
 0x1c5   : > { %v3417_v30 = vadd.f32 %v3416_v48, %v3402_v57  ;;  %v3440_v49 = vmul.f32 %v3402_v57, %v3402_v57  ;;  %v4624_v48 = vshll.u32 %v9487_v5, 16 }
 0x1c6   : > { %v2748_v62 = vpop.f32.mrf.mxu2  ;;  %v9495_v51 = vpop.f32.mrf.mxu1 }
 0x1c7   : > { %v3455_v37 = vadd.f32 %v3454_v22, %v3440_v49  ;;  %v2775_v59 = vadd.f32 %v2748_v62, %v2580_v58  ;;  %v4712_v22 = vpack.c.b16 %v4701_v41, %v4700_v33  ;;  %v4626_v63 = vrot.slane %v4624_v48, 5  ;;  %v9499_v58 = vld [vmem:[#allocation2 + $0xb8] sm:$0xf] }
 0x1c8   : > { %v3376_v43 = vpop.f32.mrf.mxu0  ;;  %v4103_v49 = vrot.slane %v9222_v44, 5  ;;  %v4102_v62 = vrot.slane %v4100_v53, 4  ;;  %v4638_v31 = vshll.u32 %v9499_v58, 16 }
 0x1c9   : > { %v3153_v6 = vadd.f32 %v9457_v38, %v2775_v59  ;;  %v3131_v20 = vpop.f32.mrf.mxu3  ;;  %v4627_v15 = vsel %vm7877_vm11, %v4622_v61, %v4626_v63  ;;  %v4629_v59 = vshrl.u32 %v4478_v55, 16 }
 0x1cb   : > { %v3403_v52 = vadd.f32 %v3376_v43, %v3153_v6  ;;  %4009 = vmatmul.bf16.gmra.mxu2 %v7291_v3  ;;  %v4632_v3 = vshll.u32 %v4478_v55, 16  ;;  %v4104_v43 = vsel %vm8083_vm14, %v4102_v62, %v4103_v49  ;;  %v4631_v63 = vrot.slane %v4629_v59, 4  ;;  %v7292_v55 = vld [vmem:[#allocation2 + $0xa8] sm:$0xff] }
 0x1cd   : > { %v3418_v19 = vadd.f32 %v3417_v30, %v3403_v52  ;;  %v3441_v21 = vmul.f32 %v3403_v52, %v3403_v52  ;;  %v7469_v54 = vpack.c.bf16 %v3403_v52, %v3402_v57  ;;  %4800 = vmatmul.bf16.gmra.mxu1 %v4712_v22  ;;  %v7323_v30 = vld [vmem:[#allocation2 + $0xa8] sm:$0xff]  ;;  %v6753_v57 = vrot.slane %v4032_v32, 9 }
 0x1ce   : > { %v2751_v14 = vpop.f32.mrf.mxu2  ;;  %4239 = vmatmul.bf16.gmra.mxu3 %v4143_v2  ;;  %v4703_v52 = vunpack.c.l.b16 %v4627_v15  ;;  %v9531_v2 = vld [vmem:[#allocation2 + $0xbc] sm:$0x1]  ;;  %v4136_v32 = vunpack.c.l.b16 %v4104_v43  ;;  %v463_v15 = vld [vmem:[#allocation2 + $0xc0] sm:$0x1] }
 0x1cf   : > { %v3456_v38 = vadd.f32 %v3455_v37, %v3441_v21  ;;  %7544 = vst [vmem:[%s9317_s28 + $0x20] sm:$0xff] %v7469_v54   ;;  %v2776_v47 = vadd.f32 %v2751_v14, %v9307_v60  ;;  %v4617_v60 = vsel %vm7877_vm11, %v4612_v29, %v9489_v4  ;;  %v7342_v37 = vld [vmem:[%s10026_s3 + $0x140] sm:$0xff]  ;;  %v4101_v48 = vsel %vm8083_vm14, %v6753_v57, %v4100_v53 }
 0x1d0   : > { %v3379_v33 = vpop.f32.mrf.mxu0  ;;  %5028 = vmatpush.bf16.msra.mxu2 %v7342_v37  ;;  %v4702_v22 = vunpack.c.l.b16 %v4617_v60  ;;  %v4634_v21 = vrot.slane %v4632_v3, 5  ;;  %v9533_v54 = vrot.slane %v4638_v31, 5  ;;  %v4648_v53 = vshll.u32 %v9531_v2, 16  ;;  %v7540_v60 = vld [vmem:[%s7685_s8 + $0x78] sm:$0xff]   ;;  %v519_v3 = vld [vmem:[#allocation2 + $0xc8] sm:$0x1] }
 0x1d1   : > { %v3154_v41 = vadd.f32 %v3129_v36, %v2776_v47  ;;  %v9519_v44 = vpop.f32.mrf.mxu3  ;;  %v4642_v36 = vshrl.u32 %v9499_v58, 16  ;;  %v4135_v47 = vunpack.c.l.b16 %v4101_v48  ;;  %v7444_v37 = vunpack.c.l.bf16 %v7540_v60 }
 0x1d2   : > { %v9523_v28 = vpop.f32.mrf.mxu1  ;;  %v4635_v57 = vor.u32 %v4634_v21, %v4631_v63  ;;  %v4650_v62 = vrot.slane %v4648_v53, 5  ;;  %v7445_v59 = vunpack.c.h.bf16 %v7540_v60  ;;  %v520_v48 = vsel %vm7709_vm4, 0, %v519_v3 }
 0x1d3   : > { %v3404_v4 = vadd.f32 %v3379_v33, %v3154_v41  ;;  %4428 = vmatmul.bf16.gmra.mxu0 %v7323_v30  ;;  %v4644_v61 = vrot.slane %v4642_v36, 4  ;;  %v4713_v30 = vpack.c.b16 %v4703_v52, %v4702_v22  ;;  %v4144_v41 = vpack.c.b16 %v4136_v32, %v4135_v47  ;;  %v7603_v52 = vld [vmem:[%s10024_s1] ss:$0 sm:$0xff]  ;;  %521 = vst [vmem:[#allocation2 + $0xc8] sm:$0x1] %v520_v48  ;;  %v7293_v48 = vld [vmem:[#allocation2 + $0xb4] sm:$0xff] }
 0x1d4   : > { %v336_v63 = vmul.f32 %v7603_v52, %v7445_v59 }
 0x1d5   : > { %v3419_v6 = vadd.f32 %v3418_v19, %v3404_v4  ;;  %v3442_v46 = vmul.f32 %v3404_v4, %v3404_v4  ;;  %v4645_v49 = vor.u32 %v4644_v61, %v9533_v54  ;;  %v7604_v61 = vld [vmem:[%s10025_s2] ss:$0 sm:$0xff] }
 0x1d6   : > { %v2753_v29 = vpop.f32.mrf.mxu2 }
 0x1d7   : > { %v3457_v45 = vadd.f32 %v3456_v38, %v3442_v46  ;;  %v2777_v14 = vadd.f32 %v2753_v29, %v2582_v50  ;;  %v7358_v38 = vld [vmem:[%s10026_s3 + $0x180] sm:$0xff]  ;;  %v4636_v46 = vrot.slane %v4635_v57, 4  ;;  %v4646_v22 = vrot.slane %v4645_v49, 4 }
 0x1d8   : > { %v3381_v19 = vpop.f32.mrf.mxu0  ;;  %5222 = vmatpush.bf16.msra.mxu3 %v7358_v38  ;;  %v335_v29 = vmul.f32 %v7603_v52, %v7444_v37  ;;  %v7366_v57 = vld [vmem:[%s10026_s3 + $0x1c0] sm:$0xff] }
 0x1d9   : > { %v3155_v23 = vadd.f32 %v3131_v20, %v2777_v14  ;;  %v9537_v10 = vpop.f32.mrf.mxu3  ;;  %v464_v20 = vsel %vm7698_vm3, 0, %v463_v15  ;;  %v4641_v53 = vsel %vm7877_vm11, %v4636_v46, %v9533_v54  ;;  %5599 = vmatpush.bf16.msra.mxu0 %v7366_v57 }
 0x1da   : > { %v9545_v31 = vpop.f32.mrf.mxu1  ;;  %465 = vst [vmem:[#allocation2 + $0xc0] sm:$0x1] %v464_v20  ;;  %v371_v14 = vadd.f32 %v7604_v61, %v335_v29  ;;  %v4704_v60 = vunpack.c.l.b16 %v4641_v53  ;;  %v991_v52 = vld [vmem:[#allocation2 + $0xc8] sm:$0x1] }
 0x1db   : > { %v3405_v33 = vadd.f32 %v3381_v19, %v3155_v23  ;;  %4014 = vmatmul.bf16.gmra.mxu2 %v7292_v55  ;;  %v372_v55 = vadd.f32 %v7604_v61, %v336_v63 }
 0x1dd   : > { %v3420_v36 = vadd.f32 %v3419_v6, %v3405_v33  ;;  %v3443_v42 = vmul.f32 %v3405_v33, %v3405_v33  ;;  %v7474_v50 = vpack.c.bf16 %v3405_v33, %v3404_v4  ;;  %4805 = vmatmul.bf16.gmra.mxu1 %v4713_v30  ;;  %v7324_v6 = vld [vmem:[#allocation2 + $0xb4] sm:$0xff]  ;;  %v404_v23 = vmax.f32 %v372_v55, 0.0 }
 0x1de   : > { %v2756_v43 = vpop.f32.mrf.mxu2  ;;  %4244 = vmatmul.bf16.gmra.mxu3 %v4144_v41  ;;  %v7350_v55 = vld [vmem:[#allocation2 + $0x78] sm:$0xff] }
 0x1df   : > { %v3458_v21 = vadd.f32 %v3457_v45, %v3443_v42  ;;  %7545 = vst [vmem:[%s9317_s28 + $0x28] sm:$0xff] %v7474_v50   ;;  %v2778_v4 = vadd.f32 %v2756_v43, %v9363_v17  ;;  %v4651_v45 = vsel %vm7877_vm11, %v4646_v22, %v4650_v62  ;;  %v403_v17 = vmax.f32 %v371_v14, 0.0 }
 0x1e0   : > { %v3384_v47 = vpop.f32.mrf.mxu0  ;;  %v556_v33 = vpack.c.bf16 %v404_v23, %v404_v23  ;;  %v4705_v15 = vunpack.c.l.b16 %v4651_v45  ;;  %v7606_v45 = vld [vmem:[#allocation2 + $0x74] sm:$0x1] }
 0x1e1   : > { %v3156_v32 = vadd.f32 %v9519_v44, %v2778_v4  ;;  %v9563_v19 = vpop.f32.mrf.mxu3  ;;  %v2584_v44 = vadd.f32 %v9140_v1, %v9378_v12  ;;  %v555_v49 = vpack.c.bf16 %v403_v17, %v403_v17  ;;  %v987_v22 = vld [vmem:[#allocation2 + $0xc0] sm:$0xf] }
 0x1e2   : > { %v823_v59 = vshrl.u32 %v556_v33, 16  ;;  %v826_v20 = vshll.u32 %v556_v33, 16  ;;  %v4714_v1 = vpack.c.b16 %v4705_v15, %v4704_v60  ;;  %v9584_v33 = vld [vmem:[#allocation2 + $0x7c] sm:$0xf] }
 0x1e3   : > { %v3406_v30 = vadd.f32 %v3384_v47, %v3156_v32  ;;  %4433 = vmatmul.bf16.gmra.mxu0 %v7324_v6  ;;  %v815_v62 = vshrl.u32 %v555_v49, 16  ;;  %v818_v37 = vshll.u32 %v555_v49, 16  ;;  %v4837_v47 = vld [vmem:[#allocation2 + $0x6c] sm:$0xe]  ;;  %v7605_v32 = vld [vmem:[#allocation2 + $0x70] sm:$0xf] }
 0x1e4   : > { %v825_v46 = vrot.slane %v823_v59, 7  ;;  %v4871_v53 = vrot.slane %v7605_v32, 5  ;;  %v5280_v49 = vld [vmem:[#allocation2 + $0x78] sm:$0xf]  ;;  %v7607_v32 = vld [vmem:[#allocation2 + $0x7c] sm:$0xf] }
 0x1e5   : > { %v3421_v41 = vadd.f32 %v3420_v36, %v3406_v30  ;;  %v3444_v54 = vmul.f32 %v3406_v30, %v3406_v30  ;;  %v817_v43 = vrot.slane %v815_v62, 7  ;;  %v9586_v62 = vld [vmem:[#allocation2 + $0x80] sm:$0x1]  ;;  %v5308_v59 = vshll.u32 %v5280_v49, 16 }
 0x1e6   : > { %v2758_v38 = vpop.f32.mrf.mxu2  ;;  %v9570_v3 = vpop.f32.mrf.mxu1  ;;  %v828_v4 = vor.u32 %v826_v20, %v825_v46  ;;  %v830_v6 = vrot.slane %v825_v46, 4  ;;  %v5314_v20 = vshll.u32 %v9584_v33, 16 }
 0x1e7   : > { %v3459_v42 = vadd.f32 %v3458_v21, %v3444_v54  ;;  %v2779_v50 = vadd.f32 %v2758_v38, %v2584_v44  ;;  %v820_v29 = vor.u32 %v818_v37, %v817_v43  ;;  %v821_v63 = vrot.slane %v817_v43, 4  ;;  %v7374_v21 = vld [vmem:[%s10026_s3 + $0x200] sm:$0xff] }
 0x1e8   : > { %v3386_v12 = vpop.f32.mrf.mxu0  ;;  %v992_v57 = vsel %vm7698_vm3, %v830_v6, %v991_v52  ;;  %v6930_v44 = vrot.slane %v4837_v47, 9  ;;  %5848 = vmatpush.bf16.msra.mxu1 %v7374_v21  ;;  %v4873_v38 = vrot.slane %v4871_v53, 4  ;;  %v5305_v37 = vshrl.u32 %v5280_v49, 16 }
 0x1e9   : > { %v3157_v36 = vadd.f32 %v9537_v10, %v2779_v50  ;;  %v9573_v61 = vpop.f32.mrf.mxu3  ;;  %v4874_v10 = vrot.slane %v7606_v45, 5  ;;  %v829_v17 = vsel %vm7783_vm7, %v821_v63, %v828_v4  ;;  %v988_v23 = vsel %vm7802_vm8, %v820_v29, %v987_v22  ;;  %993 = vst [vmem:[#allocation2 + $0xc8] sm:$0x1] %v992_v57 }
 0x1ea   : > { %989 = vst [vmem:[#allocation2 + $0xc0] sm:$0xf] %v988_v23  ;;  %v4872_v18 = vsel %vm8083_vm14, %v6930_v44, %v4871_v53  ;;  %v5307_v46 = vrot.slane %v5305_v37, 4  ;;  %v5318_v52 = vshrl.u32 %v9584_v33, 16  ;;  %v5316_v63 = vrot.slane %v5314_v20, 5 }
 0x1eb   : > { %v3407_v14 = vadd.f32 %v3386_v12, %v3157_v36  ;;  %4019 = vmatmul.bf16.gmra.mxu2 %v7293_v48  ;;  %990 = vst [vmem:[#allocation2 + $0xc4] sm:$0xf] %v829_v17  ;;  %v4941_v48 = vunpack.c.l.b16 %v4872_v18  ;;  %v4878_v53 = vrot.slane %v7607_v32, 5  ;;  %v5691_v32 = vrot.slane %v9584_v33, 5 }
 0x1ec   : > { %v5320_v6 = vrot.slane %v5318_v52, 4 }
 0x1ed   : > { %v3422_v54 = vadd.f32 %v3421_v41, %v3407_v14  ;;  %v3445_v60 = vmul.f32 %v3407_v14, %v3407_v14  ;;  %v7479_v15 = vpack.c.bf16 %v3407_v14, %v3406_v30  ;;  %4810 = vmatmul.bf16.gmra.mxu1 %v4714_v1  ;;  %v4875_v30 = vsel %vm8083_vm14, %v4873_v38, %v4874_v10 }
 0x1ee   : > { %v2761_v9 = vpop.f32.mrf.mxu2  ;;  %5223 = vmatmul.bf16.vlgmr.msra.gmra.mxu3 %v7350_v55  ;;  %v4942_v43 = vunpack.c.l.b16 %v4875_v30  ;;  %v5310_v1 = vrot.slane %v5308_v59, 5  ;;  %v9595_v12 = vpop.f32.mrf.mxu1  ;;  %v2586_v55 = vadd.f32 %v9199_v7, %v9426_v25  ;;  %v5321_v25 = vor.u32 %v5320_v6, %v5316_v63  ;;  %v4838_v59 = vld [vmem:[#allocation2 + $0x78] sm:$0xe] }
 0x1ef   : > { %v3460_v50 = vadd.f32 %v3459_v42, %v3445_v60  ;;  %7546 = vst [vmem:[%s9317_s28 + $0x30] sm:$0xff] %v7479_v15   ;;  %v2780_v41 = vadd.f32 %v2761_v9, %v9409_v11  ;;  %v5324_v42 = vshll.u32 %v9586_v62, 16  ;;  %v9613_v15 = vld [vmem:[#allocation2 + $0x78] sm:$0xe] }
 0x1f0   : > { %10097 = vst [vmem:[#allocation8_spill] sm:$0xff] %v9595_v12  ;;  %v3389_v36 = vpop.f32.mrf.mxu0  ;;  %v5311_v11 = vor.u32 %v5310_v1, %v5307_v46  ;;  %v4957_v21 = vpack.c.b16 %v4942_v43, %v4941_v48  ;;  %v9615_v9 = vld [vmem:[#allocation2 + $0xc8] sm:$0x1]  ;;  %v5322_v48 = vrot.slane %v5321_v25, 4  ;;  %v7114_v52 = vrot.slane %v9613_v15, 9 }
 0x1f1   : > { %v3158_v22 = vadd.f32 %v9563_v19, %v2780_v41  ;;  %v9600_v29 = vpop.f32.mrf.mxu3  ;;  %v4481_v14 = vld [vmem:[#allocation2 + $0xc0] sm:$0xf]  ;;  %v5326_v47 = vrot.slane %v5324_v42, 5  ;;  %v4672_v30 = vshll.u32 %v9615_v9, 16  ;;  %v6931_v42 = vrot.slane %v4838_v59, 9 }
 0x1f2   : > { %v7325_v19 = vld [vmem:[#allocation2 + $0xc0] sm:$0xff]  ;;  %v4653_v23 = vshrl.u32 %v4481_v14, 16  ;;  %v4656_v57 = vshll.u32 %v4481_v14, 16  ;;  %v5312_v7 = vrot.slane %v5311_v11, 4 }
 0x1f3   : > { %v9602_v4 = vadd.f32 %v3389_v36, %v3158_v22  ;;  %v9609_v17 = vld [vmem:[#allocation2 + $0xc4] sm:$0xf]  ;;  %4438 = vmatmul.bf16.gmra.mxu0 %v7325_v19  ;;  %v4674_v22 = vrot.slane %v4672_v30, 5  ;;  %v9647_v30 = vld [vmem:[#allocation2 + $0x8c] sm:$0x1] }
 0x1f4   : > { %v4662_v44 = vshll.u32 %v9609_v17, 16  ;;  %v4666_v49 = vshrl.u32 %v9609_v17, 16  ;;  %v4658_v18 = vrot.slane %v4656_v57, 5  ;;  %v7351_v19 = vld [vmem:[#allocation2 + $0x84] sm:$0xff]  ;;  %v7608_v57 = vld [vmem:[#allocation2 + $0x80] sm:$0x1] }
 0x1f5   : > { %v3423_v45 = vadd.f32 %v3422_v54, %v9602_v4  ;;  %v3446_v10 = vmul.f32 %v9602_v4, %v9602_v4  ;;  %v4655_v54 = vrot.slane %v4653_v23, 4  ;;  %v4880_v23 = vrot.slane %v4878_v53, 4 }
 0x1f6   : > { %v2763_v60 = vpop.f32.mrf.mxu2  ;;  %v4664_v20 = vrot.slane %v4662_v44, 5  ;;  %v4668_v41 = vrot.slane %v4666_v49, 4  ;;  %v4881_v44 = vrot.slane %v7608_v57, 5  ;;  %v4920_v8 = vrot.slane %v9609_v17, 5 }
 0x1f7   : > { %v3461_v38 = vadd.f32 %v3460_v50, %v3446_v10  ;;  %v2781_v37 = vadd.f32 %v2763_v60, %v2586_v55  ;;  %v4659_v43 = vor.u32 %v4658_v18, %v4655_v54  ;;  %v5317_v55 = vsel %vm7877_vm11, %v5312_v7, %v5316_v63  ;;  %v5283_v63 = vld [vmem:[#allocation2 + $0x84] sm:$0xf] }
 0x1f8   : > { %v3391_v46 = vpop.f32.mrf.mxu0  ;;  %v4669_v36 = vor.u32 %v4668_v41, %v4664_v20  ;;  %v5512_v15 = vunpack.c.l.b16 %v5317_v55  ;;  %v4882_v41 = vsel %vm8083_vm14, %v4880_v23, %v4881_v44 }
 0x1f9   : > { %v3159_v1 = vadd.f32 %v9573_v61, %v2781_v37  ;;  %v9620_v50 = vpop.f32.mrf.mxu3  ;;  %v4660_v6 = vrot.slane %v4659_v43, 4  ;;  %v5327_v61 = vsel %vm7877_vm11, %v5322_v48, %v5326_v47  ;;  %v4879_v47 = vsel %vm8083_vm14, %v6931_v42, %v4878_v53 }
 0x1fa   : > { %v9622_v11 = vpop.f32.mrf.mxu1  ;;  %v4670_v10 = vrot.slane %v4669_v36, 4  ;;  %v5513_v59 = vunpack.c.l.b16 %v5327_v61  ;;  %v5329_v48 = vshrl.u32 %v5283_v63, 16  ;;  %v5332_v43 = vshll.u32 %v5283_v63, 16 }
 0x1fb   : > { %10098 = vst [vmem:[#allocation7_spill] sm:$0xff] %v9622_v11  ;;  %v3409_v14 = vadd.f32 %v3391_v46, %v3159_v1  ;;  %5029 = vmatmul.bf16.vlgmr.msra.gmra.mxu2 %v4957_v21  ;;  %v4665_v49 = vsel %vm7877_vm11, %v4660_v6, %v4664_v20  ;;  %v9642_v20 = vld [vmem:[#allocation2 + $0x88] sm:$0xf]  ;;  %v5693_v1 = vrot.slane %v5691_v32, 4 }
 0x1fc   : > { %v4675_v33 = vsel %vm7877_vm11, %v4670_v10, %v4674_v22  ;;  %v4706_v7 = vunpack.c.l.b16 %v4665_v49  ;;  %v4944_v22 = vunpack.c.l.b16 %v4882_v41  ;;  %v5331_v42 = vrot.slane %v5329_v48, 4 }
 0x1fd   : > { %v9631_v60 = vadd.f32 %v3423_v45, %v3409_v14  ;;  %v3447_v21 = vmul.f32 %v3409_v14, %v3409_v14  ;;  %v7484_v25 = vpack.c.bf16 %v3409_v14, %v9602_v4  ;;  %v4707_v18 = vunpack.c.l.b16 %v4675_v33 }
 0x1fe   : > { %v3985_v54 = vpop.f32.mrf.mxu2  ;;  %5228 = vmatmul.bf16.gmra.mxu3 %v7351_v19  ;;  %v5694_v4 = vrot.slane %v9586_v62, 5  ;;  %v5334_v6 = vrot.slane %v5332_v43, 5  ;;  %v5338_v62 = vshll.u32 %v9642_v20, 16  ;;  %v5528_v55 = vpack.c.b16 %v5513_v59, %v5512_v15  ;;  %v7609_v59 = vld [vmem:[#allocation2 + $0x88] sm:$0xf] }
 0x1ff   : > { %10099 = vst [vmem:[#allocation5_spill] sm:$0xff] %v9631_v60  ;;  %v9638_v37 = vadd.f32 %v3461_v38, %v3447_v21  ;;  %v3986_v45 = vadd.f32 %v3985_v54, %v9237_v0  ;;  %v4715_v53 = vpack.c.b16 %v4707_v18, %v4706_v7  ;;  %v4943_v0 = vunpack.c.l.b16 %v4879_v47  ;;  %v4839_v54 = vld [vmem:[#allocation2 + $0x84] sm:$0xe] }
 0x200   : > { %7547 = vst [vmem:[%s9317_s28 + $0x38] sm:$0xff] %v7484_v25   ;;  %v9649_v46 = vpop.f32.mrf.mxu0  ;;  %v5342_v19 = vshrl.u32 %v9642_v20, 16  ;;  %v5348_v10 = vshll.u32 %v9647_v30, 16  ;;  %v5335_v61 = vor.u32 %v5334_v6, %v5331_v42  ;;  %v5340_v23 = vrot.slane %v5338_v62, 5  ;;  %v10102_v25 = vld [vmem:[#allocation22_spill] sm:$0xff] }
 0x201   : > { %10100 = vst [vmem:[#allocation11_spill] sm:$0xff] %v9638_v37  ;;  %v9652_v38 = vadd.f32 %v9600_v29, %v3986_v45  ;;  %v4215_v36 = vpop.f32.mrf.mxu3  ;;  %4815 = vmatmul.bf16.gmra.mxu1 %v4715_v53  ;;  %v5692_v29 = vsel %vm8083_vm14, %v7114_v52, %v5691_v32  ;;  %v5695_v57 = vsel %vm8083_vm14, %v5693_v1, %v5694_v4  ;;  %v4885_v45 = vrot.slane %v7609_v59, 5  ;;  %v5286_v42 = vld [vmem:[#allocation2 + $0x90] sm:$0xf]  ;;  %v9675_v6 = vld [vmem:[#allocation2 + $0x94] sm:$0xf] }
 0x202   : > { %v9655_v14 = vpop.f32.mrf.mxu1  ;;  %v5344_v44 = vrot.slane %v5342_v19, 4  ;;  %v4958_v21 = vpack.c.b16 %v4944_v22, %v4943_v0  ;;  %v5336_v33 = vrot.slane %v5335_v61, 4  ;;  %v5350_v15 = vrot.slane %v5348_v10, 5  ;;  %v7352_v0 = vld [vmem:[#allocation2 + $0x90] sm:$0xff] }
 0x203   : > { %10101 = vst [vmem:[#allocation10_spill] sm:$0xff] %v9655_v14  ;;  %5600 = vmatmul.bf16.vlgmr.msra.gmra.mxu0 %v5528_v55  ;;  %v5761_v47 = vunpack.c.l.b16 %v5692_v29  ;;  %v5762_v18 = vunpack.c.l.b16 %v5695_v57  ;;  %v6932_v48 = vrot.slane %v4839_v54, 9  ;;  %v4887_v22 = vrot.slane %v4885_v45, 4 }
 0x204   : > { %v5345_v7 = vor.u32 %v5344_v44, %v5340_v23  ;;  %v5341_v53 = vsel %vm7877_vm11, %v5336_v33, %v5340_v23  ;;  %v5353_v19 = vshrl.u32 %v5286_v42, 16  ;;  %v5698_v10 = vrot.slane %v9642_v20, 5 }
 0x205   : > { %v5777_v62 = vpack.c.b16 %v5762_v18, %v5761_v47  ;;  %v5356_v61 = vshll.u32 %v5286_v42, 16  ;;  %v5362_v29 = vshll.u32 %v9675_v6, 16  ;;  %v5366_v57 = vshrl.u32 %v9675_v6, 16 }
 0x206   : > { %v3987_v49 = vpop.f32.mrf.mxu2  ;;  %v5346_v32 = vrot.slane %v5345_v7, 4  ;;  %v5514_v23 = vunpack.c.l.b16 %v5341_v53  ;;  %v9685_v7 = vld [vmem:[#allocation2 + $0x98] sm:$0x1]  ;;  %v5355_v20 = vrot.slane %v5353_v19, 4  ;;  %v5701_v53 = vrot.slane %v9647_v30, 5 }
 0x207   : > { %v3988_v63 = vadd.f32 %v3987_v49, %v10102_v25  ;;  %v4886_v25 = vsel %vm8083_vm14, %v6932_v48, %v4885_v45  ;;  %v5364_v54 = vrot.slane %v5362_v29, 5  ;;  %v5368_v47 = vrot.slane %v5366_v57, 4  ;;  %v10103_v57 = vld [vmem:[#allocation4_spill] sm:$0xff] }
 0x208   : > { %v9664_v41 = vpop.f32.mrf.mxu0  ;;  %v5351_v1 = vsel %vm7877_vm11, %v5346_v32, %v5350_v15  ;;  %v5358_v15 = vrot.slane %v5356_v61, 5  ;;  %v5700_v45 = vrot.slane %v5698_v10, 4 }
 0x209   : > { %v9667_v52 = vadd.f32 %v9620_v50, %v3988_v63  ;;  %v4217_v4 = vpop.f32.mrf.mxu3  ;;  %v7610_v50 = vld [vmem:[#allocation2 + $0x8c] sm:$0x1]  ;;  %v5515_v44 = vunpack.c.l.b16 %v5351_v1  ;;  %v4945_v1 = vunpack.c.l.b16 %v4886_v25 }
 0x20a   : > { %v9669_v43 = vpop.f32.mrf.mxu1  ;;  %v4888_v55 = vrot.slane %v7610_v50, 5  ;;  %v5359_v50 = vor.u32 %v5358_v15, %v5355_v20 }
 0x20b   : > { %5034 = vmatmul.bf16.gmra.mxu2 %v4958_v21  ;;  %v5658_v21 = vld [vmem:[#allocation2 + $0x84] sm:$0xe]  ;;  %v5529_v42 = vpack.c.b16 %v5515_v44, %v5514_v23 }
 0x20c   : > { %v4889_v63 = vsel %vm8083_vm14, %v4887_v22, %v4888_v55  ;;  %v7115_v32 = vrot.slane %v5658_v21, 9  ;;  %v5369_v55 = vor.u32 %v5368_v47, %v5364_v54  ;;  %v5360_v21 = vrot.slane %v5359_v50, 4  ;;  %v7353_v47 = vld [vmem:[#allocation2 + $0x9c] sm:$0xff] }
 0x20d   : > { %v4946_v22 = vunpack.c.l.b16 %v4889_v63  ;;  %v7611_v63 = vld [vmem:[#allocation2 + $0x94] sm:$0xf]  ;;  %v5289_v50 = vld [vmem:[#allocation2 + $0x9c] sm:$0xf] }
 0x20e   : > { %v3990_v49 = vpop.f32.mrf.mxu2  ;;  %5233 = vmatmul.bf16.gmra.mxu3 %v7352_v0  ;;  %v5699_v19 = vsel %vm8083_vm14, %v7115_v32, %v5698_v10  ;;  %v5370_v25 = vrot.slane %v5369_v55, 4  ;;  %v9710_v55 = vld [vmem:[#allocation2 + $0xa0] sm:$0xf] }
 0x20f   : > { %v3991_v33 = vadd.f32 %v3990_v49, %v9301_v26  ;;  %v5372_v26 = vshll.u32 %v9685_v7, 16  ;;  %v4959_v30 = vpack.c.b16 %v4946_v22, %v4945_v1  ;;  %v5763_v23 = vunpack.c.l.b16 %v5699_v19 }
 0x210   : > { %v9687_v18 = vpop.f32.mrf.mxu0  ;;  %v5380_v19 = vshll.u32 %v5289_v50, 16 }
 0x211   : > { %v9689_v59 = vadd.f32 %v4215_v36, %v3991_v33  ;;  %v4220_v48 = vpop.f32.mrf.mxu3  ;;  %5849 = vmatmul.bf16.vlgmr.msra.gmra.mxu1 %v5777_v62  ;;  %v5702_v36 = vsel %vm8083_vm14, %v5700_v45, %v5701_v53  ;;  %v5374_v29 = vrot.slane %v5372_v26, 5  ;;  %v4840_v62 = vld [vmem:[#allocation2 + $0x90] sm:$0xe]  ;;  %v4892_v33 = vrot.slane %v7611_v63, 5  ;;  %v7612_v26 = vld [vmem:[#allocation2 + $0x98] sm:$0x1] }
 0x212   : > { %v9693_v0 = vpop.f32.mrf.mxu1  ;;  %v5764_v44 = vunpack.c.l.b16 %v5702_v36  ;;  %v6933_v32 = vrot.slane %v4840_v62, 9  ;;  %v5365_v45 = vsel %vm7877_vm11, %v5360_v21, %v5364_v54  ;;  %v5386_v36 = vshll.u32 %v9710_v55, 16  ;;  %v5659_v21 = vld [vmem:[#allocation2 + $0x90] sm:$0xe] }
 0x213   : > { %5605 = vmatmul.bf16.gmra.mxu0 %v5529_v42  ;;  %v5375_v1 = vsel %vm7877_vm11, %v5370_v25, %v5374_v29  ;;  %v4894_v22 = vrot.slane %v4892_v33, 4  ;;  %v4895_v42 = vrot.slane %v7612_v26, 5  ;;  %v5382_v62 = vrot.slane %v5380_v19, 5 }
 0x214   : > { %v4893_v29 = vsel %vm8083_vm14, %v6933_v32, %v4892_v33  ;;  %v5517_v63 = vunpack.c.l.b16 %v5375_v1  ;;  %v5708_v33 = vrot.slane %v9685_v7, 5  ;;  %v7613_v7 = vld [vmem:[#allocation2 + $0xa0] sm:$0xf] }
 0x215   : > { %v4896_v60 = vsel %vm8083_vm14, %v4894_v22, %v4895_v42  ;;  %v4947_v1 = vunpack.c.l.b16 %v4893_v29 }
 0x216   : > { %v3992_v61 = vpop.f32.mrf.mxu2  ;;  %v4948_v19 = vunpack.c.l.b16 %v4896_v60  ;;  %v4841_v60 = vld [vmem:[#allocation2 + $0x9c] sm:$0xe] }
 0x217   : > { %v3993_v49 = vadd.f32 %v3992_v61, %v10103_v57  ;;  %v5390_v61 = vshrl.u32 %v9710_v55, 16  ;;  %v5778_v57 = vpack.c.b16 %v5764_v44, %v5763_v23  ;;  %v9720_v23 = vld [vmem:[#allocation2 + $0xa4] sm:$0x1] }
 0x218   : > { %v9700_v20 = vpop.f32.mrf.mxu0  ;;  %v5396_v22 = vshll.u32 %v9720_v23, 16  ;;  %v4960_v29 = vpack.c.b16 %v4948_v19, %v4947_v1  ;;  %v7354_v1 = vld [vmem:[#allocation2 + $0xa8] sm:$0xff]  ;;  %v5715_v12 = vrot.slane %v9720_v23, 5 }
 0x219   : > { %v9702_v15 = vadd.f32 %v4217_v4, %v3993_v49  ;;  %v4222_v10 = vpop.f32.mrf.mxu3  ;;  %v5377_v4 = vshrl.u32 %v5289_v50, 16  ;;  %v5516_v49 = vunpack.c.l.b16 %v5365_v45  ;;  %v5388_v50 = vrot.slane %v5386_v36, 5  ;;  %v5292_v19 = vld [vmem:[#allocation2 + $0xa8] sm:$0xf] }
 0x21a   : > { %v9704_v53 = vpop.f32.mrf.mxu1  ;;  %v5392_v37 = vrot.slane %v5390_v61, 4  ;;  %v7116_v45 = vrot.slane %v5659_v21, 9  ;;  %v4899_v21 = vrot.slane %v7613_v7, 5 }
 0x21b   : > { %5039 = vmatmul.bf16.gmra.mxu2 %v4959_v30  ;;  %v5705_v30 = vrot.slane %v9675_v6, 5  ;;  %v5379_v25 = vrot.slane %v5377_v4, 4 }
 0x21c   : > { %v5393_v36 = vor.u32 %v5392_v37, %v5388_v50 }
 0x21d   : > { %v5707_v14 = vrot.slane %v5705_v30, 4  ;;  %v5383_v4 = vor.u32 %v5382_v62, %v5379_v25  ;;  %v5706_v42 = vsel %vm8083_vm14, %v7116_v45, %v5705_v30  ;;  %v6934_v45 = vrot.slane %v4841_v60, 9 }
 0x21e   : > { %v3995_v54 = vpop.f32.mrf.mxu2  ;;  %5238 = vmatmul.bf16.gmra.mxu3 %v7353_v47  ;;  %v5530_v47 = vpack.c.b16 %v5517_v63, %v5516_v49  ;;  %v5394_v25 = vrot.slane %v5393_v36, 4  ;;  %v5398_v49 = vrot.slane %v5396_v22, 5  ;;  %v5765_v37 = vunpack.c.l.b16 %v5706_v42  ;;  %v9746_v36 = vld [vmem:[#allocation2 + $0xac] sm:$0xf] }
 0x21f   : > { %v3996_v26 = vadd.f32 %v3995_v54, %v9357_v40  ;;  %v5384_v54 = vrot.slane %v5383_v4, 4  ;;  %v4902_v4 = vrot.slane %v9451_v34, 5  ;;  %v5404_v22 = vshll.u32 %v5292_v19, 16 }
 0x220   : > { %v9722_v6 = vpop.f32.mrf.mxu0  ;;  %v5410_v42 = vshll.u32 %v9746_v36, 16  ;;  %v5712_v34 = vrot.slane %v9710_v55, 5 }
 0x221   : > { %v9724_v44 = vadd.f32 %v4220_v48, %v3996_v26  ;;  %v4225_v32 = vpop.f32.mrf.mxu3  ;;  %5854 = vmatmul.bf16.gmra.mxu1 %v5778_v57  ;;  %v5709_v48 = vsel %vm8083_vm14, %v5707_v14, %v5708_v33  ;;  %v5389_v14 = vsel %vm7877_vm11, %v5384_v54, %v5388_v50  ;;  %v4901_v33 = vrot.slane %v4899_v21, 4 }
 0x222   : > { %v9727_v40 = vpop.f32.mrf.mxu1  ;;  %v5766_v62 = vunpack.c.l.b16 %v5709_v48  ;;  %v5414_v50 = vshrl.u32 %v9746_v36, 16  ;;  %v5406_v11 = vrot.slane %v5404_v22, 5 }
 0x223   : > { %5610 = vmatmul.bf16.gmra.mxu0 %v5530_v47 }
 0x224   : > { %v5779_v48 = vpack.c.b16 %v5766_v62, %v5765_v37  ;;  %v5412_v37 = vrot.slane %v5410_v42, 5  ;;  %v5416_v62 = vrot.slane %v5414_v50, 4 }
 0x226   : > { %v3997_v61 = vpop.f32.mrf.mxu2  ;;  %v5417_v22 = vor.u32 %v5416_v62, %v5412_v37 }
 0x227   : > { %v3998_v57 = vadd.f32 %v3997_v61, %v9384_v39  ;;  %v5399_v39 = vsel %vm7877_vm11, %v5394_v25, %v5398_v49  ;;  %v5518_v61 = vunpack.c.l.b16 %v5389_v14  ;;  %v4903_v25 = vsel %vm8083_vm14, %v4901_v33, %v4902_v4 }
 0x228   : > { %v9735_v63 = vpop.f32.mrf.mxu0  ;;  %v5519_v54 = vunpack.c.l.b16 %v5399_v39  ;;  %v4950_v33 = vunpack.c.l.b16 %v4903_v25  ;;  %v5418_v25 = vrot.slane %v5417_v22, 4 }
 0x229   : > { %v9737_v26 = vadd.f32 %v4222_v10, %v3998_v57  ;;  %v4227_v30 = vpop.f32.mrf.mxu3  ;;  %v5401_v10 = vshrl.u32 %v5292_v19, 16  ;;  %v5660_v57 = vld [vmem:[#allocation2 + $0x9c] sm:$0xe]  ;;  %v9756_v19 = vld [vmem:[#allocation2 + $0xb0] sm:$0x1] }
 0x22a   : > { %v9742_v47 = vpop.f32.mrf.mxu1  ;;  %v7117_v39 = vrot.slane %v5660_v57, 9  ;;  %v5420_v4 = vshll.u32 %v9756_v19, 16  ;;  %v4444_v57 = vadd.f32 %v9649_v46, %v9652_v38  ;;  %v4909_v46 = vrot.slane %v9487_v5, 5 }
 0x22b   : > { %5044 = vmatmul.bf16.gmra.mxu2 %v4960_v29  ;;  %v4900_v29 = vsel %vm8083_vm14, %v6934_v45, %v4899_v21  ;;  %v5403_v49 = vrot.slane %v5401_v10, 4  ;;  %v5714_v21 = vrot.slane %v5712_v34, 4 }
 0x22c   : > { %v4949_v13 = vunpack.c.l.b16 %v4900_v29  ;;  %v5713_v42 = vsel %vm8083_vm14, %v7117_v39, %v5712_v34  ;;  %v7355_v39 = vld [vmem:[#allocation2 + $0xb4] sm:$0xff] }
 0x22d   : > { %v5407_v10 = vor.u32 %v5406_v11, %v5403_v49  ;;  %v9774_v49 = vadd.f32 %v9669_v43, %v4444_v57 }
 0x22e   : > { %v4000_v7 = vpop.f32.mrf.mxu2  ;;  %5243 = vmatmul.bf16.gmra.mxu3 %v7354_v1  ;;  %v5531_v1 = vpack.c.b16 %v5519_v54, %v5518_v61  ;;  %v4961_v23 = vpack.c.b16 %v4950_v33, %v4949_v13  ;;  %v7614_v61 = vld [vmem:[#allocation2 + $0xac] sm:$0xf]  ;;  %v4842_v54 = vld [vmem:[#allocation2 + $0xa8] sm:$0xe]  ;;  %v5767_v13 = vunpack.c.l.b16 %v5713_v42  ;;  %v5719_v42 = vrot.slane %v9746_v36, 5 }
 0x22f   : > { %v4001_v60 = vadd.f32 %v4000_v7, %v9413_v16  ;;  %v5422_v7 = vrot.slane %v5420_v4, 5  ;;  %v5408_v29 = vrot.slane %v5407_v10, 4  ;;  %v4906_v11 = vrot.slane %v7614_v61, 5  ;;  %10104 = vst [vmem:[#allocation18_spill] sm:$0xff] %v9774_v49  ;;  %v5295_v4 = vld [vmem:[#allocation2 + $0xb4] sm:$0xf] }
 0x230   : > { %v9758_v14 = vpop.f32.mrf.mxu0  ;;  %v5428_v10 = vshll.u32 %v5295_v4, 16  ;;  %v9797_v49 = vld [vmem:[#allocation2 + $0xbc] sm:$0x1]  ;;  %v4445_v36 = vadd.f32 %v9664_v41, %v9667_v52 }
 0x231   : > { %v9760_v55 = vadd.f32 %v4225_v32, %v4001_v60  ;;  %v4230_v45 = vpop.f32.mrf.mxu3  ;;  %5859 = vmatmul.bf16.gmra.mxu1 %v5779_v48  ;;  %v5716_v32 = vsel %vm8083_vm14, %v5714_v21, %v5715_v12  ;;  %v5423_v43 = vsel %vm7877_vm11, %v5418_v25, %v5422_v7  ;;  %v6935_v21 = vrot.slane %v4842_v54, 9 }
 0x232   : > { %v9764_v16 = vpop.f32.mrf.mxu1  ;;  %v5768_v60 = vunpack.c.l.b16 %v5716_v32  ;;  %v4908_v33 = vrot.slane %v4906_v11, 4  ;;  %v5444_v52 = vshll.u32 %v9797_v49, 16 }
 0x233   : > { %5615 = vmatmul.bf16.gmra.mxu0 %v5531_v1  ;;  %v5425_v1 = vshrl.u32 %v5295_v4, 16  ;;  %v4907_v54 = vsel %vm8083_vm14, %v6935_v21, %v4906_v11  ;;  %v9807_v11 = vadd.f32 %v9693_v0, %v4445_v36  ;;  %v4446_v0 = vadd.f32 %v9687_v18, %v9689_v59 }
 0x234   : > { %v5780_v7 = vpack.c.b16 %v5768_v60, %v5767_v13  ;;  %v4910_v4 = vsel %vm8083_vm14, %v4908_v33, %v4909_v46  ;;  %v4951_v21 = vunpack.c.l.b16 %v4907_v54 }
 0x235   : > { %v5427_v57 = vrot.slane %v5425_v1, 4  ;;  %v4952_v33 = vunpack.c.l.b16 %v4910_v4 }
 0x236   : > { %v4002_v50 = vpop.f32.mrf.mxu2 }
 0x237   : > { %v4003_v48 = vadd.f32 %v4002_v50, %v9449_v27  ;;  %v5413_v27 = vsel %vm7877_vm11, %v5408_v29, %v5412_v37  ;;  %v5521_v50 = vunpack.c.l.b16 %v5423_v43  ;;  %v5661_v37 = vld [vmem:[#allocation2 + $0xa8] sm:$0xe] }
 0x238   : > { %v9776_v34 = vpop.f32.mrf.mxu0  ;;  %v5520_v32 = vunpack.c.l.b16 %v5413_v27  ;;  %v7118_v13 = vrot.slane %v5661_v37, 9 }
 0x239   : > { %v9778_v12 = vadd.f32 %v4227_v30, %v4003_v48  ;;  %v4232_v62 = vpop.f32.mrf.mxu3  ;;  %v9787_v30 = vld [vmem:[#allocation2 + $0xb8] sm:$0xf]  ;;  %v5430_v48 = vrot.slane %v5428_v10, 5 }
 0x23a   : > { %v9781_v38 = vpop.f32.mrf.mxu1  ;;  %v5434_v22 = vshll.u32 %v9787_v30, 16  ;;  %v5438_v5 = vshrl.u32 %v9787_v30, 16  ;;  %v5532_v60 = vpack.c.b16 %v5521_v50, %v5520_v32  ;;  %v4913_v32 = vrot.slane %v9499_v58, 5 }
 0x23b   : > { %5049 = vmatmul.bf16.gmra.mxu2 %v4961_v23  ;;  %v5431_v10 = vor.u32 %v5430_v48, %v5427_v57  ;;  %v5446_v57 = vrot.slane %v5444_v52, 5  ;;  %v4843_v48 = vld [vmem:[#allocation2 + $0xb4] sm:$0xe] }
 0x23c   : > { %v5436_v25 = vrot.slane %v5434_v22, 5  ;;  %v5440_v61 = vrot.slane %v5438_v5, 4  ;;  %v6936_v59 = vrot.slane %v4843_v48, 9  ;;  %v4915_v4 = vrot.slane %v4913_v32, 4 }
 0x23d   : > { %v5432_v5 = vrot.slane %v5431_v10, 4 }
 0x23e   : > { %v4005_v23 = vpop.f32.mrf.mxu2  ;;  %5248 = vmatmul.bf16.gmra.mxu3 %v7355_v39  ;;  %v5721_v39 = vrot.slane %v5719_v42, 4  ;;  %v5441_v41 = vor.u32 %v5440_v61, %v5436_v25  ;;  %v4914_v52 = vsel %vm8083_vm14, %v6936_v59, %v4913_v32 }
 0x23f   : > { %v4006_v29 = vadd.f32 %v4005_v23, %v9462_v56  ;;  %v5722_v56 = vrot.slane %v9756_v19, 5  ;;  %v4962_v23 = vpack.c.b16 %v4952_v33, %v4951_v21  ;;  %v5437_v58 = vsel %vm7877_vm11, %v5432_v5, %v5436_v25 }
 0x240   : > { %v9801_v27 = vpop.f32.mrf.mxu0  ;;  %v5442_v37 = vrot.slane %v5441_v41, 4  ;;  %v5522_v33 = vunpack.c.l.b16 %v5437_v58  ;;  %v4953_v58 = vunpack.c.l.b16 %v4914_v52 }
 0x241   : > { %v9803_v43 = vadd.f32 %v4230_v45, %v4006_v29  ;;  %v4235_v1 = vpop.f32.mrf.mxu3  ;;  %5864 = vmatmul.bf16.gmra.mxu1 %v5780_v7  ;;  %v5720_v45 = vsel %vm8083_vm14, %v7118_v13, %v5719_v42  ;;  %v5723_v19 = vsel %vm8083_vm14, %v5721_v39, %v5722_v56  ;;  %v9821_v7 = vadd.f32 %v9704_v53, %v4446_v0  ;;  %v7356_v13 = vld [vmem:[#allocation2 + $0xc0] sm:$0xff] }
 0x242   : > { %v9809_v46 = vpop.f32.mrf.mxu1  ;;  %v5769_v42 = vunpack.c.l.b16 %v5720_v45  ;;  %v5770_v29 = vunpack.c.l.b16 %v5723_v19  ;;  %v5447_v53 = vsel %vm7877_vm11, %v5442_v37, %v5446_v57  ;;  %v5298_v56 = vld [vmem:[#allocation2 + $0xc0] sm:$0xf]  ;;  %v9844_v37 = vld [vmem:[#allocation2 + $0xc8] sm:$0x1]  ;;  %v4447_v57 = vadd.f32 %v9700_v20, %v9702_v15  ;;  %v466_v20 = vld [vmem:[#allocation2 + $0xcc] sm:$0x1] }
 0x243   : > { %5620 = vmatmul.bf16.gmra.mxu0 %v5532_v60  ;;  %v9834_v60 = vld [vmem:[#allocation2 + $0xc4] sm:$0xf]  ;;  %v5452_v39 = vshll.u32 %v5298_v56, 16  ;;  %v5523_v41 = vunpack.c.l.b16 %v5447_v53 }
 0x244   : > { %v5458_v10 = vshll.u32 %v9834_v60, 16  ;;  %v5462_v25 = vshrl.u32 %v9834_v60, 16  ;;  %v5781_v21 = vpack.c.b16 %v5770_v29, %v5769_v42  ;;  %v5662_v42 = vld [vmem:[#allocation2 + $0xb4] sm:$0xe] }
 0x245   : > { %v5454_v5 = vrot.slane %v5452_v39, 5  ;;  %v7119_v15 = vrot.slane %v5662_v42, 9  ;;  %v4923_v42 = vrot.slane %v9615_v9, 5  ;;  %v522_v9 = vld [vmem:[#allocation2 + $0xd4] sm:$0x1] }
 0x246   : > { %v4007_v22 = vpop.f32.mrf.mxu2  ;;  %v5460_v0 = vrot.slane %v5458_v10, 5  ;;  %v4448_v10 = vadd.f32 %v9722_v6, %v9724_v44  ;;  %v4844_v44 = vld [vmem:[#allocation2 + $0xc0] sm:$0xe] }
 0x247   : > { %v4008_v50 = vadd.f32 %v4007_v22, %v9495_v51  ;;  %v4916_v51 = vrot.slane %v9531_v2, 5 }
 0x248   : > { %v9823_v61 = vpop.f32.mrf.mxu0  ;;  %v9870_v52 = vadd.f32 %v9742_v47, %v4448_v10  ;;  %v6937_v47 = vrot.slane %v4844_v44, 9 }
 0x249   : > { %v9825_v54 = vadd.f32 %v4232_v62, %v4008_v50  ;;  %v4237_v18 = vpop.f32.mrf.mxu3  ;;  %v5449_v62 = vshrl.u32 %v5298_v56, 16  ;;  %v4917_v45 = vsel %vm8083_vm14, %v4915_v4, %v4916_v51  ;;  %v5464_v50 = vrot.slane %v5462_v25, 4 }
 0x24a   : > { %v9830_v36 = vpop.f32.mrf.mxu1  ;;  %v4954_v59 = vunpack.c.l.b16 %v4917_v45 }
 0x24b   : > { %5054 = vmatmul.bf16.gmra.mxu2 %v4962_v23  ;;  %v5451_v19 = vrot.slane %v5449_v62, 4  ;;  %v5726_v23 = vrot.slane %v9787_v30, 5  ;;  %v5533_v30 = vpack.c.b16 %v5523_v41, %v5522_v33  ;;  %v5465_v53 = vor.u32 %v5464_v50, %v5460_v0 }
 0x24c   : > { %v467_v62 = vsel %vm7698_vm3, 0, %v466_v20  ;;  %v4921_v20 = vsel %vm8083_vm14, %v6937_v47, %v4920_v8 }
 0x24d   : > { %v5455_v51 = vor.u32 %v5454_v5, %v5451_v19  ;;  %v5728_v56 = vrot.slane %v5726_v23, 4  ;;  %468 = vst [vmem:[#allocation2 + $0xcc] sm:$0x1] %v467_v62  ;;  %v5466_v33 = vrot.slane %v5465_v53, 4 }
 0x24e   : > { %v4010_v2 = vpop.f32.mrf.mxu2  ;;  %5253 = vmatmul.bf16.gmra.mxu3 %v7356_v13  ;;  %v5468_v13 = vshll.u32 %v9844_v37, 16 }
 0x24f   : > { %v4011_v22 = vadd.f32 %v4010_v2, %v9523_v28  ;;  %v9853_v28 = vadd.f32 %v9727_v40, %v4447_v57  ;;  %v4963_v40 = vpack.c.b16 %v4954_v59, %v4953_v58  ;;  %v5727_v2 = vsel %vm8083_vm14, %v7119_v15, %v5726_v23 }
 0x250   : > { %v9848_v48 = vpop.f32.mrf.mxu0  ;;  %v5470_v41 = vrot.slane %v5468_v13, 5  ;;  %v4922_v57 = vrot.slane %v4920_v8, 4  ;;  %v5663_v13 = vld [vmem:[#allocation2 + $0xc0] sm:$0xe] }
 0x251   : > { %v9850_v32 = vadd.f32 %v4235_v1, %v4011_v22  ;;  %v4240_v29 = vpop.f32.mrf.mxu3  ;;  %5869 = vmatmul.bf16.gmra.mxu1 %v5781_v21  ;;  %v5729_v1 = vrot.slane %v9797_v49, 5  ;;  %v5456_v21 = vrot.slane %v5455_v51, 4  ;;  %v5771_v22 = vunpack.c.l.b16 %v5727_v2 }
 0x252   : > { %v9855_v4 = vpop.f32.mrf.mxu1  ;;  %v5471_v17 = vsel %vm7877_vm11, %v5466_v33, %v5470_v41  ;;  %v4924_v15 = vsel %vm8083_vm14, %v4922_v57, %v4923_v42  ;;  %v4955_v2 = vunpack.c.l.b16 %v4921_v20  ;;  %v4450_v57 = vadd.f32 %v9758_v14, %v9760_v55  ;;  %v10106_v42 = vld [vmem:[#allocation8_spill] sm:$0xff] }
 0x253   : > { %5625 = vmatmul.bf16.gmra.mxu0 %v5533_v30  ;;  %v5730_v49 = vsel %vm8083_vm14, %v5728_v56, %v5729_v1  ;;  %v5461_v50 = vsel %vm7877_vm11, %v5456_v21, %v5460_v0  ;;  %v5525_v58 = vunpack.c.l.b16 %v5471_v17  ;;  %v4449_v30 = vadd.f32 %v9735_v63, %v9737_v26  ;;  %v9891_v1 = vld [vmem:[#allocation2 + $0xd0] sm:$0xf] }
 0x254   : > { %v5772_v5 = vunpack.c.l.b16 %v5730_v49  ;;  %v7357_v23 = vld [vmem:[#allocation2 + $0xcc] sm:$0xff]  ;;  %v5733_v0 = vrot.slane %v9834_v60, 5  ;;  %v523_v60 = vsel %vm7709_vm4, 0, %v522_v9  ;;  %v5482_v33 = vshll.u32 %v9891_v1, 16 }
 0x255   : > { %v5301_v56 = vld [vmem:[#allocation2 + $0xcc] sm:$0xf]  ;;  %v9894_v62 = vadd.f32 %v9764_v16, %v4449_v30  ;;  %524 = vst [vmem:[#allocation2 + $0xd4] sm:$0x1] %v523_v60  ;;  %v5486_v41 = vshrl.u32 %v9891_v1, 16  ;;  %v4956_v49 = vunpack.c.l.b16 %v4924_v15 }
 0x256   : > { %v4012_v39 = vpop.f32.mrf.mxu2  ;;  %v5782_v51 = vpack.c.b16 %v5772_v5, %v5771_v22  ;;  %v5735_v44 = vrot.slane %v5733_v0, 4  ;;  %v5736_v22 = vrot.slane %v9844_v37, 5  ;;  %v5484_v5 = vrot.slane %v5482_v33, 5  ;;  %v10107_v33 = vld [vmem:[#allocation7_spill] sm:$0xff] }
 0x257   : > { %v4013_v25 = vadd.f32 %v4012_v39, %v9545_v31  ;;  %v5473_v39 = vshrl.u32 %v5301_v56, 16  ;;  %v9915_v37 = vadd.f32 %v9781_v38, %v4450_v57 }
 0x258   : > { %v9872_v45 = vpop.f32.mrf.mxu0  ;;  %v5737_v30 = vsel %vm8083_vm14, %v5735_v44, %v5736_v22 }
 0x259   : > { %v9874_v6 = vadd.f32 %v4237_v18, %v4013_v25  ;;  %v4242_v31 = vpop.f32.mrf.mxu3  ;;  %v5524_v18 = vunpack.c.l.b16 %v5461_v50  ;;  %v7120_v25 = vrot.slane %v5663_v13, 9  ;;  %v5488_v50 = vrot.slane %v5486_v41, 4 }
 0x25a   : > { %v9876_v19 = vpop.f32.mrf.mxu1 }
 0x25b   : > { %5059 = vmatmul.bf16.gmra.mxu2 %v4963_v40  ;;  %v5476_v40 = vshll.u32 %v5301_v56, 16  ;;  %v5534_v10 = vpack.c.b16 %v5525_v58, %v5524_v18  ;;  %v5489_v47 = vor.u32 %v5488_v50, %v5484_v5  ;;  %v4964_v58 = vpack.c.b16 %v4956_v49, %v4955_v2 }
 0x25c   : > { %v5303_v13 = vld [vmem:[#allocation2 + $0xd4] sm:$0x1]  ;;  %v5774_v56 = vunpack.c.l.b16 %v5737_v30  ;;  %v5740_v2 = vrot.slane %v9891_v1, 5 }
 0x25d   : > { %v5478_v8 = vrot.slane %v5476_v40, 5  ;;  %v5490_v14 = vrot.slane %v5489_v47, 4  ;;  %v5492_v55 = vshll.u32 %v5303_v13, 16  ;;  %v10108_v1 = vld [vmem:[#allocation10_spill] sm:$0xff] }
 0x25e   : > { %v4015_v59 = vpop.f32.mrf.mxu2  ;;  %5258 = vmatmul.bf16.gmra.mxu3 %v7357_v23 }
 0x25f   : > { %v4016_v53 = vadd.f32 %v4015_v59, %v9570_v3  ;;  %v5734_v59 = vsel %vm8083_vm14, %v7120_v25, %v5733_v0  ;;  %v5494_v60 = vrot.slane %v5492_v55, 5 }
 0x260   : > { %v9896_v63 = vpop.f32.mrf.mxu0  ;;  %v5773_v9 = vunpack.c.l.b16 %v5734_v59 }
 0x261   : > { %v9898_v3 = vadd.f32 %v4240_v29, %v4016_v53  ;;  %v4245_v21 = vpop.f32.mrf.mxu3  ;;  %5874 = vmatmul.bf16.gmra.mxu1 %v5782_v51  ;;  %v5475_v29 = vrot.slane %v5473_v39, 4  ;;  %v5495_v38 = vsel %vm7877_vm11, %v5490_v14, %v5494_v60  ;;  %v4451_v39 = vadd.f32 %v9776_v34, %v9778_v12  ;;  %v10109_v60 = vld [vmem:[#allocation18_spill] sm:$0xff] }
 0x262   : > { %v9904_v16 = vpop.f32.mrf.mxu1  ;;  %v5783_v40 = vpack.c.b16 %v5774_v56, %v5773_v9  ;;  %v5527_v25 = vunpack.c.l.b16 %v5495_v38  ;;  %v5742_v34 = vrot.slane %v5740_v2, 4  ;;  %v5743_v12 = vrot.slane %v5303_v13, 5 }
 0x263   : > { %v5479_v17 = vor.u32 %v5478_v8, %v5475_v29  ;;  %5630 = vmatmul.bf16.gmra.mxu0 %v5534_v10  ;;  %v9932_v49 = vadd.f32 %v9809_v46, %v4451_v39  ;;  %v5664_v8 = vld [vmem:[#allocation2 + $0xcc] sm:$0xe] }
 0x264   : > { %v5744_v47 = vsel %vm8083_vm14, %v5742_v34, %v5743_v12 }
 0x265   : > { %v5480_v51 = vrot.slane %v5479_v17, 4  ;;  %v5776_v59 = vunpack.c.l.b16 %v5744_v47 }
 0x266   : > { %v4017_v23 = vpop.f32.mrf.mxu2 }
 0x267   : > { %v4018_v18 = vadd.f32 %v4017_v23, %v10106_v42  ;;  %v5485_v0 = vsel %vm7877_vm11, %v5480_v51, %v5484_v5  ;;  %v7121_v5 = vrot.slane %v5664_v8, 9  ;;  %v4452_v23 = vadd.f32 %v9801_v27, %v9803_v43 }
 0x268   : > { %v9919_v20 = vpop.f32.mrf.mxu0  ;;  %v5526_v10 = vunpack.c.l.b16 %v5485_v0  ;;  %v4453_v43 = vadd.f32 %v9823_v61, %v9825_v54 }
 0x269   : > { %v9917_v53 = vadd.f32 %v4242_v31, %v4018_v18  ;;  %v4247_v15 = vpop.f32.mrf.mxu3  ;;  %v9946_v57 = vadd.f32 %v9830_v36, %v4452_v23 }
 0x26a   : > { %v9921_v26 = vpop.f32.mrf.mxu1  ;;  %v5535_v24 = vpack.c.b16 %v5527_v25, %v5526_v10  ;;  %v9955_v14 = vadd.f32 %v9855_v4, %v4453_v43 }
 0x26b   : > { %5064 = vmatmul.bf16.gmra.mxu2 %v4964_v58 }
 0x26e   : > { %v4020_v31 = vpop.f32.mrf.mxu2 }
 0x26f   : > { %v4021_v41 = vadd.f32 %v4020_v31, %v10107_v33  ;;  %v4455_v31 = vadd.f32 %v9872_v45, %v9874_v6 }
 0x270   : > { %v9936_v22 = vpop.f32.mrf.mxu0 }
 0x271   : > { %v9934_v29 = vadd.f32 %v4245_v21, %v4021_v41  ;;  %v5224_v44 = vpop.f32.mrf.mxu3  ;;  %5879 = vmatmul.bf16.gmra.mxu1 %v5783_v40  ;;  %v5741_v21 = vsel %vm8083_vm14, %v7121_v5, %v5740_v2  ;;  %v9969_v10 = vadd.f32 %v9904_v16, %v4455_v31 }
 0x272   : > { %v4813_v50 = vpop.f32.mrf.mxu1  ;;  %v5775_v58 = vunpack.c.l.b16 %v5741_v21 }
 0x273   : > { %5635 = vmatmul.bf16.gmra.mxu0 %v5535_v24 }
 0x274   : > { %v5784_v51 = vpack.c.b16 %v5776_v59, %v5775_v58 }
 0x276   : > { %v4022_v17 = vpop.f32.mrf.mxu2 }
 0x277   : > { %v4023_v46 = vadd.f32 %v4022_v17, %v10108_v1 }
 0x278   : > { %v9950_v30 = vpop.f32.mrf.mxu0 }
 0x279   : > { %v9948_v42 = vadd.f32 %v4247_v15, %v4023_v46  ;;  %v5226_v18 = vpop.f32.mrf.mxu3  ;;  %v4454_v15 = vadd.f32 %v9848_v48, %v9850_v32 }
 0x27b   : > { %v9962_v56 = vadd.f32 %v9876_v19, %v4454_v15 }
 0x27e   : > { %v5030_v27 = vpop.f32.mrf.mxu2  ;;  %v4816_v13 = vpop.f32.mrf.mxu1 }
 0x27f   : > { %v5070_v61 = vadd.f32 %v5030_v27, %v10109_v60 }
 0x280   : > { %v5601_v36 = vpop.f32.mrf.mxu0 }
 0x281   : > { %v5229_v35 = vpop.f32.mrf.mxu3  ;;  %5884 = vmatmul.bf16.gmra.mxu1 %v5784_v51  ;;  %v5264_v39 = vadd.f32 %v5224_v44, %v5070_v61 }
 0x283   : > { %v5641_v25 = vadd.f32 %v5601_v36, %v5264_v39  ;;  %v4459_v39 = vadd.f32 %v9950_v30, %v9948_v42 }
 0x286   : > { %v5032_v55 = vpop.f32.mrf.mxu2  ;;  %v9959_v9 = vpop.f32.mrf.mxu1 }
 0x287   : > { %v5071_v38 = vadd.f32 %v5032_v55, %v9807_v11  ;;  %v4456_v11 = vadd.f32 %v9896_v63, %v9898_v3  ;;  %v4457_v63 = vadd.f32 %v9919_v20, %v9917_v53 }
 0x288   : > { %v5603_v54 = vpop.f32.mrf.mxu0 }
 0x289   : > { %v5231_v0 = vpop.f32.mrf.mxu3  ;;  %v5265_v48 = vadd.f32 %v5226_v18, %v5071_v38  ;;  %v9975_v45 = vadd.f32 %v9921_v26, %v4456_v11  ;;  %v9981_v26 = vadd.f32 %v4813_v50, %v4457_v63 }
 0x28b   : > { %v5642_v33 = vadd.f32 %v5603_v54, %v5265_v48 }
 0x28e   : > { %v5035_v4 = vpop.f32.mrf.mxu2  ;;  %v5850_v40 = vpop.f32.mrf.mxu1 }
 0x28f   : > { %v5072_v41 = vadd.f32 %v5035_v4, %v9821_v7  ;;  %v5890_v8 = vadd.f32 %v5850_v40, %v5641_v25 }
 0x290   : > { %v5606_v19 = vpop.f32.mrf.mxu0 }
 0x291   : > { %v5234_v32 = vpop.f32.mrf.mxu3  ;;  %v5266_v16 = vadd.f32 %v5229_v35, %v5072_v41  ;;  %v5928_v44 = vmul.f32 %v5890_v8, %v5890_v8 }
 0x293   : > { %v5643_v7 = vadd.f32 %v5606_v19, %v5266_v16 }
 0x296   : > { %v5037_v2 = vpop.f32.mrf.mxu2  ;;  %v5852_v24 = vpop.f32.mrf.mxu1 }
 0x297   : > { %v5891_v6 = vadd.f32 %v5852_v24, %v5642_v33  ;;  %v5073_v46 = vadd.f32 %v5037_v2, %v9853_v28  ;;  %v4458_v28 = vadd.f32 %v9936_v22, %v9934_v29  ;;  %v9993_v22 = vadd.f32 %v9959_v9, %v4459_v39 }
 0x298   : > { %v5608_v17 = vpop.f32.mrf.mxu0 }
 0x299   : > { %v5906_v5 = vadd.f32 %v5891_v6, %v5890_v8  ;;  %v5929_v34 = vmul.f32 %v5891_v6, %v5891_v6  ;;  %v7489_v12 = vpack.c.bf16 %v5891_v6, %v5890_v8  ;;  %v5236_v23 = vpop.f32.mrf.mxu3  ;;  %v5267_v18 = vadd.f32 %v5231_v0, %v5073_v46 }
 0x29a   : > { %v9986_v53 = vadd.f32 %v4816_v13, %v4458_v28 }
 0x29b   : > { %v5944_v1 = vadd.f32 %v5929_v34, %v5928_v44  ;;  %7548 = vst [vmem:[%s9317_s28 + $0x40] sm:$0xff] %v7489_v12   ;;  %v5644_v51 = vadd.f32 %v5608_v17, %v5267_v18 }
 0x29e   : > { %v5040_v21 = vpop.f32.mrf.mxu2  ;;  %v5855_v3 = vpop.f32.mrf.mxu1 }
 0x29f   : > { %v5892_v47 = vadd.f32 %v5855_v3, %v5643_v7  ;;  %v5074_v35 = vadd.f32 %v5040_v21, %v9870_v52 }
 0x2a0   : > { %v5611_v27 = vpop.f32.mrf.mxu0 }
 0x2a1   : > { %v5907_v58 = vadd.f32 %v5906_v5, %v5892_v47  ;;  %v5930_v59 = vmul.f32 %v5892_v47, %v5892_v47  ;;  %v5239_v55 = vpop.f32.mrf.mxu3  ;;  %v5268_v50 = vadd.f32 %v5234_v32, %v5074_v35 }
 0x2a3   : > { %v5945_v43 = vadd.f32 %v5944_v1, %v5930_v59  ;;  %v5645_v4 = vadd.f32 %v5611_v27, %v5268_v50 }
 0x2a6   : > { %v5042_v36 = vpop.f32.mrf.mxu2  ;;  %v5857_v15 = vpop.f32.mrf.mxu1 }
 0x2a7   : > { %v5893_v20 = vadd.f32 %v5857_v15, %v5644_v51  ;;  %v5075_v31 = vadd.f32 %v5042_v36, %v9894_v62 }
 0x2a8   : > { %v5613_v54 = vpop.f32.mrf.mxu0 }
 0x2a9   : > { %v5908_v60 = vadd.f32 %v5907_v58, %v5893_v20  ;;  %v5931_v0 = vmul.f32 %v5893_v20, %v5893_v20  ;;  %v7494_v61 = vpack.c.bf16 %v5893_v20, %v5892_v47  ;;  %v5241_v29 = vpop.f32.mrf.mxu3  ;;  %v5269_v48 = vadd.f32 %v5236_v23, %v5075_v31 }
 0x2ab   : > { %v5946_v38 = vadd.f32 %v5945_v43, %v5931_v0  ;;  %7549 = vst [vmem:[%s9317_s28 + $0x48] sm:$0xff] %v7494_v61   ;;  %v5646_v41 = vadd.f32 %v5613_v54, %v5269_v48 }
 0x2ae   : > { %v5045_v52 = vpop.f32.mrf.mxu2  ;;  %v5860_v40 = vpop.f32.mrf.mxu1 }
 0x2af   : > { %v5894_v13 = vadd.f32 %v5860_v40, %v5645_v4  ;;  %v5076_v2 = vadd.f32 %v5045_v52, %v9915_v37 }
 0x2b0   : > { %v5616_v19 = vpop.f32.mrf.mxu0 }
 0x2b1   : > { %v5909_v32 = vadd.f32 %v5908_v60, %v5894_v13  ;;  %v5932_v25 = vmul.f32 %v5894_v13, %v5894_v13  ;;  %v5270_v24 = vadd.f32 %v5239_v55, %v5076_v2  ;;  %v5244_v42 = vpop.f32.mrf.mxu3 }
 0x2b3   : > { %v5947_v33 = vadd.f32 %v5946_v38, %v5932_v25  ;;  %v5647_v5 = vadd.f32 %v5616_v19, %v5270_v24 }
 0x2b6   : > { %v5047_v62 = vpop.f32.mrf.mxu2  ;;  %v5862_v11 = vpop.f32.mrf.mxu1 }
 0x2b7   : > { %v5895_v8 = vadd.f32 %v5862_v11, %v5646_v41  ;;  %v5077_v34 = vadd.f32 %v5047_v62, %v9932_v49 }
 0x2b8   : > { %v5618_v9 = vpop.f32.mrf.mxu0 }
 0x2b9   : > { %v5910_v30 = vadd.f32 %v5909_v32, %v5895_v8  ;;  %v5933_v6 = vmul.f32 %v5895_v8, %v5895_v8  ;;  %v7499_v16 = vpack.c.bf16 %v5895_v8, %v5894_v13  ;;  %v5271_v1 = vadd.f32 %v5241_v29, %v5077_v34  ;;  %v5246_v21 = vpop.f32.mrf.mxu3 }
 0x2bb   : > { %v5948_v44 = vadd.f32 %v5947_v33, %v5933_v6  ;;  %7550 = vst [vmem:[%s9317_s28 + $0x50] sm:$0xff] %v7499_v16   ;;  %v5648_v3 = vadd.f32 %v5618_v9, %v5271_v1 }
 0x2be   : > { %v5050_v12 = vpop.f32.mrf.mxu2  ;;  %v5865_v17 = vpop.f32.mrf.mxu1 }
 0x2bf   : > { %v5896_v23 = vadd.f32 %v5865_v17, %v5647_v5  ;;  %v5078_v47 = vadd.f32 %v5050_v12, %v9946_v57 }
 0x2c0   : > { %v5621_v46 = vpop.f32.mrf.mxu0 }
 0x2c1   : > { %v5911_v7 = vadd.f32 %v5910_v30, %v5896_v23  ;;  %v5934_v37 = vmul.f32 %v5896_v23, %v5896_v23  ;;  %v5272_v27 = vadd.f32 %v5244_v42, %v5078_v47  ;;  %v5249_v15 = vpop.f32.mrf.mxu3 }
 0x2c3   : > { %v5949_v63 = vadd.f32 %v5948_v44, %v5934_v37  ;;  %v5649_v55 = vadd.f32 %v5621_v46, %v5272_v27 }
 0x2c6   : > { %v5052_v18 = vpop.f32.mrf.mxu2  ;;  %v5867_v58 = vpop.f32.mrf.mxu1 }
 0x2c7   : > { %v5897_v59 = vadd.f32 %v5867_v58, %v5648_v3  ;;  %v5079_v28 = vadd.f32 %v5052_v18, %v9955_v14 }
 0x2c8   : > { %v5623_v35 = vpop.f32.mrf.mxu0 }
 0x2c9   : > { %v5912_v43 = vadd.f32 %v5911_v7, %v5897_v59  ;;  %v5935_v51 = vmul.f32 %v5897_v59, %v5897_v59  ;;  %v7504_v49 = vpack.c.bf16 %v5897_v59, %v5896_v23  ;;  %v5273_v0 = vadd.f32 %v5246_v21, %v5079_v28  ;;  %v5251_v40 = vpop.f32.mrf.mxu3 }
 0x2cb   : > { %v5950_v36 = vadd.f32 %v5949_v63, %v5935_v51  ;;  %7551 = vst [vmem:[%s9317_s28 + $0x58] sm:$0xff] %v7504_v49   ;;  %v5650_v4 = vadd.f32 %v5623_v35, %v5273_v0 }
 0x2ce   : > { %v5055_v20 = vpop.f32.mrf.mxu2  ;;  %v5870_v50 = vpop.f32.mrf.mxu1 }
 0x2cf   : > { %v5898_v60 = vadd.f32 %v5870_v50, %v5649_v55  ;;  %v5080_v31 = vadd.f32 %v5055_v20, %v9962_v56 }
 0x2d0   : > { %v5626_v54 = vpop.f32.mrf.mxu0 }
 0x2d1   : > { %v5913_v61 = vadd.f32 %v5912_v43, %v5898_v60  ;;  %v5936_v57 = vmul.f32 %v5898_v60, %v5898_v60  ;;  %v5274_v13 = vadd.f32 %v5249_v15, %v5080_v31  ;;  %v5254_v24 = vpop.f32.mrf.mxu3 }
 0x2d3   : > { %v5951_v38 = vadd.f32 %v5950_v36, %v5936_v57  ;;  %v5651_v33 = vadd.f32 %v5626_v54, %v5274_v13 }
 0x2d6   : > { %v5057_v52 = vpop.f32.mrf.mxu2  ;;  %v5872_v39 = vpop.f32.mrf.mxu1 }
 0x2d7   : > { %v5899_v29 = vadd.f32 %v5872_v39, %v5650_v4  ;;  %v5081_v41 = vadd.f32 %v5057_v52, %v9969_v10  ;;  %v10110_v4 = vld [vmem:[#allocation5_spill] sm:$0xff] }
 0x2d8   : > { %v5628_v25 = vpop.f32.mrf.mxu0 }
 0x2d9   : > { %v5914_v48 = vadd.f32 %v5913_v61, %v5899_v29  ;;  %v5937_v14 = vmul.f32 %v5899_v29, %v5899_v29  ;;  %v7509_v32 = vpack.c.bf16 %v5899_v29, %v5898_v60  ;;  %v5275_v8 = vadd.f32 %v5251_v40, %v5081_v41  ;;  %v5256_v1 = vpop.f32.mrf.mxu3  ;;  %v10111_v40 = vld [vmem:[#allocation11_spill] sm:$0xff] }
 0x2da   : > { %v3463_v29 = vrot.slane %v10111_v40, 4 }
 0x2db   : > { %v5952_v19 = vadd.f32 %v5951_v38, %v5937_v14  ;;  %7552 = vst [vmem:[%s9317_s28 + $0x60] sm:$0xff] %v7509_v32   ;;  %v5652_v6 = vadd.f32 %v5628_v25, %v5275_v8 }
 0x2dc   : > { %v3464_v25 = vadd.f32 %v3463_v29, %v10111_v40 }
 0x2de   : > { %v5060_v2 = vpop.f32.mrf.mxu2  ;;  %v5875_v62 = vpop.f32.mrf.mxu1 }
 0x2df   : > { %v5900_v11 = vadd.f32 %v5875_v62, %v5651_v33  ;;  %v5082_v9 = vadd.f32 %v5060_v2, %v9975_v45  ;;  %v3465_v62 = vrot.slane %v3464_v25, 2 }
 0x2e0   : > { %v5631_v16 = vpop.f32.mrf.mxu0 }
 0x2e1   : > { %v5915_v56 = vadd.f32 %v5914_v48, %v5900_v11  ;;  %v5938_v42 = vmul.f32 %v5900_v11, %v5900_v11  ;;  %v5276_v12 = vadd.f32 %v5254_v24, %v5082_v9  ;;  %v5259_v51 = vpop.f32.mrf.mxu3 }
 0x2e3   : > { %v5953_v30 = vadd.f32 %v5952_v19, %v5938_v42  ;;  %v5653_v37 = vadd.f32 %v5631_v16, %v5276_v12 }
 0x2e6   : > { %v5062_v44 = vpop.f32.mrf.mxu2  ;;  %v5877_v5 = vpop.f32.mrf.mxu1 }
 0x2e7   : > { %v5901_v34 = vadd.f32 %v5877_v5, %v5652_v6  ;;  %v5083_v46 = vadd.f32 %v5062_v44, %v9981_v26 }
 0x2e8   : > { %v5633_v21 = vpop.f32.mrf.mxu0 }
 0x2e9   : > { %v5916_v17 = vadd.f32 %v5915_v56, %v5901_v34  ;;  %v5939_v23 = vmul.f32 %v5901_v34, %v5901_v34  ;;  %v7514_v10 = vpack.c.bf16 %v5901_v34, %v5900_v11  ;;  %v5277_v18 = vadd.f32 %v5256_v1, %v5083_v46  ;;  %v5261_v57 = vpop.f32.mrf.mxu3 }
 0x2eb   : > { %v5954_v7 = vadd.f32 %v5953_v30, %v5939_v23  ;;  %7553 = vst [vmem:[%s9317_s28 + $0x68] sm:$0xff] %v7514_v10   ;;  %v5654_v27 = vadd.f32 %v5633_v21, %v5277_v18  ;;  %v3466_v30 = vadd.f32 %v3465_v62, %v3464_v25 }
 0x2ed   : > { %v3467_v34 = vrot.slane %v3466_v30, 1 }
 0x2ee   : > { %v5880_v63 = vpop.f32.mrf.mxu1  ;;  %v5065_v3 = vpop.f32.mrf.mxu2 }
 0x2ef   : > { %v5902_v47 = vadd.f32 %v5880_v63, %v5653_v37  ;;  %v5084_v43 = vadd.f32 %v5065_v3, %v9986_v53  ;;  %v3425_v53 = vrot.slane %v10110_v4, 4 }
 0x2f0   : > { %v5636_v55 = vpop.f32.mrf.mxu0 }
 0x2f1   : > { %v5917_v45 = vadd.f32 %v5916_v17, %v5902_v47  ;;  %v5940_v58 = vmul.f32 %v5902_v47, %v5902_v47  ;;  %v5278_v36 = vadd.f32 %v5259_v51, %v5084_v43  ;;  %v3426_v14 = vadd.f32 %v3425_v53, %v10110_v4 }
 0x2f3   : > { %v5955_v59 = vadd.f32 %v5954_v7, %v5940_v58  ;;  %v5655_v60 = vadd.f32 %v5636_v55, %v5278_v36  ;;  %v3427_v19 = vrot.slane %v3426_v14, 2  ;;  %v3468_v7 = vadd.f32 %v3467_v34, %v3466_v30 }
 0x2f5   : > { %v3428_v24 = vadd.f32 %v3427_v19, %v3426_v14 }
 0x2f6   : > { %v5882_v49 = vpop.f32.mrf.mxu1  ;;  %v5067_v28 = vpop.f32.mrf.mxu2 }
 0x2f7   : > { %v5903_v35 = vadd.f32 %v5882_v49, %v5654_v27  ;;  %v5085_v0 = vadd.f32 %v5067_v28, %v9993_v22  ;;  %v3429_v9 = vrot.slane %v3428_v24, 1 }
 0x2f8   : > { %v5638_v39 = vpop.f32.mrf.mxu0 }
 0x2f9   : > { %v5918_v15 = vadd.f32 %v5917_v45, %v5903_v35  ;;  %v5941_v26 = vmul.f32 %v5903_v35, %v5903_v35  ;;  %v7519_v20 = vpack.c.bf16 %v5903_v35, %v5902_v47  ;;  %v5279_v38 = vadd.f32 %v5261_v57, %v5085_v0 }
 0x2fa   : > { %v3430_v23 = vadd.f32 %v3429_v9, %v3428_v24 }
 0x2fb   : > { %v5956_v50 = vadd.f32 %v5955_v59, %v5941_v26  ;;  %7554 = vst [vmem:[%s9317_s28 + $0x70] sm:$0xff] %v7519_v20   ;;  %v5656_v48 = vadd.f32 %v5638_v39, %v5279_v38 }
 0x2fe   : > { %v5885_v61 = vpop.f32.mrf.mxu1 }
 0x2ff   : > { %v5904_v54 = vadd.f32 %v5885_v61, %v5655_v60 }
 0x301   : > { %v5919_v31 = vadd.f32 %v5918_v15, %v5904_v54  ;;  %v5942_v52 = vmul.f32 %v5904_v54, %v5904_v54 }
 0x303   : > { %v5957_v13 = vadd.f32 %v5956_v50, %v5942_v52 }
 0x306   : > { %v5887_v32 = vpop.f32.mrf.mxu1 }
 0x307   : > { %v5905_v22 = vadd.f32 %v5887_v32, %v5656_v48 }
 0x309   : > { %v5920_v33 = vadd.f32 %v5919_v31, %v5905_v22  ;;  %v5943_v41 = vmul.f32 %v5905_v22, %v5905_v22  ;;  %v7524_v2 = vpack.c.bf16 %v5905_v22, %v5904_v54 }
 0x30b   : > { %v5921_v11 = vrot.slane %v5920_v33, 4  ;;  %v5958_v8 = vadd.f32 %v5957_v13, %v5943_v41  ;;  %7555 = vst [vmem:[%s9317_s28 + $0x78] sm:$0xff] %v7524_v2  }
 0x30d   : > { %v5922_v56 = vadd.f32 %v5921_v11, %v5920_v33  ;;  %v5959_v42 = vrot.slane %v5958_v8, 4 }
 0x30f   : > { %v5923_v6 = vrot.slane %v5922_v56, 2  ;;  %v5960_v16 = vadd.f32 %v5959_v42, %v5958_v8 }
 0x311   : > { %v5924_v44 = vadd.f32 %v5923_v6, %v5922_v56  ;;  %v5961_v5 = vrot.slane %v5960_v16, 2 }
 0x313   : > { %v5925_v12 = vrot.slane %v5924_v44, 1  ;;  %v5962_v17 = vadd.f32 %v5961_v5, %v5960_v16 }
 0x315   : > { %v5926_v10 = vadd.f32 %v5925_v12, %v5924_v44  ;;  %v5963_v1 = vrot.slane %v5962_v17, 1 }
 0x317   : > { %v5927_v37 = vadd.f32 %v5926_v10, %v3430_v23  ;;  %v5964_v46 = vadd.f32 %v5963_v1, %v5962_v17 }
 0x319   : > { %v5965_v21 = vadd.f32 %v5964_v46, %v3468_v7 }
 0x31b   : > { %v6000_v63 = vsel %vm412_vm0, %v5927_v37, %v5965_v21 }
 0x31c   : > { %6001 = vst [vmem:[%s235_s12] sm:$0x3] %v6000_v63 }
 0x31d PF: > { %s16_s18 = sadd.s32 1, %s7621_s18  }
 0x31e   : > { %p13_p4 = scmp.ge.s32.totalorder %s16_s18, 4  }
 0x320   :  { %15 = sbr.rel (!%p13_p4) target bundleno = 1 (0x1), region = 93 }

</bundles_post_ra>
